<compile_context>
chip_gen: v7x
topology: tpu7x:2x2x1
jax: 0.10.0
libtpu: 0.0.40
codegen_flags: <defaults>
</compile_context>

<pallas_src>
import functools

import jax
import jax.numpy as jnp
from jax import lax
from jax.experimental import pallas as pl
from jax.experimental.pallas import tpu as pltpu

EPS = 1e-5   # PyTorch BatchNorm2d default eps
LANE = 128   # TPU lane width


def _round_up(x, m):
    return (x + m - 1) // m * m


def _preact_block_kernel(x_ref, g1_ref, b1_ref, w1_ref, g2_ref, b2_ref,
                         w2_ref, wsc_ref, out_ref, pad_ref, y1_ref,
                         *, n, h, w, cin_p, cout_p):
    wp = w + 2                       # spatially padded width
    wn = w * n                       # rows per spatial row-block (interior)
    r = n * h * w                    # real output rows
    rp = pad_ref.shape[0]            # (h+2)*(w+2)*n padded rows
    r_int = out_ref.shape[0]         # ((h-1)*wp + w)*n interior-span rows
    lo = (wp + 1) * n                # padded index of the first interior row
    cmax = pad_ref.shape[1]

    # ------------------------------------------------------------------
    # Zero ONLY the halo rows of the shared pad buffer, once; both convs
    # reuse them (interiors are overwritten per conv, halos never are).
    # ------------------------------------------------------------------
    pad_ref[0:lo, :] = jnp.zeros((lo, cmax), pad_ref.dtype)
    for g in range(h - 1):
        s = ((g + 1) * wp + 1 + w) * n
        pad_ref[s:s + 2 * n, :] = jnp.zeros((2 * n, cmax), pad_ref.dtype)
    tail = (h * wp + w + 1) * n
    pad_ref[tail:rp, :] = jnp.zeros((rp - tail, cmax), pad_ref.dtype)

    # ------------------------------------------------------------------
    # BN1 -> ReLU -> shared pad buffer (bf16).  scale/shift folding:
    # y = max(v*scale + shift, 0) (2 VPU ops/elem), re-reading v per block.
    # ------------------------------------------------------------------
    mean1 = jnp.mean(x_ref[...], axis=0, keepdims=True)
    var1 = jnp.mean(jnp.square(x_ref[...] - mean1), axis=0, keepdims=True)
    scale1 = g1_ref[...] * lax.rsqrt(var1 + EPS)
    shift1 = b1_ref[...] - mean1 * scale1
    sc1 = jnp.broadcast_to(scale1, (wn, cin_p))   # hoisted (no per-iter bcast)
    sh1 = jnp.broadcast_to(shift1, (wn, cin_p))
    for hh in range(h):
        a = jnp.maximum(x_ref[hh * wn:(hh + 1) * wn, :] * sc1 + sh1, 0.0)
        dst = ((hh + 1) * wp + 1) * n
        pad_ref[dst:dst + wn, 0:cin_p] = a.astype(pad_ref.dtype)

    # ------------------------------------------------------------------
    # 1x1 projection shortcut: center-tap slab @ wsc written directly into
    # the output accumulator (fused residual; no separate add pass later).
    # (Write-then-accumulate on out_ref is valid only because grid=(1,).)
    # ------------------------------------------------------------------
    out_ref[...] = jnp.dot(pad_ref[lo:lo + r_int, 0:cin_p], wsc_ref[...],
                           preferred_element_type=jnp.float32)

    # ------------------------------------------------------------------
    # conv1: 9 shifted contiguous slab dots accumulated into y1 (f32).
    # ------------------------------------------------------------------
    for kh in range(3):
        for kw in range(3):
            off = ((kh - 1) * wp + (kw - 1)) * n
            slab = pad_ref[lo + off:lo + off + r_int, 0:cin_p]
            t = kh * 3 + kw
            contrib = jnp.dot(slab, w1_ref[t * cin_p:(t + 1) * cin_p, :],
                              preferred_element_type=jnp.float32)
            if t == 0:
                y1_ref[...] = contrib
            else:
                y1_ref[...] += contrib

    # Zero the (h-1) inter-row-block garbage gaps of y1 so BN2 batch stats can
    # be taken over the whole slab and divided by the true element count r.
    for g in range(h - 1):
        s = g * wp * n + wn
        y1_ref[s:s + 2 * n, :] = jnp.zeros((2 * n, cout_p), jnp.float32)

    # ------------------------------------------------------------------
    # BN2 -> ReLU -> shared pad buffer (overwrites conv1's interiors; the
    # halo rows are still zero from the one-time zeroing above).
    # ------------------------------------------------------------------
    inv_r = 1.0 / r
    mean2 = jnp.sum(y1_ref[...], axis=0, keepdims=True) * inv_r
    dsq = jnp.sum(jnp.square(y1_ref[...] - mean2), axis=0, keepdims=True)
    # gap rows are exactly zero -> they contributed (r_int - r)*mean2^2; remove
    var2 = jnp.maximum((dsq - (r_int - r) * jnp.square(mean2)) * inv_r, 0.0)
    scale2 = g2_ref[...] * lax.rsqrt(var2 + EPS)
    shift2 = b2_ref[...] - mean2 * scale2
    sc2 = jnp.broadcast_to(scale2, (wn, cout_p))
    sh2 = jnp.broadcast_to(shift2, (wn, cout_p))
    for hh in range(h):
        src = hh * wp * n
        a = jnp.maximum(y1_ref[src:src + wn, :] * sc2 + sh2, 0.0)
        dst = ((hh + 1) * wp + 1) * n
        pad_ref[dst:dst + wn, 0:cout_p] = a.astype(pad_ref.dtype)

    # ------------------------------------------------------------------
    # conv2: 9 shifted slab dots accumulated on top of the shortcut result.
    # ------------------------------------------------------------------
    for kh in range(3):
        for kw in range(3):
            off = ((kh - 1) * wp + (kw - 1)) * n
            slab = pad_ref[lo + off:lo + off + r_int, 0:cout_p]
            t = kh * 3 + kw
            out_ref[...] += jnp.dot(slab, w2_ref[t * cout_p:(t + 1) * cout_p, :],
                                    preferred_element_type=jnp.float32)


def preact_block_pallas(x_nchw, params):
    n, c_in, h, w = x_nchw.shape
    c_out = params["w1"].shape[0]
    # bf16 pad buffer packs 16 rows per vreg: keep the +/-N row shifts aligned.
    assert n % 16 == 0, "batch must be a multiple of 16 (bf16 sublane packing)"
    wp = w + 2
    r = n * h * w
    rp = (h + 2) * wp * n
    r_int = ((h - 1) * wp + w) * n
    cin_p = _round_up(c_in, LANE)
    cout_p = _round_up(c_out, LANE)
    cmax = max(cin_p, cout_p)

    f32, bf16 = jnp.float32, jnp.bfloat16

    # ---- glue: layout conversion & weight re-packing (plain JAX/XLA) ----
    # NCHW -> (H, W, N, C) -> (R, C), pad channels to a multiple of 128 lanes.
    x2d = jnp.transpose(x_nchw, (2, 3, 0, 1)).reshape(r, c_in).astype(f32)
    x2d = jnp.pad(x2d, ((0, 0), (0, cin_p - c_in)))

    def pack_conv3x3(wt, ci, ci_p, co, co_p):
        # OIHW -> (kh, kw, I, O); zero-pad I/O to lane multiples; -> (9*Ip, Op)
        wt = jnp.transpose(wt, (2, 3, 1, 0))
        wt = jnp.pad(wt, ((0, 0), (0, 0), (0, ci_p - ci), (0, co_p - co)))
        return wt.reshape(9 * ci_p, co_p).astype(bf16)

    w1 = pack_conv3x3(params["w1"], c_in, cin_p, c_out, cout_p)
    w2 = pack_conv3x3(params["w2"], c_out, cout_p, c_out, cout_p)
    wsc = jnp.transpose(params["wsc"].reshape(c_out, c_in), (1, 0))
    wsc = jnp.pad(wsc, ((0, cin_p - c_in), (0, cout_p - c_out))).astype(bf16)

    def pad_vec(v, cp, fill):
        v2 = v.reshape(1, -1).astype(f32)
        return jnp.pad(v2, ((0, 0), (0, cp - v2.shape[1])),
                       constant_values=fill)

    g1 = pad_vec(params["g1"], cin_p, 1.0)
    b1 = pad_vec(params["b1"], cin_p, 0.0)
    g2 = pad_vec(params["g2"], cout_p, 1.0)
    b2 = pad_vec(params["b2"], cout_p, 0.0)

    kernel = functools.partial(_preact_block_kernel, n=n, h=h, w=w,
                               cin_p=cin_p, cout_p=cout_p)

    flops = 2 * r_int * (9 * cin_p * cout_p + 9 * cout_p * cout_p
                         + cin_p * cout_p)
    bytes_accessed = (x2d.size * 4 + (w1.size + w2.size + wsc.size) * 2
                      + (g1.size + b1.size + g2.size + b2.size) * 4
                      + r_int * cout_p * 4)

    # derive the VMEM request from the actual need (+ headroom) instead of a
    # fixed constant; cap well inside v7x's 64 MiB per-TC budget growth path.
    vmem_need = (rp * cmax * 2                 # shared pad scratch (bf16)
                 + r_int * cout_p * 4          # y1 accumulator (f32)
                 + 2 * r * cin_p * 4           # x block (double-buffered)
                 + 2 * r_int * cout_p * 4      # out block (double-buffered)
                 + 2 * (w1.size + w2.size + wsc.size) * 2
                 + 2 * (g1.size + b1.size + g2.size + b2.size) * 4)
    vmem_limit = int(min(2 * vmem_need + (16 << 20), 112 << 20))

    out2d = pl.pallas_call(
        kernel,
        out_shape=jax.ShapeDtypeStruct((r_int, cout_p), jnp.float32),
        grid=(1,),
        in_specs=[
            pl.BlockSpec((r, cin_p), lambda i: (0, 0)),            # x
            pl.BlockSpec((1, cin_p), lambda i: (0, 0)),            # g1
            pl.BlockSpec((1, cin_p), lambda i: (0, 0)),            # b1
            pl.BlockSpec((9 * cin_p, cout_p), lambda i: (0, 0)),   # w1 packed
            pl.BlockSpec((1, cout_p), lambda i: (0, 0)),           # g2
            pl.BlockSpec((1, cout_p), lambda i: (0, 0)),           # b2
            pl.BlockSpec((9 * cout_p, cout_p), lambda i: (0, 0)),  # w2 packed
            pl.BlockSpec((cin_p, cout_p), lambda i: (0, 0)),       # wsc
        ],
        out_specs=pl.BlockSpec((r_int, cout_p), lambda i: (0, 0)),
        scratch_shapes=[
            pltpu.VMEM((rp, cmax), jnp.bfloat16),      # shared pad (both convs)
            pltpu.VMEM((r_int, cout_p), jnp.float32),  # conv1 output accum
        ],
        compiler_params=pltpu.CompilerParams(
            dimension_semantics=("arbitrary",),
            vmem_limit_bytes=vmem_limit),
        cost_estimate=pl.CostEstimate(
            flops=flops,
            transcendentals=cin_p + cout_p,
            bytes_accessed=bytes_accessed),
    )(x2d, g1, b1, w1, g2, b2, w2, wsc)

    # interior-span rows -> dense (H, W, N, C) -> NCHW; the garbage gap rows
    # and padded channels are sliced away here (cheap XLA glue).
    outp = jnp.pad(out2d, ((0, h * wp * n - r_int), (0, 0)))
    out = outp.reshape(h, wp, n, cout_p)[:, :w, :, :c_out]
    return jnp.transpose(out, (2, 3, 0, 1))  # back to NCHW


# ---------------- pure-JAX reference (for correctness check) ----------------
def _bn_relu_ref(x, g, b):
    mean = jnp.mean(x, axis=(0, 2, 3), keepdims=True)
    var = jnp.mean((x - mean) ** 2, axis=(0, 2, 3), keepdims=True)
    y = (x - mean) / jnp.sqrt(var + EPS) * g.reshape(1, -1, 1, 1) \
        + b.reshape(1, -1, 1, 1)
    return jnp.maximum(y, 0.0)


def _conv_ref(x, w, padding):
    return lax.conv_general_dilated(
        x, w, window_strides=(1, 1), padding=padding,
        dimension_numbers=("NCHW", "OIHW", "NCHW"),
        precision=lax.Precision.HIGHEST)


def preact_block_ref(x, params):
    a1 = _bn_relu_ref(x, params["g1"], params["b1"])
    shortcut = _conv_ref(a1, params["wsc"], ((0, 0), (0, 0)))
    y1 = _conv_ref(a1, params["w1"], ((1, 1), (1, 1)))
    a2 = _bn_relu_ref(y1, params["g2"], params["b2"])
    y2 = _conv_ref(a2, params["w2"], ((1, 1), (1, 1)))
    return y2 + shortcut


if __name__ == "__main__":
    N, C_IN, C_OUT, H, W = 16, 4, 8, 8, 8   # in != out -> projection shortcut

    key = jax.random.PRNGKey(0)
    kx, k1, k2, k3, k4, k5, k6, k7 = jax.random.split(key, 8)
    x = jax.random.normal(kx, (N, C_IN, H, W), jnp.float32)
    params = {
        "g1": 1.0 + 0.1 * jax.random.normal(k1, (C_IN,), jnp.float32),
        "b1": 0.1 * jax.random.normal(k2, (C_IN,), jnp.float32),
        "w1": 0.2 * jax.random.normal(k3, (C_OUT, C_IN, 3, 3), jnp.float32),
        "g2": 1.0 + 0.1 * jax.random.normal(k4, (C_OUT,), jnp.float32),
        "b2": 0.1 * jax.random.normal(k5, (C_OUT,), jnp.float32),
        "w2": 0.2 * jax.random.normal(k6, (C_OUT, C_OUT, 3, 3), jnp.float32),
        "wsc": 0.2 * jax.random.normal(k7, (C_OUT, C_IN, 1, 1), jnp.float32),
    }

    out = jax.jit(preact_block_pallas)(x, params)
    out = jax.block_until_ready(out)

    ref = preact_block_ref(x, params)
    err_max = float(jnp.max(jnp.abs(out - ref)))
    err_mean = float(jnp.mean(jnp.abs(out - ref)))
    assert out.shape == (N, C_OUT, H, W), out.shape
    # tolerance sized for bf16 MXU operands (f32 accumulation)
    assert err_max < 1e-1 and err_mean < 2e-2, (err_max, err_mean)
    print("KERNEL_OK")
</pallas_src>

<mosaic_0001>
module attributes {stable_mosaic.version = 11 : i64} {
  func.func @_preact_block_kernel(%arg0: i32, %arg1: memref<1024x128xf32, #tpu.memory_space<vmem>>, %arg2: memref<1x128xf32, #tpu.memory_space<vmem>>, %arg3: memref<1x128xf32, #tpu.memory_space<vmem>>, %arg4: memref<1152x128xbf16, #tpu.memory_space<vmem>>, %arg5: memref<1x128xf32, #tpu.memory_space<vmem>>, %arg6: memref<1x128xf32, #tpu.memory_space<vmem>>, %arg7: memref<1152x128xbf16, #tpu.memory_space<vmem>>, %arg8: memref<128x128xbf16, #tpu.memory_space<vmem>>, %arg9: memref<1248x128xf32, #tpu.memory_space<vmem>>, %arg10: memref<1600x128xbf16, #tpu.memory_space<vmem>>, %arg11: memref<1248x128xf32, #tpu.memory_space<vmem>>) attributes {dimension_semantics = [#tpu.dimension_semantics<arbitrary>], iteration_bounds = array<i64: 1>, scalar_prefetch = 0 : i64, scratch_operands = 2 : i64, tpu.core_type = #tpu.core_type<tc>, window_params = [{pipeline_mode = #tpu.pipeline_mode<synchronous>, transform_indices = @transform_0, window_bounds = array<i64: 1024, 128>}, {pipeline_mode = #tpu.pipeline_mode<synchronous>, transform_indices = @transform_1, window_bounds = array<i64: 1, 128>}, {pipeline_mode = #tpu.pipeline_mode<synchronous>, transform_indices = @transform_2, window_bounds = array<i64: 1, 128>}, {pipeline_mode = #tpu.pipeline_mode<synchronous>, transform_indices = @transform_3, window_bounds = array<i64: 1152, 128>}, {pipeline_mode = #tpu.pipeline_mode<synchronous>, transform_indices = @transform_4, window_bounds = array<i64: 1, 128>}, {pipeline_mode = #tpu.pipeline_mode<synchronous>, transform_indices = @transform_5, window_bounds = array<i64: 1, 128>}, {pipeline_mode = #tpu.pipeline_mode<synchronous>, transform_indices = @transform_6, window_bounds = array<i64: 1152, 128>}, {pipeline_mode = #tpu.pipeline_mode<synchronous>, transform_indices = @transform_7, window_bounds = array<i64: 128, 128>}, {pipeline_mode = #tpu.pipeline_mode<synchronous>, transform_indices = @transform_8, window_bounds = array<i64: 1248, 128>}]} {
    %cst = arith.constant 0.000000e+00 : bf16
    %0 = vector.broadcast %cst : bf16 to vector<176x128xbf16>
    %c0 = arith.constant 0 : index
    %c0_0 = arith.constant 0 : index
    %1 = vector.load %arg10[%c0, %c0_0] : memref<1600x128xbf16, #tpu.memory_space<vmem>>, vector<176x128xbf16>
    tpu.vector_store %arg10[%c0, %c0_0], %0 {strides = array<i32>} : memref<1600x128xbf16, #tpu.memory_space<vmem>>, vector<176x128xbf16>,
    %cst_1 = arith.constant 0.000000e+00 : bf16
    %2 = vector.broadcast %cst_1 : bf16 to vector<32x128xbf16>
    %c304 = arith.constant 304 : index
    %c0_2 = arith.constant 0 : index
    %3 = vector.load %arg10[%c304, %c0_2] : memref<1600x128xbf16, #tpu.memory_space<vmem>>, vector<32x128xbf16>
    tpu.vector_store %arg10[%c304, %c0_2], %2 {strides = array<i32>} : memref<1600x128xbf16, #tpu.memory_space<vmem>>, vector<32x128xbf16>,
    %cst_3 = arith.constant 0.000000e+00 : bf16
    %4 = vector.broadcast %cst_3 : bf16 to vector<32x128xbf16>
    %c464 = arith.constant 464 : index
    %c0_4 = arith.constant 0 : index
    %5 = vector.load %arg10[%c464, %c0_4] : memref<1600x128xbf16, #tpu.memory_space<vmem>>, vector<32x128xbf16>
    tpu.vector_store %arg10[%c464, %c0_4], %4 {strides = array<i32>} : memref<1600x128xbf16, #tpu.memory_space<vmem>>, vector<32x128xbf16>,
    %cst_5 = arith.constant 0.000000e+00 : bf16
    %6 = vector.broadcast %cst_5 : bf16 to vector<32x128xbf16>
    %c624 = arith.constant 624 : index
    %c0_6 = arith.constant 0 : index
    %7 = vector.load %arg10[%c624, %c0_6] : memref<1600x128xbf16, #tpu.memory_space<vmem>>, vector<32x128xbf16>
    tpu.vector_store %arg10[%c624, %c0_6], %6 {strides = array<i32>} : memref<1600x128xbf16, #tpu.memory_space<vmem>>, vector<32x128xbf16>,
    %cst_7 = arith.constant 0.000000e+00 : bf16
    %8 = vector.broadcast %cst_7 : bf16 to vector<32x128xbf16>
    %c784 = arith.constant 784 : index
    %c0_8 = arith.constant 0 : index
    %9 = vector.load %arg10[%c784, %c0_8] : memref<1600x128xbf16, #tpu.memory_space<vmem>>, vector<32x128xbf16>
    tpu.vector_store %arg10[%c784, %c0_8], %8 {strides = array<i32>} : memref<1600x128xbf16, #tpu.memory_space<vmem>>, vector<32x128xbf16>,
    %cst_9 = arith.constant 0.000000e+00 : bf16
    %10 = vector.broadcast %cst_9 : bf16 to vector<32x128xbf16>
    %c944 = arith.constant 944 : index
    %c0_10 = arith.constant 0 : index
    %11 = vector.load %arg10[%c944, %c0_10] : memref<1600x128xbf16, #tpu.memory_space<vmem>>, vector<32x128xbf16>
    tpu.vector_store %arg10[%c944, %c0_10], %10 {strides = array<i32>} : memref<1600x128xbf16, #tpu.memory_space<vmem>>, vector<32x128xbf16>,
    %cst_11 = arith.constant 0.000000e+00 : bf16
    %12 = vector.broadcast %cst_11 : bf16 to vector<32x128xbf16>
    %c1104 = arith.constant 1104 : index
    %c0_12 = arith.constant 0 : index
    %13 = vector.load %arg10[%c1104, %c0_12] : memref<1600x128xbf16, #tpu.memory_space<vmem>>, vector<32x128xbf16>
    tpu.vector_store %arg10[%c1104, %c0_12], %12 {strides = array<i32>} : memref<1600x128xbf16, #tpu.memory_space<vmem>>, vector<32x128xbf16>,
    %cst_13 = arith.constant 0.000000e+00 : bf16
    %14 = vector.broadcast %cst_13 : bf16 to vector<32x128xbf16>
    %c1264 = arith.constant 1264 : index
    %c0_14 = arith.constant 0 : index
    %15 = vector.load %arg10[%c1264, %c0_14] : memref<1600x128xbf16, #tpu.memory_space<vmem>>, vector<32x128xbf16>
    tpu.vector_store %arg10[%c1264, %c0_14], %14 {strides = array<i32>} : memref<1600x128xbf16, #tpu.memory_space<vmem>>, vector<32x128xbf16>,
    %cst_15 = arith.constant 0.000000e+00 : bf16
    %16 = vector.broadcast %cst_15 : bf16 to vector<176x128xbf16>
    %c1424 = arith.constant 1424 : index
    %c0_16 = arith.constant 0 : index
    %17 = vector.load %arg10[%c1424, %c0_16] : memref<1600x128xbf16, #tpu.memory_space<vmem>>, vector<176x128xbf16>
    tpu.vector_store %arg10[%c1424, %c0_16], %16 {strides = array<i32>} : memref<1600x128xbf16, #tpu.memory_space<vmem>>, vector<176x128xbf16>,
    %c0_17 = arith.constant 0 : index
    %c0_18 = arith.constant 0 : index
    %18 = vector.load %arg1[%c0_17, %c0_18] : memref<1024x128xf32, #tpu.memory_space<vmem>>, vector<1024x128xf32>
    %cst_19 = arith.constant dense<0.000000e+00> : vector<128xf32>
    %19 = vector.multi_reduction <add>, %18, %cst_19 [0] : vector<1024x128xf32> to vector<128xf32>
    %20 = vector.shape_cast %19 : vector<128xf32> to vector<1x128xf32>
    %cst_20 = arith.constant 1.024000e+03 : f32
    %21 = vector.broadcast %cst_20 : f32 to vector<1x128xf32>
    %22 = arith.divf %20, %21 : vector<1x128xf32>
    %c0_21 = arith.constant 0 : index
    %c0_22 = arith.constant 0 : index
    %23 = vector.load %arg1[%c0_21, %c0_22] : memref<1024x128xf32, #tpu.memory_space<vmem>>, vector<1024x128xf32>
    %24 = vector.broadcast %22 : vector<1x128xf32> to vector<1024x128xf32>
    %25 = arith.subf %23, %24 : vector<1024x128xf32>
    %26 = arith.mulf %25, %25 : vector<1024x128xf32>
    %cst_23 = arith.constant dense<0.000000e+00> : vector<128xf32>
    %27 = vector.multi_reduction <add>, %26, %cst_23 [0] : vector<1024x128xf32> to vector<128xf32>
    %28 = vector.shape_cast %27 : vector<128xf32> to vector<1x128xf32>
    %cst_24 = arith.constant 1.024000e+03 : f32
    %29 = vector.broadcast %cst_24 : f32 to vector<1x128xf32>
    %30 = arith.divf %28, %29 : vector<1x128xf32>
    %c0_25 = arith.constant 0 : index
    %c0_26 = arith.constant 0 : index
    %31 = vector.load %arg2[%c0_25, %c0_26] : memref<1x128xf32, #tpu.memory_space<vmem>>, vector<1x128xf32>
    %cst_27 = arith.constant 9.99999974E-6 : f32
    %32 = vector.broadcast %cst_27 : f32 to vector<1x128xf32>
    %33 = arith.addf %30, %32 : vector<1x128xf32>
    %34 = math.rsqrt %33 : vector<1x128xf32>
    %35 = arith.mulf %31, %34 : vector<1x128xf32>
    %c0_28 = arith.constant 0 : index
    %c0_29 = arith.constant 0 : index
    %36 = vector.load %arg3[%c0_28, %c0_29] : memref<1x128xf32, #tpu.memory_space<vmem>>, vector<1x128xf32>
    %37 = arith.mulf %22, %35 : vector<1x128xf32>
    %38 = arith.subf %36, %37 : vector<1x128xf32>
    %39 = vector.shape_cast %35 : vector<1x128xf32> to vector<1x128xf32>
    %40 = vector.broadcast %39 : vector<1x128xf32> to vector<128x128xf32>
    %41 = vector.shape_cast %38 : vector<1x128xf32> to vector<1x128xf32>
    %42 = vector.broadcast %41 : vector<1x128xf32> to vector<128x128xf32>
    %c0_30 = arith.constant 0 : index
    %c0_31 = arith.constant 0 : index
    %43 = vector.load %arg1[%c0_30, %c0_31] : memref<1024x128xf32, #tpu.memory_space<vmem>>, vector<128x128xf32>
    %44 = arith.mulf %43, %40 : vector<128x128xf32>
    %45 = arith.addf %44, %42 : vector<128x128xf32>
    %cst_32 = arith.constant 0.000000e+00 : f32
    %46 = vector.broadcast %cst_32 : f32 to vector<128x128xf32>
    %47 = arith.maximumf %45, %46 : vector<128x128xf32>
    %48 = arith.truncf %47 : vector<128x128xf32> to vector<128x128xbf16>
    %c176 = arith.constant 176 : index
    %c0_33 = arith.constant 0 : index
    %49 = vector.load %arg10[%c176, %c0_33] : memref<1600x128xbf16, #tpu.memory_space<vmem>>, vector<128x128xbf16>
    tpu.vector_store %arg10[%c176, %c0_33], %48 {strides = array<i32>} : memref<1600x128xbf16, #tpu.memory_space<vmem>>, vector<128x128xbf16>,
    %c128 = arith.constant 128 : index
    %c0_34 = arith.constant 0 : index
    %50 = vector.load %arg1[%c128, %c0_34] : memref<1024x128xf32, #tpu.memory_space<vmem>>, vector<128x128xf32>
    %51 = arith.mulf %50, %40 : vector<128x128xf32>
    %52 = arith.addf %51, %42 : vector<128x128xf32>
    %cst_35 = arith.constant 0.000000e+00 : f32
    %53 = vector.broadcast %cst_35 : f32 to vector<128x128xf32>
    %54 = arith.maximumf %52, %53 : vector<128x128xf32>
    %55 = arith.truncf %54 : vector<128x128xf32> to vector<128x128xbf16>
    %c336 = arith.constant 336 : index
    %c0_36 = arith.constant 0 : index
    %56 = vector.load %arg10[%c336, %c0_36] : memref<1600x128xbf16, #tpu.memory_space<vmem>>, vector<128x128xbf16>
    tpu.vector_store %arg10[%c336, %c0_36], %55 {strides = array<i32>} : memref<1600x128xbf16, #tpu.memory_space<vmem>>, vector<128x128xbf16>,
    %c256 = arith.constant 256 : index
    %c0_37 = arith.constant 0 : index
    %57 = vector.load %arg1[%c256, %c0_37] : memref<1024x128xf32, #tpu.memory_space<vmem>>, vector<128x128xf32>
    %58 = arith.mulf %57, %40 : vector<128x128xf32>
    %59 = arith.addf %58, %42 : vector<128x128xf32>
    %cst_38 = arith.constant 0.000000e+00 : f32
    %60 = vector.broadcast %cst_38 : f32 to vector<128x128xf32>
    %61 = arith.maximumf %59, %60 : vector<128x128xf32>
    %62 = arith.truncf %61 : vector<128x128xf32> to vector<128x128xbf16>
    %c496 = arith.constant 496 : index
    %c0_39 = arith.constant 0 : index
    %63 = vector.load %arg10[%c496, %c0_39] : memref<1600x128xbf16, #tpu.memory_space<vmem>>, vector<128x128xbf16>
    tpu.vector_store %arg10[%c496, %c0_39], %62 {strides = array<i32>} : memref<1600x128xbf16, #tpu.memory_space<vmem>>, vector<128x128xbf16>,
    %c384 = arith.constant 384 : index
    %c0_40 = arith.constant 0 : index
    %64 = vector.load %arg1[%c384, %c0_40] : memref<1024x128xf32, #tpu.memory_space<vmem>>, vector<128x128xf32>
    %65 = arith.mulf %64, %40 : vector<128x128xf32>
    %66 = arith.addf %65, %42 : vector<128x128xf32>
    %cst_41 = arith.constant 0.000000e+00 : f32
    %67 = vector.broadcast %cst_41 : f32 to vector<128x128xf32>
    %68 = arith.maximumf %66, %67 : vector<128x128xf32>
    %69 = arith.truncf %68 : vector<128x128xf32> to vector<128x128xbf16>
    %c656 = arith.constant 656 : index
    %c0_42 = arith.constant 0 : index
    %70 = vector.load %arg10[%c656, %c0_42] : memref<1600x128xbf16, #tpu.memory_space<vmem>>, vector<128x128xbf16>
    tpu.vector_store %arg10[%c656, %c0_42], %69 {strides = array<i32>} : memref<1600x128xbf16, #tpu.memory_space<vmem>>, vector<128x128xbf16>,
    %c512 = arith.constant 512 : index
    %c0_43 = arith.constant 0 : index
    %71 = vector.load %arg1[%c512, %c0_43] : memref<1024x128xf32, #tpu.memory_space<vmem>>, vector<128x128xf32>
    %72 = arith.mulf %71, %40 : vector<128x128xf32>
    %73 = arith.addf %72, %42 : vector<128x128xf32>
    %cst_44 = arith.constant 0.000000e+00 : f32
    %74 = vector.broadcast %cst_44 : f32 to vector<128x128xf32>
    %75 = arith.maximumf %73, %74 : vector<128x128xf32>
    %76 = arith.truncf %75 : vector<128x128xf32> to vector<128x128xbf16>
    %c816 = arith.constant 816 : index
    %c0_45 = arith.constant 0 : index
    %77 = vector.load %arg10[%c816, %c0_45] : memref<1600x128xbf16, #tpu.memory_space<vmem>>, vector<128x128xbf16>
    tpu.vector_store %arg10[%c816, %c0_45], %76 {strides = array<i32>} : memref<1600x128xbf16, #tpu.memory_space<vmem>>, vector<128x128xbf16>,
    %c640 = arith.constant 640 : index
    %c0_46 = arith.constant 0 : index
    %78 = vector.load %arg1[%c640, %c0_46] : memref<1024x128xf32, #tpu.memory_space<vmem>>, vector<128x128xf32>
    %79 = arith.mulf %78, %40 : vector<128x128xf32>
    %80 = arith.addf %79, %42 : vector<128x128xf32>
    %cst_47 = arith.constant 0.000000e+00 : f32
    %81 = vector.broadcast %cst_47 : f32 to vector<128x128xf32>
    %82 = arith.maximumf %80, %81 : vector<128x128xf32>
    %83 = arith.truncf %82 : vector<128x128xf32> to vector<128x128xbf16>
    %c976 = arith.constant 976 : index
    %c0_48 = arith.constant 0 : index
    %84 = vector.load %arg10[%c976, %c0_48] : memref<1600x128xbf16, #tpu.memory_space<vmem>>, vector<128x128xbf16>
    tpu.vector_store %arg10[%c976, %c0_48], %83 {strides = array<i32>} : memref<1600x128xbf16, #tpu.memory_space<vmem>>, vector<128x128xbf16>,
    %c768 = arith.constant 768 : index
    %c0_49 = arith.constant 0 : index
    %85 = vector.load %arg1[%c768, %c0_49] : memref<1024x128xf32, #tpu.memory_space<vmem>>, vector<128x128xf32>
    %86 = arith.mulf %85, %40 : vector<128x128xf32>
    %87 = arith.addf %86, %42 : vector<128x128xf32>
    %cst_50 = arith.constant 0.000000e+00 : f32
    %88 = vector.broadcast %cst_50 : f32 to vector<128x128xf32>
    %89 = arith.maximumf %87, %88 : vector<128x128xf32>
    %90 = arith.truncf %89 : vector<128x128xf32> to vector<128x128xbf16>
    %c1136 = arith.constant 1136 : index
    %c0_51 = arith.constant 0 : index
    %91 = vector.load %arg10[%c1136, %c0_51] : memref<1600x128xbf16, #tpu.memory_space<vmem>>, vector<128x128xbf16>
    tpu.vector_store %arg10[%c1136, %c0_51], %90 {strides = array<i32>} : memref<1600x128xbf16, #tpu.memory_space<vmem>>, vector<128x128xbf16>,
    %c896 = arith.constant 896 : index
    %c0_52 = arith.constant 0 : index
    %92 = vector.load %arg1[%c896, %c0_52] : memref<1024x128xf32, #tpu.memory_space<vmem>>, vector<128x128xf32>
    %93 = arith.mulf %92, %40 : vector<128x128xf32>
    %94 = arith.addf %93, %42 : vector<128x128xf32>
    %cst_53 = arith.constant 0.000000e+00 : f32
    %95 = vector.broadcast %cst_53 : f32 to vector<128x128xf32>
    %96 = arith.maximumf %94, %95 : vector<128x128xf32>
    %97 = arith.truncf %96 : vector<128x128xf32> to vector<128x128xbf16>
    %c1296 = arith.constant 1296 : index
    %c0_54 = arith.constant 0 : index
    %98 = vector.load %arg10[%c1296, %c0_54] : memref<1600x128xbf16, #tpu.memory_space<vmem>>, vector<128x128xbf16>
    tpu.vector_store %arg10[%c1296, %c0_54], %97 {strides = array<i32>} : memref<1600x128xbf16, #tpu.memory_space<vmem>>, vector<128x128xbf16>,
    %c176_55 = arith.constant 176 : index
    %c0_56 = arith.constant 0 : index
    %99 = vector.load %arg10[%c176_55, %c0_56] : memref<1600x128xbf16, #tpu.memory_space<vmem>>, vector<1248x128xbf16>
    %c0_57 = arith.constant 0 : index
    %c0_58 = arith.constant 0 : index
    %100 = vector.load %arg8[%c0_57, %c0_58] : memref<128x128xbf16, #tpu.memory_space<vmem>>, vector<128x128xbf16>
    %cst_59 = arith.constant dense<0.000000e+00> : vector<1248x128xf32>
    %101 = tpu.matmul %99, %100, %cst_59 {dimension_numbers = #tpu.dot_dimension_numbers<[1], [0], [0], [1], [0, 0, 1, 1], [], []>} : vector<1248x128xbf16>, vector<128x128xbf16>, vector<1248x128xf32> -> vector<1248x128xf32>
    %c0_60 = arith.constant 0 : index
    %c0_61 = arith.constant 0 : index
    %102 = vector.load %arg9[%c0_60, %c0_61] : memref<1248x128xf32, #tpu.memory_space<vmem>>, vector<1248x128xf32>
    tpu.vector_store %arg9[%c0_60, %c0_61], %101 {strides = array<i32>} : memref<1248x128xf32, #tpu.memory_space<vmem>>, vector<1248x128xf32>,
    %c0_62 = arith.constant 0 : index
    %c0_63 = arith.constant 0 : index
    %103 = vector.load %arg10[%c0_62, %c0_63] : memref<1600x128xbf16, #tpu.memory_space<vmem>>, vector<1248x128xbf16>
    %c0_64 = arith.constant 0 : index
    %c0_65 = arith.constant 0 : index
    %104 = vector.load %arg4[%c0_64, %c0_65] : memref<1152x128xbf16, #tpu.memory_space<vmem>>, vector<128x128xbf16>
    %cst_66 = arith.constant dense<0.000000e+00> : vector<1248x128xf32>
    %105 = tpu.matmul %103, %104, %cst_66 {dimension_numbers = #tpu.dot_dimension_numbers<[1], [0], [0], [1], [0, 0, 1, 1], [], []>} : vector<1248x128xbf16>, vector<128x128xbf16>, vector<1248x128xf32> -> vector<1248x128xf32>
    %c0_67 = arith.constant 0 : index
    %c0_68 = arith.constant 0 : index
    %106 = vector.load %arg11[%c0_67, %c0_68] : memref<1248x128xf32, #tpu.memory_space<vmem>>, vector<1248x128xf32>
    tpu.vector_store %arg11[%c0_67, %c0_68], %105 {strides = array<i32>} : memref<1248x128xf32, #tpu.memory_space<vmem>>, vector<1248x128xf32>,
    %c16 = arith.constant 16 : index
    %c0_69 = arith.constant 0 : index
    %107 = vector.load %arg10[%c16, %c0_69] : memref<1600x128xbf16, #tpu.memory_space<vmem>>, vector<1248x128xbf16>
    %c128_70 = arith.constant 128 : index
    %c0_71 = arith.constant 0 : index
    %108 = vector.load %arg4[%c128_70, %c0_71] : memref<1152x128xbf16, #tpu.memory_space<vmem>>, vector<128x128xbf16>
    %cst_72 = arith.constant dense<0.000000e+00> : vector<1248x128xf32>
    %109 = tpu.matmul %107, %108, %cst_72 {dimension_numbers = #tpu.dot_dimension_numbers<[1], [0], [0], [1], [0, 0, 1, 1], [], []>} : vector<1248x128xbf16>, vector<128x128xbf16>, vector<1248x128xf32> -> vector<1248x128xf32>
    %c0_73 = arith.constant 0 : index
    %c0_74 = arith.constant 0 : index
    %110 = vector.load %arg11[%c0_73, %c0_74] : memref<1248x128xf32, #tpu.memory_space<vmem>>, vector<1248x128xf32>
    %111 = arith.addf %110, %109 : vector<1248x128xf32>
    %c0_75 = arith.constant 0 : index
    %c0_76 = arith.constant 0 : index
    %112 = vector.load %arg11[%c0_75, %c0_76] : memref<1248x128xf32, #tpu.memory_space<vmem>>, vector<1248x128xf32>
    tpu.vector_store %arg11[%c0_75, %c0_76], %111 {strides = array<i32>} : memref<1248x128xf32, #tpu.memory_space<vmem>>, vector<1248x128xf32>,
    %c32 = arith.constant 32 : index
    %c0_77 = arith.constant 0 : index
    %113 = vector.load %arg10[%c32, %c0_77] : memref<1600x128xbf16, #tpu.memory_space<vmem>>, vector<1248x128xbf16>
    %c256_78 = arith.constant 256 : index
    %c0_79 = arith.constant 0 : index
    %114 = vector.load %arg4[%c256_78, %c0_79] : memref<1152x128xbf16, #tpu.memory_space<vmem>>, vector<128x128xbf16>
    %cst_80 = arith.constant dense<0.000000e+00> : vector<1248x128xf32>
    %115 = tpu.matmul %113, %114, %cst_80 {dimension_numbers = #tpu.dot_dimension_numbers<[1], [0], [0], [1], [0, 0, 1, 1], [], []>} : vector<1248x128xbf16>, vector<128x128xbf16>, vector<1248x128xf32> -> vector<1248x128xf32>
    %c0_81 = arith.constant 0 : index
    %c0_82 = arith.constant 0 : index
    %116 = vector.load %arg11[%c0_81, %c0_82] : memref<1248x128xf32, #tpu.memory_space<vmem>>, vector<1248x128xf32>
    %117 = arith.addf %116, %115 : vector<1248x128xf32>
    %c0_83 = arith.constant 0 : index
    %c0_84 = arith.constant 0 : index
    %118 = vector.load %arg11[%c0_83, %c0_84] : memref<1248x128xf32, #tpu.memory_space<vmem>>, vector<1248x128xf32>
    tpu.vector_store %arg11[%c0_83, %c0_84], %117 {strides = array<i32>} : memref<1248x128xf32, #tpu.memory_space<vmem>>, vector<1248x128xf32>,
    %c160 = arith.constant 160 : index
    %c0_85 = arith.constant 0 : index
    %119 = vector.load %arg10[%c160, %c0_85] : memref<1600x128xbf16, #tpu.memory_space<vmem>>, vector<1248x128xbf16>
    %c384_86 = arith.constant 384 : index
    %c0_87 = arith.constant 0 : index
    %120 = vector.load %arg4[%c384_86, %c0_87] : memref<1152x128xbf16, #tpu.memory_space<vmem>>, vector<128x128xbf16>
    %cst_88 = arith.constant dense<0.000000e+00> : vector<1248x128xf32>
    %121 = tpu.matmul %119, %120, %cst_88 {dimension_numbers = #tpu.dot_dimension_numbers<[1], [0], [0], [1], [0, 0, 1, 1], [], []>} : vector<1248x128xbf16>, vector<128x128xbf16>, vector<1248x128xf32> -> vector<1248x128xf32>
    %c0_89 = arith.constant 0 : index
    %c0_90 = arith.constant 0 : index
    %122 = vector.load %arg11[%c0_89, %c0_90] : memref<1248x128xf32, #tpu.memory_space<vmem>>, vector<1248x128xf32>
    %123 = arith.addf %122, %121 : vector<1248x128xf32>
    %c0_91 = arith.constant 0 : index
    %c0_92 = arith.constant 0 : index
    %124 = vector.load %arg11[%c0_91, %c0_92] : memref<1248x128xf32, #tpu.memory_space<vmem>>, vector<1248x128xf32>
    tpu.vector_store %arg11[%c0_91, %c0_92], %123 {strides = array<i32>} : memref<1248x128xf32, #tpu.memory_space<vmem>>, vector<1248x128xf32>,
    %c176_93 = arith.constant 176 : index
    %c0_94 = arith.constant 0 : index
    %125 = vector.load %arg10[%c176_93, %c0_94] : memref<1600x128xbf16, #tpu.memory_space<vmem>>, vector<1248x128xbf16>
    %c512_95 = arith.constant 512 : index
    %c0_96 = arith.constant 0 : index
    %126 = vector.load %arg4[%c512_95, %c0_96] : memref<1152x128xbf16, #tpu.memory_space<vmem>>, vector<128x128xbf16>
    %cst_97 = arith.constant dense<0.000000e+00> : vector<1248x128xf32>
    %127 = tpu.matmul %125, %126, %cst_97 {dimension_numbers = #tpu.dot_dimension_numbers<[1], [0], [0], [1], [0, 0, 1, 1], [], []>} : vector<1248x128xbf16>, vector<128x128xbf16>, vector<1248x128xf32> -> vector<1248x128xf32>
    %c0_98 = arith.constant 0 : index
    %c0_99 = arith.constant 0 : index
    %128 = vector.load %arg11[%c0_98, %c0_99] : memref<1248x128xf32, #tpu.memory_space<vmem>>, vector<1248x128xf32>
    %129 = arith.addf %128, %127 : vector<1248x128xf32>
    %c0_100 = arith.constant 0 : index
    %c0_101 = arith.constant 0 : index
    %130 = vector.load %arg11[%c0_100, %c0_101] : memref<1248x128xf32, #tpu.memory_space<vmem>>, vector<1248x128xf32>
    tpu.vector_store %arg11[%c0_100, %c0_101], %129 {strides = array<i32>} : memref<1248x128xf32, #tpu.memory_space<vmem>>, vector<1248x128xf32>,
    %c192 = arith.constant 192 : index
    %c0_102 = arith.constant 0 : index
    %131 = vector.load %arg10[%c192, %c0_102] : memref<1600x128xbf16, #tpu.memory_space<vmem>>, vector<1248x128xbf16>
    %c640_103 = arith.constant 640 : index
    %c0_104 = arith.constant 0 : index
    %132 = vector.load %arg4[%c640_103, %c0_104] : memref<1152x128xbf16, #tpu.memory_space<vmem>>, vector<128x128xbf16>
    %cst_105 = arith.constant dense<0.000000e+00> : vector<1248x128xf32>
    %133 = tpu.matmul %131, %132, %cst_105 {dimension_numbers = #tpu.dot_dimension_numbers<[1], [0], [0], [1], [0, 0, 1, 1], [], []>} : vector<1248x128xbf16>, vector<128x128xbf16>, vector<1248x128xf32> -> vector<1248x128xf32>
    %c0_106 = arith.constant 0 : index
    %c0_107 = arith.constant 0 : index
    %134 = vector.load %arg11[%c0_106, %c0_107] : memref<1248x128xf32, #tpu.memory_space<vmem>>, vector<1248x128xf32>
    %135 = arith.addf %134, %133 : vector<1248x128xf32>
    %c0_108 = arith.constant 0 : index
    %c0_109 = arith.constant 0 : index
    %136 = vector.load %arg11[%c0_108, %c0_109] : memref<1248x128xf32, #tpu.memory_space<vmem>>, vector<1248x128xf32>
    tpu.vector_store %arg11[%c0_108, %c0_109], %135 {strides = array<i32>} : memref<1248x128xf32, #tpu.memory_space<vmem>>, vector<1248x128xf32>,
    %c320 = arith.constant 320 : index
    %c0_110 = arith.constant 0 : index
    %137 = vector.load %arg10[%c320, %c0_110] : memref<1600x128xbf16, #tpu.memory_space<vmem>>, vector<1248x128xbf16>
    %c768_111 = arith.constant 768 : index
    %c0_112 = arith.constant 0 : index
    %138 = vector.load %arg4[%c768_111, %c0_112] : memref<1152x128xbf16, #tpu.memory_space<vmem>>, vector<128x128xbf16>
    %cst_113 = arith.constant dense<0.000000e+00> : vector<1248x128xf32>
    %139 = tpu.matmul %137, %138, %cst_113 {dimension_numbers = #tpu.dot_dimension_numbers<[1], [0], [0], [1], [0, 0, 1, 1], [], []>} : vector<1248x128xbf16>, vector<128x128xbf16>, vector<1248x128xf32> -> vector<1248x128xf32>
    %c0_114 = arith.constant 0 : index
    %c0_115 = arith.constant 0 : index
    %140 = vector.load %arg11[%c0_114, %c0_115] : memref<1248x128xf32, #tpu.memory_space<vmem>>, vector<1248x128xf32>
    %141 = arith.addf %140, %139 : vector<1248x128xf32>
    %c0_116 = arith.constant 0 : index
    %c0_117 = arith.constant 0 : index
    %142 = vector.load %arg11[%c0_116, %c0_117] : memref<1248x128xf32, #tpu.memory_space<vmem>>, vector<1248x128xf32>
    tpu.vector_store %arg11[%c0_116, %c0_117], %141 {strides = array<i32>} : memref<1248x128xf32, #tpu.memory_space<vmem>>, vector<1248x128xf32>,
    %c336_118 = arith.constant 336 : index
    %c0_119 = arith.constant 0 : index
    %143 = vector.load %arg10[%c336_118, %c0_119] : memref<1600x128xbf16, #tpu.memory_space<vmem>>, vector<1248x128xbf16>
    %c896_120 = arith.constant 896 : index
    %c0_121 = arith.constant 0 : index
    %144 = vector.load %arg4[%c896_120, %c0_121] : memref<1152x128xbf16, #tpu.memory_space<vmem>>, vector<128x128xbf16>
    %cst_122 = arith.constant dense<0.000000e+00> : vector<1248x128xf32>
    %145 = tpu.matmul %143, %144, %cst_122 {dimension_numbers = #tpu.dot_dimension_numbers<[1], [0], [0], [1], [0, 0, 1, 1], [], []>} : vector<1248x128xbf16>, vector<128x128xbf16>, vector<1248x128xf32> -> vector<1248x128xf32>
    %c0_123 = arith.constant 0 : index
    %c0_124 = arith.constant 0 : index
    %146 = vector.load %arg11[%c0_123, %c0_124] : memref<1248x128xf32, #tpu.memory_space<vmem>>, vector<1248x128xf32>
    %147 = arith.addf %146, %145 : vector<1248x128xf32>
    %c0_125 = arith.constant 0 : index
    %c0_126 = arith.constant 0 : index
    %148 = vector.load %arg11[%c0_125, %c0_126] : memref<1248x128xf32, #tpu.memory_space<vmem>>, vector<1248x128xf32>
    tpu.vector_store %arg11[%c0_125, %c0_126], %147 {strides = array<i32>} : memref<1248x128xf32, #tpu.memory_space<vmem>>, vector<1248x128xf32>,
    %c352 = arith.constant 352 : index
    %c0_127 = arith.constant 0 : index
    %149 = vector.load %arg10[%c352, %c0_127] : memref<1600x128xbf16, #tpu.memory_space<vmem>>, vector<1248x128xbf16>
    %c1024 = arith.constant 1024 : index
    %c0_128 = arith.constant 0 : index
    %150 = vector.load %arg4[%c1024, %c0_128] : memref<1152x128xbf16, #tpu.memory_space<vmem>>, vector<128x128xbf16>
    %cst_129 = arith.constant dense<0.000000e+00> : vector<1248x128xf32>
    %151 = tpu.matmul %149, %150, %cst_129 {dimension_numbers = #tpu.dot_dimension_numbers<[1], [0], [0], [1], [0, 0, 1, 1], [], []>} : vector<1248x128xbf16>, vector<128x128xbf16>, vector<1248x128xf32> -> vector<1248x128xf32>
    %c0_130 = arith.constant 0 : index
    %c0_131 = arith.constant 0 : index
    %152 = vector.load %arg11[%c0_130, %c0_131] : memref<1248x128xf32, #tpu.memory_space<vmem>>, vector<1248x128xf32>
    %153 = arith.addf %152, %151 : vector<1248x128xf32>
    %c0_132 = arith.constant 0 : index
    %c0_133 = arith.constant 0 : index
    %154 = vector.load %arg11[%c0_132, %c0_133] : memref<1248x128xf32, #tpu.memory_space<vmem>>, vector<1248x128xf32>
    tpu.vector_store %arg11[%c0_132, %c0_133], %153 {strides = array<i32>} : memref<1248x128xf32, #tpu.memory_space<vmem>>, vector<1248x128xf32>,
    %cst_134 = arith.constant 0.000000e+00 : f32
    %155 = vector.broadcast %cst_134 : f32 to vector<32x128xf32>
    %c128_135 = arith.constant 128 : index
    %c0_136 = arith.constant 0 : index
    %156 = vector.load %arg11[%c128_135, %c0_136] : memref<1248x128xf32, #tpu.memory_space<vmem>>, vector<32x128xf32>
    tpu.vector_store %arg11[%c128_135, %c0_136], %155 {strides = array<i32>} : memref<1248x128xf32, #tpu.memory_space<vmem>>, vector<32x128xf32>,
    %cst_137 = arith.constant 0.000000e+00 : f32
    %157 = vector.broadcast %cst_137 : f32 to vector<32x128xf32>
    %c288 = arith.constant 288 : index
    %c0_138 = arith.constant 0 : index
    %158 = vector.load %arg11[%c288, %c0_138] : memref<1248x128xf32, #tpu.memory_space<vmem>>, vector<32x128xf32>
    tpu.vector_store %arg11[%c288, %c0_138], %157 {strides = array<i32>} : memref<1248x128xf32, #tpu.memory_space<vmem>>, vector<32x128xf32>,
    %cst_139 = arith.constant 0.000000e+00 : f32
    %159 = vector.broadcast %cst_139 : f32 to vector<32x128xf32>
    %c448 = arith.constant 448 : index
    %c0_140 = arith.constant 0 : index
    %160 = vector.load %arg11[%c448, %c0_140] : memref<1248x128xf32, #tpu.memory_space<vmem>>, vector<32x128xf32>
    tpu.vector_store %arg11[%c448, %c0_140], %159 {strides = array<i32>} : memref<1248x128xf32, #tpu.memory_space<vmem>>, vector<32x128xf32>,
    %cst_141 = arith.constant 0.000000e+00 : f32
    %161 = vector.broadcast %cst_141 : f32 to vector<32x128xf32>
    %c608 = arith.constant 608 : index
    %c0_142 = arith.constant 0 : index
    %162 = vector.load %arg11[%c608, %c0_142] : memref<1248x128xf32, #tpu.memory_space<vmem>>, vector<32x128xf32>
    tpu.vector_store %arg11[%c608, %c0_142], %161 {strides = array<i32>} : memref<1248x128xf32, #tpu.memory_space<vmem>>, vector<32x128xf32>,
    %cst_143 = arith.constant 0.000000e+00 : f32
    %163 = vector.broadcast %cst_143 : f32 to vector<32x128xf32>
    %c768_144 = arith.constant 768 : index
    %c0_145 = arith.constant 0 : index
    %164 = vector.load %arg11[%c768_144, %c0_145] : memref<1248x128xf32, #tpu.memory_space<vmem>>, vector<32x128xf32>
    tpu.vector_store %arg11[%c768_144, %c0_145], %163 {strides = array<i32>} : memref<1248x128xf32, #tpu.memory_space<vmem>>, vector<32x128xf32>,
    %cst_146 = arith.constant 0.000000e+00 : f32
    %165 = vector.broadcast %cst_146 : f32 to vector<32x128xf32>
    %c928 = arith.constant 928 : index
    %c0_147 = arith.constant 0 : index
    %166 = vector.load %arg11[%c928, %c0_147] : memref<1248x128xf32, #tpu.memory_space<vmem>>, vector<32x128xf32>
    tpu.vector_store %arg11[%c928, %c0_147], %165 {strides = array<i32>} : memref<1248x128xf32, #tpu.memory_space<vmem>>, vector<32x128xf32>,
    %cst_148 = arith.constant 0.000000e+00 : f32
    %167 = vector.broadcast %cst_148 : f32 to vector<32x128xf32>
    %c1088 = arith.constant 1088 : index
    %c0_149 = arith.constant 0 : index
    %168 = vector.load %arg11[%c1088, %c0_149] : memref<1248x128xf32, #tpu.memory_space<vmem>>, vector<32x128xf32>
    tpu.vector_store %arg11[%c1088, %c0_149], %167 {strides = array<i32>} : memref<1248x128xf32, #tpu.memory_space<vmem>>, vector<32x128xf32>,
    %c0_150 = arith.constant 0 : index
    %c0_151 = arith.constant 0 : index
    %169 = vector.load %arg11[%c0_150, %c0_151] : memref<1248x128xf32, #tpu.memory_space<vmem>>, vector<1248x128xf32>
    %cst_152 = arith.constant dense<0.000000e+00> : vector<128xf32>
    %170 = vector.multi_reduction <add>, %169, %cst_152 [0] : vector<1248x128xf32> to vector<128xf32>
    %171 = vector.shape_cast %170 : vector<128xf32> to vector<1x128xf32>
    %cst_153 = arith.constant 9.765625E-4 : f32
    %172 = vector.broadcast %cst_153 : f32 to vector<1x128xf32>
    %173 = arith.mulf %171, %172 : vector<1x128xf32>
    %c0_154 = arith.constant 0 : index
    %c0_155 = arith.constant 0 : index
    %174 = vector.load %arg11[%c0_154, %c0_155] : memref<1248x128xf32, #tpu.memory_space<vmem>>, vector<1248x128xf32>
    %175 = vector.broadcast %173 : vector<1x128xf32> to vector<1248x128xf32>
    %176 = arith.subf %174, %175 : vector<1248x128xf32>
    %177 = arith.mulf %176, %176 : vector<1248x128xf32>
    %cst_156 = arith.constant dense<0.000000e+00> : vector<128xf32>
    %178 = vector.multi_reduction <add>, %177, %cst_156 [0] : vector<1248x128xf32> to vector<128xf32>
    %179 = vector.shape_cast %178 : vector<128xf32> to vector<1x128xf32>
    %180 = arith.mulf %173, %173 : vector<1x128xf32>
    %cst_157 = arith.constant 2.240000e+02 : f32
    %181 = vector.broadcast %cst_157 : f32 to vector<1x128xf32>
    %182 = arith.mulf %181, %180 : vector<1x128xf32>
    %183 = arith.subf %179, %182 : vector<1x128xf32>
    %cst_158 = arith.constant 9.765625E-4 : f32
    %184 = vector.broadcast %cst_158 : f32 to vector<1x128xf32>
    %185 = arith.mulf %183, %184 : vector<1x128xf32>
    %cst_159 = arith.constant 0.000000e+00 : f32
    %186 = vector.broadcast %cst_159 : f32 to vector<1x128xf32>
    %187 = arith.maximumf %185, %186 : vector<1x128xf32>
    %c0_160 = arith.constant 0 : index
    %c0_161 = arith.constant 0 : index
    %188 = vector.load %arg5[%c0_160, %c0_161] : memref<1x128xf32, #tpu.memory_space<vmem>>, vector<1x128xf32>
    %cst_162 = arith.constant 9.99999974E-6 : f32
    %189 = vector.broadcast %cst_162 : f32 to vector<1x128xf32>
    %190 = arith.addf %187, %189 : vector<1x128xf32>
    %191 = math.rsqrt %190 : vector<1x128xf32>
    %192 = arith.mulf %188, %191 : vector<1x128xf32>
    %c0_163 = arith.constant 0 : index
    %c0_164 = arith.constant 0 : index
    %193 = vector.load %arg6[%c0_163, %c0_164] : memref<1x128xf32, #tpu.memory_space<vmem>>, vector<1x128xf32>
    %194 = arith.mulf %173, %192 : vector<1x128xf32>
    %195 = arith.subf %193, %194 : vector<1x128xf32>
    %196 = vector.shape_cast %192 : vector<1x128xf32> to vector<1x128xf32>
    %197 = vector.broadcast %196 : vector<1x128xf32> to vector<128x128xf32>
    %198 = vector.shape_cast %195 : vector<1x128xf32> to vector<1x128xf32>
    %199 = vector.broadcast %198 : vector<1x128xf32> to vector<128x128xf32>
    %c0_165 = arith.constant 0 : index
    %c0_166 = arith.constant 0 : index
    %200 = vector.load %arg11[%c0_165, %c0_166] : memref<1248x128xf32, #tpu.memory_space<vmem>>, vector<128x128xf32>
    %201 = arith.mulf %200, %197 : vector<128x128xf32>
    %202 = arith.addf %201, %199 : vector<128x128xf32>
    %cst_167 = arith.constant 0.000000e+00 : f32
    %203 = vector.broadcast %cst_167 : f32 to vector<128x128xf32>
    %204 = arith.maximumf %202, %203 : vector<128x128xf32>
    %205 = arith.truncf %204 : vector<128x128xf32> to vector<128x128xbf16>
    %c176_168 = arith.constant 176 : index
    %c0_169 = arith.constant 0 : index
    %206 = vector.load %arg10[%c176_168, %c0_169] : memref<1600x128xbf16, #tpu.memory_space<vmem>>, vector<128x128xbf16>
    tpu.vector_store %arg10[%c176_168, %c0_169], %205 {strides = array<i32>} : memref<1600x128xbf16, #tpu.memory_space<vmem>>, vector<128x128xbf16>,
    %c160_170 = arith.constant 160 : index
    %c0_171 = arith.constant 0 : index
    %207 = vector.load %arg11[%c160_170, %c0_171] : memref<1248x128xf32, #tpu.memory_space<vmem>>, vector<128x128xf32>
    %208 = arith.mulf %207, %197 : vector<128x128xf32>
    %209 = arith.addf %208, %199 : vector<128x128xf32>
    %cst_172 = arith.constant 0.000000e+00 : f32
    %210 = vector.broadcast %cst_172 : f32 to vector<128x128xf32>
    %211 = arith.maximumf %209, %210 : vector<128x128xf32>
    %212 = arith.truncf %211 : vector<128x128xf32> to vector<128x128xbf16>
    %c336_173 = arith.constant 336 : index
    %c0_174 = arith.constant 0 : index
    %213 = vector.load %arg10[%c336_173, %c0_174] : memref<1600x128xbf16, #tpu.memory_space<vmem>>, vector<128x128xbf16>
    tpu.vector_store %arg10[%c336_173, %c0_174], %212 {strides = array<i32>} : memref<1600x128xbf16, #tpu.memory_space<vmem>>, vector<128x128xbf16>,
    %c320_175 = arith.constant 320 : index
    %c0_176 = arith.constant 0 : index
    %214 = vector.load %arg11[%c320_175, %c0_176] : memref<1248x128xf32, #tpu.memory_space<vmem>>, vector<128x128xf32>
    %215 = arith.mulf %214, %197 : vector<128x128xf32>
    %216 = arith.addf %215, %199 : vector<128x128xf32>
    %cst_177 = arith.constant 0.000000e+00 : f32
    %217 = vector.broadcast %cst_177 : f32 to vector<128x128xf32>
    %218 = arith.maximumf %216, %217 : vector<128x128xf32>
    %219 = arith.truncf %218 : vector<128x128xf32> to vector<128x128xbf16>
    %c496_178 = arith.constant 496 : index
    %c0_179 = arith.constant 0 : index
    %220 = vector.load %arg10[%c496_178, %c0_179] : memref<1600x128xbf16, #tpu.memory_space<vmem>>, vector<128x128xbf16>
    tpu.vector_store %arg10[%c496_178, %c0_179], %219 {strides = array<i32>} : memref<1600x128xbf16, #tpu.memory_space<vmem>>, vector<128x128xbf16>,
    %c480 = arith.constant 480 : index
    %c0_180 = arith.constant 0 : index
    %221 = vector.load %arg11[%c480, %c0_180] : memref<1248x128xf32, #tpu.memory_space<vmem>>, vector<128x128xf32>
    %222 = arith.mulf %221, %197 : vector<128x128xf32>
    %223 = arith.addf %222, %199 : vector<128x128xf32>
    %cst_181 = arith.constant 0.000000e+00 : f32
    %224 = vector.broadcast %cst_181 : f32 to vector<128x128xf32>
    %225 = arith.maximumf %223, %224 : vector<128x128xf32>
    %226 = arith.truncf %225 : vector<128x128xf32> to vector<128x128xbf16>
    %c656_182 = arith.constant 656 : index
    %c0_183 = arith.constant 0 : index
    %227 = vector.load %arg10[%c656_182, %c0_183] : memref<1600x128xbf16, #tpu.memory_space<vmem>>, vector<128x128xbf16>
    tpu.vector_store %arg10[%c656_182, %c0_183], %226 {strides = array<i32>} : memref<1600x128xbf16, #tpu.memory_space<vmem>>, vector<128x128xbf16>,
    %c640_184 = arith.constant 640 : index
    %c0_185 = arith.constant 0 : index
    %228 = vector.load %arg11[%c640_184, %c0_185] : memref<1248x128xf32, #tpu.memory_space<vmem>>, vector<128x128xf32>
    %229 = arith.mulf %228, %197 : vector<128x128xf32>
    %230 = arith.addf %229, %199 : vector<128x128xf32>
    %cst_186 = arith.constant 0.000000e+00 : f32
    %231 = vector.broadcast %cst_186 : f32 to vector<128x128xf32>
    %232 = arith.maximumf %230, %231 : vector<128x128xf32>
    %233 = arith.truncf %232 : vector<128x128xf32> to vector<128x128xbf16>
    %c816_187 = arith.constant 816 : index
    %c0_188 = arith.constant 0 : index
    %234 = vector.load %arg10[%c816_187, %c0_188] : memref<1600x128xbf16, #tpu.memory_space<vmem>>, vector<128x128xbf16>
    tpu.vector_store %arg10[%c816_187, %c0_188], %233 {strides = array<i32>} : memref<1600x128xbf16, #tpu.memory_space<vmem>>, vector<128x128xbf16>,
    %c800 = arith.constant 800 : index
    %c0_189 = arith.constant 0 : index
    %235 = vector.load %arg11[%c800, %c0_189] : memref<1248x128xf32, #tpu.memory_space<vmem>>, vector<128x128xf32>
    %236 = arith.mulf %235, %197 : vector<128x128xf32>
    %237 = arith.addf %236, %199 : vector<128x128xf32>
    %cst_190 = arith.constant 0.000000e+00 : f32
    %238 = vector.broadcast %cst_190 : f32 to vector<128x128xf32>
    %239 = arith.maximumf %237, %238 : vector<128x128xf32>
    %240 = arith.truncf %239 : vector<128x128xf32> to vector<128x128xbf16>
    %c976_191 = arith.constant 976 : index
    %c0_192 = arith.constant 0 : index
    %241 = vector.load %arg10[%c976_191, %c0_192] : memref<1600x128xbf16, #tpu.memory_space<vmem>>, vector<128x128xbf16>
    tpu.vector_store %arg10[%c976_191, %c0_192], %240 {strides = array<i32>} : memref<1600x128xbf16, #tpu.memory_space<vmem>>, vector<128x128xbf16>,
    %c960 = arith.constant 960 : index
    %c0_193 = arith.constant 0 : index
    %242 = vector.load %arg11[%c960, %c0_193] : memref<1248x128xf32, #tpu.memory_space<vmem>>, vector<128x128xf32>
    %243 = arith.mulf %242, %197 : vector<128x128xf32>
    %244 = arith.addf %243, %199 : vector<128x128xf32>
    %cst_194 = arith.constant 0.000000e+00 : f32
    %245 = vector.broadcast %cst_194 : f32 to vector<128x128xf32>
    %246 = arith.maximumf %244, %245 : vector<128x128xf32>
    %247 = arith.truncf %246 : vector<128x128xf32> to vector<128x128xbf16>
    %c1136_195 = arith.constant 1136 : index
    %c0_196 = arith.constant 0 : index
    %248 = vector.load %arg10[%c1136_195, %c0_196] : memref<1600x128xbf16, #tpu.memory_space<vmem>>, vector<128x128xbf16>
    tpu.vector_store %arg10[%c1136_195, %c0_196], %247 {strides = array<i32>} : memref<1600x128xbf16, #tpu.memory_space<vmem>>, vector<128x128xbf16>,
    %c1120 = arith.constant 1120 : index
    %c0_197 = arith.constant 0 : index
    %249 = vector.load %arg11[%c1120, %c0_197] : memref<1248x128xf32, #tpu.memory_space<vmem>>, vector<128x128xf32>
    %250 = arith.mulf %249, %197 : vector<128x128xf32>
    %251 = arith.addf %250, %199 : vector<128x128xf32>
    %cst_198 = arith.constant 0.000000e+00 : f32
    %252 = vector.broadcast %cst_198 : f32 to vector<128x128xf32>
    %253 = arith.maximumf %251, %252 : vector<128x128xf32>
    %254 = arith.truncf %253 : vector<128x128xf32> to vector<128x128xbf16>
    %c1296_199 = arith.constant 1296 : index
    %c0_200 = arith.constant 0 : index
    %255 = vector.load %arg10[%c1296_199, %c0_200] : memref<1600x128xbf16, #tpu.memory_space<vmem>>, vector<128x128xbf16>
    tpu.vector_store %arg10[%c1296_199, %c0_200], %254 {strides = array<i32>} : memref<1600x128xbf16, #tpu.memory_space<vmem>>, vector<128x128xbf16>,
    %c0_201 = arith.constant 0 : index
    %c0_202 = arith.constant 0 : index
    %256 = vector.load %arg10[%c0_201, %c0_202] : memref<1600x128xbf16, #tpu.memory_space<vmem>>, vector<1248x128xbf16>
    %c0_203 = arith.constant 0 : index
    %c0_204 = arith.constant 0 : index
    %257 = vector.load %arg9[%c0_203, %c0_204] : memref<1248x128xf32, #tpu.memory_space<vmem>>, vector<1248x128xf32>
    %c0_205 = arith.constant 0 : index
    %c0_206 = arith.constant 0 : index
    %258 = vector.load %arg7[%c0_205, %c0_206] : memref<1152x128xbf16, #tpu.memory_space<vmem>>, vector<128x128xbf16>
    %cst_207 = arith.constant dense<0.000000e+00> : vector<1248x128xf32>
    %259 = tpu.matmul %256, %258, %cst_207 {dimension_numbers = #tpu.dot_dimension_numbers<[1], [0], [0], [1], [0, 0, 1, 1], [], []>} : vector<1248x128xbf16>, vector<128x128xbf16>, vector<1248x128xf32> -> vector<1248x128xf32>
    %260 = arith.addf %257, %259 : vector<1248x128xf32>
    %c0_208 = arith.constant 0 : index
    %c0_209 = arith.constant 0 : index
    %261 = vector.load %arg9[%c0_208, %c0_209] : memref<1248x128xf32, #tpu.memory_space<vmem>>, vector<1248x128xf32>
    tpu.vector_store %arg9[%c0_208, %c0_209], %260 {strides = array<i32>} : memref<1248x128xf32, #tpu.memory_space<vmem>>, vector<1248x128xf32>,
    %c16_210 = arith.constant 16 : index
    %c0_211 = arith.constant 0 : index
    %262 = vector.load %arg10[%c16_210, %c0_211] : memref<1600x128xbf16, #tpu.memory_space<vmem>>, vector<1248x128xbf16>
    %c0_212 = arith.constant 0 : index
    %c0_213 = arith.constant 0 : index
    %263 = vector.load %arg9[%c0_212, %c0_213] : memref<1248x128xf32, #tpu.memory_space<vmem>>, vector<1248x128xf32>
    %c128_214 = arith.constant 128 : index
    %c0_215 = arith.constant 0 : index
    %264 = vector.load %arg7[%c128_214, %c0_215] : memref<1152x128xbf16, #tpu.memory_space<vmem>>, vector<128x128xbf16>
    %cst_216 = arith.constant dense<0.000000e+00> : vector<1248x128xf32>
    %265 = tpu.matmul %262, %264, %cst_216 {dimension_numbers = #tpu.dot_dimension_numbers<[1], [0], [0], [1], [0, 0, 1, 1], [], []>} : vector<1248x128xbf16>, vector<128x128xbf16>, vector<1248x128xf32> -> vector<1248x128xf32>
    %266 = arith.addf %263, %265 : vector<1248x128xf32>
    %c0_217 = arith.constant 0 : index
    %c0_218 = arith.constant 0 : index
    %267 = vector.load %arg9[%c0_217, %c0_218] : memref<1248x128xf32, #tpu.memory_space<vmem>>, vector<1248x128xf32>
    tpu.vector_store %arg9[%c0_217, %c0_218], %266 {strides = array<i32>} : memref<1248x128xf32, #tpu.memory_space<vmem>>, vector<1248x128xf32>,
    %c32_219 = arith.constant 32 : index
    %c0_220 = arith.constant 0 : index
    %268 = vector.load %arg10[%c32_219, %c0_220] : memref<1600x128xbf16, #tpu.memory_space<vmem>>, vector<1248x128xbf16>
    %c0_221 = arith.constant 0 : index
    %c0_222 = arith.constant 0 : index
    %269 = vector.load %arg9[%c0_221, %c0_222] : memref<1248x128xf32, #tpu.memory_space<vmem>>, vector<1248x128xf32>
    %c256_223 = arith.constant 256 : index
    %c0_224 = arith.constant 0 : index
    %270 = vector.load %arg7[%c256_223, %c0_224] : memref<1152x128xbf16, #tpu.memory_space<vmem>>, vector<128x128xbf16>
    %cst_225 = arith.constant dense<0.000000e+00> : vector<1248x128xf32>
    %271 = tpu.matmul %268, %270, %cst_225 {dimension_numbers = #tpu.dot_dimension_numbers<[1], [0], [0], [1], [0, 0, 1, 1], [], []>} : vector<1248x128xbf16>, vector<128x128xbf16>, vector<1248x128xf32> -> vector<1248x128xf32>
    %272 = arith.addf %269, %271 : vector<1248x128xf32>
    %c0_226 = arith.constant 0 : index
    %c0_227 = arith.constant 0 : index
    %273 = vector.load %arg9[%c0_226, %c0_227] : memref<1248x128xf32, #tpu.memory_space<vmem>>, vector<1248x128xf32>
    tpu.vector_store %arg9[%c0_226, %c0_227], %272 {strides = array<i32>} : memref<1248x128xf32, #tpu.memory_space<vmem>>, vector<1248x128xf32>,
    %c160_228 = arith.constant 160 : index
    %c0_229 = arith.constant 0 : index
    %274 = vector.load %arg10[%c160_228, %c0_229] : memref<1600x128xbf16, #tpu.memory_space<vmem>>, vector<1248x128xbf16>
    %c0_230 = arith.constant 0 : index
    %c0_231 = arith.constant 0 : index
    %275 = vector.load %arg9[%c0_230, %c0_231] : memref<1248x128xf32, #tpu.memory_space<vmem>>, vector<1248x128xf32>
    %c384_232 = arith.constant 384 : index
    %c0_233 = arith.constant 0 : index
    %276 = vector.load %arg7[%c384_232, %c0_233] : memref<1152x128xbf16, #tpu.memory_space<vmem>>, vector<128x128xbf16>
    %cst_234 = arith.constant dense<0.000000e+00> : vector<1248x128xf32>
    %277 = tpu.matmul %274, %276, %cst_234 {dimension_numbers = #tpu.dot_dimension_numbers<[1], [0], [0], [1], [0, 0, 1, 1], [], []>} : vector<1248x128xbf16>, vector<128x128xbf16>, vector<1248x128xf32> -> vector<1248x128xf32>
    %278 = arith.addf %275, %277 : vector<1248x128xf32>
    %c0_235 = arith.constant 0 : index
    %c0_236 = arith.constant 0 : index
    %279 = vector.load %arg9[%c0_235, %c0_236] : memref<1248x128xf32, #tpu.memory_space<vmem>>, vector<1248x128xf32>
    tpu.vector_store %arg9[%c0_235, %c0_236], %278 {strides = array<i32>} : memref<1248x128xf32, #tpu.memory_space<vmem>>, vector<1248x128xf32>,
    %c176_237 = arith.constant 176 : index
    %c0_238 = arith.constant 0 : index
    %280 = vector.load %arg10[%c176_237, %c0_238] : memref<1600x128xbf16, #tpu.memory_space<vmem>>, vector<1248x128xbf16>
    %c0_239 = arith.constant 0 : index
    %c0_240 = arith.constant 0 : index
    %281 = vector.load %arg9[%c0_239, %c0_240] : memref<1248x128xf32, #tpu.memory_space<vmem>>, vector<1248x128xf32>
    %c512_241 = arith.constant 512 : index
    %c0_242 = arith.constant 0 : index
    %282 = vector.load %arg7[%c512_241, %c0_242] : memref<1152x128xbf16, #tpu.memory_space<vmem>>, vector<128x128xbf16>
    %cst_243 = arith.constant dense<0.000000e+00> : vector<1248x128xf32>
    %283 = tpu.matmul %280, %282, %cst_243 {dimension_numbers = #tpu.dot_dimension_numbers<[1], [0], [0], [1], [0, 0, 1, 1], [], []>} : vector<1248x128xbf16>, vector<128x128xbf16>, vector<1248x128xf32> -> vector<1248x128xf32>
    %284 = arith.addf %281, %283 : vector<1248x128xf32>
    %c0_244 = arith.constant 0 : index
    %c0_245 = arith.constant 0 : index
    %285 = vector.load %arg9[%c0_244, %c0_245] : memref<1248x128xf32, #tpu.memory_space<vmem>>, vector<1248x128xf32>
    tpu.vector_store %arg9[%c0_244, %c0_245], %284 {strides = array<i32>} : memref<1248x128xf32, #tpu.memory_space<vmem>>, vector<1248x128xf32>,
    %c192_246 = arith.constant 192 : index
    %c0_247 = arith.constant 0 : index
    %286 = vector.load %arg10[%c192_246, %c0_247] : memref<1600x128xbf16, #tpu.memory_space<vmem>>, vector<1248x128xbf16>
    %c0_248 = arith.constant 0 : index
    %c0_249 = arith.constant 0 : index
    %287 = vector.load %arg9[%c0_248, %c0_249] : memref<1248x128xf32, #tpu.memory_space<vmem>>, vector<1248x128xf32>
    %c640_250 = arith.constant 640 : index
    %c0_251 = arith.constant 0 : index
    %288 = vector.load %arg7[%c640_250, %c0_251] : memref<1152x128xbf16, #tpu.memory_space<vmem>>, vector<128x128xbf16>
    %cst_252 = arith.constant dense<0.000000e+00> : vector<1248x128xf32>
    %289 = tpu.matmul %286, %288, %cst_252 {dimension_numbers = #tpu.dot_dimension_numbers<[1], [0], [0], [1], [0, 0, 1, 1], [], []>} : vector<1248x128xbf16>, vector<128x128xbf16>, vector<1248x128xf32> -> vector<1248x128xf32>
    %290 = arith.addf %287, %289 : vector<1248x128xf32>
    %c0_253 = arith.constant 0 : index
    %c0_254 = arith.constant 0 : index
    %291 = vector.load %arg9[%c0_253, %c0_254] : memref<1248x128xf32, #tpu.memory_space<vmem>>, vector<1248x128xf32>
    tpu.vector_store %arg9[%c0_253, %c0_254], %290 {strides = array<i32>} : memref<1248x128xf32, #tpu.memory_space<vmem>>, vector<1248x128xf32>,
    %c320_255 = arith.constant 320 : index
    %c0_256 = arith.constant 0 : index
    %292 = vector.load %arg10[%c320_255, %c0_256] : memref<1600x128xbf16, #tpu.memory_space<vmem>>, vector<1248x128xbf16>
    %c0_257 = arith.constant 0 : index
    %c0_258 = arith.constant 0 : index
    %293 = vector.load %arg9[%c0_257, %c0_258] : memref<1248x128xf32, #tpu.memory_space<vmem>>, vector<1248x128xf32>
    %c768_259 = arith.constant 768 : index
    %c0_260 = arith.constant 0 : index
    %294 = vector.load %arg7[%c768_259, %c0_260] : memref<1152x128xbf16, #tpu.memory_space<vmem>>, vector<128x128xbf16>
    %cst_261 = arith.constant dense<0.000000e+00> : vector<1248x128xf32>
    %295 = tpu.matmul %292, %294, %cst_261 {dimension_numbers = #tpu.dot_dimension_numbers<[1], [0], [0], [1], [0, 0, 1, 1], [], []>} : vector<1248x128xbf16>, vector<128x128xbf16>, vector<1248x128xf32> -> vector<1248x128xf32>
    %296 = arith.addf %293, %295 : vector<1248x128xf32>
    %c0_262 = arith.constant 0 : index
    %c0_263 = arith.constant 0 : index
    %297 = vector.load %arg9[%c0_262, %c0_263] : memref<1248x128xf32, #tpu.memory_space<vmem>>, vector<1248x128xf32>
    tpu.vector_store %arg9[%c0_262, %c0_263], %296 {strides = array<i32>} : memref<1248x128xf32, #tpu.memory_space<vmem>>, vector<1248x128xf32>,
    %c336_264 = arith.constant 336 : index
    %c0_265 = arith.constant 0 : index
    %298 = vector.load %arg10[%c336_264, %c0_265] : memref<1600x128xbf16, #tpu.memory_space<vmem>>, vector<1248x128xbf16>
    %c0_266 = arith.constant 0 : index
    %c0_267 = arith.constant 0 : index
    %299 = vector.load %arg9[%c0_266, %c0_267] : memref<1248x128xf32, #tpu.memory_space<vmem>>, vector<1248x128xf32>
    %c896_268 = arith.constant 896 : index
    %c0_269 = arith.constant 0 : index
    %300 = vector.load %arg7[%c896_268, %c0_269] : memref<1152x128xbf16, #tpu.memory_space<vmem>>, vector<128x128xbf16>
    %cst_270 = arith.constant dense<0.000000e+00> : vector<1248x128xf32>
    %301 = tpu.matmul %298, %300, %cst_270 {dimension_numbers = #tpu.dot_dimension_numbers<[1], [0], [0], [1], [0, 0, 1, 1], [], []>} : vector<1248x128xbf16>, vector<128x128xbf16>, vector<1248x128xf32> -> vector<1248x128xf32>
    %302 = arith.addf %299, %301 : vector<1248x128xf32>
    %c0_271 = arith.constant 0 : index
    %c0_272 = arith.constant 0 : index
    %303 = vector.load %arg9[%c0_271, %c0_272] : memref<1248x128xf32, #tpu.memory_space<vmem>>, vector<1248x128xf32>
    tpu.vector_store %arg9[%c0_271, %c0_272], %302 {strides = array<i32>} : memref<1248x128xf32, #tpu.memory_space<vmem>>, vector<1248x128xf32>,
    %c352_273 = arith.constant 352 : index
    %c0_274 = arith.constant 0 : index
    %304 = vector.load %arg10[%c352_273, %c0_274] : memref<1600x128xbf16, #tpu.memory_space<vmem>>, vector<1248x128xbf16>
    %c0_275 = arith.constant 0 : index
    %c0_276 = arith.constant 0 : index
    %305 = vector.load %arg9[%c0_275, %c0_276] : memref<1248x128xf32, #tpu.memory_space<vmem>>, vector<1248x128xf32>
    %c1024_277 = arith.constant 1024 : index
    %c0_278 = arith.constant 0 : index
    %306 = vector.load %arg7[%c1024_277, %c0_278] : memref<1152x128xbf16, #tpu.memory_space<vmem>>, vector<128x128xbf16>
    %cst_279 = arith.constant dense<0.000000e+00> : vector<1248x128xf32>
    %307 = tpu.matmul %304, %306, %cst_279 {dimension_numbers = #tpu.dot_dimension_numbers<[1], [0], [0], [1], [0, 0, 1, 1], [], []>} : vector<1248x128xbf16>, vector<128x128xbf16>, vector<1248x128xf32> -> vector<1248x128xf32>
    %308 = arith.addf %305, %307 : vector<1248x128xf32>
    %c0_280 = arith.constant 0 : index
    %c0_281 = arith.constant 0 : index
    %309 = vector.load %arg9[%c0_280, %c0_281] : memref<1248x128xf32, #tpu.memory_space<vmem>>, vector<1248x128xf32>
    tpu.vector_store %arg9[%c0_280, %c0_281], %308 {strides = array<i32>} : memref<1248x128xf32, #tpu.memory_space<vmem>>, vector<1248x128xf32>,
    return
  }
  func.func @transform_0(%arg0: i32) -> (i32, i32) {
    %c0_i32 = arith.constant 0 : i32
    %c0_i32_0 = arith.constant 0 : i32
    %c0_i32_1 = arith.constant 0 : i32
    return %c0_i32, %c0_i32_0 : i32, i32
  }
  func.func @transform_1(%arg0: i32) -> (i32, i32) {
    %c0_i32 = arith.constant 0 : i32
    %c0_i32_0 = arith.constant 0 : i32
    %c0_i32_1 = arith.constant 0 : i32
    return %c0_i32, %c0_i32_0 : i32, i32
  }
  func.func @transform_2(%arg0: i32) -> (i32, i32) {
    %c0_i32 = arith.constant 0 : i32
    %c0_i32_0 = arith.constant 0 : i32
    %c0_i32_1 = arith.constant 0 : i32
    return %c0_i32, %c0_i32_0 : i32, i32
  }
  func.func @transform_3(%arg0: i32) -> (i32, i32) {
    %c0_i32 = arith.constant 0 : i32
    %c0_i32_0 = arith.constant 0 : i32
    %c0_i32_1 = arith.constant 0 : i32
    return %c0_i32, %c0_i32_0 : i32, i32
  }
  func.func @transform_4(%arg0: i32) -> (i32, i32) {
    %c0_i32 = arith.constant 0 : i32
    %c0_i32_0 = arith.constant 0 : i32
    %c0_i32_1 = arith.constant 0 : i32
    return %c0_i32, %c0_i32_0 : i32, i32
  }
  func.func @transform_5(%arg0: i32) -> (i32, i32) {
    %c0_i32 = arith.constant 0 : i32
    %c0_i32_0 = arith.constant 0 : i32
    %c0_i32_1 = arith.constant 0 : i32
    return %c0_i32, %c0_i32_0 : i32, i32
  }
  func.func @transform_6(%arg0: i32) -> (i32, i32) {
    %c0_i32 = arith.constant 0 : i32
    %c0_i32_0 = arith.constant 0 : i32
    %c0_i32_1 = arith.constant 0 : i32
    return %c0_i32, %c0_i32_0 : i32, i32
  }
  func.func @transform_7(%arg0: i32) -> (i32, i32) {
    %c0_i32 = arith.constant 0 : i32
    %c0_i32_0 = arith.constant 0 : i32
    %c0_i32_1 = arith.constant 0 : i32
    return %c0_i32, %c0_i32_0 : i32, i32
  }
  func.func @transform_8(%arg0: i32) -> (i32, i32) {
    %c0_i32 = arith.constant 0 : i32
    %c0_i32_0 = arith.constant 0 : i32
    %c0_i32_1 = arith.constant 0 : i32
    return %c0_i32, %c0_i32_0 : i32, i32
  }
}

</mosaic_0001>

<bundles_post_ra>
// kernel: preact_block_pallas.1
= control target key start
LH: loop header
LB: loop body
LE: loop exit
PB: predicated region body
PF: predicated region fallthrough
CT: control target
= control target key end

     0   :  { %s41058_s7 = inlined_call_operand.vmem [shape: bf16[128,128], index: 7, kind: input, shape index: {}]   ;;  %s41059_s0 = inlined_call_operand.vmem [shape: f32[1024,128], index: 0, kind: input, shape index: {}]   ;;  %s41060_s3 = inlined_call_operand.vmem [shape: bf16[1152,128], index: 3, kind: input, shape index: {}]   ;;  %s41061_s1 = inlined_call_operand.vmem [shape: f32[1,128], index: 1, kind: input, shape index: {}]   ;;  %s41062_s2 = inlined_call_operand.vmem [shape: f32[1,128], index: 2, kind: input, shape index: {}]   ;;  %s41063_s8 = inlined_call_operand.vmem [shape: f32[1248,128], index: 8, kind: output, shape index: {}]   ;;  %s41064_s6 = inlined_call_operand.vmem [shape: bf16[1152,128], index: 6, kind: input, shape index: {}]   ;;  %s41065_s4 = inlined_call_operand.vmem [shape: f32[1,128], index: 4, kind: input, shape index: {}]   ;;  %s41066_s5 = inlined_call_operand.vmem [shape: f32[1,128], index: 5, kind: input, shape index: {}]  }
   0x1   :  { %v33965_v0 = vld [vmem:[%s41058_s7] sm:$0xff]   ;;  %v33966_v1 = vld [vmem:[%s41058_s7 + $0x8] sm:$0xff]   ;;  %v33967_v2 = vld [vmem:[%s41058_s7 + $0x10] sm:$0xff]  }
   0x2   :  { %31368 = vmatprep.subr.bf16.mxu1 %v33965_v0  ;;  %28100 = vmatprep.subr.bf16.mxu0 %v33965_v0  ;;  %v33968_v3 = vld [vmem:[%s41058_s7 + $0x18] sm:$0xff]   ;;  %v34194_v4 = vld [vmem:[%s41059_s0] sm:$0xff]  ;;  %v34199_v5 = vld [vmem:[%s41059_s0 + $0x8] sm:$0xff] }
   0x3   :  { %31376 = vmatpush3.bf16.msra.mxu1 %v33965_v0  ;;  %28101 = vmatpush3.bf16.msra.mxu0 %v33965_v0  ;;  %v34204_v6 = vld [vmem:[%s41059_s0 + $0x10] sm:$0xff]  ;;  %v194_v7 = vadd.f32 %v34199_v5, %v34194_v4  ;;  %v34211_v8 = vld [vmem:[%s41059_s0 + $0x18] sm:$0xff]  ;;  %v33969_v10 = vld [vmem:[%s41058_s7 + $0x20] sm:$0xff]  }
   0x4   :  { %31369 = vmatprep.subr.bf16.mxu1 %v33966_v1  ;;  %28102 = vmatprep.subr.bf16.mxu0 %v33966_v1  ;;  %v34220_v11 = vld [vmem:[%s41059_s0 + $0x20] sm:$0xff]  ;;  %v34226_v13 = vld [vmem:[%s41059_s0 + $0x28] sm:$0xff]  ;;  %v34235_v16 = vld [vmem:[%s41059_s0 + $0x30] sm:$0xff] }
   0x5   :  { %v195_v9 = vadd.f32 %v194_v7, %v34204_v6  ;;  %v33970_v15 = vld [vmem:[%s41058_s7 + $0x28] sm:$0xff]   ;;  %v34241_v18 = vld [vmem:[%s41059_s0 + $0x38] sm:$0xff]  ;;  %v33971_v20 = vld [vmem:[%s41058_s7 + $0x30] sm:$0xff]  }
   0x6   :  { %v34250_v21 = vld [vmem:[%s41059_s0 + $0x40] sm:$0xff]  ;;  %v34256_v23 = vld [vmem:[%s41059_s0 + $0x48] sm:$0xff]  ;;  %v33972_v25 = vld [vmem:[%s41058_s7 + $0x38] sm:$0xff]  }
   0x7   :  { %31377 = vmatpush3.bf16.msra.mxu1 %v33966_v1  ;;  %28103 = vmatpush3.bf16.msra.mxu0 %v33966_v1  ;;  %v196_v12 = vadd.f32 %v195_v9, %v34211_v8  ;;  %v34265_v26 = vld [vmem:[%s41059_s0 + $0x50] sm:$0xff]  ;;  %v34271_v28 = vld [vmem:[%s41059_s0 + $0x58] sm:$0xff]  ;;  %v34277_v30 = vld [vmem:[%s41059_s0 + $0x60] sm:$0xff] }
   0x8   :  { %31370 = vmatprep.subr.bf16.mxu1 %v33967_v2  ;;  %28104 = vmatprep.subr.bf16.mxu0 %v33967_v2  ;;  %v34283_v32 = vld [vmem:[%s41059_s0 + $0x68] sm:$0xff]  ;;  %v34289_v34 = vld [vmem:[%s41059_s0 + $0x70] sm:$0xff]  ;;  %v34295_v36 = vld [vmem:[%s41059_s0 + $0x78] sm:$0xff] }
   0x9   :  { %v197_v14 = vadd.f32 %v196_v12, %v34220_v11  ;;  %v34301_v38 = vld [vmem:[%s41059_s0 + $0x80] sm:$0xff]  ;;  %v34307_v40 = vld [vmem:[%s41059_s0 + $0x88] sm:$0xff]  ;;  %v34313_v42 = vld [vmem:[%s41059_s0 + $0x90] sm:$0xff] }
   0xa   :  { %v34319_v44 = vld [vmem:[%s41059_s0 + $0x98] sm:$0xff]  ;;  %v34325_v46 = vld [vmem:[%s41059_s0 + $0xa0] sm:$0xff]  ;;  %v34331_v48 = vld [vmem:[%s41059_s0 + $0xa8] sm:$0xff] }
   0xb   :  { %31378 = vmatpush3.bf16.msra.mxu1 %v33967_v2  ;;  %28105 = vmatpush3.bf16.msra.mxu0 %v33967_v2  ;;  %v198_v17 = vadd.f32 %v197_v14, %v34226_v13  ;;  %v34337_v50 = vld [vmem:[%s41059_s0 + $0xb0] sm:$0xff]  ;;  %v34343_v52 = vld [vmem:[%s41059_s0 + $0xb8] sm:$0xff]  ;;  %v34349_v54 = vld [vmem:[%s41059_s0 + $0xc0] sm:$0xff] }
   0xc   :  { %31371 = vmatprep.subr.bf16.mxu1 %v33968_v3  ;;  %28106 = vmatprep.subr.bf16.mxu0 %v33968_v3  ;;  %v34355_v56 = vld [vmem:[%s41059_s0 + $0xc8] sm:$0xff]  ;;  %v34361_v58 = vld [vmem:[%s41059_s0 + $0xd0] sm:$0xff]  ;;  %v34367_v60 = vld [vmem:[%s41059_s0 + $0xd8] sm:$0xff] }
   0xd   :  { %v199_v19 = vadd.f32 %v198_v17, %v34235_v16  ;;  %v34373_v62 = vld [vmem:[%s41059_s0 + $0xe0] sm:$0xff]  ;;  %v34379_v0 = vld [vmem:[%s41059_s0 + $0xe8] sm:$0xff]  ;;  %v34385_v2 = vld [vmem:[%s41059_s0 + $0xf0] sm:$0xff] }
   0xe   :  { %v34391_v7 = vld [vmem:[%s41059_s0 + $0xf8] sm:$0xff]  ;;  %v34403_v14 = vld [vmem:[%s41059_s0 + $0x108] sm:$0xff]  ;;  %v34409_v17 = vld [vmem:[%s41059_s0 + $0x110] sm:$0xff] }
   0xf   :  { %31379 = vmatpush3.bf16.msra.mxu1 %v33968_v3  ;;  %28107 = vmatpush3.bf16.msra.mxu0 %v33968_v3  ;;  %v200_v22 = vadd.f32 %v199_v19, %v34241_v18 }
  0x10   :  { %31372 = vmatprep.subr.bf16.mxu1 %v33969_v10  ;;  %28108 = vmatprep.subr.bf16.mxu0 %v33969_v10 }
  0x11   :  { %v201_v24 = vadd.f32 %v200_v22, %v34250_v21 }
  0x13   :  { %31380 = vmatpush3.bf16.msra.mxu1 %v33969_v10  ;;  %28109 = vmatpush3.bf16.msra.mxu0 %v33969_v10  ;;  %v202_v27 = vadd.f32 %v201_v24, %v34256_v23  ;;  %v34397_v10 = vld [vmem:[%s41059_s0 + $0x100] sm:$0xff] }
  0x14   :  { %31373 = vmatprep.subr.bf16.mxu1 %v33970_v15  ;;  %28110 = vmatprep.subr.bf16.mxu0 %v33970_v15  ;;  %v34421_v24 = vld [vmem:[%s41059_s0 + $0x120] sm:$0xff] }
  0x15   :  { %v203_v29 = vadd.f32 %v202_v27, %v34265_v26  ;;  %v34427_v27 = vld [vmem:[%s41059_s0 + $0x128] sm:$0xff] }
  0x17   :  { %31381 = vmatpush3.bf16.msra.mxu1 %v33970_v15  ;;  %28111 = vmatpush3.bf16.msra.mxu0 %v33970_v15  ;;  %v204_v31 = vadd.f32 %v203_v29, %v34271_v28 }
  0x18   :  { %31374 = vmatprep.subr.bf16.mxu1 %v33971_v20  ;;  %28112 = vmatprep.subr.bf16.mxu0 %v33971_v20 }
  0x19   :  { %v205_v33 = vadd.f32 %v204_v31, %v34277_v30  ;;  %v34433_v31 = vld [vmem:[%s41059_s0 + $0x130] sm:$0xff] }
  0x1b   :  { %31382 = vmatpush3.bf16.msra.mxu1 %v33971_v20  ;;  %28113 = vmatpush3.bf16.msra.mxu0 %v33971_v20  ;;  %v206_v35 = vadd.f32 %v205_v33, %v34283_v32  ;;  %v34415_v20 = vld [vmem:[%s41059_s0 + $0x118] sm:$0xff] }
  0x1c   :  { %31375 = vmatprep.subr.bf16.mxu1 %v33972_v25  ;;  %28114 = vmatprep.subr.bf16.mxu0 %v33972_v25 }
  0x1d   :  { %v207_v37 = vadd.f32 %v206_v35, %v34289_v34  ;;  %v34439_v35 = vld [vmem:[%s41059_s0 + $0x138] sm:$0xff] }
  0x1f   :  { %31383 = vmatpush3.bf16.msra.mxu1 %v33972_v25  ;;  %28115 = vmatpush3.bf16.msra.mxu0 %v33972_v25  ;;  %v208_v39 = vadd.f32 %v207_v37, %v34295_v36 }
  0x21   :  { %v209_v41 = vadd.f32 %v208_v39, %v34301_v38  ;;  %v34445_v39 = vld [vmem:[%s41059_s0 + $0x140] sm:$0xff] }
  0x23   :  { %v210_v43 = vadd.f32 %v209_v41, %v34307_v40 }
  0x25   :  { %v211_v45 = vadd.f32 %v210_v43, %v34313_v42  ;;  %v34451_v43 = vld [vmem:[%s41059_s0 + $0x148] sm:$0xff] }
  0x27   :  { %v212_v47 = vadd.f32 %v211_v45, %v34319_v44 }
  0x29   :  { %v213_v49 = vadd.f32 %v212_v47, %v34325_v46  ;;  %v34457_v47 = vld [vmem:[%s41059_s0 + $0x150] sm:$0xff] }
  0x2b   :  { %v214_v51 = vadd.f32 %v213_v49, %v34331_v48 }
  0x2d   :  { %v215_v53 = vadd.f32 %v214_v51, %v34337_v50  ;;  %v34463_v51 = vld [vmem:[%s41059_s0 + $0x158] sm:$0xff] }
  0x2f   :  { %v216_v55 = vadd.f32 %v215_v53, %v34343_v52 }
  0x31   :  { %v217_v57 = vadd.f32 %v216_v55, %v34349_v54  ;;  %v34469_v55 = vld [vmem:[%s41059_s0 + $0x160] sm:$0xff] }
  0x33   :  { %v218_v59 = vadd.f32 %v217_v57, %v34355_v56 }
  0x35   :  { %v219_v61 = vadd.f32 %v218_v59, %v34361_v58  ;;  %v34475_v59 = vld [vmem:[%s41059_s0 + $0x168] sm:$0xff] }
  0x37   :  { %v220_v63 = vadd.f32 %v219_v61, %v34367_v60 }
  0x39   :  { %v221_v1 = vadd.f32 %v220_v63, %v34373_v62  ;;  %v34481_v63 = vld [vmem:[%s41059_s0 + $0x170] sm:$0xff] }
  0x3b   :  { %v222_v3 = vadd.f32 %v221_v1, %v34379_v0 }
  0x3d   :  { %v223_v9 = vadd.f32 %v222_v3, %v34385_v2  ;;  %v34487_v3 = vld [vmem:[%s41059_s0 + $0x178] sm:$0xff] }
  0x3f   :  { %v224_v12 = vadd.f32 %v223_v9, %v34391_v7 }
  0x41   :  { %v225_v15 = vadd.f32 %v224_v12, %v34397_v10  ;;  %v34493_v12 = vld [vmem:[%s41059_s0 + $0x180] sm:$0xff] }
  0x43   :  { %v226_v19 = vadd.f32 %v225_v15, %v34403_v14 }
  0x45   :  { %v227_v22 = vadd.f32 %v226_v19, %v34409_v17  ;;  %v34499_v19 = vld [vmem:[%s41059_s0 + $0x188] sm:$0xff] }
  0x47   :  { %v228_v25 = vadd.f32 %v227_v22, %v34415_v20 }
  0x49   :  { %v229_v29 = vadd.f32 %v228_v25, %v34421_v24  ;;  %v34505_v25 = vld [vmem:[%s41059_s0 + $0x190] sm:$0xff] }
  0x4a   :  { %41475 = vst [vmem:[#allocation4_spill] sm:$0xff] %v34505_v25 }
  0x4b   :  { %v230_v33 = vadd.f32 %v229_v29, %v34427_v27 }
  0x4d   :  { %v231_v37 = vadd.f32 %v230_v33, %v34433_v31  ;;  %v34511_v33 = vld [vmem:[%s41059_s0 + $0x198] sm:$0xff] }
  0x4e   :  { %41476 = vst [vmem:[#allocation5_spill] sm:$0xff] %v34511_v33 }
  0x4f   :  { %v232_v41 = vadd.f32 %v231_v37, %v34439_v35 }
  0x51   :  { %v233_v45 = vadd.f32 %v232_v41, %v34445_v39  ;;  %v34517_v41 = vld [vmem:[%s41059_s0 + $0x1a0] sm:$0xff] }
  0x52   :  { %41477 = vst [vmem:[#allocation6_spill] sm:$0xff] %v34517_v41 }
  0x53   :  { %v234_v49 = vadd.f32 %v233_v45, %v34451_v43 }
  0x55   :  { %v235_v53 = vadd.f32 %v234_v49, %v34457_v47  ;;  %v34523_v49 = vld [vmem:[%s41059_s0 + $0x1a8] sm:$0xff] }
  0x56   :  { %41478 = vst [vmem:[#allocation7_spill] sm:$0xff] %v34523_v49 }
  0x57   :  { %v236_v57 = vadd.f32 %v235_v53, %v34463_v51 }
  0x59   :  { %v237_v61 = vadd.f32 %v236_v57, %v34469_v55  ;;  %v34529_v57 = vld [vmem:[%s41059_s0 + $0x1b0] sm:$0xff] }
  0x5a   :  { %41479 = vst [vmem:[#allocation8_spill] sm:$0xff] %v34529_v57 }
  0x5b   :  { %v238_v1 = vadd.f32 %v237_v61, %v34475_v59 }
  0x5d   :  { %v239_v9 = vadd.f32 %v238_v1, %v34481_v63  ;;  %v34535_v1 = vld [vmem:[%s41059_s0 + $0x1b8] sm:$0xff] }
  0x5e   :  { %41480 = vst [vmem:[#allocation9_spill] sm:$0xff] %v34535_v1 }
  0x5f   :  { %v240_v15 = vadd.f32 %v239_v9, %v34487_v3 }
  0x61   :  { %v241_v22 = vadd.f32 %v240_v15, %v34493_v12  ;;  %v34541_v15 = vld [vmem:[%s41059_s0 + $0x1c0] sm:$0xff] }
  0x62   :  { %41481 = vst [vmem:[#allocation10_spill] sm:$0xff] %v34541_v15 }
  0x63   :  { %v242_v29 = vadd.f32 %v241_v22, %v34499_v19 }
  0x65   :  { %v243_v37 = vadd.f32 %v242_v29, %v34505_v25  ;;  %v34547_v29 = vld [vmem:[%s41059_s0 + $0x1c8] sm:$0xff] }
  0x66   :  { %41482 = vst [vmem:[#allocation11_spill] sm:$0xff] %v34547_v29 }
  0x67   :  { %v244_v45 = vadd.f32 %v243_v37, %v34511_v33 }
  0x69   :  { %v245_v53 = vadd.f32 %v244_v45, %v34517_v41  ;;  %v34553_v45 = vld [vmem:[%s41059_s0 + $0x1d0] sm:$0xff] }
  0x6a   :  { %41483 = vst [vmem:[#allocation12_spill] sm:$0xff] %v34553_v45 }
  0x6b   :  { %v246_v61 = vadd.f32 %v245_v53, %v34523_v49 }
  0x6d   :  { %v247_v9 = vadd.f32 %v246_v61, %v34529_v57  ;;  %v34559_v61 = vld [vmem:[%s41059_s0 + $0x1d8] sm:$0xff] }
  0x6e   :  { %41484 = vst [vmem:[#allocation13_spill] sm:$0xff] %v34559_v61  ;;  %v185_v57 = vld [vmem:[%s41059_s0 + $0x3b8] sm:$0xff] }
  0x6f   :  { %v248_v22 = vadd.f32 %v247_v9, %v34535_v1  ;;  %v34565_v1 = vld [vmem:[%s41059_s0 + $0x1e0] sm:$0xff] }
  0x70   :  { %41485 = vst [vmem:[#allocation14_spill] sm:$0xff] %v34565_v1 }
  0x71   :  { %v249_v37 = vadd.f32 %v248_v22, %v34541_v15  ;;  %v34571_v15 = vld [vmem:[%s41059_s0 + $0x1e8] sm:$0xff] }
  0x72   :  { %41486 = vst [vmem:[#allocation15_spill] sm:$0xff] %v34571_v15 }
  0x73   :  { %v250_v53 = vadd.f32 %v249_v37, %v34547_v29  ;;  %v34577_v29 = vld [vmem:[%s41059_s0 + $0x1f0] sm:$0xff] }
  0x74   :  { %41487 = vst [vmem:[#allocation16_spill] sm:$0xff] %v34577_v29 }
  0x75   :  { %v251_v9 = vadd.f32 %v250_v53, %v34553_v45  ;;  %v34583_v45 = vld [vmem:[%s41059_s0 + $0x1f8] sm:$0xff] }
  0x76   :  { %41488 = vst [vmem:[#allocation17_spill] sm:$0xff] %v34583_v45 }
  0x77   :  { %v252_v22 = vadd.f32 %v251_v9, %v34559_v61  ;;  %v34589_v61 = vld [vmem:[%s41059_s0 + $0x200] sm:$0xff] }
  0x78   :  { %41489 = vst [vmem:[#allocation18_spill] sm:$0xff] %v34589_v61 }
  0x79   :  { %v253_v37 = vadd.f32 %v252_v22, %v34565_v1  ;;  %v34595_v1 = vld [vmem:[%s41059_s0 + $0x208] sm:$0xff] }
  0x7a   :  { %41490 = vst [vmem:[#allocation19_spill] sm:$0xff] %v34595_v1 }
  0x7b   :  { %v254_v53 = vadd.f32 %v253_v37, %v34571_v15  ;;  %v34601_v15 = vld [vmem:[%s41059_s0 + $0x210] sm:$0xff] }
  0x7c   :  { %41491 = vst [vmem:[#allocation20_spill] sm:$0xff] %v34601_v15 }
  0x7d   :  { %v255_v9 = vadd.f32 %v254_v53, %v34577_v29  ;;  %v34607_v29 = vld [vmem:[%s41059_s0 + $0x218] sm:$0xff] }
  0x7e   :  { %41492 = vst [vmem:[#allocation21_spill] sm:$0xff] %v34607_v29 }
  0x7f   :  { %v256_v22 = vadd.f32 %v255_v9, %v34583_v45  ;;  %v34613_v45 = vld [vmem:[%s41059_s0 + $0x220] sm:$0xff] }
  0x80   :  { %41493 = vst [vmem:[#allocation22_spill] sm:$0xff] %v34613_v45 }
  0x81   :  { %v257_v37 = vadd.f32 %v256_v22, %v34589_v61  ;;  %v34619_v61 = vld [vmem:[%s41059_s0 + $0x228] sm:$0xff] }
  0x82   :  { %41494 = vst [vmem:[#allocation23_spill] sm:$0xff] %v34619_v61 }
  0x83   :  { %v258_v53 = vadd.f32 %v257_v37, %v34595_v1  ;;  %v34625_v1 = vld [vmem:[%s41059_s0 + $0x230] sm:$0xff] }
  0x84   :  { %41495 = vst [vmem:[#allocation24_spill] sm:$0xff] %v34625_v1 }
  0x85   :  { %v259_v9 = vadd.f32 %v258_v53, %v34601_v15  ;;  %v34631_v15 = vld [vmem:[%s41059_s0 + $0x238] sm:$0xff] }
  0x86   :  { %41496 = vst [vmem:[#allocation25_spill] sm:$0xff] %v34631_v15 }
  0x87   :  { %v260_v22 = vadd.f32 %v259_v9, %v34607_v29  ;;  %v34637_v29 = vld [vmem:[%s41059_s0 + $0x240] sm:$0xff] }
  0x88   :  { %41497 = vst [vmem:[#allocation26_spill] sm:$0xff] %v34637_v29 }
  0x89   :  { %v261_v37 = vadd.f32 %v260_v22, %v34613_v45  ;;  %v34643_v45 = vld [vmem:[%s41059_s0 + $0x248] sm:$0xff] }
  0x8a   :  { %41498 = vst [vmem:[#allocation27_spill] sm:$0xff] %v34643_v45 }
  0x8b   :  { %v262_v53 = vadd.f32 %v261_v37, %v34619_v61  ;;  %v34649_v61 = vld [vmem:[%s41059_s0 + $0x250] sm:$0xff] }
  0x8c   :  { %41499 = vst [vmem:[#allocation28_spill] sm:$0xff] %v34649_v61 }
  0x8d   :  { %v263_v9 = vadd.f32 %v262_v53, %v34625_v1  ;;  %v34655_v1 = vld [vmem:[%s41059_s0 + $0x258] sm:$0xff] }
  0x8e   :  { %41500 = vst [vmem:[#allocation29_spill] sm:$0xff] %v34655_v1 }
  0x8f   :  { %v264_v22 = vadd.f32 %v263_v9, %v34631_v15  ;;  %v34661_v15 = vld [vmem:[%s41059_s0 + $0x260] sm:$0xff] }
  0x90   :  { %41501 = vst [vmem:[#allocation30_spill] sm:$0xff] %v34661_v15 }
  0x91   :  { %v265_v37 = vadd.f32 %v264_v22, %v34637_v29  ;;  %v34667_v29 = vld [vmem:[%s41059_s0 + $0x268] sm:$0xff] }
  0x92   :  { %41502 = vst [vmem:[#allocation31_spill] sm:$0xff] %v34667_v29 }
  0x93   :  { %v266_v53 = vadd.f32 %v265_v37, %v34643_v45  ;;  %v34673_v45 = vld [vmem:[%s41059_s0 + $0x270] sm:$0xff] }
  0x94   :  { %41503 = vst [vmem:[#allocation32_spill] sm:$0xff] %v34673_v45 }
  0x95   :  { %v267_v9 = vadd.f32 %v266_v53, %v34649_v61  ;;  %v34679_v61 = vld [vmem:[%s41059_s0 + $0x278] sm:$0xff] }
  0x96   :  { %41504 = vst [vmem:[#allocation33_spill] sm:$0xff] %v34679_v61 }
  0x97   :  { %v268_v22 = vadd.f32 %v267_v9, %v34655_v1  ;;  %v34685_v1 = vld [vmem:[%s41059_s0 + $0x280] sm:$0xff] }
  0x98   :  { %41505 = vst [vmem:[#allocation34_spill] sm:$0xff] %v34685_v1 }
  0x99   :  { %v269_v37 = vadd.f32 %v268_v22, %v34661_v15  ;;  %v34691_v15 = vld [vmem:[%s41059_s0 + $0x288] sm:$0xff] }
  0x9a   :  { %41506 = vst [vmem:[#allocation35_spill] sm:$0xff] %v34691_v15 }
  0x9b   :  { %v270_v53 = vadd.f32 %v269_v37, %v34667_v29  ;;  %v34697_v29 = vld [vmem:[%s41059_s0 + $0x290] sm:$0xff] }
  0x9c   :  { %41507 = vst [vmem:[#allocation36_spill] sm:$0xff] %v34697_v29 }
  0x9d   :  { %v271_v9 = vadd.f32 %v270_v53, %v34673_v45  ;;  %v34703_v45 = vld [vmem:[%s41059_s0 + $0x298] sm:$0xff] }
  0x9e   :  { %41508 = vst [vmem:[#allocation37_spill] sm:$0xff] %v34703_v45 }
  0x9f   :  { %v272_v22 = vadd.f32 %v271_v9, %v34679_v61  ;;  %v34709_v61 = vld [vmem:[%s41059_s0 + $0x2a0] sm:$0xff] }
  0xa0   :  { %41509 = vst [vmem:[#allocation38_spill] sm:$0xff] %v34709_v61 }
  0xa1   :  { %v273_v37 = vadd.f32 %v272_v22, %v34685_v1  ;;  %v34715_v1 = vld [vmem:[%s41059_s0 + $0x2a8] sm:$0xff] }
  0xa2   :  { %41510 = vst [vmem:[#allocation39_spill] sm:$0xff] %v34715_v1 }
  0xa3   :  { %v274_v53 = vadd.f32 %v273_v37, %v34691_v15  ;;  %v34721_v15 = vld [vmem:[%s41059_s0 + $0x2b0] sm:$0xff] }
  0xa4   :  { %41511 = vst [vmem:[#allocation40_spill] sm:$0xff] %v34721_v15 }
  0xa5   :  { %v275_v9 = vadd.f32 %v274_v53, %v34697_v29  ;;  %v34727_v29 = vld [vmem:[%s41059_s0 + $0x2b8] sm:$0xff] }
  0xa6   :  { %41512 = vst [vmem:[#allocation41_spill] sm:$0xff] %v34727_v29 }
  0xa7   :  { %v276_v22 = vadd.f32 %v275_v9, %v34703_v45  ;;  %v34733_v45 = vld [vmem:[%s41059_s0 + $0x2c0] sm:$0xff] }
  0xa8   :  { %41513 = vst [vmem:[#allocation42_spill] sm:$0xff] %v34733_v45 }
  0xa9   :  { %v277_v37 = vadd.f32 %v276_v22, %v34709_v61  ;;  %v34739_v61 = vld [vmem:[%s41059_s0 + $0x2c8] sm:$0xff] }
  0xaa   :  { %41514 = vst [vmem:[#allocation43_spill] sm:$0xff] %v34739_v61 }
  0xab   :  { %v278_v53 = vadd.f32 %v277_v37, %v34715_v1  ;;  %v34745_v1 = vld [vmem:[%s41059_s0 + $0x2d0] sm:$0xff] }
  0xac   :  { %41515 = vst [vmem:[#allocation44_spill] sm:$0xff] %v34745_v1 }
  0xad   :  { %v279_v9 = vadd.f32 %v278_v53, %v34721_v15  ;;  %v34751_v15 = vld [vmem:[%s41059_s0 + $0x2d8] sm:$0xff] }
  0xae   :  { %41516 = vst [vmem:[#allocation45_spill] sm:$0xff] %v34751_v15 }
  0xaf   :  { %v280_v22 = vadd.f32 %v279_v9, %v34727_v29  ;;  %v34757_v29 = vld [vmem:[%s41059_s0 + $0x2e0] sm:$0xff] }
  0xb0   :  { %41517 = vst [vmem:[#allocation46_spill] sm:$0xff] %v34757_v29 }
  0xb1   :  { %v281_v37 = vadd.f32 %v280_v22, %v34733_v45  ;;  %v34763_v45 = vld [vmem:[%s41059_s0 + $0x2e8] sm:$0xff] }
  0xb2   :  { %41518 = vst [vmem:[#allocation47_spill] sm:$0xff] %v34763_v45 }
  0xb3   :  { %v282_v53 = vadd.f32 %v281_v37, %v34739_v61  ;;  %v34769_v61 = vld [vmem:[%s41059_s0 + $0x2f0] sm:$0xff] }
  0xb4   :  { %41519 = vst [vmem:[#allocation48_spill] sm:$0xff] %v34769_v61 }
  0xb5   :  { %v283_v9 = vadd.f32 %v282_v53, %v34745_v1  ;;  %v34775_v1 = vld [vmem:[%s41059_s0 + $0x2f8] sm:$0xff] }
  0xb6   :  { %41520 = vst [vmem:[#allocation49_spill] sm:$0xff] %v34775_v1 }
  0xb7   :  { %v284_v22 = vadd.f32 %v283_v9, %v34751_v15  ;;  %v34781_v15 = vld [vmem:[%s41059_s0 + $0x300] sm:$0xff] }
  0xb8   :  { %41521 = vst [vmem:[#allocation50_spill] sm:$0xff] %v34781_v15 }
  0xb9   :  { %v285_v37 = vadd.f32 %v284_v22, %v34757_v29  ;;  %v34787_v29 = vld [vmem:[%s41059_s0 + $0x308] sm:$0xff] }
  0xba   :  { %41522 = vst [vmem:[#allocation51_spill] sm:$0xff] %v34787_v29 }
  0xbb   :  { %v286_v53 = vadd.f32 %v285_v37, %v34763_v45  ;;  %v34793_v45 = vld [vmem:[%s41059_s0 + $0x310] sm:$0xff] }
  0xbc   :  { %41523 = vst [vmem:[#allocation52_spill] sm:$0xff] %v34793_v45 }
  0xbd   :  { %v287_v9 = vadd.f32 %v286_v53, %v34769_v61  ;;  %v34799_v61 = vld [vmem:[%s41059_s0 + $0x318] sm:$0xff] }
  0xbe   :  { %41524 = vst [vmem:[#allocation53_spill] sm:$0xff] %v34799_v61 }
  0xbf   :  { %v288_v22 = vadd.f32 %v287_v9, %v34775_v1  ;;  %v34805_v1 = vld [vmem:[%s41059_s0 + $0x320] sm:$0xff] }
  0xc0   :  { %41525 = vst [vmem:[#allocation54_spill] sm:$0xff] %v34805_v1 }
  0xc1   :  { %v289_v37 = vadd.f32 %v288_v22, %v34781_v15  ;;  %v34811_v15 = vld [vmem:[%s41059_s0 + $0x328] sm:$0xff] }
  0xc2   :  { %41526 = vst [vmem:[#allocation55_spill] sm:$0xff] %v34811_v15 }
  0xc3   :  { %v290_v53 = vadd.f32 %v289_v37, %v34787_v29  ;;  %v34817_v29 = vld [vmem:[%s41059_s0 + $0x330] sm:$0xff] }
  0xc4   :  { %41527 = vst [vmem:[#allocation56_spill] sm:$0xff] %v34817_v29 }
  0xc5   :  { %v291_v9 = vadd.f32 %v290_v53, %v34793_v45  ;;  %v34823_v45 = vld [vmem:[%s41059_s0 + $0x338] sm:$0xff] }
  0xc6   :  { %41528 = vst [vmem:[#allocation57_spill] sm:$0xff] %v34823_v45 }
  0xc7   :  { %v292_v22 = vadd.f32 %v291_v9, %v34799_v61  ;;  %v34829_v61 = vld [vmem:[%s41059_s0 + $0x340] sm:$0xff] }
  0xc8   :  { %41529 = vst [vmem:[#allocation58_spill] sm:$0xff] %v34829_v61 }
  0xc9   :  { %v293_v37 = vadd.f32 %v292_v22, %v34805_v1  ;;  %v34835_v1 = vld [vmem:[%s41059_s0 + $0x348] sm:$0xff] }
  0xca   :  { %41530 = vst [vmem:[#allocation59_spill] sm:$0xff] %v34835_v1 }
  0xcb   :  { %v294_v53 = vadd.f32 %v293_v37, %v34811_v15  ;;  %v34841_v15 = vld [vmem:[%s41059_s0 + $0x350] sm:$0xff] }
  0xcc   :  { %41531 = vst [vmem:[#allocation60_spill] sm:$0xff] %v34841_v15 }
  0xcd   :  { %v295_v9 = vadd.f32 %v294_v53, %v34817_v29  ;;  %v34847_v29 = vld [vmem:[%s41059_s0 + $0x358] sm:$0xff] }
  0xce   :  { %41532 = vst [vmem:[#allocation61_spill] sm:$0xff] %v34847_v29 }
  0xcf   :  { %v296_v22 = vadd.f32 %v295_v9, %v34823_v45 }
  0xd1   :  { %v297_v37 = vadd.f32 %v296_v22, %v34829_v61  ;;  %v34854_v22 = vld [vmem:[%s41059_s0 + $0x360] sm:$0xff] }
  0xd2   :  { %41533 = vst [vmem:[#allocation62_spill] sm:$0xff] %v34854_v22 }
  0xd3   :  { %v298_v53 = vadd.f32 %v297_v37, %v34835_v1  ;;  %v34860_v37 = vld [vmem:[%s41059_s0 + $0x368] sm:$0xff] }
  0xd4   :  { %41534 = vst [vmem:[#allocation63_spill] sm:$0xff] %v34860_v37 }
  0xd5   :  { %v299_v9 = vadd.f32 %v298_v53, %v34841_v15  ;;  %v34866_v53 = vld [vmem:[%s41059_s0 + $0x370] sm:$0xff] }
  0xd6   :  { %41535 = vst [vmem:[#allocation64_spill] sm:$0xff] %v34866_v53 }
  0xd7   :  { %v300_v45 = vadd.f32 %v299_v9, %v34847_v29  ;;  %v34872_v29 = vld [vmem:[%s41059_s0 + $0x378] sm:$0xff] }
  0xd8   :  { %41536 = vst [vmem:[#allocation65_spill] sm:$0xff] %v34872_v29 }
  0xd9   :  { %v301_v61 = vadd.f32 %v300_v45, %v34854_v22  ;;  %v34878_v22 = vld [vmem:[%s41059_s0 + $0x380] sm:$0xff] }
  0xda   :  { %41537 = vst [vmem:[#allocation66_spill] sm:$0xff] %v34878_v22 }
  0xdb   :  { %v302_v1 = vadd.f32 %v301_v61, %v34860_v37  ;;  %v34884_v37 = vld [vmem:[%s41059_s0 + $0x388] sm:$0xff] }
  0xdc   :  { %41538 = vst [vmem:[#allocation67_spill] sm:$0xff] %v34884_v37 }
  0xdd   :  { %v303_v9 = vadd.f32 %v302_v1, %v34866_v53  ;;  %v34890_v53 = vld [vmem:[%s41059_s0 + $0x390] sm:$0xff] }
  0xde   :  { %41539 = vst [vmem:[#allocation68_spill] sm:$0xff] %v34890_v53 }
  0xdf   :  { %v304_v45 = vadd.f32 %v303_v9, %v34872_v29  ;;  %v34896_v29 = vld [vmem:[%s41059_s0 + $0x398] sm:$0xff] }
  0xe0   :  { %41540 = vst [vmem:[#allocation69_spill] sm:$0xff] %v34896_v29 }
  0xe1   :  { %v305_v61 = vadd.f32 %v304_v45, %v34878_v22  ;;  %v182_v22 = vld [vmem:[%s41059_s0 + $0x3a0] sm:$0xff] }
  0xe3   :  { %v306_v1 = vadd.f32 %v305_v61, %v34884_v37  ;;  %v183_v61 = vld [vmem:[%s41059_s0 + $0x3a8] sm:$0xff] }
  0xe5   :  { %v307_v9 = vadd.f32 %v306_v1, %v34890_v53  ;;  %v184_v1 = vld [vmem:[%s41059_s0 + $0x3b0] sm:$0xff] }
  0xe7   :  { %v308_v45 = vadd.f32 %v307_v9, %v34896_v29  ;;  %v186_v29 = vld [vmem:[%s41059_s0 + $0x3c0] sm:$0xff] }
  0xe9   :  { %v309_v15 = vadd.f32 %v308_v45, %v182_v22  ;;  %v187_v45 = vld [vmem:[%s41059_s0 + $0x3c8] sm:$0xff] }
  0xeb   :  { %v310_v37 = vadd.f32 %v309_v15, %v183_v61  ;;  %v188_v61 = vld [vmem:[%s41059_s0 + $0x3d0] sm:$0xff] }
  0xed   :  { %v311_v53 = vadd.f32 %v310_v37, %v184_v1  ;;  %v189_v1 = vld [vmem:[%s41059_s0 + $0x3d8] sm:$0xff] }
  0xef   :  { %v312_v9 = vadd.f32 %v311_v53, %v185_v57  ;;  %v190_v53 = vld [vmem:[%s41059_s0 + $0x3e0] sm:$0xff] }
  0xf1   :  { %v313_v22 = vadd.f32 %v312_v9, %v186_v29  ;;  %v191_v9 = vld [vmem:[%s41059_s0 + $0x3e8] sm:$0xff] }
  0xf3   :  { %v314_v15 = vadd.f32 %v313_v22, %v187_v45  ;;  %v192_v45 = vld [vmem:[%s41059_s0 + $0x3f0] sm:$0xff] }
  0xf5   :  { %v315_v37 = vadd.f32 %v314_v15, %v188_v61  ;;  %v193_v61 = vld [vmem:[%s41059_s0 + $0x3f8] sm:$0xff] }
  0xf7   :  { %v316_v57 = vadd.f32 %v315_v37, %v189_v1 }
  0xf9   :  { %v317_v29 = vadd.f32 %v316_v57, %v190_v53 }
  0xfb   :  { %v318_v22 = vadd.f32 %v317_v29, %v191_v9 }
  0xfd   :  { %v319_v15 = vadd.f32 %v318_v22, %v192_v45 }
  0xff   :  { %v320_v37 = vadd.f32 %v319_v15, %v193_v61 }
 0x101   :  { %v321_v1 = vrot.slane %v320_v37, 4 }
 0x103   :  { %v322_v49 = vadd.f32 %v321_v1, %v320_v37 }
 0x105   :  { %v323_v41 = vrot.slane %v322_v49, 2 }
 0x107   :  { %v324_v33 = vadd.f32 %v323_v41, %v322_v49 }
 0x109   :  { %v325_v57 = vrot.slane %v324_v33, 1 }
 0x10b   :  { %v326_v53 = vadd.f32 %v325_v57, %v324_v33 }
 0x10d   :  { %v34935_v25 = vmul.f32 0.0009765625, %v326_v53 }
 0x10f   :  { %v329_v29 = vsub.f32 %v34194_v4, %v34935_v25  ;;  %v330_v9 = vsub.f32 %v34199_v5, %v34935_v25  ;;  %v331_v22 = vsub.f32 %v34204_v6, %v34935_v25  ;;  %v332_v45 = vsub.f32 %v34211_v8, %v34935_v25 }
 0x110   :  { %v333_v41 = vsub.f32 %v34220_v11, %v34935_v25  ;;  %v334_v49 = vsub.f32 %v34226_v13, %v34935_v25  ;;  %v335_v5 = vsub.f32 %v34235_v16, %v34935_v25  ;;  %v336_v6 = vsub.f32 %v34241_v18, %v34935_v25 }
 0x111   :  { %v457_v15 = vmul.f32 %v329_v29, %v329_v29  ;;  %v458_v61 = vmul.f32 %v330_v9, %v330_v9  ;;  %v459_v33 = vmul.f32 %v331_v22, %v331_v22  ;;  %v460_v37 = vmul.f32 %v332_v45, %v332_v45 }
 0x112   :  { %v461_v1 = vmul.f32 %v333_v41, %v333_v41  ;;  %v462_v8 = vmul.f32 %v334_v49, %v334_v49  ;;  %v337_v29 = vsub.f32 %v34250_v21, %v34935_v25  ;;  %v463_v11 = vmul.f32 %v335_v5, %v335_v5 }
 0x113   :  { %v585_v4 = vadd.f32 %v458_v61, %v457_v15  ;;  %v338_v13 = vsub.f32 %v34256_v23, %v34935_v25  ;;  %v464_v22 = vmul.f32 %v336_v6, %v336_v6  ;;  %v339_v16 = vsub.f32 %v34265_v26, %v34935_v25 }
 0x114   :  { %v465_v15 = vmul.f32 %v337_v29, %v337_v29  ;;  %v340_v18 = vsub.f32 %v34271_v28, %v34935_v25  ;;  %v341_v21 = vsub.f32 %v34277_v30, %v34935_v25  ;;  %v342_v23 = vsub.f32 %v34283_v32, %v34935_v25 }
 0x115   :  { %v586_v57 = vadd.f32 %v585_v4, %v459_v33  ;;  %v466_v41 = vmul.f32 %v338_v13, %v338_v13  ;;  %v467_v49 = vmul.f32 %v339_v16, %v339_v16  ;;  %v343_v26 = vsub.f32 %v34289_v34, %v34935_v25 }
 0x116   :  { %v468_v4 = vmul.f32 %v340_v18, %v340_v18  ;;  %v344_v28 = vsub.f32 %v34295_v36, %v34935_v25  ;;  %v470_v6 = vmul.f32 %v342_v23, %v342_v23  ;;  %v345_v30 = vsub.f32 %v34301_v38, %v34935_v25 }
 0x117   :  { %v587_v53 = vadd.f32 %v586_v57, %v460_v37  ;;  %v346_v32 = vsub.f32 %v34307_v40, %v34935_v25  ;;  %v347_v34 = vsub.f32 %v34313_v42, %v34935_v25  ;;  %v348_v36 = vsub.f32 %v34319_v44, %v34935_v25 }
 0x118   :  { %v473_v13 = vmul.f32 %v345_v30, %v345_v30  ;;  %v349_v38 = vsub.f32 %v34325_v46, %v34935_v25  ;;  %v350_v40 = vsub.f32 %v34331_v48, %v34935_v25  ;;  %v351_v42 = vsub.f32 %v34337_v50, %v34935_v25 }
 0x119   :  { %v588_v9 = vadd.f32 %v587_v53, %v461_v1  ;;  %v469_v1 = vmul.f32 %v341_v21, %v341_v21  ;;  %v471_v53 = vmul.f32 %v343_v26, %v343_v26  ;;  %v476_v18 = vmul.f32 %v348_v36, %v348_v36 }
 0x11a   :  { %v352_v44 = vsub.f32 %v34343_v52, %v34935_v25  ;;  %v353_v46 = vsub.f32 %v34349_v54, %v34935_v25  ;;  %v479_v23 = vmul.f32 %v351_v42, %v351_v42  ;;  %v354_v48 = vsub.f32 %v34355_v56, %v34935_v25 }
 0x11b   :  { %v589_v45 = vadd.f32 %v588_v9, %v462_v8  ;;  %v355_v50 = vsub.f32 %v34361_v58, %v34935_v25  ;;  %v356_v52 = vsub.f32 %v34367_v60, %v34935_v25  ;;  %v357_v54 = vsub.f32 %v34373_v62, %v34935_v25 }
 0x11c   :  { %v358_v56 = vsub.f32 %v34379_v0, %v34935_v25  ;;  %v359_v58 = vsub.f32 %v34385_v2, %v34935_v25  ;;  %v360_v60 = vsub.f32 %v34391_v7, %v34935_v25  ;;  %v361_v62 = vsub.f32 %v34397_v10, %v34935_v25 }
 0x11d   :  { %v590_v61 = vadd.f32 %v589_v45, %v463_v11  ;;  %v472_v11 = vmul.f32 %v344_v28, %v344_v28  ;;  %v474_v45 = vmul.f32 %v346_v32, %v346_v32  ;;  %v482_v28 = vmul.f32 %v354_v48, %v354_v48 }
 0x11e   :  { %v485_v32 = vmul.f32 %v357_v54, %v357_v54  ;;  %v362_v0 = vsub.f32 %v34403_v14, %v34935_v25  ;;  %v488_v36 = vmul.f32 %v360_v60, %v360_v60  ;;  %v363_v2 = vsub.f32 %v34409_v17, %v34935_v25 }
 0x11f   :  { %v591_v33 = vadd.f32 %v590_v61, %v464_v22  ;;  %v364_v7 = vsub.f32 %v34415_v20, %v34935_v25  ;;  %v365_v10 = vsub.f32 %v34421_v24, %v34935_v25  ;;  %v366_v14 = vsub.f32 %v34427_v27, %v34935_v25 }
 0x120   :  { %v367_v17 = vsub.f32 %v34433_v31, %v34935_v25  ;;  %v368_v20 = vsub.f32 %v34439_v35, %v34935_v25  ;;  %v369_v24 = vsub.f32 %v34445_v39, %v34935_v25  ;;  %v370_v27 = vsub.f32 %v34451_v43, %v34935_v25 }
 0x121   :  { %v592_v37 = vadd.f32 %v591_v33, %v465_v15  ;;  %v475_v15 = vmul.f32 %v347_v34, %v347_v34  ;;  %v477_v33 = vmul.f32 %v349_v38, %v349_v38  ;;  %v371_v31 = vsub.f32 %v34457_v47, %v34935_v25 }
 0x122   :  { %v497_v48 = vmul.f32 %v369_v24, %v369_v24  ;;  %v372_v35 = vsub.f32 %v34463_v51, %v34935_v25  ;;  %v373_v39 = vsub.f32 %v34469_v55, %v34935_v25  ;;  %v374_v43 = vsub.f32 %v34475_v59, %v34935_v25 }
 0x123   :  { %v593_v5 = vadd.f32 %v592_v37, %v466_v41  ;;  %v375_v47 = vsub.f32 %v34481_v63, %v34935_v25  ;;  %v376_v51 = vsub.f32 %v34487_v3, %v34935_v25  ;;  %v377_v55 = vsub.f32 %v34493_v12, %v34935_v25 }
 0x124   :  { %v378_v59 = vsub.f32 %v34499_v19, %v34935_v25 }
 0x125   :  { %v594_v57 = vadd.f32 %v593_v5, %v467_v49  ;;  %v478_v49 = vmul.f32 %v350_v40, %v350_v40  ;;  %v480_v5 = vmul.f32 %v352_v44, %v352_v44  ;;  %v491_v40 = vmul.f32 %v363_v2, %v363_v2 }
 0x126   :  { %v494_v44 = vmul.f32 %v366_v14, %v366_v14  ;;  %v41547_v14 = vld [vmem:[#allocation10_spill] sm:$0xff] }
 0x127   :  { %v595_v8 = vadd.f32 %v594_v57, %v468_v4 }
 0x129   :  { %v596_v29 = vadd.f32 %v595_v8, %v469_v1  ;;  %v481_v1 = vmul.f32 %v353_v46, %v353_v46  ;;  %v483_v8 = vmul.f32 %v355_v50, %v355_v50 }
 0x12b   :  { %v597_v9 = vadd.f32 %v596_v29, %v470_v6 }
 0x12d   :  { %v598_v22 = vadd.f32 %v597_v9, %v471_v53  ;;  %v484_v53 = vmul.f32 %v356_v52, %v356_v52  ;;  %v486_v9 = vmul.f32 %v358_v56, %v358_v56  ;;  %v500_v52 = vmul.f32 %v372_v35, %v372_v35 }
 0x12e   :  { %v503_v56 = vmul.f32 %v375_v47, %v375_v47 }
 0x12f   :  { %v599_v16 = vadd.f32 %v598_v22, %v472_v11 }
 0x131   :  { %v600_v61 = vadd.f32 %v599_v16, %v473_v13  ;;  %v487_v13 = vmul.f32 %v359_v58, %v359_v58  ;;  %v489_v16 = vmul.f32 %v361_v62, %v361_v62 }
 0x133   :  { %v601_v41 = vadd.f32 %v600_v61, %v474_v45 }
 0x135   :  { %v602_v21 = vadd.f32 %v601_v41, %v475_v15  ;;  %v490_v15 = vmul.f32 %v362_v0, %v362_v0  ;;  %v492_v41 = vmul.f32 %v364_v7, %v364_v7 }
 0x137   :  { %v603_v37 = vadd.f32 %v602_v21, %v476_v18 }
 0x139   :  { %v604_v4 = vadd.f32 %v603_v37, %v477_v33  ;;  %v493_v33 = vmul.f32 %v365_v10, %v365_v10  ;;  %v495_v37 = vmul.f32 %v367_v17, %v367_v17 }
 0x13b   :  { %v605_v26 = vadd.f32 %v604_v4, %v478_v49 }
 0x13d   :  { %v606_v57 = vadd.f32 %v605_v26, %v479_v23  ;;  %v496_v23 = vmul.f32 %v368_v20, %v368_v20  ;;  %v498_v26 = vmul.f32 %v370_v27, %v370_v27  ;;  %v41550_v27 = vld [vmem:[#allocation13_spill] sm:$0xff] }
 0x13f   :  { %v607_v6 = vadd.f32 %v606_v57, %v480_v5 }
 0x141   :  { %v608_v30 = vadd.f32 %v607_v6, %v481_v1  ;;  %v499_v1 = vmul.f32 %v371_v31, %v371_v31  ;;  %v501_v6 = vmul.f32 %v373_v39, %v373_v39 }
 0x143   :  { %v609_v29 = vadd.f32 %v608_v30, %v482_v28 }
 0x145   :  { %v610_v11 = vadd.f32 %v609_v29, %v483_v8  ;;  %v502_v8 = vmul.f32 %v374_v43, %v374_v43  ;;  %v504_v29 = vmul.f32 %v376_v51, %v376_v51  ;;  %v41553_v43 = vld [vmem:[#allocation16_spill] sm:$0xff] }
 0x147   :  { %v611_v34 = vadd.f32 %v610_v11, %v484_v53  ;;  %v505_v11 = vmul.f32 %v377_v55, %v377_v55 }
 0x149   :  { %v612_v22 = vadd.f32 %v611_v34, %v485_v32  ;;  %v41541_v32 = vld [vmem:[#allocation4_spill] sm:$0xff]  ;;  %v506_v34 = vmul.f32 %v378_v59, %v378_v59  ;;  %v41556_v59 = vld [vmem:[#allocation19_spill] sm:$0xff] }
 0x14a   :  { %v379_v63 = vsub.f32 %v41541_v32, %v34935_v25 }
 0x14b   :  { %v613_v45 = vadd.f32 %v612_v22, %v486_v9  ;;  %v41542_v9 = vld [vmem:[#allocation5_spill] sm:$0xff] }
 0x14c   :  { %v380_v3 = vsub.f32 %v41542_v9, %v34935_v25  ;;  %v507_v22 = vmul.f32 %v379_v63, %v379_v63  ;;  %v41557_v63 = vld [vmem:[#allocation20_spill] sm:$0xff] }
 0x14d   :  { %v614_v38 = vadd.f32 %v613_v45, %v487_v13  ;;  %v41543_v13 = vld [vmem:[#allocation6_spill] sm:$0xff] }
 0x14e   :  { %v381_v12 = vsub.f32 %v41543_v13, %v34935_v25  ;;  %v508_v45 = vmul.f32 %v380_v3, %v380_v3  ;;  %v41558_v3 = vld [vmem:[#allocation21_spill] sm:$0xff] }
 0x14f   :  { %v615_v61 = vadd.f32 %v614_v38, %v488_v36  ;;  %v41544_v36 = vld [vmem:[#allocation7_spill] sm:$0xff] }
 0x150   :  { %v382_v19 = vsub.f32 %v41544_v36, %v34935_v25  ;;  %v509_v7 = vmul.f32 %v381_v12, %v381_v12  ;;  %v41559_v12 = vld [vmem:[#allocation22_spill] sm:$0xff] }
 0x151   :  { %v616_v18 = vadd.f32 %v615_v61, %v489_v16  ;;  %v41545_v16 = vld [vmem:[#allocation8_spill] sm:$0xff]  ;;  %v41546_v61 = vld [vmem:[#allocation9_spill] sm:$0xff] }
 0x152   :  { %v383_v38 = vsub.f32 %v41545_v16, %v34935_v25  ;;  %v384_v10 = vsub.f32 %v41546_v61, %v34935_v25 }
 0x153   :  { %v617_v42 = vadd.f32 %v616_v18, %v490_v15 }
 0x154   :  { %v512_v20 = vmul.f32 %v384_v10, %v384_v10  ;;  %v41562_v10 = vld [vmem:[#allocation25_spill] sm:$0xff] }
 0x155   :  { %v618_v21 = vadd.f32 %v617_v42, %v491_v40  ;;  %v510_v40 = vmul.f32 %v382_v19, %v382_v19  ;;  %v511_v42 = vmul.f32 %v383_v38, %v383_v38  ;;  %v41560_v19 = vld [vmem:[#allocation23_spill] sm:$0xff]  ;;  %v41561_v38 = vld [vmem:[#allocation24_spill] sm:$0xff] }
 0x157   :  { %v619_v49 = vadd.f32 %v618_v21, %v492_v41  ;;  %v385_v41 = vsub.f32 %v41547_v14, %v34935_v25 }
 0x159   :  { %v620_v46 = vadd.f32 %v619_v49, %v493_v33  ;;  %v41548_v33 = vld [vmem:[#allocation11_spill] sm:$0xff]  ;;  %v41549_v49 = vld [vmem:[#allocation12_spill] sm:$0xff] }
 0x15a   :  { %v386_v21 = vsub.f32 %v41548_v33, %v34935_v25  ;;  %v387_v24 = vsub.f32 %v41549_v49, %v34935_v25 }
 0x15b   :  { %v621_v4 = vadd.f32 %v620_v46, %v494_v44 }
 0x15c   :  { %v515_v35 = vmul.f32 %v387_v24, %v387_v24  ;;  %v41565_v24 = vld [vmem:[#allocation28_spill] sm:$0xff] }
 0x15d   :  { %v622_v5 = vadd.f32 %v621_v4, %v495_v37  ;;  %v513_v37 = vmul.f32 %v385_v41, %v385_v41  ;;  %v514_v4 = vmul.f32 %v386_v21, %v386_v21  ;;  %v41563_v41 = vld [vmem:[#allocation26_spill] sm:$0xff]  ;;  %v41564_v21 = vld [vmem:[#allocation27_spill] sm:$0xff] }
 0x15f   :  { %v623_v50 = vadd.f32 %v622_v5, %v496_v23  ;;  %v388_v23 = vsub.f32 %v41550_v27, %v34935_v25 }
 0x161   :  { %v624_v57 = vadd.f32 %v623_v50, %v497_v48  ;;  %v41551_v48 = vld [vmem:[#allocation14_spill] sm:$0xff]  ;;  %v41552_v50 = vld [vmem:[#allocation15_spill] sm:$0xff] }
 0x162   :  { %v389_v5 = vsub.f32 %v41551_v48, %v34935_v25  ;;  %v390_v39 = vsub.f32 %v41552_v50, %v34935_v25 }
 0x163   :  { %v625_v28 = vadd.f32 %v624_v57, %v498_v26 }
 0x164   :  { %v518_v51 = vmul.f32 %v390_v39, %v390_v39  ;;  %v41568_v39 = vld [vmem:[#allocation31_spill] sm:$0xff] }
 0x165   :  { %v626_v54 = vadd.f32 %v625_v28, %v499_v1  ;;  %v516_v1 = vmul.f32 %v388_v23, %v388_v23  ;;  %v517_v28 = vmul.f32 %v389_v5, %v389_v5  ;;  %v41566_v23 = vld [vmem:[#allocation29_spill] sm:$0xff]  ;;  %v41567_v5 = vld [vmem:[#allocation30_spill] sm:$0xff] }
 0x167   :  { %v627_v30 = vadd.f32 %v626_v54, %v500_v52  ;;  %v391_v52 = vsub.f32 %v41553_v43, %v34935_v25 }
 0x169   :  { %v628_v53 = vadd.f32 %v627_v30, %v501_v6  ;;  %v41554_v6 = vld [vmem:[#allocation17_spill] sm:$0xff]  ;;  %v41555_v30 = vld [vmem:[#allocation18_spill] sm:$0xff] }
 0x16a   :  { %v392_v54 = vsub.f32 %v41554_v6, %v34935_v25  ;;  %v393_v55 = vsub.f32 %v41555_v30, %v34935_v25 }
 0x16b   :  { %v629_v58 = vadd.f32 %v628_v53, %v502_v8 }
 0x16d   :  { %v630_v60 = vadd.f32 %v629_v58, %v503_v56  ;;  %v519_v56 = vmul.f32 %v391_v52, %v391_v52  ;;  %v520_v58 = vmul.f32 %v392_v54, %v392_v54  ;;  %v41569_v52 = vld [vmem:[#allocation32_spill] sm:$0xff]  ;;  %v41570_v54 = vld [vmem:[#allocation33_spill] sm:$0xff] }
 0x16f   :  { %v631_v62 = vadd.f32 %v630_v60, %v504_v29  ;;  %v394_v29 = vsub.f32 %v41556_v59, %v34935_v25  ;;  %v521_v60 = vmul.f32 %v393_v55, %v393_v55  ;;  %v41571_v55 = vld [vmem:[#allocation34_spill] sm:$0xff] }
 0x171   :  { %v632_v0 = vadd.f32 %v631_v62, %v505_v11  ;;  %v395_v11 = vsub.f32 %v41557_v63, %v34935_v25  ;;  %v522_v62 = vmul.f32 %v394_v29, %v394_v29  ;;  %v41572_v29 = vld [vmem:[#allocation35_spill] sm:$0xff] }
 0x173   :  { %v633_v2 = vadd.f32 %v632_v0, %v506_v34  ;;  %v396_v34 = vsub.f32 %v41558_v3, %v34935_v25  ;;  %v523_v0 = vmul.f32 %v395_v11, %v395_v11  ;;  %v41573_v11 = vld [vmem:[#allocation36_spill] sm:$0xff] }
 0x175   :  { %v634_v15 = vadd.f32 %v633_v2, %v507_v22  ;;  %v397_v22 = vsub.f32 %v41559_v12, %v34935_v25  ;;  %v524_v2 = vmul.f32 %v396_v34, %v396_v34  ;;  %v41574_v34 = vld [vmem:[#allocation37_spill] sm:$0xff] }
 0x177   :  { %v635_v18 = vadd.f32 %v634_v15, %v508_v45  ;;  %v398_v45 = vsub.f32 %v41560_v19, %v34935_v25  ;;  %v525_v15 = vmul.f32 %v397_v22, %v397_v22  ;;  %v41575_v22 = vld [vmem:[#allocation38_spill] sm:$0xff] }
 0x179   :  { %v636_v17 = vadd.f32 %v635_v18, %v509_v7  ;;  %v399_v7 = vsub.f32 %v41561_v38, %v34935_v25  ;;  %v526_v18 = vmul.f32 %v398_v45, %v398_v45  ;;  %v41576_v45 = vld [vmem:[#allocation39_spill] sm:$0xff] }
 0x17b   :  { %v637_v44 = vadd.f32 %v636_v17, %v510_v40  ;;  %v400_v40 = vsub.f32 %v41562_v10, %v34935_v25  ;;  %v527_v17 = vmul.f32 %v399_v7, %v399_v7  ;;  %v41577_v7 = vld [vmem:[#allocation40_spill] sm:$0xff] }
 0x17d   :  { %v638_v46 = vadd.f32 %v637_v44, %v511_v42  ;;  %v401_v42 = vsub.f32 %v41563_v41, %v34935_v25  ;;  %v528_v44 = vmul.f32 %v400_v40, %v400_v40  ;;  %v41578_v40 = vld [vmem:[#allocation41_spill] sm:$0xff] }
 0x17f   :  { %v639_v31 = vadd.f32 %v638_v46, %v512_v20  ;;  %v402_v20 = vsub.f32 %v41564_v21, %v34935_v25  ;;  %v529_v46 = vmul.f32 %v401_v42, %v401_v42  ;;  %v41579_v42 = vld [vmem:[#allocation42_spill] sm:$0xff] }
 0x181   :  { %v640_v26 = vadd.f32 %v639_v31, %v513_v37  ;;  %v403_v37 = vsub.f32 %v41565_v24, %v34935_v25  ;;  %v530_v31 = vmul.f32 %v402_v20, %v402_v20  ;;  %v41580_v20 = vld [vmem:[#allocation43_spill] sm:$0xff] }
 0x183   :  { %v641_v57 = vadd.f32 %v640_v26, %v514_v4  ;;  %v404_v4 = vsub.f32 %v41566_v23, %v34935_v25  ;;  %v531_v26 = vmul.f32 %v403_v37, %v403_v37  ;;  %v35120_v37 = vld [vmem:[%s41060_s3] sm:$0xff]  }
 0x184   :  { %28272 = vmatprep.subr.bf16.mxu1 %v35120_v37 }
 0x185   :  { %v642_v47 = vadd.f32 %v641_v57, %v515_v35  ;;  %v405_v35 = vsub.f32 %v41567_v5, %v34935_v25  ;;  %v532_v57 = vmul.f32 %v404_v4, %v404_v4 }
 0x187   :  { %v643_v8 = vadd.f32 %v642_v47, %v516_v1  ;;  %v406_v1 = vsub.f32 %v41568_v39, %v34935_v25  ;;  %v533_v47 = vmul.f32 %v405_v35, %v405_v35 }
 0x189   :  { %v644_v53 = vadd.f32 %v643_v8, %v517_v28  ;;  %v407_v28 = vsub.f32 %v41569_v52, %v34935_v25  ;;  %v534_v8 = vmul.f32 %v406_v1, %v406_v1 }
 0x18b   :  { %v645_v32 = vadd.f32 %v644_v53, %v518_v51  ;;  %v408_v51 = vsub.f32 %v41570_v54, %v34935_v25  ;;  %v535_v53 = vmul.f32 %v407_v28, %v407_v28 }
 0x18d   :  { %v646_v9 = vadd.f32 %v645_v32, %v519_v56  ;;  %v409_v56 = vsub.f32 %v41571_v55, %v34935_v25  ;;  %v536_v32 = vmul.f32 %v408_v51, %v408_v51 }
 0x18f   :  { %v647_v13 = vadd.f32 %v646_v9, %v520_v58  ;;  %v410_v58 = vsub.f32 %v41572_v29, %v34935_v25  ;;  %v537_v9 = vmul.f32 %v409_v56, %v409_v56 }
 0x191   :  { %v648_v36 = vadd.f32 %v647_v13, %v521_v60  ;;  %v411_v60 = vsub.f32 %v41573_v11, %v34935_v25  ;;  %v538_v13 = vmul.f32 %v410_v58, %v410_v58 }
 0x193   :  { %v649_v16 = vadd.f32 %v648_v36, %v522_v62  ;;  %v412_v62 = vsub.f32 %v41574_v34, %v34935_v25  ;;  %v539_v36 = vmul.f32 %v411_v60, %v411_v60 }
 0x195   :  { %v650_v61 = vadd.f32 %v649_v16, %v523_v0  ;;  %v413_v0 = vsub.f32 %v41575_v22, %v34935_v25  ;;  %v540_v16 = vmul.f32 %v412_v62, %v412_v62 }
 0x197   :  { %v651_v14 = vadd.f32 %v650_v61, %v524_v2  ;;  %v414_v2 = vsub.f32 %v41576_v45, %v34935_v25  ;;  %v541_v61 = vmul.f32 %v413_v0, %v413_v0 }
 0x199   :  { %v652_v33 = vadd.f32 %v651_v14, %v525_v15  ;;  %v415_v15 = vsub.f32 %v41577_v7, %v34935_v25  ;;  %v542_v14 = vmul.f32 %v414_v2, %v414_v2 }
 0x19b   :  { %v653_v49 = vadd.f32 %v652_v33, %v526_v18  ;;  %v416_v18 = vsub.f32 %v41578_v40, %v34935_v25  ;;  %v543_v33 = vmul.f32 %v415_v15, %v415_v15 }
 0x19d   :  { %v654_v27 = vadd.f32 %v653_v49, %v527_v17  ;;  %v417_v17 = vsub.f32 %v41579_v42, %v34935_v25  ;;  %v544_v49 = vmul.f32 %v416_v18, %v416_v18 }
 0x19f   :  { %v655_v48 = vadd.f32 %v654_v27, %v528_v44  ;;  %v418_v44 = vsub.f32 %v41580_v20, %v34935_v25  ;;  %v545_v23 = vmul.f32 %v417_v17, %v417_v17 }
 0x1a1   :  { %v656_v50 = vadd.f32 %v655_v48, %v529_v46  ;;  %v41581_v46 = vld [vmem:[#allocation44_spill] sm:$0xff]  ;;  %v546_v5 = vmul.f32 %v418_v44, %v418_v44 }
 0x1a2   :  { %v419_v27 = vsub.f32 %v41581_v46, %v34935_v25 }
 0x1a3   :  { %v657_v43 = vadd.f32 %v656_v50, %v530_v31  ;;  %v41582_v31 = vld [vmem:[#allocation45_spill] sm:$0xff] }
 0x1a4   :  { %v420_v48 = vsub.f32 %v41582_v31, %v34935_v25  ;;  %v547_v39 = vmul.f32 %v419_v27, %v419_v27 }
 0x1a5   :  { %v658_v6 = vadd.f32 %v657_v43, %v531_v26  ;;  %v41583_v26 = vld [vmem:[#allocation46_spill] sm:$0xff] }
 0x1a6   :  { %v421_v50 = vsub.f32 %v41583_v26, %v34935_v25  ;;  %v548_v52 = vmul.f32 %v420_v48, %v420_v48 }
 0x1a7   :  { %v659_v30 = vadd.f32 %v658_v6, %v532_v57  ;;  %v41584_v57 = vld [vmem:[#allocation47_spill] sm:$0xff] }
 0x1a8   :  { %v422_v43 = vsub.f32 %v41584_v57, %v34935_v25  ;;  %v549_v54 = vmul.f32 %v421_v50, %v421_v50 }
 0x1a9   :  { %v660_v59 = vadd.f32 %v659_v30, %v533_v47  ;;  %v41585_v47 = vld [vmem:[#allocation48_spill] sm:$0xff] }
 0x1aa   :  { %v423_v6 = vsub.f32 %v41585_v47, %v34935_v25  ;;  %v550_v55 = vmul.f32 %v422_v43, %v422_v43 }
 0x1ab   :  { %v661_v63 = vadd.f32 %v660_v59, %v534_v8  ;;  %v41586_v8 = vld [vmem:[#allocation49_spill] sm:$0xff] }
 0x1ac   :  { %v424_v30 = vsub.f32 %v41586_v8, %v34935_v25  ;;  %v551_v29 = vmul.f32 %v423_v6, %v423_v6 }
 0x1ad   :  { %v662_v3 = vadd.f32 %v661_v63, %v535_v53  ;;  %v41587_v53 = vld [vmem:[#allocation50_spill] sm:$0xff] }
 0x1ae   :  { %v425_v59 = vsub.f32 %v41587_v53, %v34935_v25  ;;  %v552_v11 = vmul.f32 %v424_v30, %v424_v30 }
 0x1af   :  { %v663_v12 = vadd.f32 %v662_v3, %v536_v32  ;;  %v41588_v32 = vld [vmem:[#allocation51_spill] sm:$0xff] }
 0x1b0   :  { %v426_v63 = vsub.f32 %v41588_v32, %v34935_v25  ;;  %v553_v34 = vmul.f32 %v425_v59, %v425_v59 }
 0x1b1   :  { %v664_v19 = vadd.f32 %v663_v12, %v537_v9  ;;  %v41589_v9 = vld [vmem:[#allocation52_spill] sm:$0xff] }
 0x1b2   :  { %v427_v3 = vsub.f32 %v41589_v9, %v34935_v25  ;;  %v554_v22 = vmul.f32 %v426_v63, %v426_v63 }
 0x1b3   :  { %v665_v38 = vadd.f32 %v664_v19, %v538_v13  ;;  %v41590_v13 = vld [vmem:[#allocation53_spill] sm:$0xff] }
 0x1b4   :  { %v428_v12 = vsub.f32 %v41590_v13, %v34935_v25  ;;  %v555_v45 = vmul.f32 %v427_v3, %v427_v3 }
 0x1b5   :  { %v666_v10 = vadd.f32 %v665_v38, %v539_v36  ;;  %v41591_v36 = vld [vmem:[#allocation54_spill] sm:$0xff] }
 0x1b6   :  { %v429_v19 = vsub.f32 %v41591_v36, %v34935_v25  ;;  %v556_v7 = vmul.f32 %v428_v12, %v428_v12 }
 0x1b7   :  { %v667_v41 = vadd.f32 %v666_v10, %v540_v16  ;;  %v41592_v16 = vld [vmem:[#allocation55_spill] sm:$0xff] }
 0x1b8   :  { %v430_v38 = vsub.f32 %v41592_v16, %v34935_v25  ;;  %v557_v40 = vmul.f32 %v429_v19, %v429_v19 }
 0x1b9   :  { %v668_v21 = vadd.f32 %v667_v41, %v541_v61  ;;  %v41593_v61 = vld [vmem:[#allocation56_spill] sm:$0xff] }
 0x1ba   :  { %v431_v10 = vsub.f32 %v41593_v61, %v34935_v25  ;;  %v558_v42 = vmul.f32 %v430_v38, %v430_v38 }
 0x1bb   :  { %v669_v24 = vadd.f32 %v668_v21, %v542_v14  ;;  %v41594_v14 = vld [vmem:[#allocation57_spill] sm:$0xff] }
 0x1bc   :  { %v432_v41 = vsub.f32 %v41594_v14, %v34935_v25  ;;  %v559_v20 = vmul.f32 %v431_v10, %v431_v10 }
 0x1bd   :  { %v670_v4 = vadd.f32 %v669_v24, %v543_v33  ;;  %v41595_v33 = vld [vmem:[#allocation58_spill] sm:$0xff] }
 0x1be   :  { %v433_v21 = vsub.f32 %v41595_v33, %v34935_v25  ;;  %v560_v46 = vmul.f32 %v432_v41, %v432_v41 }
 0x1bf   :  { %v671_v35 = vadd.f32 %v670_v4, %v544_v49  ;;  %v41596_v49 = vld [vmem:[#allocation59_spill] sm:$0xff] }
 0x1c0   :  { %v434_v24 = vsub.f32 %v41596_v49, %v34935_v25  ;;  %v561_v31 = vmul.f32 %v433_v21, %v433_v21 }
 0x1c1   :  { %v672_v1 = vadd.f32 %v671_v35, %v545_v23  ;;  %v41597_v23 = vld [vmem:[#allocation60_spill] sm:$0xff] }
 0x1c2   :  { %v435_v4 = vsub.f32 %v41597_v23, %v34935_v25  ;;  %v562_v26 = vmul.f32 %v434_v24, %v434_v24 }
 0x1c3   :  { %v673_v28 = vadd.f32 %v672_v1, %v546_v5  ;;  %v41598_v5 = vld [vmem:[#allocation61_spill] sm:$0xff] }
 0x1c4   :  { %v436_v35 = vsub.f32 %v41598_v5, %v34935_v25  ;;  %v563_v57 = vmul.f32 %v435_v4, %v435_v4 }
 0x1c5   :  { %v674_v51 = vadd.f32 %v673_v28, %v547_v39  ;;  %v41599_v39 = vld [vmem:[#allocation62_spill] sm:$0xff] }
 0x1c6   :  { %v437_v1 = vsub.f32 %v41599_v39, %v34935_v25  ;;  %v564_v47 = vmul.f32 %v436_v35, %v436_v35 }
 0x1c7   :  { %v675_v56 = vadd.f32 %v674_v51, %v548_v52  ;;  %v41600_v52 = vld [vmem:[#allocation63_spill] sm:$0xff] }
 0x1c8   :  { %v438_v28 = vsub.f32 %v41600_v52, %v34935_v25  ;;  %v565_v8 = vmul.f32 %v437_v1, %v437_v1 }
 0x1c9   :  { %v676_v58 = vadd.f32 %v675_v56, %v549_v54  ;;  %v41601_v54 = vld [vmem:[#allocation64_spill] sm:$0xff] }
 0x1ca   :  { %v439_v51 = vsub.f32 %v41601_v54, %v34935_v25  ;;  %v566_v53 = vmul.f32 %v438_v28, %v438_v28 }
 0x1cb   :  { %v677_v60 = vadd.f32 %v676_v58, %v550_v55  ;;  %v41602_v55 = vld [vmem:[#allocation65_spill] sm:$0xff] }
 0x1cc   :  { %v440_v56 = vsub.f32 %v41602_v55, %v34935_v25  ;;  %v567_v32 = vmul.f32 %v439_v51, %v439_v51 }
 0x1cd   :  { %v678_v62 = vadd.f32 %v677_v60, %v551_v29  ;;  %v41603_v29 = vld [vmem:[#allocation66_spill] sm:$0xff] }
 0x1ce   :  { %v441_v58 = vsub.f32 %v41603_v29, %v34935_v25  ;;  %v568_v9 = vmul.f32 %v440_v56, %v440_v56 }
 0x1cf   :  { %v679_v0 = vadd.f32 %v678_v62, %v552_v11  ;;  %v41604_v11 = vld [vmem:[#allocation67_spill] sm:$0xff] }
 0x1d0   :  { %v442_v60 = vsub.f32 %v41604_v11, %v34935_v25  ;;  %v569_v13 = vmul.f32 %v441_v58, %v441_v58 }
 0x1d1   :  { %v680_v2 = vadd.f32 %v679_v0, %v553_v34  ;;  %v41605_v34 = vld [vmem:[#allocation68_spill] sm:$0xff] }
 0x1d2   :  { %v443_v62 = vsub.f32 %v41605_v34, %v34935_v25  ;;  %v570_v36 = vmul.f32 %v442_v60, %v442_v60 }
 0x1d3   :  { %v681_v15 = vadd.f32 %v680_v2, %v554_v22  ;;  %v41606_v22 = vld [vmem:[#allocation69_spill] sm:$0xff] }
 0x1d4   :  { %v444_v0 = vsub.f32 %v41606_v22, %v34935_v25  ;;  %v571_v16 = vmul.f32 %v443_v62, %v443_v62 }
 0x1d5   :  { %v682_v18 = vadd.f32 %v681_v15, %v555_v45  ;;  %v34121_v45 = vld [vmem:[%s41059_s0 + $0x3a0] sm:$0xff] }
 0x1d6   :  { %v445_v2 = vsub.f32 %v34121_v45, %v34935_v25  ;;  %v572_v61 = vmul.f32 %v444_v0, %v444_v0  ;;  %v727_v45 = vlaneseq }
 0x1d7   :  { %v683_v17 = vadd.f32 %v682_v18, %v556_v7  ;;  %v34122_v7 = vld [vmem:[%s41059_s0 + $0x3a8] sm:$0xff] }
 0x1d8   :  { %v446_v15 = vsub.f32 %v34122_v7, %v34935_v25  ;;  %v573_v14 = vmul.f32 %v445_v2, %v445_v2  ;;  %v728_v2 = vshrl.u32 %v727_v45, 7  ;;  %v33975_v45 = vld [vmem:[%s41060_s3 + $0x10] sm:$0xff]  }
 0x1d9   :  { %v684_v44 = vadd.f32 %v683_v17, %v557_v40  ;;  %v34123_v40 = vld [vmem:[%s41059_s0 + $0x3b0] sm:$0xff] }
 0x1da   :  { %v447_v18 = vsub.f32 %v34123_v40, %v34935_v25  ;;  %v574_v33 = vmul.f32 %v446_v15, %v446_v15  ;;  %v1059_v40 = vld [vmem:[%s41059_s0 + $0x208] sm:$0xff] }
 0x1db   :  { %v685_v27 = vadd.f32 %v684_v44, %v558_v42  ;;  %v34124_v42 = vld [vmem:[%s41059_s0 + $0x3b8] sm:$0xff] }
 0x1dc   :  { %v448_v17 = vsub.f32 %v34124_v42, %v34935_v25  ;;  %v575_v49 = vmul.f32 %v447_v18, %v447_v18  ;;  %v1060_v18 = vld [vmem:[%s41059_s0 + $0x210] sm:$0xff]  ;;  %v1061_v42 = vld [vmem:[%s41059_s0 + $0x218] sm:$0xff] }
 0x1dd   :  { %v686_v48 = vadd.f32 %v685_v27, %v559_v20  ;;  %v34125_v20 = vld [vmem:[%s41059_s0 + $0x3c0] sm:$0xff] }
 0x1de   :  { %v449_v44 = vsub.f32 %v34125_v20, %v34935_v25  ;;  %v576_v23 = vmul.f32 %v448_v17, %v448_v17  ;;  %v1062_v17 = vld [vmem:[%s41059_s0 + $0x220] sm:$0xff] }
 0x1df   :  { %v687_v50 = vadd.f32 %v686_v48, %v560_v46  ;;  %v34126_v46 = vld [vmem:[%s41059_s0 + $0x3c8] sm:$0xff] }
 0x1e0   :  { %v450_v27 = vsub.f32 %v34126_v46, %v34935_v25  ;;  %v577_v5 = vmul.f32 %v449_v44, %v449_v44  ;;  %v1066_v46 = vld [vmem:[%s41059_s0 + $0x240] sm:$0xff] }
 0x1e1   :  { %v688_v43 = vadd.f32 %v687_v50, %v561_v31  ;;  %v34127_v31 = vld [vmem:[%s41059_s0 + $0x3d0] sm:$0xff] }
 0x1e2   :  { %v451_v48 = vsub.f32 %v34127_v31, %v34935_v25  ;;  %v578_v39 = vmul.f32 %v450_v27, %v450_v27  ;;  %v1067_v27 = vld [vmem:[%s41059_s0 + $0x248] sm:$0xff] }
 0x1e3   :  { %v689_v6 = vadd.f32 %v688_v43, %v562_v26  ;;  %v34128_v26 = vld [vmem:[%s41059_s0 + $0x3d8] sm:$0xff] }
 0x1e4   :  { %v452_v50 = vsub.f32 %v34128_v26, %v34935_v25  ;;  %v579_v52 = vmul.f32 %v451_v48, %v451_v48 }
 0x1e5   :  { %v690_v30 = vadd.f32 %v689_v6, %v563_v57  ;;  %v34129_v57 = vld [vmem:[%s41059_s0 + $0x3e0] sm:$0xff] }
 0x1e6   :  { %v453_v43 = vsub.f32 %v34129_v57, %v34935_v25  ;;  %v580_v54 = vmul.f32 %v452_v50, %v452_v50 }
 0x1e7   :  { %v691_v59 = vadd.f32 %v690_v30, %v564_v47  ;;  %v34130_v47 = vld [vmem:[%s41059_s0 + $0x3e8] sm:$0xff] }
 0x1e8   :  { %v454_v6 = vsub.f32 %v34130_v47, %v34935_v25  ;;  %v581_v55 = vmul.f32 %v453_v43, %v453_v43 }
 0x1e9   :  { %v692_v63 = vadd.f32 %v691_v59, %v565_v8  ;;  %v34131_v8 = vld [vmem:[%s41059_s0 + $0x3f0] sm:$0xff] }
 0x1ea   :  { %v455_v30 = vsub.f32 %v34131_v8, %v34935_v25  ;;  %v582_v29 = vmul.f32 %v454_v6, %v454_v6 }
 0x1eb   :  { %v693_v3 = vadd.f32 %v692_v63, %v566_v53  ;;  %v34132_v53 = vld [vmem:[%s41059_s0 + $0x3f8] sm:$0xff] }
 0x1ec   :  { %v456_v59 = vsub.f32 %v34132_v53, %v34935_v25 }
 0x1ed   :  { %v694_v12 = vadd.f32 %v693_v3, %v567_v32  ;;  %v583_v32 = vmul.f32 %v455_v30, %v455_v30 }
 0x1ee   :  { %v584_v11 = vmul.f32 %v456_v59, %v456_v59 }
 0x1ef   :  { %v695_v19 = vadd.f32 %v694_v12, %v568_v9 }
 0x1f1   :  { %v696_v38 = vadd.f32 %v695_v19, %v569_v13 }
 0x1f3   :  { %v697_v10 = vadd.f32 %v696_v38, %v570_v36  ;;  %v35226_v38 = vsub.s32 0, %v728_v2 }
 0x1f5   :  { %v698_v41 = vadd.f32 %v697_v10, %v571_v16  ;;  %v719_v16 = vld [vmem:[%s41061_s1] sm:$0x1]  ;;  %41607 = vst [vmem:[#allocation4_spill] sm:$0xff] %v35226_v38 }
 0x1f6   :  { %v1058_v10 = vld [vmem:[%s41059_s0 + $0x200] sm:$0xff] }
 0x1f7   :  { %v699_v21 = vadd.f32 %v698_v41, %v572_v61  ;;  %v723_v61 = vld [vmem:[%s41062_s2] sm:$0x1] }
 0x1f9   :  { %v700_v24 = vadd.f32 %v699_v21, %v573_v14  ;;  %v1064_v21 = vld [vmem:[%s41059_s0 + $0x230] sm:$0xff] }
 0x1fb   :  { %v701_v4 = vadd.f32 %v700_v24, %v574_v33  ;;  %v1063_v33 = vld [vmem:[%s41059_s0 + $0x228] sm:$0xff]  ;;  %v1065_v24 = vld [vmem:[%s41059_s0 + $0x238] sm:$0xff] }
 0x1fd   :  { %v702_v35 = vadd.f32 %v701_v4, %v575_v49 }
 0x1ff   :  { %v703_v1 = vadd.f32 %v702_v35, %v576_v23 }
 0x201   :  { %v704_v28 = vadd.f32 %v703_v1, %v577_v5 }
 0x203   :  { %v705_v51 = vadd.f32 %v704_v28, %v578_v39 }
 0x205   :  { %v706_v56 = vadd.f32 %v705_v51, %v579_v52 }
 0x207   :  { %v707_v58 = vadd.f32 %v706_v56, %v580_v54 }
 0x209   :  { %v708_v63 = vadd.f32 %v707_v58, %v581_v55 }
 0x20b   :  { %v709_v60 = vadd.f32 %v708_v63, %v582_v29  ;;  %v1069_v63 = vld [vmem:[%s41059_s0 + $0x258] sm:$0xff] }
 0x20d   :  { %v710_v9 = vadd.f32 %v709_v60, %v583_v32  ;;  %v1068_v32 = vld [vmem:[%s41059_s0 + $0x250] sm:$0xff]  ;;  %v33974_v60 = vld [vmem:[%s41060_s3 + $0x8] sm:$0xff]  }
 0x20f   :  { %v711_v3 = vadd.f32 %v710_v9, %v584_v11  ;;  %v1070_v9 = vld [vmem:[%s41059_s0 + $0x260] sm:$0xff] }
 0x211   :  { %v712_v34 = vrot.slane %v711_v3, 4 }
 0x213   :  { %v713_v62 = vadd.f32 %v712_v34, %v711_v3  ;;  %v1071_v3 = vld [vmem:[%s41059_s0 + $0x268] sm:$0xff] }
 0x215   :  { %v714_v13 = vrot.slane %v713_v62, 2 }
 0x217   :  { %v715_v12 = vadd.f32 %v714_v13, %v713_v62 }
 0x219   :  { %v716_v22 = vrot.slane %v715_v12, 1 }
 0x21b   :  { %v717_v0 = vadd.f32 %v716_v22, %v715_v12 }
 0x21d   :  { %v718_v36 = vmul.f32 0.0009765625, %v717_v0 }
 0x21f   :  { %v720_v19 = vadd.f32 1e-05, %v718_v36 }
 0x221   :  { %34117 = vrsqrt.f32 %v720_v19 }
 0x22b   :  { %v34118_v7 = vpop.eup %34117 }
 0x22c   :  { %v722_v15 = vmul.f32 %v34118_v7, %v719_v16 }
 0x22e   :  { %v724_v14 = vmul.f32 %v722_v15, %v34935_v25  ;;  %v35242_v41 = vrot.slane %v722_v15, %v35226_v38 }
 0x230   :  { %v725_v25 = vsub.f32 %v723_v61, %v724_v14  ;;  %v1074_v20 = vmul.f32 %v1058_v10, %v35242_v41  ;;  %v1075_v44 = vmul.f32 %v1059_v40, %v35242_v41  ;;  %v1076_v49 = vmul.f32 %v1060_v18, %v35242_v41  ;;  %v1072_v10 = vld [vmem:[%s41059_s0 + $0x270] sm:$0xff]  ;;  %v1073_v40 = vld [vmem:[%s41059_s0 + $0x278] sm:$0xff] }
 0x231   :  { %v1077_v23 = vmul.f32 %v1061_v42, %v35242_v41  ;;  %v1078_v4 = vmul.f32 %v1062_v17, %v35242_v41  ;;  %v1079_v31 = vmul.f32 %v1063_v33, %v35242_v41  ;;  %v1080_v5 = vmul.f32 %v1064_v21, %v35242_v41  ;;  %v33976_v18 = vld [vmem:[%s41060_s3 + $0x18] sm:$0xff]  }
 0x232   :  { %v35272_v48 = vrot.slane %v725_v25, %v35226_v38  ;;  %v1081_v35 = vmul.f32 %v1065_v24, %v35242_v41  ;;  %v1082_v26 = vmul.f32 %v1066_v46, %v35242_v41  ;;  %v1083_v50 = vmul.f32 %v1067_v27, %v35242_v41  ;;  %v1138_v27 = vld [vmem:[%s41059_s0 + $0x280] sm:$0xff] }
 0x233   :  { %v1084_v13 = vmul.f32 %v1068_v32, %v35242_v41  ;;  %v1085_v12 = vmul.f32 %v1069_v63, %v35242_v41  ;;  %v1086_v36 = vmul.f32 %v1070_v9, %v35242_v41  ;;  %v1087_v19 = vmul.f32 %v1071_v3, %v35242_v41 }
 0x234   :  { %v1090_v39 = vadd.f32 %v1074_v20, %v35272_v48  ;;  %v1091_v1 = vadd.f32 %v1075_v44, %v35272_v48  ;;  %v1092_v57 = vadd.f32 %v1076_v49, %v35272_v48  ;;  %v1093_v43 = vadd.f32 %v1077_v23, %v35272_v48  ;;  %v33977_v20 = vld [vmem:[%s41060_s3 + $0x20] sm:$0xff]   ;;  %v1139_v23 = vld [vmem:[%s41059_s0 + $0x288] sm:$0xff] }
 0x235   :  { %v1094_v52 = vadd.f32 %v1078_v4, %v35272_v48  ;;  %v1095_v28 = vadd.f32 %v1079_v31, %v35272_v48  ;;  %v1096_v55 = vadd.f32 %v1080_v5, %v35272_v48  ;;  %v1097_v56 = vadd.f32 %v1081_v35, %v35272_v48  ;;  %v33978_v4 = vld [vmem:[%s41060_s3 + $0x28] sm:$0xff]  }
 0x236   :  { %v1106_v47 = vmax.f32 %v1090_v39, 0.0  ;;  %v1107_v6 = vmax.f32 %v1091_v1, 0.0  ;;  %v1108_v54 = vmax.f32 %v1092_v57, 0.0  ;;  %v1109_v51 = vmax.f32 %v1093_v43, 0.0  ;;  %v1140_v43 = vld [vmem:[%s41059_s0 + $0x290] sm:$0xff] }
 0x237   :  { %v1110_v8 = vmax.f32 %v1094_v52, 0.0  ;;  %v1111_v30 = vmax.f32 %v1095_v28, 0.0  ;;  %v1098_v29 = vadd.f32 %v1082_v26, %v35272_v48  ;;  %v1099_v58 = vadd.f32 %v1083_v50, %v35272_v48  ;;  %v33979_v50 = vld [vmem:[%s41060_s3 + $0x30] sm:$0xff]   ;;  %v1141_v52 = vld [vmem:[%s41059_s0 + $0x298] sm:$0xff]  ;;  %v1142_v28 = vld [vmem:[%s41059_s0 + $0x2a0] sm:$0xff] }
 0x238   :  { %v35286_v53 = vpack.c.bf16 %v1107_v6, %v1106_v47  ;;  %v35288_v59 = vpack.c.bf16 %v1109_v51, %v1108_v54  ;;  %v1112_v34 = vmax.f32 %v1096_v55, 0.0  ;;  %v1113_v62 = vmax.f32 %v1097_v56, 0.0  ;;  %v1143_v47 = vld [vmem:[%s41059_s0 + $0x2a8] sm:$0xff]  ;;  %v33980_v6 = vld [vmem:[%s41060_s3 + $0x38] sm:$0xff]  }
 0x239   :  { %v35298_v11 = vpack.c.bf16 %v1111_v30, %v1110_v8  ;;  %v1114_v22 = vmax.f32 %v1098_v29, 0.0  ;;  %v1115_v0 = vmax.f32 %v1099_v58, 0.0  ;;  %v1100_v16 = vadd.f32 %v1084_v13, %v35272_v48  ;;  %v35394_v58 = vld [vmem:[%s41060_s3 + $0x40] sm:$0xff]  }
 0x23a   :  { %28196 = vmatprep.mubr.bf16.mxu1 %v35286_v53  ;;  %v35320_v2 = vpack.c.bf16 %v1113_v62, %v1112_v34  ;;  %v1101_v7 = vadd.f32 %v1085_v12, %v35272_v48  ;;  %v1102_v15 = vadd.f32 %v1086_v36, %v35272_v48  ;;  %v1103_v61 = vadd.f32 %v1087_v19, %v35272_v48  ;;  %v1144_v34 = vld [vmem:[%s41059_s0 + $0x2b0] sm:$0xff]  ;;  %v1145_v62 = vld [vmem:[%s41059_s0 + $0x2b8] sm:$0xff]  ;;  %v1146_v13 = vld [vmem:[%s41059_s0 + $0x2c0] sm:$0xff] }
 0x23b   :  { %28197 = vmatmul.mubr.bf16.vlgmr.msra.gmra.mrb[0].mxu1 %v35288_v59  ;;  %v1116_v14 = vmax.f32 %v1100_v16, 0.0  ;;  %v1088_v17 = vmul.f32 %v1072_v10, %v35242_v41  ;;  %v1089_v33 = vmul.f32 %v1073_v40, %v35242_v41  ;;  %v1154_v35 = vmul.f32 %v1138_v27, %v35242_v41  ;;  %v1147_v12 = vld [vmem:[%s41059_s0 + $0x2c8] sm:$0xff] }
 0x23c   :  { %28273 = vmatpush3.bf16.msra.mxu1 %v35120_v37  ;;  %28200 = vmatprep.mubr.bf16.mxu1 %v35298_v11  ;;  %v35324_v37 = vpack.c.bf16 %v1115_v0, %v1114_v22  ;;  %v1117_v42 = vmax.f32 %v1101_v7, 0.0  ;;  %v1118_v21 = vmax.f32 %v1102_v15, 0.0  ;;  %v1119_v25 = vmax.f32 %v1103_v61, 0.0 }
 0x23d   :  { %28274 = vmatprep.subr.bf16.mxu1 %v33974_v60  ;;  %v1104_v49 = vadd.f32 %v1088_v17, %v35272_v48  ;;  %v1105_v24 = vadd.f32 %v1089_v33, %v35272_v48  ;;  %v1155_v26 = vmul.f32 %v1139_v23, %v35242_v41  ;;  %v1170_v1 = vadd.f32 %v1154_v35, %v35272_v48  ;;  %v1148_v17 = vld [vmem:[%s41059_s0 + $0x2d0] sm:$0xff]  ;;  %v1149_v33 = vld [vmem:[%s41059_s0 + $0x2d8] sm:$0xff] }
 0x23e   :  { %v35344_v44 = vpack.c.bf16 %v1117_v42, %v1116_v14  ;;  %v35348_v46 = vpack.c.bf16 %v1119_v25, %v1118_v21  ;;  %v1156_v54 = vmul.f32 %v1140_v43, %v35242_v41  ;;  %v1157_v51 = vmul.f32 %v1141_v52, %v35242_v41  ;;  %v1150_v21 = vld [vmem:[%s41059_s0 + $0x2e0] sm:$0xff]  ;;  %v1151_v25 = vld [vmem:[%s41059_s0 + $0x2e8] sm:$0xff]  ;;  %v1152_v52 = vld [vmem:[%s41059_s0 + $0x2f0] sm:$0xff] }
 0x23f   :  { %v1120_v31 = vmax.f32 %v1104_v49, 0.0  ;;  %v1121_v5 = vmax.f32 %v1105_v24, 0.0  ;;  %v1171_v57 = vadd.f32 %v1155_v26, %v35272_v48  ;;  %v41133_v8 = vmov 0  }
 0x240   :  { %28275 = vmatpush3.bf16.msra.mxu1 %v33974_v60  ;;  %v1186_v30 = vmax.f32 %v1170_v1, 0.0  ;;  %v1158_v56 = vmul.f32 %v1142_v28, %v35242_v41  ;;  %v1159_v29 = vmul.f32 %v1143_v47, %v35242_v41  ;;  %v1172_v32 = vadd.f32 %v1156_v54, %v35272_v48  ;;  %v1153_v28 = vld [vmem:[%s41059_s0 + $0x2f8] sm:$0xff] }
 0x241   :  { %28276 = vmatprep.subr.bf16.mxu1 %v33975_v45  ;;  %v35366_v39 = vpack.c.bf16 %v1121_v5, %v1120_v31  ;;  %v1187_v55 = vmax.f32 %v1171_v57, 0.0  ;;  %v1173_v63 = vadd.f32 %v1157_v51, %v35272_v48  ;;  %v1160_v36 = vmul.f32 %v1144_v34, %v35242_v41 }
 0x242   :  { %v1174_v9 = vadd.f32 %v1158_v56, %v35272_v48  ;;  %v1175_v3 = vadd.f32 %v1159_v29, %v35272_v48  ;;  %v1188_v22 = vmax.f32 %v1172_v32, 0.0  ;;  %v1161_v19 = vmul.f32 %v1145_v62, %v35242_v41  ;;  %v738_v62 = vld [vmem:[%s41059_s0] sm:$0xff] }
 0x243   :  { %28201 = vmatmul.mubr.bf16.gmra.mrb[4].mxu1 %v35320_v2  ;;  %v35398_v60 = vpack.c.bf16 %v1187_v55, %v1186_v30  ;;  %v1189_v0 = vmax.f32 %v1173_v63, 0.0  ;;  %v1162_v7 = vmul.f32 %v1146_v13, %v35242_v41  ;;  %v1163_v15 = vmul.f32 %v1147_v12, %v35242_v41  ;;  %v1218_v63 = vld [vmem:[%s41059_s0 + $0x300] sm:$0xff]  ;;  %v739_v13 = vld [vmem:[%s41059_s0 + $0x8] sm:$0xff] }
 0x244   :  { %28204 = vmatprep.mubr.bf16.mxu1 %v35324_v37  ;;  %28277 = vmatpush3.bf16.msra.mxu1 %v33975_v45  ;;  %v1190_v45 = vmax.f32 %v1174_v9, 0.0  ;;  %v1191_v16 = vmax.f32 %v1175_v3, 0.0  ;;  %v1176_v10 = vadd.f32 %v1160_v36, %v35272_v48  ;;  %v1177_v40 = vadd.f32 %v1161_v19, %v35272_v48  ;;  %v1219_v3 = vld [vmem:[%s41059_s0 + $0x308] sm:$0xff] }
 0x245   :  { %28278 = vmatprep.subr.bf16.mxu1 %v33976_v18  ;;  %v35421_v61 = vpack.c.bf16 %v1189_v0, %v1188_v22  ;;  %v1178_v14 = vadd.f32 %v1162_v7, %v35272_v48  ;;  %v1179_v42 = vadd.f32 %v1163_v15, %v35272_v48  ;;  %v1164_v24 = vmul.f32 %v1148_v17, %v35242_v41  ;;  %v1220_v7 = vld [vmem:[%s41059_s0 + $0x310] sm:$0xff] }
 0x246   :  { %v1193_v49 = vmax.f32 %v1177_v40, 0.0  ;;  %v1165_v27 = vmul.f32 %v1149_v33, %v35242_v41  ;;  %v1166_v31 = vmul.f32 %v1150_v21, %v35242_v41  ;;  %v1167_v5 = vmul.f32 %v1151_v25, %v35242_v41  ;;  %v1221_v40 = vld [vmem:[%s41059_s0 + $0x318] sm:$0xff]  ;;  %v1222_v33 = vld [vmem:[%s41059_s0 + $0x320] sm:$0xff]  ;;  %v1223_v25 = vld [vmem:[%s41059_s0 + $0x328] sm:$0xff] }
 0x247   :  { %v1194_v23 = vmax.f32 %v1178_v14, 0.0  ;;  %v1180_v26 = vadd.f32 %v1164_v24, %v35272_v48  ;;  %v1168_v54 = vmul.f32 %v1152_v52, %v35242_v41  ;;  %v1169_v51 = vmul.f32 %v1153_v28, %v35242_v41  ;;  %v741_v24 = vld [vmem:[%s41059_s0 + $0x18] sm:$0xff] }
 0x248   :  { %28279 = vmatpush3.bf16.msra.mxu1 %v33976_v18  ;;  %v35425_v18 = vpack.c.bf16 %v1191_v16, %v1190_v45  ;;  %v1182_v57 = vadd.f32 %v1166_v31, %v35272_v48  ;;  %v1183_v43 = vadd.f32 %v1167_v5, %v35272_v48  ;;  %v1234_v34 = vmul.f32 %v1218_v63, %v35242_v41  ;;  %v742_v31 = vld [vmem:[%s41059_s0 + $0x20] sm:$0xff]  ;;  %v743_v5 = vld [vmem:[%s41059_s0 + $0x28] sm:$0xff] }
 0x249   :  { %28280 = vmatprep.subr.bf16.mxu1 %v33977_v20  ;;  %v1196_v47 = vmax.f32 %v1180_v26, 0.0  ;;  %v1184_v29 = vadd.f32 %v1168_v54, %v35272_v48  ;;  %v1185_v32 = vadd.f32 %v1169_v51, %v35272_v48  ;;  %v754_v0 = vmul.f32 %v738_v62, %v35242_v41 }
 0x24a   :  { %v1198_v30 = vmax.f32 %v1182_v57, 0.0  ;;  %v1199_v55 = vmax.f32 %v1183_v43, 0.0  ;;  %v755_v36 = vmul.f32 %v739_v13, %v35242_v41  ;;  %v1235_v19 = vmul.f32 %v1219_v3, %v35242_v41 }
 0x24b   :  { %28205 = vmatmul.mubr.bf16.gmra.mrb[8].mxu1 %v35344_v44  ;;  %v1200_v12 = vmax.f32 %v1184_v29, 0.0  ;;  %v1201_v22 = vmax.f32 %v1185_v32, 0.0  ;;  %v770_v45 = vadd.f32 %v754_v0, %v35272_v48  ;;  %v1236_v21 = vmul.f32 %v1220_v7, %v35242_v41  ;;  %v1224_v29 = vld [vmem:[%s41059_s0 + $0x330] sm:$0xff]  ;;  %v1226_v0 = vld [vmem:[%s41059_s0 + $0x340] sm:$0xff] }
 0x24c   :  { %28208 = vmatprep.mubr.bf16.mxu1 %v35348_v46  ;;  %28281 = vmatpush3.bf16.msra.mxu1 %v33977_v20  ;;  %v1192_v20 = vmax.f32 %v1176_v10, 0.0  ;;  %v35472_v9 = vpack.c.bf16 %v1199_v55, %v1198_v30  ;;  %v771_v16 = vadd.f32 %v755_v36, %v35272_v48  ;;  %v1250_v10 = vadd.f32 %v1234_v34, %v35272_v48  ;;  %v1225_v34 = vld [vmem:[%s41059_s0 + $0x338] sm:$0xff] }
 0x24d   :  { %28282 = vmatprep.subr.bf16.mxu1 %v33978_v4  ;;  %v35494_v15 = vpack.c.bf16 %v1201_v22, %v1200_v12  ;;  %v786_v14 = vmax.f32 %v770_v45, 0.0  ;;  %v1251_v17 = vadd.f32 %v1235_v19, %v35272_v48  ;;  %v758_v57 = vmul.f32 %v742_v31, %v35242_v41 }
 0x24e   :  { %v35447_v35 = vpack.c.bf16 %v1193_v49, %v1192_v20  ;;  %41609 = vst [vmem:[#allocation6_spill] sm:$0xff] %v35472_v9  ;;  %v740_v49 = vld [vmem:[%s41059_s0 + $0x10] sm:$0xff]  ;;  %v1266_v26 = vmax.f32 %v1250_v10, 0.0  ;;  %v759_v43 = vmul.f32 %v743_v5, %v35242_v41  ;;  %v1239_v28 = vmul.f32 %v1223_v25, %v35242_v41  ;;  %v747_v25 = vld [vmem:[%s41059_s0 + $0x48] sm:$0xff] }
 0x24f   :  { %41610 = vst [vmem:[#allocation7_spill] sm:$0xff] %v35494_v15  ;;  %v1267_v52 = vmax.f32 %v1251_v17, 0.0  ;;  %v1252_v54 = vadd.f32 %v1236_v21, %v35272_v48  ;;  %v774_v51 = vadd.f32 %v758_v57, %v35272_v48  ;;  %v1240_v45 = vmul.f32 %v1224_v29, %v35242_v41  ;;  %v744_v10 = vld [vmem:[%s41059_s0 + $0x30] sm:$0xff]  ;;  %v746_v21 = vld [vmem:[%s41059_s0 + $0x40] sm:$0xff] }
 0x250   :  { %28283 = vmatpush3.bf16.msra.mxu1 %v33978_v4  ;;  %v1195_v4 = vmax.f32 %v1179_v42, 0.0  ;;  %v787_v42 = vmax.f32 %v771_v16, 0.0  ;;  %v775_v30 = vadd.f32 %v759_v43, %v35272_v48  ;;  %v1255_v22 = vadd.f32 %v1239_v28, %v35272_v48  ;;  %v1227_v16 = vld [vmem:[%s41059_s0 + $0x348] sm:$0xff]  ;;  %v1228_v28 = vld [vmem:[%s41059_s0 + $0x350] sm:$0xff] }
 0x251   :  { %28284 = vmatprep.subr.bf16.mxu1 %v33979_v50  ;;  %v790_v62 = vmax.f32 %v774_v51, 0.0  ;;  %v35545_v12 = vpack.c.bf16 %v1267_v52, %v1266_v26  ;;  %v1268_v19 = vmax.f32 %v1252_v54, 0.0  ;;  %v760_v17 = vmul.f32 %v744_v10, %v35242_v41 }
 0x252   :  { %v35451_v1 = vpack.c.bf16 %v1195_v4, %v1194_v23  ;;  %v35508_v20 = vpack.c.bf16 %v787_v42, %v786_v14  ;;  %v756_v23 = vmul.f32 %v740_v49, %v35242_v41  ;;  %v757_v4 = vmul.f32 %v741_v24, %v35242_v41 }
 0x253   :  { %28209 = vmatmul.mubr.bf16.gmra.mrb[12].mxu1 %v35366_v39  ;;  %v791_v13 = vmax.f32 %v775_v30, 0.0  ;;  %v1241_v42 = vmul.f32 %v1225_v34, %v35242_v41  ;;  %v1242_v24 = vmul.f32 %v1226_v0, %v35242_v41  ;;  %v1243_v31 = vmul.f32 %v1227_v16, %v35242_v41  ;;  %v1229_v30 = vld [vmem:[%s41059_s0 + $0x358] sm:$0xff] }
 0x254   :  { %28212 = vmatprep.mubr.bf16.mxu1 %v41133_v8  ;;  %28285 = vmatpush3.bf16.msra.mxu1 %v33979_v50  ;;  %v1181_v50 = vadd.f32 %v1165_v27, %v35272_v48  ;;  %41611 = vst [vmem:[#allocation8_spill] sm:$0xff] %v35508_v20  ;;  %v1237_v27 = vmul.f32 %v1221_v40, %v35242_v41  ;;  %v745_v40 = vld [vmem:[%s41059_s0 + $0x38] sm:$0xff] }
 0x255   :  { %28286 = vmatprep.subr.bf16.mxu1 %v33980_v6  ;;  %28116 = vmatprep.mubr.bf16.mxu0 %v35508_v20  ;;  %v35557_v7 = vpack.c.bf16 %v791_v13, %v790_v62  ;;  %v776_v5 = vadd.f32 %v760_v17, %v35272_v48  ;;  %v1257_v52 = vadd.f32 %v1241_v42, %v35272_v48  ;;  %v750_v42 = vld [vmem:[%s41059_s0 + $0x60] sm:$0xff]  ;;  %v751_v17 = vld [vmem:[%s41059_s0 + $0x68] sm:$0xff] }
 0x256   :  { %v1253_v55 = vadd.f32 %v1237_v27, %v35272_v48  ;;  %v762_v27 = vmul.f32 %v746_v21, %v35242_v41  ;;  %v1258_v51 = vadd.f32 %v1242_v24, %v35272_v48  ;;  %v1244_v13 = vmul.f32 %v1228_v28, %v35242_v41 }
 0x257   :  { %41613 = vst [vmem:[#allocation10_spill] sm:$0xff] %v35557_v7  ;;  %v1273_v16 = vmax.f32 %v1257_v52, 0.0  ;;  %v1245_v10 = vmul.f32 %v1229_v30, %v35242_v41 }
 0x258   :  { %28287 = vmatpush3.bf16.msra.mxu1 %v33980_v6  ;;  %v1197_v6 = vmax.f32 %v1181_v50, 0.0  ;;  %v1238_v50 = vmul.f32 %v1222_v33, %v35242_v41  ;;  %v1269_v14 = vmax.f32 %v1253_v55, 0.0  ;;  %v761_v33 = vmul.f32 %v745_v40, %v35242_v41 }
 0x259   :  { %28444 = vmatprep.subr.bf16.mxu1 %v35394_v58  ;;  %v778_v57 = vadd.f32 %v762_v27, %v35272_v48  ;;  %v1261_v52 = vadd.f32 %v1245_v10, %v35272_v48 }
 0x25a   :  { %v35465_v56 = vpack.c.bf16 %v1197_v6, %v1196_v47  ;;  %v772_v47 = vadd.f32 %v756_v23, %v35272_v48  ;;  %v773_v6 = vadd.f32 %v757_v4, %v35272_v48  ;;  %v1254_v3 = vadd.f32 %v1238_v50, %v35272_v48 }
 0x25b   :  { %28213 = vmatmul.mubr.bf16.gmra.mrb[16].mxu1 %v41133_v8  ;;  %v763_v23 = vmul.f32 %v747_v25, %v35242_v41  ;;  %v1271_v4 = vmax.f32 %v1255_v22, 0.0  ;;  %v777_v26 = vadd.f32 %v761_v33, %v35272_v48  ;;  %v1256_v50 = vadd.f32 %v1240_v45, %v35272_v48  ;;  %v1231_v22 = vld [vmem:[%s41059_s0 + $0x368] sm:$0xff]  ;;  %v749_v45 = vld [vmem:[%s41059_s0 + $0x58] sm:$0xff] }
 0x25c   :  { %28216 = vmatprep.mubr.bf16.mxu1 %v35398_v60  ;;  %41608 = vst [vmem:[#allocation5_spill] sm:$0xff] %v35465_v56  ;;  %v788_v32 = vmax.f32 %v772_v47, 0.0  ;;  %v789_v63 = vmax.f32 %v773_v6, 0.0  ;;  %v1270_v49 = vmax.f32 %v1254_v3, 0.0  ;;  %v792_v47 = vmax.f32 %v776_v5, 0.0  ;;  %v1230_v3 = vld [vmem:[%s41059_s0 + $0x360] sm:$0xff] }
 0x25d   :  { %v779_v43 = vadd.f32 %v763_v23, %v35272_v48  ;;  %v793_v6 = vmax.f32 %v777_v26, 0.0  ;;  %v35591_v54 = vpack.c.bf16 %v1269_v14, %v1268_v19  ;;  %v794_v55 = vmax.f32 %v778_v57, 0.0  ;;  %v748_v19 = vld [vmem:[%s41059_s0 + $0x50] sm:$0xff] }
 0x25e   :  { %v35551_v36 = vpack.c.bf16 %v789_v63, %v788_v32  ;;  %v35597_v32 = vpack.c.bf16 %v1271_v4, %v1270_v49  ;;  %v1259_v63 = vadd.f32 %v1243_v31, %v35272_v48  ;;  %v1272_v62 = vmax.f32 %v1256_v50, 0.0 }
 0x25f   :  { %v795_v29 = vmax.f32 %v779_v43, 0.0  ;;  %v35603_v34 = vpack.c.bf16 %v793_v6, %v792_v47  ;;  %v764_v40 = vmul.f32 %v748_v19, %v35242_v41  ;;  %v765_v14 = vmul.f32 %v749_v45, %v35242_v41 }
 0x260   :  { %41612 = vst [vmem:[#allocation9_spill] sm:$0xff] %v35551_v36  ;;  %28117 = vmatmul.mubr.bf16.vlgmr.msra.gmra.mrb[0].mxu0 %v35551_v36  ;;  %v1274_v33 = vmax.f32 %v1258_v51, 0.0  ;;  %v1246_v21 = vmul.f32 %v1230_v3, %v35242_v41  ;;  %v766_v25 = vmul.f32 %v750_v42, %v35242_v41  ;;  %v767_v49 = vmul.f32 %v751_v17, %v35242_v41 }
 0x261   :  { %28120 = vmatprep.mubr.bf16.mxu0 %v35557_v7  ;;  %v35609_v0 = vpack.c.bf16 %v795_v29, %v794_v55  ;;  %v1275_v24 = vmax.f32 %v1259_v63, 0.0  ;;  %v1247_v27 = vmul.f32 %v1231_v22, %v35242_v41  ;;  %v780_v23 = vadd.f32 %v764_v40, %v35272_v48  ;;  %v1232_v55 = vld [vmem:[%s41059_s0 + $0x370] sm:$0xff]  ;;  %v1233_v29 = vld [vmem:[%s41059_s0 + $0x378] sm:$0xff] }
 0x262   :  { %v781_v4 = vadd.f32 %v765_v14, %v35272_v48  ;;  %v782_v31 = vadd.f32 %v766_v25, %v35272_v48  ;;  %v783_v5 = vadd.f32 %v767_v49, %v35272_v48  ;;  %v1260_v26 = vadd.f32 %v1244_v13, %v35272_v48  ;;  %v753_v13 = vld [vmem:[%s41059_s0 + $0x78] sm:$0xff] }
 0x263   :  { %28217 = vmatmul.mubr.bf16.gmra.mrb[20].mxu1 %v35421_v61  ;;  %v796_v50 = vmax.f32 %v780_v23, 0.0  ;;  %v35639_v43 = vpack.c.bf16 %v1273_v16, %v1272_v62  ;;  %v35642_v6 = vpack.c.bf16 %v1275_v24, %v1274_v33  ;;  %v1262_v51 = vadd.f32 %v1246_v21, %v35272_v48  ;;  %v752_v62 = vld [vmem:[%s41059_s0 + $0x70] sm:$0xff]  ;;  %v1298_v23 = vld [vmem:[%s41059_s0 + $0x380] sm:$0xff] }
 0x264   :  { %28220 = vmatprep.mubr.bf16.mxu1 %v35425_v18  ;;  %v797_v57 = vmax.f32 %v781_v4, 0.0  ;;  %v798_v28 = vmax.f32 %v782_v31, 0.0  ;;  %v799_v47 = vmax.f32 %v783_v5, 0.0  ;;  %v1263_v30 = vadd.f32 %v1247_v27, %v35272_v48  ;;  %v1299_v5 = vld [vmem:[%s41059_s0 + $0x388] sm:$0xff] }
 0x265   :  { %41614 = vst [vmem:[#allocation11_spill] sm:$0xff] %v35639_v43  ;;  %41615 = vst [vmem:[#allocation12_spill] sm:$0xff] %v35642_v6  ;;  %v768_v22 = vmul.f32 %v752_v62, %v35242_v41  ;;  %v769_v19 = vmul.f32 %v753_v13, %v35242_v41  ;;  %v1276_v45 = vmax.f32 %v1260_v26, 0.0  ;;  %v1277_v16 = vmax.f32 %v1261_v52, 0.0  ;;  %v1300_v62 = vld [vmem:[%s41059_s0 + $0x390] sm:$0xff] }
 0x266   :  { %v35652_v63 = vpack.c.bf16 %v797_v57, %v796_v50  ;;  %v35654_v3 = vpack.c.bf16 %v799_v47, %v798_v28  ;;  %v1248_v10 = vmul.f32 %v1232_v55, %v35242_v41  ;;  %v1249_v40 = vmul.f32 %v1233_v29, %v35242_v41  ;;  %v818_v50 = vld [vmem:[%s41059_s0 + $0x80] sm:$0xff]  ;;  %v819_v57 = vld [vmem:[%s41059_s0 + $0x88] sm:$0xff] }
 0x267   :  { %v1278_v14 = vmax.f32 %v1262_v51, 0.0  ;;  %v1279_v42 = vmax.f32 %v1263_v30, 0.0  ;;  %v784_v17 = vadd.f32 %v768_v22, %v35272_v48  ;;  %v785_v33 = vadd.f32 %v769_v19, %v35272_v48  ;;  %v1301_v19 = vld [vmem:[%s41059_s0 + $0x398] sm:$0xff] }
 0x268   :  { %28121 = vmatmul.mubr.bf16.gmra.mrb[4].mxu0 %v35603_v34  ;;  %v35672_v49 = vpack.c.bf16 %v1277_v16, %v1276_v45  ;;  %v1264_v24 = vadd.f32 %v1248_v10, %v35272_v48  ;;  %v1265_v27 = vadd.f32 %v1249_v40, %v35272_v48  ;;  %v1314_v26 = vmul.f32 %v1298_v23, %v35242_v41  ;;  %v1302_v40 = vld [vmem:[%s41059_s0 + $0x3a0] sm:$0xff] }
 0x269   :  { %28124 = vmatprep.mubr.bf16.mxu0 %v35609_v0  ;;  %v800_v21 = vmax.f32 %v784_v17, 0.0  ;;  %v801_v25 = vmax.f32 %v785_v33, 0.0  ;;  %v35679_v4 = vpack.c.bf16 %v1279_v42, %v1278_v14  ;;  %v834_v47 = vmul.f32 %v818_v50, %v35242_v41  ;;  %v1303_v42 = vld [vmem:[%s41059_s0 + $0x3a8] sm:$0xff]  ;;  %v820_v33 = vld [vmem:[%s41059_s0 + $0x90] sm:$0xff]  ;;  %v822_v23 = vld [vmem:[%s41059_s0 + $0xa0] sm:$0xff] }
 0x26a   :  { %41616 = vst [vmem:[#allocation13_spill] sm:$0xff] %v35672_v49  ;;  %v1280_v52 = vmax.f32 %v1264_v24, 0.0  ;;  %v1281_v28 = vmax.f32 %v1265_v27, 0.0  ;;  %v835_v51 = vmul.f32 %v819_v57, %v35242_v41  ;;  %v1315_v30 = vmul.f32 %v1299_v5, %v35242_v41  ;;  %v823_v5 = vld [vmem:[%s41059_s0 + $0xa8] sm:$0xff] }
 0x26b   :  { %28221 = vmatmul.mubr.bf16.gmra.mrb[24].mxu1 %v35447_v35  ;;  %41617 = vst [vmem:[#allocation14_spill] sm:$0xff] %v35679_v4  ;;  %v35681_v31 = vpack.c.bf16 %v801_v25, %v800_v21  ;;  %v850_v55 = vadd.f32 %v834_v47, %v35272_v48  ;;  %v1330_v22 = vadd.f32 %v1314_v26, %v35272_v48  ;;  %v821_v21 = vld [vmem:[%s41059_s0 + $0x98] sm:$0xff] }
 0x26c   :  { %28224 = vmatprep.mubr.bf16.mxu1 %v35451_v1  ;;  %v851_v29 = vadd.f32 %v835_v51, %v35272_v48  ;;  %v35705_v13 = vpack.c.bf16 %v1281_v28, %v1280_v52  ;;  %v1331_v10 = vadd.f32 %v1315_v30, %v35272_v48  ;;  %v1316_v14 = vmul.f32 %v1300_v62, %v35242_v41 }
 0x26d   :  { %v866_v45 = vmax.f32 %v850_v55, 0.0  ;;  %v1317_v25 = vmul.f32 %v1301_v19, %v35242_v41  ;;  %v836_v24 = vmul.f32 %v820_v33, %v35242_v41  ;;  %v837_v27 = vmul.f32 %v821_v21, %v35242_v41  ;;  %v1304_v19 = vld [vmem:[%s41059_s0 + $0x3b0] sm:$0xff] }
 0x26e   :  { %41618 = vst [vmem:[#allocation15_spill] sm:$0xff] %v35705_v13  ;;  %v867_v16 = vmax.f32 %v851_v29, 0.0  ;;  %v1346_v26 = vmax.f32 %v1330_v22, 0.0  ;;  %v1318_v50 = vmul.f32 %v1302_v40, %v35242_v41  ;;  %v838_v57 = vmul.f32 %v822_v23, %v35242_v41  ;;  %v1305_v40 = vld [vmem:[%s41059_s0 + $0x3b8] sm:$0xff] }
 0x26f   :  { %v839_v52 = vmul.f32 %v823_v5, %v35242_v41  ;;  %v1347_v28 = vmax.f32 %v1331_v10, 0.0  ;;  %v1319_v47 = vmul.f32 %v1303_v42, %v35242_v41  ;;  %v852_v51 = vadd.f32 %v836_v24, %v35272_v48  ;;  %v1307_v5 = vld [vmem:[%s41059_s0 + $0x3c8] sm:$0xff] }
 0x270   :  { %28125 = vmatmul.mubr.bf16.gmra.mrb[8].mxu0 %v35652_v63  ;;  %v35719_v17 = vpack.c.bf16 %v867_v16, %v866_v45  ;;  %v853_v30 = vadd.f32 %v837_v27, %v35272_v48  ;;  %v1332_v55 = vadd.f32 %v1316_v14, %v35272_v48  ;;  %v854_v29 = vadd.f32 %v838_v57, %v35272_v48  ;;  %v825_v57 = vld [vmem:[%s41059_s0 + $0xb8] sm:$0xff] }
 0x271   :  { %28128 = vmatprep.mubr.bf16.mxu0 %v35654_v3  ;;  %v855_v62 = vadd.f32 %v839_v52, %v35272_v48  ;;  %v1333_v22 = vadd.f32 %v1317_v25, %v35272_v48  ;;  %v868_v45 = vmax.f32 %v852_v51, 0.0  ;;  %v1334_v10 = vadd.f32 %v1318_v50, %v35272_v48  ;;  %v1306_v25 = vld [vmem:[%s41059_s0 + $0x3c0] sm:$0xff] }
 0x272   :  { %v869_v16 = vmax.f32 %v853_v30, 0.0  ;;  %v870_v42 = vmax.f32 %v854_v29, 0.0  ;;  %v35757_v33 = vpack.c.bf16 %v1347_v28, %v1346_v26  ;;  %v1335_v21 = vadd.f32 %v1319_v47, %v35272_v48  ;;  %v824_v26 = vld [vmem:[%s41059_s0 + $0xb0] sm:$0xff]  ;;  %v826_v30 = vld [vmem:[%s41059_s0 + $0xc0] sm:$0xff] }
 0x273   :  { %28225 = vmatmul.mubr.bf16.gmra.mrb[28].mxu1 %v35465_v56  ;;  %v871_v14 = vmax.f32 %v855_v62, 0.0  ;;  %v1348_v27 = vmax.f32 %v1332_v55, 0.0  ;;  %v1320_v23 = vmul.f32 %v1304_v19, %v35242_v41  ;;  %v1349_v52 = vmax.f32 %v1333_v22, 0.0  ;;  %v827_v55 = vld [vmem:[%s41059_s0 + $0xc8] sm:$0xff] }
 0x274   :  { %28228 = vmatprep.mubr.bf16.mxu1 %v35472_v9  ;;  %41619 = vst [vmem:[#allocation16_spill] sm:$0xff] %v35757_v33  ;;  %v35763_v24 = vpack.c.bf16 %v869_v16, %v868_v45  ;;  %v1321_v28 = vmul.f32 %v1305_v40, %v35242_v41  ;;  %v840_v47 = vmul.f32 %v824_v26, %v35242_v41  ;;  %v1350_v29 = vmax.f32 %v1334_v10, 0.0 }
 0x275   :  { %v35769_v50 = vpack.c.bf16 %v871_v14, %v870_v42  ;;  %v841_v51 = vmul.f32 %v825_v57, %v35242_v41  ;;  %v1322_v62 = vmul.f32 %v1306_v25, %v35242_v41  ;;  %v842_v22 = vmul.f32 %v826_v30, %v35242_v41  ;;  %v1308_v57 = vld [vmem:[%s41059_s0 + $0x3d0] sm:$0xff] }
 0x276   :  { %v843_v19 = vmul.f32 %v827_v55, %v35242_v41  ;;  %v1351_v45 = vmax.f32 %v1335_v21, 0.0  ;;  %v1323_v16 = vmul.f32 %v1307_v5, %v35242_v41  ;;  %v856_v40 = vadd.f32 %v840_v47, %v35272_v48 }
 0x277   :  { %v857_v42 = vadd.f32 %v841_v51, %v35272_v48  ;;  %v1336_v14 = vadd.f32 %v1320_v23, %v35272_v48  ;;  %v858_v10 = vadd.f32 %v842_v22, %v35272_v48  ;;  %v1337_v26 = vadd.f32 %v1321_v28, %v35272_v48  ;;  %v1309_v23 = vld [vmem:[%s41059_s0 + $0x3d8] sm:$0xff] }
 0x278   :  { %28129 = vmatmul.mubr.bf16.gmra.mrb[12].mxu0 %v35681_v31  ;;  %v859_v25 = vadd.f32 %v843_v19, %v35272_v48  ;;  %v872_v30 = vmax.f32 %v856_v40, 0.0  ;;  %v35803_v55 = vpack.c.bf16 %v1349_v52, %v1348_v27  ;;  %v1338_v5 = vadd.f32 %v1322_v62, %v35272_v48  ;;  %v1310_v19 = vld [vmem:[%s41059_s0 + $0x3e0] sm:$0xff]  ;;  %v1311_v62 = vld [vmem:[%s41059_s0 + $0x3e8] sm:$0xff] }
 0x279   :  { %28132 = vmatprep.mubr.bf16.mxu0 %v41133_v8  ;;  %v873_v21 = vmax.f32 %v857_v42, 0.0  ;;  %v874_v47 = vmax.f32 %v858_v10, 0.0  ;;  %v35809_v22 = vpack.c.bf16 %v1351_v45, %v1350_v29  ;;  %v1339_v28 = vadd.f32 %v1323_v16, %v35272_v48  ;;  %v828_v29 = vld [vmem:[%s41059_s0 + $0xd0] sm:$0xff]  ;;  %v829_v45 = vld [vmem:[%s41059_s0 + $0xd8] sm:$0xff] }
 0x27a   :  { %41620 = vst [vmem:[#allocation17_spill] sm:$0xff] %v35803_v55  ;;  %v875_v51 = vmax.f32 %v859_v25, 0.0  ;;  %v1352_v27 = vmax.f32 %v1336_v14, 0.0  ;;  %v1324_v52 = vmul.f32 %v1308_v57, %v35242_v41  ;;  %v1353_v16 = vmax.f32 %v1337_v26, 0.0  ;;  %v830_v57 = vld [vmem:[%s41059_s0 + $0xe0] sm:$0xff] }
 0x27b   :  { %28229 = vmatmul.mubr.bf16.gmra.mrb[32].mxu1 %v35494_v15  ;;  %41621 = vst [vmem:[#allocation18_spill] sm:$0xff] %v35809_v22  ;;  %v35815_v40 = vpack.c.bf16 %v873_v21, %v872_v30  ;;  %v1325_v10 = vmul.f32 %v1309_v23, %v35242_v41  ;;  %v844_v14 = vmul.f32 %v828_v29, %v35242_v41  ;;  %v831_v30 = vld [vmem:[%s41059_s0 + $0xe8] sm:$0xff]  ;;  %v1354_v21 = vmax.f32 %v1338_v5, 0.0 }
 0x27c   :  { %28232 = vmatprep.mubr.bf16.mxu1 %v41133_v8  ;;  %v35821_v42 = vpack.c.bf16 %v875_v51, %v874_v47  ;;  %v845_v25 = vmul.f32 %v829_v45, %v35242_v41  ;;  %v1326_v26 = vmul.f32 %v1310_v19, %v35242_v41  ;;  %v846_v23 = vmul.f32 %v830_v57, %v35242_v41 }
 0x27d   :  { %v847_v47 = vmul.f32 %v831_v30, %v35242_v41  ;;  %v1355_v51 = vmax.f32 %v1339_v28, 0.0  ;;  %v1327_v29 = vmul.f32 %v1311_v62, %v35242_v41  ;;  %v860_v45 = vadd.f32 %v844_v14, %v35272_v48 }
 0x27e   :  { %v862_v38 = vadd.f32 %v846_v23, %v35272_v48  ;;  %v1340_v19 = vadd.f32 %v1324_v52, %v35272_v48  ;;  %v35851_v30 = vpack.c.bf16 %v1353_v16, %v1352_v27  ;;  %v1342_v62 = vadd.f32 %v1326_v26, %v35272_v48  ;;  %v833_v16 = vld [vmem:[%s41059_s0 + $0xf8] sm:$0xff] }
 0x27f   :  { %v863_v5 = vadd.f32 %v847_v47, %v35272_v48  ;;  %v876_v57 = vmax.f32 %v860_v45, 0.0  ;;  %v1343_v14 = vadd.f32 %v1327_v29, %v35272_v48 }
 0x280   :  { %28133 = vmatmul.mubr.bf16.gmra.mrb[16].mxu0 %v41133_v8  ;;  %41622 = vst [vmem:[#allocation19_spill] sm:$0xff] %v35851_v30  ;;  %v1358_v47 = vmax.f32 %v1342_v62, 0.0  ;;  %v898_v62 = vld [vmem:[%s41059_s0 + $0x100] sm:$0xff] }
 0x281   :  { %28136 = vmatprep.mubr.bf16.mxu0 %v35719_v17  ;;  %v879_v28 = vmax.f32 %v863_v5, 0.0 }
 0x283   :  { %28233 = vmatmul.mubr.bf16.gmra.mrb[36].mxu1 %v41133_v8 }
 0x284   :  { %28236 = vmatprep.mubr.bf16.mxu1 %v35545_v12 }
 0x288   :  { %28137 = vmatmul.mubr.bf16.gmra.mrb[20].mxu0 %v35763_v24 }
 0x289   :  { %28140 = vmatprep.mubr.bf16.mxu0 %v35769_v50 }
 0x28b   :  { %28237 = vmatmul.mubr.bf16.gmra.mrb[40].mxu1 %v35591_v54 }
 0x28c   :  { %28240 = vmatprep.mubr.bf16.mxu1 %v35597_v32 }
 0x290   :  { %28141 = vmatmul.mubr.bf16.gmra.mrb[24].mxu0 %v35815_v40 }
 0x291   :  { %28144 = vmatprep.mubr.bf16.mxu0 %v35821_v42 }
 0x293   :  { %28241 = vmatmul.mubr.bf16.gmra.mrb[44].mxu1 %v35639_v43 }
 0x294   :  { %28244 = vmatprep.mubr.bf16.mxu1 %v35642_v6 }
 0x29b   :  { %28245 = vmatmul.mubr.bf16.gmra.mrb[48].mxu1 %v35672_v49 }
 0x29c   :  { %28248 = vmatprep.mubr.bf16.mxu1 %v35679_v4 }
 0x2a3   :  { %28249 = vmatmul.mubr.bf16.gmra.mrb[52].mxu1 %v35705_v13  ;;  %v35854_v13 = vpack.c.bf16 %v1355_v51, %v1354_v21  ;;  %v849_v21 = vmul.f32 %v833_v16, %v35242_v41  ;;  %v1359_v51 = vmax.f32 %v1343_v14, 0.0  ;;  %v899_v14 = vld [vmem:[%s41059_s0 + $0x108] sm:$0xff] }
 0x2a4   :  { %28252 = vmatprep.mubr.bf16.mxu1 %v41133_v8 }
 0x2a5   :  { %41623 = vst [vmem:[#allocation20_spill] sm:$0xff] %v35854_v13  ;;  %v865_v45 = vadd.f32 %v849_v21, %v35272_v48  ;;  %v915_v21 = vmul.f32 %v899_v14, %v35242_v41 }
 0x2ab   :  { %28253 = vmatmul.mubr.bf16.gmra.mrb[56].mxu1 %v41133_v8  ;;  %v861_v8 = vadd.f32 %v845_v25, %v35272_v48  ;;  %v1312_v25 = vld [vmem:[%s41059_s0 + $0x3f0] sm:$0xff] }
 0x2ac   :  { %28256 = vmatprep.mubr.bf16.mxu1 %v35757_v33  ;;  %v1341_v33 = vadd.f32 %v1325_v10, %v35272_v48 }
 0x2ae   :  { %v1357_v26 = vmax.f32 %v1341_v33, 0.0 }
 0x2b3   :  { %28257 = vmatmul.mubr.bf16.gmra.mrb[60].mxu1 %v35803_v55  ;;  %v877_v55 = vmax.f32 %v861_v8, 0.0  ;;  %v1313_v8 = vld [vmem:[%s41059_s0 + $0x3f8] sm:$0xff] }
 0x2b4   :  { %28260 = vmatprep.mubr.bf16.mxu1 %v35809_v22  ;;  %v878_v22 = vmax.f32 %v862_v38, 0.0  ;;  %v832_v38 = vld [vmem:[%s41059_s0 + $0xf0] sm:$0xff]  ;;  %v1329_v23 = vmul.f32 %v1313_v8, %v35242_v41 }
 0x2b5   :  { %v35864_v27 = vpack.c.bf16 %v877_v55, %v876_v57  ;;  %v848_v10 = vmul.f32 %v832_v38, %v35242_v41  ;;  %v1356_v55 = vmax.f32 %v1340_v19, 0.0  ;;  %v881_v57 = vmax.f32 %v865_v45, 0.0  ;;  %v900_v45 = vld [vmem:[%s41059_s0 + $0x110] sm:$0xff] }
 0x2b6   :  { %v35866_v52 = vpack.c.bf16 %v879_v28, %v878_v22  ;;  %v1328_v22 = vmul.f32 %v1312_v25, %v35242_v41  ;;  %v1345_v19 = vadd.f32 %v1329_v23, %v35272_v48  ;;  %v35888_v25 = vpack.c.bf16 %v1359_v51, %v1358_v47 }
 0x2b7   :  { %28145 = vmatmul.mubr.bf16.gmra.mrb[28].mxu0 %v35864_v27  ;;  %v864_v29 = vadd.f32 %v848_v10, %v35272_v48  ;;  %v35884_v28 = vpack.c.bf16 %v1357_v26, %v1356_v55  ;;  %v914_v10 = vmul.f32 %v898_v62, %v35242_v41  ;;  %v41626_v55 = vmov 0   ;;  %v903_v62 = vld [vmem:[%s41059_s0 + $0x128] sm:$0xff] }
 0x2b8   :  { %28148 = vmatprep.mubr.bf16.mxu0 %v35866_v52  ;;  %v1344_v33 = vadd.f32 %v1328_v22, %v35272_v48  ;;  %41625 = vst [vmem:[#allocation22_spill] sm:$0xff] %v35888_v25  ;;  %v1361_v16 = vmax.f32 %v1345_v19, 0.0  ;;  %v931_v22 = vadd.f32 %v915_v21, %v35272_v48  ;;  %v902_v19 = vld [vmem:[%s41059_s0 + $0x120] sm:$0xff] }
 0x2b9   :  { %v880_v5 = vmax.f32 %v864_v29, 0.0  ;;  %41624 = vst [vmem:[#allocation21_spill] sm:$0xff] %v35884_v28  ;;  %v930_v26 = vadd.f32 %v914_v10, %v35272_v48  ;;  %v918_v14 = vmul.f32 %v902_v19, %v35242_v41  ;;  %v33982_v19 = vld [vmem:[%s41060_s3 + $0x48] sm:$0xff]  }
 0x2ba   :  { %v1360_v38 = vmax.f32 %v1344_v33, 0.0  ;;  %v947_v51 = vmax.f32 %v931_v22, 0.0 }
 0x2bb   :  { %28261 = vmatmul.mubr.bf16.gmra.mrb[64].mxu1 %v35851_v30  ;;  %v35890_v8 = vpack.c.bf16 %v881_v57, %v880_v5  ;;  %v946_v47 = vmax.f32 %v930_v26, 0.0  ;;  %v901_v5 = vld [vmem:[%s41059_s0 + $0x118] sm:$0xff]  ;;  %v916_v57 = vmul.f32 %v900_v45, %v35242_v41  ;;  %v934_v21 = vadd.f32 %v918_v14, %v35272_v48 }
 0x2bc   :  { %28264 = vmatprep.mubr.bf16.mxu1 %v35854_v13  ;;  %v35906_v23 = vpack.c.bf16 %v1361_v16, %v1360_v38  ;;  %v917_v33 = vmul.f32 %v901_v5, %v35242_v41  ;;  %v919_v38 = vmul.f32 %v903_v62, %v35242_v41 }
 0x2bd   :  { %v35908_v29 = vpack.c.bf16 %v947_v51, %v946_v47  ;;  %v932_v16 = vadd.f32 %v916_v57, %v35272_v48  ;;  %v950_v51 = vmax.f32 %v934_v21, 0.0  ;;  %v904_v57 = vld [vmem:[%s41059_s0 + $0x130] sm:$0xff] }
 0x2be   :  { %41627 = vst [vmem:[#allocation23_spill] sm:$0xff] %v35906_v23  ;;  %v933_v10 = vadd.f32 %v917_v33, %v35272_v48  ;;  %v935_v26 = vadd.f32 %v919_v38, %v35272_v48  ;;  %v905_v33 = vld [vmem:[%s41059_s0 + $0x138] sm:$0xff]  ;;  %v920_v14 = vmul.f32 %v904_v57, %v35242_v41 }
 0x2bf   :  { %28149 = vmatmul.mubr.bf16.gmra.mrb[32].mxu0 %v35890_v8  ;;  %v948_v22 = vmax.f32 %v932_v16, 0.0  ;;  %v921_v38 = vmul.f32 %v905_v33, %v35242_v41  ;;  %v906_v16 = vld [vmem:[%s41059_s0 + $0x140] sm:$0xff] }
 0x2c0   :  { %28152 = vmatprep.mubr.bf16.mxu0 %v41626_v55  ;;  %v949_v47 = vmax.f32 %v933_v10, 0.0  ;;  %v951_v45 = vmax.f32 %v935_v26, 0.0  ;;  %v907_v10 = vld [vmem:[%s41059_s0 + $0x148] sm:$0xff]  ;;  %v922_v21 = vmul.f32 %v906_v16, %v35242_v41 }
 0x2c1   :  { %v923_v26 = vmul.f32 %v907_v10, %v35242_v41 }
 0x2c2   :  { %v35934_v5 = vpack.c.bf16 %v949_v47, %v948_v22  ;;  %v35939_v62 = vpack.c.bf16 %v951_v45, %v950_v51  ;;  %v936_v22 = vadd.f32 %v920_v14, %v35272_v48  ;;  %v937_v47 = vadd.f32 %v921_v38, %v35272_v48  ;;  %v33983_v51 = vld [vmem:[%s41060_s3 + $0x50] sm:$0xff]   ;;  %v33984_v14 = vld [vmem:[%s41060_s3 + $0x58] sm:$0xff]  }
 0x2c3   :  { %28265 = vmatmul.mubr.bf16.gmra.mrb[68].mxu1 %v35884_v28  ;;  %v938_v45 = vadd.f32 %v922_v21, %v35272_v48  ;;  %v939_v57 = vadd.f32 %v923_v26, %v35272_v48  ;;  %v908_v21 = vld [vmem:[%s41059_s0 + $0x150] sm:$0xff]  ;;  %v909_v26 = vld [vmem:[%s41059_s0 + $0x158] sm:$0xff] }
 0x2c4   :  { %28268 = vmatprep.mubr.bf16.mxu1 %v35888_v25  ;;  %v952_v33 = vmax.f32 %v936_v22, 0.0  ;;  %v953_v16 = vmax.f32 %v937_v47, 0.0  ;;  %v924_v22 = vmul.f32 %v908_v21, %v35242_v41  ;;  %v910_v47 = vld [vmem:[%s41059_s0 + $0x160] sm:$0xff] }
 0x2c5   :  { %v954_v10 = vmax.f32 %v938_v45, 0.0  ;;  %v926_v45 = vmul.f32 %v910_v47, %v35242_v41 }
 0x2c7   :  { %28153 = vmatmul.mubr.bf16.gmra.mrb[36].mxu0 %v41626_v55 }
 0x2c8   :  { %28156 = vmatprep.mubr.bf16.mxu0 %v35908_v29 }
 0x2cb   :  { %28269 = vmatmul.mubr.bf16.gmra.mrb[72].mxu1 %v35906_v23  ;;  %v955_v23 = vmax.f32 %v939_v57, 0.0 }
 0x2cc   :  { %28288 = vmatprep.mubr.bf16.mxu1 %v41626_v55 }
 0x2cd   :  { %v35974_v38 = vpack.c.bf16 %v955_v23, %v954_v10  ;;  %v911_v23 = vld [vmem:[%s41059_s0 + $0x168] sm:$0xff]  ;;  %v942_v10 = vadd.f32 %v926_v45, %v35272_v48 }
 0x2ce   :  { %v927_v57 = vmul.f32 %v911_v23, %v35242_v41 }
 0x2cf   :  { %28157 = vmatmul.mubr.bf16.gmra.mrb[40].mxu0 %v35934_v5  ;;  %v958_v28 = vmax.f32 %v942_v10, 0.0  ;;  %v979_v10 = vld [vmem:[%s41059_s0 + $0x188] sm:$0xff] }
 0x2d0   :  { %28160 = vmatprep.mubr.bf16.mxu0 %v35939_v62  ;;  %v943_v21 = vadd.f32 %v927_v57, %v35272_v48 }
 0x2d2   :  { %v959_v47 = vmax.f32 %v943_v21, 0.0 }
 0x2d3   :  { %28289 = vmatmul.mubr.bf16.vlgmr.msra.gmra.mrb[76].mxu1 %v41626_v55 }
 0x2d4   :  { %28445 = vmatpush3.bf16.msra.mxu1 %v35394_v58  ;;  %28292 = vmatprep.mubr.bf16.mxu1 %v41626_v55  ;;  %v35969_v58 = vpack.c.bf16 %v953_v16, %v952_v33  ;;  %v940_v33 = vadd.f32 %v924_v22, %v35272_v48  ;;  %v36002_v13 = vpack.c.bf16 %v959_v47, %v958_v28  ;;  %v913_v22 = vld [vmem:[%s41059_s0 + $0x178] sm:$0xff] }
 0x2d5   :  { %28446 = vmatprep.subr.bf16.mxu1 %v33982_v19  ;;  %v929_v45 = vmul.f32 %v913_v22, %v35242_v41  ;;  %v33985_v22 = vld [vmem:[%s41060_s3 + $0x60] sm:$0xff]  }
 0x2d7   :  { %28161 = vmatmul.mubr.bf16.gmra.mrb[44].mxu0 %v35969_v58 }
 0x2d8   :  { %28447 = vmatpush3.bf16.msra.mxu1 %v33982_v19  ;;  %v925_v19 = vmul.f32 %v909_v26, %v35242_v41  ;;  %28164 = vmatprep.mubr.bf16.mxu0 %v35974_v38  ;;  %v956_v26 = vmax.f32 %v940_v33, 0.0 }
 0x2d9   :  { %28448 = vmatprep.subr.bf16.mxu1 %v33983_v51 }
 0x2da   :  { %v941_v16 = vadd.f32 %v925_v19, %v35272_v48 }
 0x2db   :  { %28293 = vmatmul.mubr.bf16.gmra.mrb[80].mxu1 %v41626_v55 }
 0x2dc   :  { %28296 = vmatprep.mubr.bf16.mxu1 %v41626_v55  ;;  %28449 = vmatpush3.bf16.msra.mxu1 %v33983_v51  ;;  %v957_v25 = vmax.f32 %v941_v16, 0.0  ;;  %v912_v51 = vld [vmem:[%s41059_s0 + $0x170] sm:$0xff]  ;;  %v978_v16 = vld [vmem:[%s41059_s0 + $0x180] sm:$0xff] }
 0x2dd   :  { %28450 = vmatprep.subr.bf16.mxu1 %v33984_v14  ;;  %v928_v19 = vmul.f32 %v912_v51, %v35242_v41  ;;  %v994_v21 = vmul.f32 %v978_v16, %v35242_v41 }
 0x2de   :  { %v36000_v23 = vpack.c.bf16 %v957_v25, %v956_v26  ;;  %v945_v25 = vadd.f32 %v929_v45, %v35272_v48  ;;  %v995_v26 = vmul.f32 %v979_v10, %v35242_v41  ;;  %v982_v10 = vld [vmem:[%s41059_s0 + $0x1a0] sm:$0xff] }
 0x2df   :  { %v944_v28 = vadd.f32 %v928_v19, %v35272_v48  ;;  %v1010_v47 = vadd.f32 %v994_v21, %v35272_v48  ;;  %v983_v21 = vld [vmem:[%s41059_s0 + $0x1a8] sm:$0xff] }
 0x2e0   :  { %28451 = vmatpush3.bf16.msra.mxu1 %v33984_v14  ;;  %28165 = vmatmul.mubr.bf16.gmra.mrb[48].mxu0 %v36000_v23  ;;  %v961_v57 = vmax.f32 %v945_v25, 0.0  ;;  %v1011_v51 = vadd.f32 %v995_v26, %v35272_v48  ;;  %v980_v25 = vld [vmem:[%s41059_s0 + $0x190] sm:$0xff]  ;;  %v998_v26 = vmul.f32 %v982_v10, %v35242_v41 }
 0x2e1   :  { %28168 = vmatprep.mubr.bf16.mxu0 %v36002_v13  ;;  %v960_v14 = vmax.f32 %v944_v28, 0.0  ;;  %v1026_v19 = vmax.f32 %v1010_v47, 0.0  ;;  %28452 = vmatprep.subr.bf16.mxu1 %v33985_v22  ;;  %v999_v47 = vmul.f32 %v983_v21, %v35242_v41  ;;  %v984_v21 = vld [vmem:[%s41059_s0 + $0x1b0] sm:$0xff] }
 0x2e2   :  { %v1027_v45 = vmax.f32 %v1011_v51, 0.0 }
 0x2e3   :  { %28297 = vmatmul.mubr.bf16.gmra.mrb[84].mxu1 %v41626_v55  ;;  %v36018_v33 = vpack.c.bf16 %v961_v57, %v960_v14  ;;  %v981_v14 = vld [vmem:[%s41059_s0 + $0x198] sm:$0xff]  ;;  %v996_v57 = vmul.f32 %v980_v25, %v35242_v41 }
 0x2e4   :  { %28300 = vmatprep.mubr.bf16.mxu1 %v41626_v55  ;;  %v36037_v28 = vpack.c.bf16 %v1027_v45, %v1026_v19  ;;  %28453 = vmatpush3.bf16.msra.mxu1 %v33985_v22  ;;  %v997_v16 = vmul.f32 %v981_v14, %v35242_v41  ;;  %v1014_v19 = vadd.f32 %v998_v26, %v35272_v48 }
 0x2e5   :  { %v1012_v51 = vadd.f32 %v996_v57, %v35272_v48  ;;  %v1015_v45 = vadd.f32 %v999_v47, %v35272_v48  ;;  %v985_v57 = vld [vmem:[%s41059_s0 + $0x1b8] sm:$0xff]  ;;  %v986_v47 = vld [vmem:[%s41059_s0 + $0x1c0] sm:$0xff] }
 0x2e6   :  { %v1013_v22 = vadd.f32 %v997_v16, %v35272_v48  ;;  %v1030_v30 = vmax.f32 %v1014_v19, 0.0  ;;  %v1000_v16 = vmul.f32 %v984_v21, %v35242_v41  ;;  %v1001_v26 = vmul.f32 %v985_v57, %v35242_v41 }
 0x2e7   :  { %v1028_v25 = vmax.f32 %v1012_v51, 0.0  ;;  %v1031_v4 = vmax.f32 %v1015_v45, 0.0 }
 0x2e8   :  { %28169 = vmatmul.mubr.bf16.gmra.mrb[52].mxu0 %v36018_v33  ;;  %v1029_v14 = vmax.f32 %v1013_v22, 0.0  ;;  %v1016_v22 = vadd.f32 %v1000_v16, %v35272_v48  ;;  %v1017_v19 = vadd.f32 %v1001_v26, %v35272_v48  ;;  %v989_v16 = vld [vmem:[%s41059_s0 + $0x1d8] sm:$0xff] }
 0x2e9   :  { %28172 = vmatprep.mubr.bf16.mxu0 %v41626_v55  ;;  %v36065_v10 = vpack.c.bf16 %v1031_v4, %v1030_v30  ;;  %v987_v4 = vld [vmem:[%s41059_s0 + $0x1c8] sm:$0xff]  ;;  %v1002_v30 = vmul.f32 %v986_v47, %v35242_v41 }
 0x2ea   :  { %v36063_v49 = vpack.c.bf16 %v1029_v14, %v1028_v25  ;;  %v1003_v51 = vmul.f32 %v987_v4, %v35242_v41  ;;  %v1032_v14 = vmax.f32 %v1016_v22, 0.0  ;;  %v1033_v21 = vmax.f32 %v1017_v19, 0.0  ;;  %v988_v4 = vld [vmem:[%s41059_s0 + $0x1d0] sm:$0xff] }
 0x2eb   :  { %28301 = vmatmul.mubr.bf16.gmra.mrb[88].mxu1 %v41626_v55  ;;  %v1018_v45 = vadd.f32 %v1002_v30, %v35272_v48  ;;  %v1004_v26 = vmul.f32 %v988_v4, %v35242_v41  ;;  %v1005_v30 = vmul.f32 %v989_v16, %v35242_v41 }
 0x2ec   :  { %28304 = vmatprep.mubr.bf16.mxu1 %v41626_v55  ;;  %v1019_v25 = vadd.f32 %v1003_v51, %v35272_v48  ;;  %v36091_v6 = vpack.c.bf16 %v1033_v21, %v1032_v14  ;;  %v990_v51 = vld [vmem:[%s41059_s0 + $0x1e0] sm:$0xff] }
 0x2ed   :  { %v1034_v57 = vmax.f32 %v1018_v45, 0.0  ;;  %v1006_v22 = vmul.f32 %v990_v51, %v35242_v41  ;;  %v1020_v45 = vadd.f32 %v1004_v26, %v35272_v48  ;;  %v993_v26 = vld [vmem:[%s41059_s0 + $0x1f8] sm:$0xff] }
 0x2ef   :  { %v1022_v14 = vadd.f32 %v1006_v22, %v35272_v48  ;;  %v1009_v22 = vmul.f32 %v993_v26, %v35242_v41 }
 0x2f0   :  { %28173 = vmatmul.mubr.bf16.gmra.mrb[56].mxu0 %v41626_v55 }
 0x2f1   :  { %28176 = vmatprep.mubr.bf16.mxu0 %v36037_v28  ;;  %v1038_v16 = vmax.f32 %v1022_v14, 0.0 }
 0x2f3   :  { %28305 = vmatmul.mubr.bf16.gmra.mrb[92].mxu1 %v41626_v55 }
 0x2f4   :  { %28308 = vmatprep.mubr.bf16.mxu1 %v41626_v55 }
 0x2f8   :  { %28177 = vmatmul.mubr.bf16.gmra.mrb[60].mxu0 %v36063_v49 }
 0x2f9   :  { %28180 = vmatprep.mubr.bf16.mxu0 %v36065_v10 }
 0x2fb   :  { %28309 = vmatmul.mubr.bf16.gmra.mrb[96].mxu1 %v35508_v20  ;;  %v1035_v20 = vmax.f32 %v1019_v25, 0.0  ;;  %v1021_v25 = vadd.f32 %v1005_v30, %v35272_v48 }
 0x2fc   :  { %28312 = vmatprep.mubr.bf16.mxu1 %v35551_v36 }
 0x2fd   :  { %v36093_v47 = vpack.c.bf16 %v1035_v20, %v1034_v57  ;;  %v991_v20 = vld [vmem:[%s41059_s0 + $0x1e8] sm:$0xff]  ;;  %v1036_v57 = vmax.f32 %v1020_v45, 0.0  ;;  %v1037_v4 = vmax.f32 %v1021_v25, 0.0 }
 0x2fe   :  { %v1007_v19 = vmul.f32 %v991_v20, %v35242_v41  ;;  %v992_v20 = vld [vmem:[%s41059_s0 + $0x1f0] sm:$0xff] }
 0x2ff   :  { %v36119_v36 = vpack.c.bf16 %v1037_v4, %v1036_v57  ;;  %v1008_v30 = vmul.f32 %v992_v20, %v35242_v41  ;;  %v33986_v4 = vld [vmem:[%s41060_s3 + $0x68] sm:$0xff]  }
 0x300   :  { %28181 = vmatmul.mubr.bf16.gmra.mrb[64].mxu0 %v36091_v6  ;;  %v1023_v21 = vadd.f32 %v1007_v19, %v35272_v48  ;;  %v1025_v19 = vadd.f32 %v1009_v22, %v35272_v48  ;;  %28454 = vmatprep.subr.bf16.mxu1 %v33986_v4 }
 0x301   :  { %28184 = vmatprep.mubr.bf16.mxu0 %v36093_v47  ;;  %28455 = vmatpush3.bf16.msra.mxu1 %v33986_v4 }
 0x302   :  { %v1041_v14 = vmax.f32 %v1025_v19, 0.0 }
 0x303   :  { %28313 = vmatmul.mubr.bf16.gmra.mrb[100].mxu1 %v35557_v7  ;;  %v1039_v7 = vmax.f32 %v1023_v21, 0.0 }
 0x304   :  { %28316 = vmatprep.mubr.bf16.mxu1 %v35603_v34 }
 0x305   :  { %v36121_v51 = vpack.c.bf16 %v1039_v7, %v1038_v16  ;;  %v1024_v7 = vadd.f32 %v1008_v30, %v35272_v48 }
 0x307   :  { %v1040_v25 = vmax.f32 %v1024_v7, 0.0 }
 0x308   :  { %28185 = vmatmul.mubr.bf16.gmra.mrb[68].mxu0 %v36119_v36 }
 0x309   :  { %28188 = vmatprep.mubr.bf16.mxu0 %v36121_v51  ;;  %v36143_v57 = vpack.c.bf16 %v1041_v14, %v1040_v25 }
 0x30b   :  { %28317 = vmatmul.mubr.bf16.gmra.mrb[104].mxu1 %v35609_v0 }
 0x30c   :  { %28320 = vmatprep.mubr.bf16.mxu1 %v35652_v63 }
 0x30e   :  { %v28198_v45 = vpop.f32.mrb[0].mxu1 }
 0x30f   :  { %31384 = vst [vmem:[%s41063_s8 + $0x290] sm:$0xff] %v28198_v45  ;;  %v1874_v41 = vpop.f32.mrb[1].mxu1 }
 0x310   :  { %31387 = vst [vmem:[%s41063_s8 + $0x280] sm:$0xff] %v1874_v41  ;;  %v28199_v21 = vpop.f32.mrb[2].mxu1  ;;  %28189 = vmatmul.mubr.bf16.gmra.mrb[72].mxu0 %v36143_v57 }
 0x311   :  { %31390 = vst [vmem:[%s41063_s8 + $0x298] sm:$0xff] %v28199_v21  ;;  %v1877_v48 = vpop.f32.mrb[3].mxu1  ;;  %28192 = vmatprep.mubr.bf16.mxu0 %v41626_v55 }
 0x312   :  { %31393 = vst [vmem:[%s41063_s8 + $0x288] sm:$0xff] %v1877_v48 }
 0x313   :  { %28321 = vmatmul.mubr.bf16.gmra.mrb[108].mxu1 %v35654_v3 }
 0x314   :  { %28324 = vmatprep.mubr.bf16.mxu1 %v35681_v31 }
 0x316   :  { %v28202_v16 = vpop.f32.mrb[4].mxu1 }
 0x317   :  { %31396 = vst [vmem:[%s41063_s8 + $0x2b0] sm:$0xff] %v28202_v16  ;;  %v1890_v20 = vpop.f32.mrb[5].mxu1 }
 0x318   :  { %31399 = vst [vmem:[%s41063_s8 + $0x2a0] sm:$0xff] %v1890_v20  ;;  %v28203_v26 = vpop.f32.mrb[6].mxu1  ;;  %28193 = vmatmul.mubr.bf16.gmra.mrb[76].mxu0 %v41626_v55 }
 0x319   :  { %31402 = vst [vmem:[%s41063_s8 + $0x2b8] sm:$0xff] %v28203_v26  ;;  %v1893_v30 = vpop.f32.mrb[7].mxu1  ;;  %29836 = vmatprep.mubr.bf16.mxu0 %v41626_v55 }
 0x31a   :  { %31405 = vst [vmem:[%s41063_s8 + $0x2a8] sm:$0xff] %v1893_v30 }
 0x31b   :  { %28325 = vmatmul.mubr.bf16.gmra.mrb[112].mxu1 %v41626_v55 }
 0x31c   :  { %28328 = vmatprep.mubr.bf16.mxu1 %v41626_v55 }
 0x31e   :  { %v28206_v22 = vpop.f32.mrb[8].mxu1 }
 0x31f   :  { %31408 = vst [vmem:[%s41063_s8 + $0x2d0] sm:$0xff] %v28206_v22  ;;  %v1906_v7 = vpop.f32.mrb[9].mxu1 }
 0x320   :  { %31411 = vst [vmem:[%s41063_s8 + $0x2c0] sm:$0xff] %v1906_v7  ;;  %v28207_v19 = vpop.f32.mrb[10].mxu1 }
 0x321   :  { %31414 = vst [vmem:[%s41063_s8 + $0x2d8] sm:$0xff] %v28207_v19  ;;  %v1909_v45 = vpop.f32.mrb[11].mxu1  ;;  %v33987_v19 = vld [vmem:[%s41060_s3 + $0x70] sm:$0xff]  }
 0x322   :  { %31417 = vst [vmem:[%s41063_s8 + $0x2c8] sm:$0xff] %v1909_v45  ;;  %28456 = vmatprep.subr.bf16.mxu1 %v33987_v19 }
 0x323   :  { %28329 = vmatmul.mubr.bf16.gmra.mrb[116].mxu1 %v35719_v17 }
 0x324   :  { %28332 = vmatprep.mubr.bf16.mxu1 %v35763_v24  ;;  %28457 = vmatpush3.bf16.msra.mxu1 %v33987_v19 }
 0x326   :  { %v28210_v25 = vpop.f32.mrb[12].mxu1 }
 0x327   :  { %31420 = vst [vmem:[%s41063_s8 + $0x2f0] sm:$0xff] %v28210_v25  ;;  %v1922_v14 = vpop.f32.mrb[13].mxu1 }
 0x328   :  { %31423 = vst [vmem:[%s41063_s8 + $0x2e0] sm:$0xff] %v1922_v14  ;;  %v28211_v41 = vpop.f32.mrb[14].mxu1 }
 0x329   :  { %31426 = vst [vmem:[%s41063_s8 + $0x2f8] sm:$0xff] %v28211_v41  ;;  %v1925_v21 = vpop.f32.mrb[15].mxu1 }
 0x32a   :  { %31429 = vst [vmem:[%s41063_s8 + $0x2e8] sm:$0xff] %v1925_v21 }
 0x32b   :  { %28333 = vmatmul.mubr.bf16.gmra.mrb[120].mxu1 %v35769_v50 }
 0x32c   :  { %28336 = vmatprep.mubr.bf16.mxu1 %v35815_v40 }
 0x32e   :  { %v28214_v48 = vpop.f32.mrb[16].mxu1 }
 0x32f   :  { %31432 = vst [vmem:[%s41063_s8 + $0x310] sm:$0xff] %v28214_v48  ;;  %v1938_v4 = vpop.f32.mrb[17].mxu1 }
 0x330   :  { %31435 = vst [vmem:[%s41063_s8 + $0x300] sm:$0xff] %v1938_v4  ;;  %v28215_v16 = vpop.f32.mrb[18].mxu1 }
 0x331   :  { %31438 = vst [vmem:[%s41063_s8 + $0x318] sm:$0xff] %v28215_v16  ;;  %v1941_v20 = vpop.f32.mrb[19].mxu1 }
 0x332   :  { %31441 = vst [vmem:[%s41063_s8 + $0x308] sm:$0xff] %v1941_v20 }
 0x333   :  { %28337 = vmatmul.mubr.bf16.gmra.mrb[124].mxu1 %v35821_v42 }
 0x334   :  { %28340 = vmatprep.mubr.bf16.mxu1 %v35864_v27 }
 0x336   :  { %v28218_v26 = vpop.f32.mrb[20].mxu1 }
 0x337   :  { %31444 = vst [vmem:[%s41063_s8 + $0x330] sm:$0xff] %v28218_v26  ;;  %v1954_v30 = vpop.f32.mrb[21].mxu1 }
 0x338   :  { %31447 = vst [vmem:[%s41063_s8 + $0x320] sm:$0xff] %v1954_v30  ;;  %v28219_v22 = vpop.f32.mrb[22].mxu1 }
 0x339   :  { %31450 = vst [vmem:[%s41063_s8 + $0x338] sm:$0xff] %v28219_v22  ;;  %v1957_v7 = vpop.f32.mrb[23].mxu1 }
 0x33a   :  { %31453 = vst [vmem:[%s41063_s8 + $0x328] sm:$0xff] %v1957_v7 }
 0x33b   :  { %28341 = vmatmul.mubr.bf16.gmra.mrb[128].mxu1 %v35866_v52 }
 0x33c   :  { %28344 = vmatprep.mubr.bf16.mxu1 %v35890_v8 }
 0x33e   :  { %v28222_v45 = vpop.f32.mrb[24].mxu1 }
 0x33f   :  { %31456 = vst [vmem:[%s41063_s8 + $0x350] sm:$0xff] %v28222_v45  ;;  %v1970_v25 = vpop.f32.mrb[25].mxu1 }
 0x340   :  { %31459 = vst [vmem:[%s41063_s8 + $0x340] sm:$0xff] %v1970_v25  ;;  %v28223_v14 = vpop.f32.mrb[26].mxu1 }
 0x341   :  { %31462 = vst [vmem:[%s41063_s8 + $0x358] sm:$0xff] %v28223_v14  ;;  %v1973_v41 = vpop.f32.mrb[27].mxu1 }
 0x342   :  { %31465 = vst [vmem:[%s41063_s8 + $0x348] sm:$0xff] %v1973_v41 }
 0x343   :  { %28345 = vmatmul.mubr.bf16.gmra.mrb[132].mxu1 %v41626_v55 }
 0x344   :  { %28348 = vmatprep.mubr.bf16.mxu1 %v41626_v55 }
 0x346   :  { %v28226_v21 = vpop.f32.mrb[28].mxu1 }
 0x347   :  { %31468 = vst [vmem:[%s41063_s8 + $0x370] sm:$0xff] %v28226_v21  ;;  %v1986_v48 = vpop.f32.mrb[29].mxu1 }
 0x348   :  { %31471 = vst [vmem:[%s41063_s8 + $0x360] sm:$0xff] %v1986_v48  ;;  %v28227_v4 = vpop.f32.mrb[30].mxu1 }
 0x349   :  { %31474 = vst [vmem:[%s41063_s8 + $0x378] sm:$0xff] %v28227_v4  ;;  %v1989_v16 = vpop.f32.mrb[31].mxu1  ;;  %v33988_v4 = vld [vmem:[%s41060_s3 + $0x78] sm:$0xff]  }
 0x34a   :  { %31477 = vst [vmem:[%s41063_s8 + $0x368] sm:$0xff] %v1989_v16  ;;  %28458 = vmatprep.subr.bf16.mxu1 %v33988_v4 }
 0x34b   :  { %28349 = vmatmul.mubr.bf16.gmra.mrb[136].mxu1 %v35908_v29 }
 0x34c   :  { %28352 = vmatprep.mubr.bf16.mxu1 %v35934_v5  ;;  %28459 = vmatpush3.bf16.msra.mxu1 %v33988_v4 }
 0x34e   :  { %v28230_v20 = vpop.f32.mrb[32].mxu1 }
 0x34f   :  { %31480 = vst [vmem:[%s41063_s8 + $0x390] sm:$0xff] %v28230_v20  ;;  %v2002_v26 = vpop.f32.mrb[33].mxu1 }
 0x350   :  { %31483 = vst [vmem:[%s41063_s8 + $0x380] sm:$0xff] %v2002_v26  ;;  %v28231_v30 = vpop.f32.mrb[34].mxu1 }
 0x351   :  { %31486 = vst [vmem:[%s41063_s8 + $0x398] sm:$0xff] %v28231_v30  ;;  %v2005_v22 = vpop.f32.mrb[35].mxu1 }
 0x352   :  { %31489 = vst [vmem:[%s41063_s8 + $0x388] sm:$0xff] %v2005_v22 }
 0x353   :  { %28353 = vmatmul.mubr.bf16.gmra.mrb[140].mxu1 %v35939_v62 }
 0x354   :  { %28356 = vmatprep.mubr.bf16.mxu1 %v35969_v58 }
 0x356   :  { %v28234_v7 = vpop.f32.mrb[36].mxu1 }
 0x357   :  { %31492 = vst [vmem:[%s41063_s8 + $0x3b0] sm:$0xff] %v28234_v7  ;;  %v2018_v19 = vpop.f32.mrb[37].mxu1 }
 0x358   :  { %31495 = vst [vmem:[%s41063_s8 + $0x3a0] sm:$0xff] %v2018_v19  ;;  %v28235_v45 = vpop.f32.mrb[38].mxu1 }
 0x359   :  { %31498 = vst [vmem:[%s41063_s8 + $0x3b8] sm:$0xff] %v28235_v45  ;;  %v2021_v25 = vpop.f32.mrb[39].mxu1 }
 0x35a   :  { %31501 = vst [vmem:[%s41063_s8 + $0x3a8] sm:$0xff] %v2021_v25 }
 0x35b   :  { %28357 = vmatmul.mubr.bf16.gmra.mrb[144].mxu1 %v35974_v38 }
 0x35c   :  { %28360 = vmatprep.mubr.bf16.mxu1 %v36000_v23 }
 0x35e   :  { %v28238_v14 = vpop.f32.mrb[40].mxu1 }
 0x35f   :  { %31504 = vst [vmem:[%s41063_s8 + $0x3d0] sm:$0xff] %v28238_v14  ;;  %v2034_v41 = vpop.f32.mrb[41].mxu1 }
 0x360   :  { %31507 = vst [vmem:[%s41063_s8 + $0x3c0] sm:$0xff] %v2034_v41  ;;  %v28239_v21 = vpop.f32.mrb[42].mxu1 }
 0x361   :  { %31510 = vst [vmem:[%s41063_s8 + $0x3d8] sm:$0xff] %v28239_v21  ;;  %v2037_v48 = vpop.f32.mrb[43].mxu1 }
 0x362   :  { %31513 = vst [vmem:[%s41063_s8 + $0x3c8] sm:$0xff] %v2037_v48 }
 0x363   :  { %28361 = vmatmul.mubr.bf16.gmra.mrb[148].mxu1 %v36002_v13 }
 0x364   :  { %28364 = vmatprep.mubr.bf16.mxu1 %v36018_v33 }
 0x366   :  { %v28242_v16 = vpop.f32.mrb[44].mxu1 }
 0x367   :  { %31516 = vst [vmem:[%s41063_s8 + $0x3f0] sm:$0xff] %v28242_v16  ;;  %v2050_v20 = vpop.f32.mrb[45].mxu1 }
 0x368   :  { %31519 = vst [vmem:[%s41063_s8 + $0x3e0] sm:$0xff] %v2050_v20  ;;  %v28243_v26 = vpop.f32.mrb[46].mxu1 }
 0x369   :  { %31522 = vst [vmem:[%s41063_s8 + $0x3f8] sm:$0xff] %v28243_v26  ;;  %v2053_v30 = vpop.f32.mrb[47].mxu1  ;;  %v36365_v26 = vld [vmem:[%s41060_s3 + $0x80] sm:$0xff]  }
 0x36a   :  { %31525 = vst [vmem:[%s41063_s8 + $0x3e8] sm:$0xff] %v2053_v30  ;;  %28616 = vmatprep.subr.bf16.mxu1 %v36365_v26 }
 0x36b   :  { %28365 = vmatmul.mubr.bf16.gmra.mrb[152].mxu1 %v41626_v55 }
 0x36c   :  { %28368 = vmatprep.mubr.bf16.mxu1 %v41626_v55 }
 0x36e   :  { %v28246_v22 = vpop.f32.mrb[48].mxu1 }
 0x36f   :  { %31528 = vst [vmem:[%s41063_s8 + $0x410] sm:$0xff] %v28246_v22  ;;  %v2066_v7 = vpop.f32.mrb[49].mxu1 }
 0x370   :  { %31531 = vst [vmem:[%s41063_s8 + $0x400] sm:$0xff] %v2066_v7  ;;  %v28247_v19 = vpop.f32.mrb[50].mxu1 }
 0x371   :  { %31534 = vst [vmem:[%s41063_s8 + $0x418] sm:$0xff] %v28247_v19  ;;  %v2069_v45 = vpop.f32.mrb[51].mxu1 }
 0x372   :  { %31537 = vst [vmem:[%s41063_s8 + $0x408] sm:$0xff] %v2069_v45 }
 0x373   :  { %28369 = vmatmul.mubr.bf16.gmra.mrb[156].mxu1 %v36037_v28 }
 0x374   :  { %28372 = vmatprep.mubr.bf16.mxu1 %v36063_v49 }
 0x376   :  { %v28250_v25 = vpop.f32.mrb[52].mxu1 }
 0x377   :  { %31540 = vst [vmem:[%s41063_s8 + $0x430] sm:$0xff] %v28250_v25  ;;  %v2082_v14 = vpop.f32.mrb[53].mxu1 }
 0x378   :  { %31543 = vst [vmem:[%s41063_s8 + $0x420] sm:$0xff] %v2082_v14  ;;  %v28251_v41 = vpop.f32.mrb[54].mxu1 }
 0x379   :  { %31546 = vst [vmem:[%s41063_s8 + $0x438] sm:$0xff] %v28251_v41  ;;  %v2085_v21 = vpop.f32.mrb[55].mxu1 }
 0x37a   :  { %31549 = vst [vmem:[%s41063_s8 + $0x428] sm:$0xff] %v2085_v21 }
 0x37b   :  { %28373 = vmatmul.mubr.bf16.gmra.mrb[160].mxu1 %v36065_v10 }
 0x37c   :  { %28376 = vmatprep.mubr.bf16.mxu1 %v36091_v6 }
 0x37e   :  { %v28254_v48 = vpop.f32.mrb[56].mxu1 }
 0x37f   :  { %31552 = vst [vmem:[%s41063_s8 + $0x450] sm:$0xff] %v28254_v48  ;;  %v2098_v4 = vpop.f32.mrb[57].mxu1 }
 0x380   :  { %31555 = vst [vmem:[%s41063_s8 + $0x440] sm:$0xff] %v2098_v4  ;;  %v28255_v16 = vpop.f32.mrb[58].mxu1 }
 0x381   :  { %31558 = vst [vmem:[%s41063_s8 + $0x458] sm:$0xff] %v28255_v16  ;;  %v2101_v20 = vpop.f32.mrb[59].mxu1 }
 0x382   :  { %31561 = vst [vmem:[%s41063_s8 + $0x448] sm:$0xff] %v2101_v20 }
 0x383   :  { %28377 = vmatmul.mubr.bf16.gmra.mrb[164].mxu1 %v36093_v47 }
 0x384   :  { %28380 = vmatprep.mubr.bf16.mxu1 %v36119_v36 }
 0x386   :  { %v28258_v30 = vpop.f32.mrb[60].mxu1 }
 0x387   :  { %31564 = vst [vmem:[%s41063_s8 + $0x470] sm:$0xff] %v28258_v30  ;;  %v2114_v22 = vpop.f32.mrb[61].mxu1 }
 0x388   :  { %31567 = vst [vmem:[%s41063_s8 + $0x460] sm:$0xff] %v2114_v22  ;;  %v28259_v7 = vpop.f32.mrb[62].mxu1 }
 0x389   :  { %31570 = vst [vmem:[%s41063_s8 + $0x478] sm:$0xff] %v28259_v7  ;;  %v2117_v19 = vpop.f32.mrb[63].mxu1 }
 0x38a   :  { %31573 = vst [vmem:[%s41063_s8 + $0x468] sm:$0xff] %v2117_v19 }
 0x38b   :  { %28381 = vmatmul.mubr.bf16.gmra.mrb[168].mxu1 %v36121_v51 }
 0x38c   :  { %28384 = vmatprep.mubr.bf16.mxu1 %v36143_v57 }
 0x38e   :  { %v28262_v45 = vpop.f32.mrb[64].mxu1 }
 0x38f   :  { %31576 = vst [vmem:[%s41063_s8 + $0x490] sm:$0xff] %v28262_v45  ;;  %v2130_v25 = vpop.f32.mrb[65].mxu1 }
 0x390   :  { %31579 = vst [vmem:[%s41063_s8 + $0x480] sm:$0xff] %v2130_v25  ;;  %v28263_v14 = vpop.f32.mrb[66].mxu1 }
 0x391   :  { %31582 = vst [vmem:[%s41063_s8 + $0x498] sm:$0xff] %v28263_v14  ;;  %v2133_v41 = vpop.f32.mrb[67].mxu1 }
 0x392   :  { %31585 = vst [vmem:[%s41063_s8 + $0x488] sm:$0xff] %v2133_v41 }
 0x393   :  { %28385 = vmatmul.mubr.bf16.gmra.mrb[172].mxu1 %v41626_v55 }
 0x394   :  { %28388 = vmatprep.mubr.bf16.mxu1 %v41626_v55 }
 0x396   :  { %v28266_v21 = vpop.f32.mrb[68].mxu1 }
 0x397   :  { %31588 = vst [vmem:[%s41063_s8 + $0x4b0] sm:$0xff] %v28266_v21  ;;  %v2146_v48 = vpop.f32.mrb[69].mxu1 }
 0x398   :  { %31591 = vst [vmem:[%s41063_s8 + $0x4a0] sm:$0xff] %v2146_v48  ;;  %v28267_v4 = vpop.f32.mrb[70].mxu1 }
 0x399   :  { %31594 = vst [vmem:[%s41063_s8 + $0x4b8] sm:$0xff] %v28267_v4  ;;  %v2149_v16 = vpop.f32.mrb[71].mxu1 }
 0x39a   :  { %31597 = vst [vmem:[%s41063_s8 + $0x4a8] sm:$0xff] %v2149_v16  ;;  %v41628_v16 = vld [vmem:[#allocation12_spill] sm:$0xff] }
 0x39b   :  { %28389 = vmatmul.mubr.bf16.gmra.mrb[176].mxu1 %v35286_v53 }
 0x39c   :  { %28392 = vmatprep.mubr.bf16.mxu1 %v35288_v59 }
 0x39e   :  { %v28270_v20 = vpop.f32.mrb[72].mxu1 }
 0x39f   :  { %31600 = vst [vmem:[%s41063_s8 + $0x4d0] sm:$0xff] %v28270_v20  ;;  %v2162_v30 = vpop.f32.mrb[73].mxu1  ;;  %v41629_v20 = vld [vmem:[#allocation13_spill] sm:$0xff] }
 0x3a0   :  { %31603 = vst [vmem:[%s41063_s8 + $0x4c0] sm:$0xff] %v2162_v30  ;;  %v28271_v22 = vpop.f32.mrb[74].mxu1  ;;  %v41630_v30 = vld [vmem:[#allocation14_spill] sm:$0xff] }
 0x3a1   :  { %31606 = vst [vmem:[%s41063_s8 + $0x4d8] sm:$0xff] %v28271_v22  ;;  %v2165_v7 = vpop.f32.mrb[75].mxu1  ;;  %v33990_v22 = vld [vmem:[%s41060_s3 + $0x88] sm:$0xff]  }
 0x3a2   :  { %31609 = vst [vmem:[%s41063_s8 + $0x4c8] sm:$0xff] %v2165_v7  ;;  %v33991_v7 = vld [vmem:[%s41060_s3 + $0x90] sm:$0xff]  }
 0x3a3   :  { %28393 = vmatmul.mubr.bf16.gmra.mrb[180].mxu1 %v35298_v11 }
 0x3a4   :  { %28396 = vmatprep.mubr.bf16.mxu1 %v35320_v2 }
 0x3ab   :  { %28397 = vmatmul.mubr.bf16.gmra.mrb[184].mxu1 %v35324_v37 }
 0x3ac   :  { %28400 = vmatprep.mubr.bf16.mxu1 %v35344_v44 }
 0x3b3   :  { %28401 = vmatmul.mubr.bf16.gmra.mrb[188].mxu1 %v35348_v46 }
 0x3b4   :  { %28404 = vmatprep.mubr.bf16.mxu1 %v35366_v39 }
 0x3bb   :  { %28405 = vmatmul.mubr.bf16.gmra.mrb[192].mxu1 %v41626_v55 }
 0x3bc   :  { %28408 = vmatprep.mubr.bf16.mxu1 %v41626_v55 }
 0x3c3   :  { %28409 = vmatmul.mubr.bf16.gmra.mrb[196].mxu1 %v35398_v60 }
 0x3c4   :  { %28412 = vmatprep.mubr.bf16.mxu1 %v35421_v61 }
 0x3c6   :  { %v28306_v19 = vpop.f32.mrb[92].mxu1 }
 0x3c7   :  { %v2573_v45 = vpop.f32.mrb[93].mxu1  ;;  %v33992_v19 = vld [vmem:[%s41060_s3 + $0x98] sm:$0xff]  }
 0x3c8   :  { %v28307_v25 = vpop.f32.mrb[94].mxu1 }
 0x3c9   :  { %v2576_v14 = vpop.f32.mrb[95].mxu1 }
 0x3cb   :  { %28413 = vmatmul.mubr.bf16.gmra.mrb[200].mxu1 %v35425_v18 }
 0x3cc   :  { %28416 = vmatprep.mubr.bf16.mxu1 %v35447_v35 }
 0x3d3   :  { %28417 = vmatmul.mubr.bf16.gmra.mrb[204].mxu1 %v35451_v1 }
 0x3d4   :  { %28420 = vmatprep.mubr.bf16.mxu1 %v35465_v56 }
 0x3db   :  { %28421 = vmatmul.mubr.bf16.gmra.mrb[208].mxu1 %v35472_v9 }
 0x3dc   :  { %28424 = vmatprep.mubr.bf16.mxu1 %v35494_v15 }
 0x3e3   :  { %28425 = vmatmul.mubr.bf16.gmra.mrb[212].mxu1 %v41626_v55 }
 0x3e4   :  { %28428 = vmatprep.mubr.bf16.mxu1 %v41626_v55 }
 0x3eb   :  { %28429 = vmatmul.mubr.bf16.gmra.mrb[216].mxu1 %v35545_v12 }
 0x3ec   :  { %28432 = vmatprep.mubr.bf16.mxu1 %v35591_v54 }
 0x3ee   :  { %v28326_v41 = vpop.f32.mrb[112].mxu1 }
 0x3ef   :  { %v2653_v21 = vpop.f32.mrb[113].mxu1  ;;  %v33993_v41 = vld [vmem:[%s41060_s3 + $0xa0] sm:$0xff]  }
 0x3f0   :  { %v28327_v48 = vpop.f32.mrb[114].mxu1  ;;  %v41631_v21 = vld [vmem:[#allocation8_spill] sm:$0xff] }
 0x3f1   :  { %v2656_v4 = vpop.f32.mrb[115].mxu1  ;;  %v41632_v48 = vld [vmem:[#allocation9_spill] sm:$0xff] }
 0x3f2   :  { %v41633_v4 = vld [vmem:[#allocation10_spill] sm:$0xff] }
 0x3f3   :  { %28433 = vmatmul.mubr.bf16.gmra.mrb[220].mxu1 %v35597_v32 }
 0x3f4   :  { %28436 = vmatprep.mubr.bf16.mxu1 %v35639_v43 }
 0x3fb   :  { %28437 = vmatmul.mubr.bf16.gmra.mrb[224].mxu1 %v41628_v16 }
 0x3fc   :  { %28440 = vmatprep.mubr.bf16.mxu1 %v41629_v20 }
 0x403   :  { %28441 = vmatmul.mubr.bf16.gmra.mrb[228].mxu1 %v41630_v30 }
 0x404   :  { %28460 = vmatprep.mubr.bf16.mxu1 %v41626_v55 }
 0x40b   :  { %28461 = vmatmul.mubr.bf16.vlgmr.msra.gmra.mrb[76].mxu1 %v41626_v55 }
 0x40c   :  { %28617 = vmatpush3.bf16.msra.mxu1 %v36365_v26  ;;  %28464 = vmatprep.mubr.bf16.mxu1 %v41626_v55 }
 0x40d   :  { %28618 = vmatprep.subr.bf16.mxu1 %v33990_v22 }
 0x410   :  { %28619 = vmatpush3.bf16.msra.mxu1 %v33990_v22 }
 0x411   :  { %28620 = vmatprep.subr.bf16.mxu1 %v33991_v7 }
 0x413   :  { %28465 = vmatmul.mubr.bf16.gmra.mrb[80].mxu1 %v41626_v55 }
 0x414   :  { %28468 = vmatprep.mubr.bf16.mxu1 %v41626_v55  ;;  %28621 = vmatpush3.bf16.msra.mxu1 %v33991_v7 }
 0x415   :  { %28622 = vmatprep.subr.bf16.mxu1 %v33992_v19 }
 0x416   :  { %v28346_v26 = vpop.f32.mrb[132].mxu1 }
 0x417   :  { %v2733_v45 = vpop.f32.mrb[133].mxu1 }
 0x418   :  { %v28347_v25 = vpop.f32.mrb[134].mxu1  ;;  %28623 = vmatpush3.bf16.msra.mxu1 %v33992_v19  ;;  %v33994_v45 = vld [vmem:[%s41060_s3 + $0xa8] sm:$0xff]  }
 0x419   :  { %v2736_v14 = vpop.f32.mrb[135].mxu1  ;;  %28624 = vmatprep.subr.bf16.mxu1 %v33993_v41 }
 0x41b   :  { %28469 = vmatmul.mubr.bf16.gmra.mrb[84].mxu1 %v41626_v55 }
 0x41c   :  { %28472 = vmatprep.mubr.bf16.mxu1 %v41626_v55  ;;  %28625 = vmatpush3.bf16.msra.mxu1 %v33993_v41 }
 0x41d   :  { %28626 = vmatprep.subr.bf16.mxu1 %v33994_v45 }
 0x420   :  { %28627 = vmatpush3.bf16.msra.mxu1 %v33994_v45 }
 0x423   :  { %28473 = vmatmul.mubr.bf16.gmra.mrb[88].mxu1 %v41626_v55 }
 0x424   :  { %28476 = vmatprep.mubr.bf16.mxu1 %v41626_v55 }
 0x42b   :  { %28477 = vmatmul.mubr.bf16.gmra.mrb[232].mxu1 %v41626_v55 }
 0x42c   :  { %28480 = vmatprep.mubr.bf16.mxu1 %v41631_v21 }
 0x433   :  { %28481 = vmatmul.mubr.bf16.gmra.mrb[96].mxu1 %v41632_v48 }
 0x434   :  { %28484 = vmatprep.mubr.bf16.mxu1 %v41633_v4 }
 0x43b   :  { %28485 = vmatmul.mubr.bf16.gmra.mrb[100].mxu1 %v35603_v34 }
 0x43c   :  { %28488 = vmatprep.mubr.bf16.mxu1 %v35609_v0 }
 0x43e   :  { %v28366_v22 = vpop.f32.mrb[152].mxu1 }
 0x43f   :  { %v2813_v7 = vpop.f32.mrb[153].mxu1 }
 0x440   :  { %v28367_v19 = vpop.f32.mrb[154].mxu1  ;;  %v33995_v7 = vld [vmem:[%s41060_s3 + $0xb0] sm:$0xff]  }
 0x441   :  { %v2816_v26 = vpop.f32.mrb[155].mxu1  ;;  %28628 = vmatprep.subr.bf16.mxu1 %v33995_v7 }
 0x442   :  { %28629 = vmatpush3.bf16.msra.mxu1 %v33995_v7 }
 0x443   :  { %28489 = vmatmul.mubr.bf16.gmra.mrb[104].mxu1 %v35652_v63 }
 0x444   :  { %28492 = vmatprep.mubr.bf16.mxu1 %v35654_v3 }
 0x44b   :  { %28493 = vmatmul.mubr.bf16.gmra.mrb[108].mxu1 %v35681_v31 }
 0x44c   :  { %28496 = vmatprep.mubr.bf16.mxu1 %v41626_v55 }
 0x453   :  { %28497 = vmatmul.mubr.bf16.gmra.mrb[236].mxu1 %v41626_v55 }
 0x454   :  { %28500 = vmatprep.mubr.bf16.mxu1 %v35719_v17 }
 0x45b   :  { %28501 = vmatmul.mubr.bf16.gmra.mrb[116].mxu1 %v35763_v24 }
 0x45c   :  { %28504 = vmatprep.mubr.bf16.mxu1 %v35769_v50 }
 0x463   :  { %28505 = vmatmul.mubr.bf16.gmra.mrb[120].mxu1 %v35815_v40 }
 0x464   :  { %28508 = vmatprep.mubr.bf16.mxu1 %v35821_v42 }
 0x466   :  { %v28386_v25 = vpop.f32.mrb[172].mxu1 }
 0x467   :  { %v2893_v14 = vpop.f32.mrb[173].mxu1 }
 0x468   :  { %v28387_v41 = vpop.f32.mrb[174].mxu1  ;;  %v33996_v14 = vld [vmem:[%s41060_s3 + $0xb8] sm:$0xff]  }
 0x469   :  { %v2896_v22 = vpop.f32.mrb[175].mxu1  ;;  %28630 = vmatprep.subr.bf16.mxu1 %v33996_v14 }
 0x46a   :  { %28631 = vmatpush3.bf16.msra.mxu1 %v33996_v14 }
 0x46b   :  { %28509 = vmatmul.mubr.bf16.gmra.mrb[124].mxu1 %v35864_v27 }
 0x46c   :  { %28512 = vmatprep.mubr.bf16.mxu1 %v35866_v52 }
 0x473   :  { %28513 = vmatmul.mubr.bf16.gmra.mrb[128].mxu1 %v35890_v8 }
 0x474   :  { %28516 = vmatprep.mubr.bf16.mxu1 %v41626_v55 }
 0x47b   :  { %28517 = vmatmul.mubr.bf16.gmra.mrb[240].mxu1 %v41626_v55 }
 0x47c   :  { %28520 = vmatprep.mubr.bf16.mxu1 %v35908_v29 }
 0x483   :  { %28521 = vmatmul.mubr.bf16.gmra.mrb[136].mxu1 %v35934_v5 }
 0x484   :  { %28524 = vmatprep.mubr.bf16.mxu1 %v35939_v62 }
 0x48b   :  { %28525 = vmatmul.mubr.bf16.gmra.mrb[140].mxu1 %v35969_v58 }
 0x48c   :  { %28528 = vmatprep.mubr.bf16.mxu1 %v35974_v38 }
 0x48e   :  { %v28406_v19 = vpop.f32.mrb[192].mxu1 }
 0x48f   :  { %v2973_v26 = vpop.f32.mrb[193].mxu1 }
 0x490   :  { %v28407_v45 = vpop.f32.mrb[194].mxu1  ;;  %v33997_v26 = vld [vmem:[%s41060_s3 + $0xc0] sm:$0xff]  }
 0x491   :  { %v2976_v25 = vpop.f32.mrb[195].mxu1  ;;  %28788 = vmatprep.subr.bf16.mxu1 %v33997_v26 }
 0x493   :  { %28529 = vmatmul.mubr.bf16.gmra.mrb[144].mxu1 %v36000_v23 }
 0x494   :  { %28532 = vmatprep.mubr.bf16.mxu1 %v36002_v13 }
 0x49b   :  { %28533 = vmatmul.mubr.bf16.gmra.mrb[148].mxu1 %v36018_v33 }
 0x49c   :  { %28536 = vmatprep.mubr.bf16.mxu1 %v41626_v55 }
 0x4a3   :  { %28537 = vmatmul.mubr.bf16.gmra.mrb[244].mxu1 %v41626_v55 }
 0x4a4   :  { %28540 = vmatprep.mubr.bf16.mxu1 %v36037_v28 }
 0x4ab   :  { %28541 = vmatmul.mubr.bf16.gmra.mrb[156].mxu1 %v36063_v49 }
 0x4ac   :  { %28544 = vmatprep.mubr.bf16.mxu1 %v36065_v10 }
 0x4b3   :  { %28545 = vmatmul.mubr.bf16.gmra.mrb[160].mxu1 %v36091_v6 }
 0x4b4   :  { %28548 = vmatprep.mubr.bf16.mxu1 %v36093_v47 }
 0x4b6   :  { %v28426_v41 = vpop.f32.mrb[212].mxu1 }
 0x4b7   :  { %v3053_v22 = vpop.f32.mrb[213].mxu1 }
 0x4b8   :  { %v28427_v7 = vpop.f32.mrb[214].mxu1 }
 0x4b9   :  { %v3056_v19 = vpop.f32.mrb[215].mxu1 }
 0x4bb   :  { %28549 = vmatmul.mubr.bf16.gmra.mrb[164].mxu1 %v36119_v36 }
 0x4bc   :  { %28552 = vmatprep.mubr.bf16.mxu1 %v36121_v51 }
 0x4c3   :  { %28553 = vmatmul.mubr.bf16.gmra.mrb[168].mxu1 %v36143_v57 }
 0x4c4   :  { %28556 = vmatprep.mubr.bf16.mxu1 %v41626_v55 }
 0x4cb   :  { %28557 = vmatmul.mubr.bf16.gmra.mrb[248].mxu1 %v41626_v55 }
 0x4cc   :  { %28560 = vmatprep.mubr.bf16.mxu1 %v35286_v53 }
 0x4d3   :  { %28561 = vmatmul.mubr.bf16.gmra.mrb[176].mxu1 %v35288_v59 }
 0x4d4   :  { %28564 = vmatprep.mubr.bf16.mxu1 %v35298_v11 }
 0x4db   :  { %28565 = vmatmul.mubr.bf16.gmra.mrb[180].mxu1 %v35320_v2 }
 0x4dc   :  { %28568 = vmatprep.mubr.bf16.mxu1 %v35324_v37 }
 0x4e3   :  { %28569 = vmatmul.mubr.bf16.gmra.mrb[184].mxu1 %v35344_v44 }
 0x4e4   :  { %28572 = vmatprep.mubr.bf16.mxu1 %v35348_v46 }
 0x4eb   :  { %28573 = vmatmul.mubr.bf16.gmra.mrb[188].mxu1 %v35366_v39 }
 0x4ec   :  { %28576 = vmatprep.mubr.bf16.mxu1 %v41626_v55 }
 0x4f3   :  { %28577 = vmatmul.mubr.bf16.gmra.mrb[252].mxu1 %v41626_v55 }
 0x4f4   :  { %28580 = vmatprep.mubr.bf16.mxu1 %v35398_v60 }
 0x4fb   :  { %28581 = vmatmul.mubr.bf16.gmra.mrb[196].mxu1 %v35421_v61 }
 0x4fc   :  { %28584 = vmatprep.mubr.bf16.mxu1 %v35425_v18 }
 0x4fe   :  { %v28478_v45 = vpop.f32.mrb[232].mxu1 }
 0x4ff   :  { %v3528_v25 = vpop.f32.mrb[233].mxu1 }
 0x500   :  { %v28479_v14 = vpop.f32.mrb[234].mxu1  ;;  %v41634_v25 = vld [vmem:[#allocation15_spill] sm:$0xff] }
 0x501   :  { %v3531_v41 = vpop.f32.mrb[235].mxu1  ;;  %v33998_v14 = vld [vmem:[%s41060_s3 + $0xc8] sm:$0xff]  }
 0x502   :  { %v33999_v41 = vld [vmem:[%s41060_s3 + $0xd0] sm:$0xff]  }
 0x503   :  { %28585 = vmatmul.mubr.bf16.gmra.mrb[200].mxu1 %v35447_v35 }
 0x504   :  { %28588 = vmatprep.mubr.bf16.mxu1 %v35451_v1 }
 0x50b   :  { %28589 = vmatmul.mubr.bf16.gmra.mrb[204].mxu1 %v35465_v56 }
 0x50c   :  { %28592 = vmatprep.mubr.bf16.mxu1 %v35472_v9 }
 0x513   :  { %28593 = vmatmul.mubr.bf16.gmra.mrb[208].mxu1 %v35494_v15 }
 0x514   :  { %28596 = vmatprep.mubr.bf16.mxu1 %v41626_v55 }
 0x51b   :  { %28597 = vmatmul.mubr.bf16.gmra.mrb[92].mxu1 %v41626_v55 }
 0x51c   :  { %28600 = vmatprep.mubr.bf16.mxu1 %v35545_v12 }
 0x523   :  { %28601 = vmatmul.mubr.bf16.gmra.mrb[216].mxu1 %v35591_v54 }
 0x524   :  { %28604 = vmatprep.mubr.bf16.mxu1 %v35597_v32 }
 0x526   :  { %v28498_v22 = vpop.f32.mrb[236].mxu1 }
 0x527   :  { %v3608_v7 = vpop.f32.mrb[237].mxu1  ;;  %v34000_v22 = vld [vmem:[%s41060_s3 + $0xd8] sm:$0xff]  }
 0x528   :  { %v28499_v19 = vpop.f32.mrb[238].mxu1 }
 0x529   :  { %v3611_v45 = vpop.f32.mrb[239].mxu1 }
 0x52b   :  { %28605 = vmatmul.mubr.bf16.gmra.mrb[220].mxu1 %v35639_v43 }
 0x52c   :  { %28608 = vmatprep.mubr.bf16.mxu1 %v41628_v16 }
 0x533   :  { %28609 = vmatmul.mubr.bf16.gmra.mrb[224].mxu1 %v41629_v20 }
 0x534   :  { %28612 = vmatprep.mubr.bf16.mxu1 %v41630_v30 }
 0x53b   :  { %28613 = vmatmul.mubr.bf16.gmra.mrb[228].mxu1 %v41634_v25 }
 0x53c   :  { %28632 = vmatprep.mubr.bf16.mxu1 %v41626_v55 }
 0x543   :  { %28633 = vmatmul.mubr.bf16.vlgmr.msra.gmra.mrb[76].mxu1 %v41626_v55 }
 0x544   :  { %28789 = vmatpush3.bf16.msra.mxu1 %v33997_v26  ;;  %28636 = vmatprep.mubr.bf16.mxu1 %v41626_v55 }
 0x545   :  { %28790 = vmatprep.subr.bf16.mxu1 %v33998_v14 }
 0x548   :  { %28791 = vmatpush3.bf16.msra.mxu1 %v33998_v14  ;;  %v34001_v14 = vld [vmem:[%s41060_s3 + $0xe0] sm:$0xff]  }
 0x549   :  { %28792 = vmatprep.subr.bf16.mxu1 %v33999_v41 }
 0x54b   :  { %28637 = vmatmul.mubr.bf16.gmra.mrb[80].mxu1 %v41626_v55 }
 0x54c   :  { %28640 = vmatprep.mubr.bf16.mxu1 %v41626_v55  ;;  %28793 = vmatpush3.bf16.msra.mxu1 %v33999_v41 }
 0x54d   :  { %28794 = vmatprep.subr.bf16.mxu1 %v34000_v22 }
 0x54e   :  { %v28518_v26 = vpop.f32.mrb[240].mxu1 }
 0x54f   :  { %v3688_v7 = vpop.f32.mrb[241].mxu1 }
 0x550   :  { %v28519_v19 = vpop.f32.mrb[242].mxu1  ;;  %28795 = vmatpush3.bf16.msra.mxu1 %v34000_v22 }
 0x551   :  { %v3691_v45 = vpop.f32.mrb[243].mxu1  ;;  %28796 = vmatprep.subr.bf16.mxu1 %v34001_v14  ;;  %v34002_v19 = vld [vmem:[%s41060_s3 + $0xe8] sm:$0xff]  }
 0x553   :  { %28641 = vmatmul.mubr.bf16.gmra.mrb[84].mxu1 %v41626_v55 }
 0x554   :  { %28644 = vmatprep.mubr.bf16.mxu1 %v41626_v55  ;;  %28797 = vmatpush3.bf16.msra.mxu1 %v34001_v14 }
 0x555   :  { %28798 = vmatprep.subr.bf16.mxu1 %v34002_v19 }
 0x558   :  { %28799 = vmatpush3.bf16.msra.mxu1 %v34002_v19 }
 0x55b   :  { %28645 = vmatmul.mubr.bf16.gmra.mrb[88].mxu1 %v41626_v55 }
 0x55c   :  { %28648 = vmatprep.mubr.bf16.mxu1 %v41626_v55 }
 0x563   :  { %28649 = vmatmul.mubr.bf16.gmra.mrb[112].mxu1 %v41631_v21 }
 0x564   :  { %28652 = vmatprep.mubr.bf16.mxu1 %v41632_v48 }
 0x56b   :  { %28653 = vmatmul.mubr.bf16.gmra.mrb[96].mxu1 %v41633_v4 }
 0x56c   :  { %28656 = vmatprep.mubr.bf16.mxu1 %v35603_v34 }
 0x573   :  { %28657 = vmatmul.mubr.bf16.gmra.mrb[100].mxu1 %v35609_v0 }
 0x574   :  { %28660 = vmatprep.mubr.bf16.mxu1 %v35652_v63 }
 0x576   :  { %v28538_v41 = vpop.f32.mrb[244].mxu1 }
 0x577   :  { %v3768_v22 = vpop.f32.mrb[245].mxu1 }
 0x578   :  { %v28539_v26 = vpop.f32.mrb[246].mxu1 }
 0x579   :  { %v3771_v7 = vpop.f32.mrb[247].mxu1  ;;  %v34003_v26 = vld [vmem:[%s41060_s3 + $0xf0] sm:$0xff]  }
 0x57a   :  { %28800 = vmatprep.subr.bf16.mxu1 %v34003_v26 }
 0x57b   :  { %28661 = vmatmul.mubr.bf16.gmra.mrb[104].mxu1 %v35654_v3 }
 0x57c   :  { %28664 = vmatprep.mubr.bf16.mxu1 %v35681_v31  ;;  %28801 = vmatpush3.bf16.msra.mxu1 %v34003_v26 }
 0x583   :  { %28665 = vmatmul.mubr.bf16.gmra.mrb[108].mxu1 %v41626_v55 }
 0x584   :  { %28668 = vmatprep.mubr.bf16.mxu1 %v41626_v55 }
 0x58b   :  { %28669 = vmatmul.mubr.bf16.gmra.mrb[132].mxu1 %v35719_v17 }
 0x58c   :  { %28672 = vmatprep.mubr.bf16.mxu1 %v35763_v24 }
 0x593   :  { %28673 = vmatmul.mubr.bf16.gmra.mrb[116].mxu1 %v35769_v50 }
 0x594   :  { %28676 = vmatprep.mubr.bf16.mxu1 %v35815_v40 }
 0x59b   :  { %28677 = vmatmul.mubr.bf16.gmra.mrb[120].mxu1 %v35821_v42 }
 0x59c   :  { %28680 = vmatprep.mubr.bf16.mxu1 %v35864_v27 }
 0x59e   :  { %v28558_v45 = vpop.f32.mrb[248].mxu1 }
 0x59f   :  { %v3848_v14 = vpop.f32.mrb[249].mxu1 }
 0x5a0   :  { %v28559_v41 = vpop.f32.mrb[250].mxu1 }
 0x5a1   :  { %v3851_v22 = vpop.f32.mrb[251].mxu1  ;;  %v34004_v41 = vld [vmem:[%s41060_s3 + $0xf8] sm:$0xff]  }
 0x5a2   :  { %28802 = vmatprep.subr.bf16.mxu1 %v34004_v41 }
 0x5a3   :  { %28681 = vmatmul.mubr.bf16.gmra.mrb[124].mxu1 %v35866_v52 }
 0x5a4   :  { %28684 = vmatprep.mubr.bf16.mxu1 %v35890_v8  ;;  %28803 = vmatpush3.bf16.msra.mxu1 %v34004_v41 }
 0x5ab   :  { %28685 = vmatmul.mubr.bf16.gmra.mrb[128].mxu1 %v41626_v55 }
 0x5ac   :  { %28688 = vmatprep.mubr.bf16.mxu1 %v41626_v55 }
 0x5b3   :  { %28689 = vmatmul.mubr.bf16.gmra.mrb[152].mxu1 %v35908_v29 }
 0x5b4   :  { %28692 = vmatprep.mubr.bf16.mxu1 %v35934_v5 }
 0x5bb   :  { %28693 = vmatmul.mubr.bf16.gmra.mrb[136].mxu1 %v35939_v62 }
 0x5bc   :  { %28696 = vmatprep.mubr.bf16.mxu1 %v35969_v58 }
 0x5c3   :  { %28697 = vmatmul.mubr.bf16.gmra.mrb[140].mxu1 %v35974_v38 }
 0x5c4   :  { %28700 = vmatprep.mubr.bf16.mxu1 %v36000_v23 }
 0x5c6   :  { %v28578_v7 = vpop.f32.mrb[252].mxu1 }
 0x5c7   :  { %v3928_v19 = vpop.f32.mrb[253].mxu1 }
 0x5c8   :  { %v28579_v45 = vpop.f32.mrb[254].mxu1 }
 0x5c9   :  { %v3931_v14 = vpop.f32.mrb[255].mxu1  ;;  %v34005_v45 = vld [vmem:[%s41060_s3 + $0x100] sm:$0xff]  }
 0x5ca   :  { %28960 = vmatprep.subr.bf16.mxu1 %v34005_v45 }
 0x5cb   :  { %28701 = vmatmul.mubr.bf16.gmra.mrb[144].mxu1 %v36002_v13 }
 0x5cc   :  { %28704 = vmatprep.mubr.bf16.mxu1 %v36018_v33 }
 0x5d3   :  { %28705 = vmatmul.mubr.bf16.gmra.mrb[148].mxu1 %v41626_v55 }
 0x5d4   :  { %28708 = vmatprep.mubr.bf16.mxu1 %v41626_v55 }
 0x5db   :  { %28709 = vmatmul.mubr.bf16.gmra.mrb[172].mxu1 %v36037_v28 }
 0x5dc   :  { %28712 = vmatprep.mubr.bf16.mxu1 %v36063_v49 }
 0x5e3   :  { %28713 = vmatmul.mubr.bf16.gmra.mrb[156].mxu1 %v36065_v10 }
 0x5e4   :  { %28716 = vmatprep.mubr.bf16.mxu1 %v36091_v6 }
 0x5eb   :  { %28717 = vmatmul.mubr.bf16.gmra.mrb[160].mxu1 %v36093_v47 }
 0x5ec   :  { %28720 = vmatprep.mubr.bf16.mxu1 %v36119_v36 }
 0x5ee   :  { %v28598_v22 = vpop.f32.mrb[92].mxu1 }
 0x5ef   :  { %v4008_v26 = vpop.f32.mrb[93].mxu1 }
 0x5f0   :  { %v28599_v7 = vpop.f32.mrb[94].mxu1 }
 0x5f1   :  { %v4011_v19 = vpop.f32.mrb[95].mxu1 }
 0x5f3   :  { %28721 = vmatmul.mubr.bf16.gmra.mrb[164].mxu1 %v36121_v51 }
 0x5f4   :  { %28724 = vmatprep.mubr.bf16.mxu1 %v36143_v57 }
 0x5fb   :  { %28725 = vmatmul.mubr.bf16.gmra.mrb[168].mxu1 %v41626_v55 }
 0x5fc   :  { %28728 = vmatprep.mubr.bf16.mxu1 %v41626_v55 }
 0x603   :  { %28729 = vmatmul.mubr.bf16.gmra.mrb[192].mxu1 %v35286_v53 }
 0x604   :  { %28732 = vmatprep.mubr.bf16.mxu1 %v35288_v59 }
 0x60b   :  { %28733 = vmatmul.mubr.bf16.gmra.mrb[176].mxu1 %v35298_v11 }
 0x60c   :  { %28736 = vmatprep.mubr.bf16.mxu1 %v35320_v2 }
 0x613   :  { %28737 = vmatmul.mubr.bf16.gmra.mrb[180].mxu1 %v35324_v37 }
 0x614   :  { %28740 = vmatprep.mubr.bf16.mxu1 %v35344_v44 }
 0x61b   :  { %28741 = vmatmul.mubr.bf16.gmra.mrb[184].mxu1 %v35348_v46 }
 0x61c   :  { %28744 = vmatprep.mubr.bf16.mxu1 %v35366_v39 }
 0x623   :  { %28745 = vmatmul.mubr.bf16.gmra.mrb[188].mxu1 %v41626_v55 }
 0x624   :  { %28748 = vmatprep.mubr.bf16.mxu1 %v41626_v55 }
 0x62b   :  { %28749 = vmatmul.mubr.bf16.gmra.mrb[212].mxu1 %v35398_v60 }
 0x62c   :  { %28752 = vmatprep.mubr.bf16.mxu1 %v35421_v61 }
 0x633   :  { %28753 = vmatmul.mubr.bf16.gmra.mrb[196].mxu1 %v35425_v18 }
 0x634   :  { %28756 = vmatprep.mubr.bf16.mxu1 %v35447_v35 }
 0x636   :  { %v28650_v14 = vpop.f32.mrb[112].mxu1 }
 0x637   :  { %v4795_v41 = vpop.f32.mrb[113].mxu1 }
 0x638   :  { %v28651_v22 = vpop.f32.mrb[114].mxu1 }
 0x639   :  { %v4798_v26 = vpop.f32.mrb[115].mxu1  ;;  %v34006_v22 = vld [vmem:[%s41060_s3 + $0x108] sm:$0xff]  }
 0x63a   :  { %v34007_v26 = vld [vmem:[%s41060_s3 + $0x110] sm:$0xff]  }
 0x63b   :  { %28757 = vmatmul.mubr.bf16.gmra.mrb[200].mxu1 %v35451_v1 }
 0x63c   :  { %28760 = vmatprep.mubr.bf16.mxu1 %v35465_v56 }
 0x643   :  { %28761 = vmatmul.mubr.bf16.gmra.mrb[204].mxu1 %v35472_v9 }
 0x644   :  { %28764 = vmatprep.mubr.bf16.mxu1 %v35494_v15 }
 0x64b   :  { %28765 = vmatmul.mubr.bf16.gmra.mrb[208].mxu1 %v41626_v55 }
 0x64c   :  { %28768 = vmatprep.mubr.bf16.mxu1 %v41626_v55 }
 0x653   :  { %28769 = vmatmul.mubr.bf16.gmra.mrb[232].mxu1 %v35545_v12 }
 0x654   :  { %28772 = vmatprep.mubr.bf16.mxu1 %v35591_v54 }
 0x65b   :  { %28773 = vmatmul.mubr.bf16.gmra.mrb[216].mxu1 %v35597_v32 }
 0x65c   :  { %28776 = vmatprep.mubr.bf16.mxu1 %v35639_v43 }
 0x65e   :  { %v28670_v7 = vpop.f32.mrb[132].mxu1 }
 0x65f   :  { %v4875_v19 = vpop.f32.mrb[133].mxu1  ;;  %v34008_v7 = vld [vmem:[%s41060_s3 + $0x118] sm:$0xff]  }
 0x660   :  { %v28671_v14 = vpop.f32.mrb[134].mxu1 }
 0x661   :  { %v4878_v41 = vpop.f32.mrb[135].mxu1 }
 0x663   :  { %28777 = vmatmul.mubr.bf16.gmra.mrb[220].mxu1 %v41628_v16 }
 0x664   :  { %28780 = vmatprep.mubr.bf16.mxu1 %v41629_v20 }
 0x66b   :  { %28781 = vmatmul.mubr.bf16.gmra.mrb[224].mxu1 %v41630_v30 }
 0x66c   :  { %28784 = vmatprep.mubr.bf16.mxu1 %v41634_v25 }
 0x673   :  { %28785 = vmatmul.mubr.bf16.gmra.mrb[228].mxu1 %v41626_v55 }
 0x674   :  { %28804 = vmatprep.mubr.bf16.mxu1 %v41626_v55 }
 0x67b   :  { %28805 = vmatmul.mubr.bf16.vlgmr.msra.gmra.mrb[76].mxu1 %v41631_v21 }
 0x67c   :  { %28961 = vmatpush3.bf16.msra.mxu1 %v34005_v45  ;;  %28808 = vmatprep.mubr.bf16.mxu1 %v41632_v48 }
 0x67d   :  { %28962 = vmatprep.subr.bf16.mxu1 %v34006_v22 }
 0x680   :  { %28963 = vmatpush3.bf16.msra.mxu1 %v34006_v22  ;;  %v34009_v22 = vld [vmem:[%s41060_s3 + $0x120] sm:$0xff]  }
 0x681   :  { %28964 = vmatprep.subr.bf16.mxu1 %v34007_v26 }
 0x683   :  { %28809 = vmatmul.mubr.bf16.gmra.mrb[80].mxu1 %v41633_v4 }
 0x684   :  { %28812 = vmatprep.mubr.bf16.mxu1 %v35603_v34  ;;  %28965 = vmatpush3.bf16.msra.mxu1 %v34007_v26 }
 0x685   :  { %28966 = vmatprep.subr.bf16.mxu1 %v34008_v7 }
 0x686   :  { %v28690_v45 = vpop.f32.mrb[152].mxu1 }
 0x687   :  { %v4955_v19 = vpop.f32.mrb[153].mxu1 }
 0x688   :  { %v28691_v14 = vpop.f32.mrb[154].mxu1  ;;  %28967 = vmatpush3.bf16.msra.mxu1 %v34008_v7 }
 0x689   :  { %v4958_v41 = vpop.f32.mrb[155].mxu1  ;;  %28968 = vmatprep.subr.bf16.mxu1 %v34009_v22  ;;  %v34010_v14 = vld [vmem:[%s41060_s3 + $0x128] sm:$0xff]  }
 0x68b   :  { %28813 = vmatmul.mubr.bf16.gmra.mrb[84].mxu1 %v35609_v0 }
 0x68c   :  { %28816 = vmatprep.mubr.bf16.mxu1 %v35652_v63  ;;  %28969 = vmatpush3.bf16.msra.mxu1 %v34009_v22 }
 0x68d   :  { %28970 = vmatprep.subr.bf16.mxu1 %v34010_v14 }
 0x690   :  { %28971 = vmatpush3.bf16.msra.mxu1 %v34010_v14 }
 0x693   :  { %28817 = vmatmul.mubr.bf16.gmra.mrb[88].mxu1 %v35654_v3 }
 0x694   :  { %28820 = vmatprep.mubr.bf16.mxu1 %v35681_v31 }
 0x69b   :  { %28821 = vmatmul.mubr.bf16.gmra.mrb[236].mxu1 %v41626_v55 }
 0x69c   :  { %28824 = vmatprep.mubr.bf16.mxu1 %v41626_v55 }
 0x6a3   :  { %28825 = vmatmul.mubr.bf16.gmra.mrb[96].mxu1 %v35719_v17 }
 0x6a4   :  { %28828 = vmatprep.mubr.bf16.mxu1 %v35763_v24 }
 0x6ab   :  { %28829 = vmatmul.mubr.bf16.gmra.mrb[100].mxu1 %v35769_v50 }
 0x6ac   :  { %28832 = vmatprep.mubr.bf16.mxu1 %v35815_v40 }
 0x6ae   :  { %v28710_v26 = vpop.f32.mrb[172].mxu1 }
 0x6af   :  { %v5035_v7 = vpop.f32.mrb[173].mxu1 }
 0x6b0   :  { %v28711_v45 = vpop.f32.mrb[174].mxu1 }
 0x6b1   :  { %v5038_v19 = vpop.f32.mrb[175].mxu1  ;;  %v34011_v45 = vld [vmem:[%s41060_s3 + $0x130] sm:$0xff]  }
 0x6b2   :  { %28972 = vmatprep.subr.bf16.mxu1 %v34011_v45 }
 0x6b3   :  { %28833 = vmatmul.mubr.bf16.gmra.mrb[104].mxu1 %v35821_v42 }
 0x6b4   :  { %28836 = vmatprep.mubr.bf16.mxu1 %v35864_v27  ;;  %28973 = vmatpush3.bf16.msra.mxu1 %v34011_v45 }
 0x6bb   :  { %28837 = vmatmul.mubr.bf16.gmra.mrb[108].mxu1 %v35866_v52 }
 0x6bc   :  { %28840 = vmatprep.mubr.bf16.mxu1 %v35890_v8 }
 0x6c3   :  { %28841 = vmatmul.mubr.bf16.gmra.mrb[240].mxu1 %v41626_v55 }
 0x6c4   :  { %28844 = vmatprep.mubr.bf16.mxu1 %v41626_v55 }
 0x6cb   :  { %28845 = vmatmul.mubr.bf16.gmra.mrb[116].mxu1 %v35908_v29 }
 0x6cc   :  { %28848 = vmatprep.mubr.bf16.mxu1 %v35934_v5 }
 0x6d3   :  { %28849 = vmatmul.mubr.bf16.gmra.mrb[120].mxu1 %v35939_v62 }
 0x6d4   :  { %28852 = vmatprep.mubr.bf16.mxu1 %v35969_v58 }
 0x6d6   :  { %v28730_v41 = vpop.f32.mrb[192].mxu1 }
 0x6d7   :  { %v5115_v22 = vpop.f32.mrb[193].mxu1 }
 0x6d8   :  { %v28731_v26 = vpop.f32.mrb[194].mxu1 }
 0x6d9   :  { %v5118_v7 = vpop.f32.mrb[195].mxu1  ;;  %v34012_v26 = vld [vmem:[%s41060_s3 + $0x138] sm:$0xff]  }
 0x6da   :  { %28974 = vmatprep.subr.bf16.mxu1 %v34012_v26 }
 0x6db   :  { %28853 = vmatmul.mubr.bf16.gmra.mrb[124].mxu1 %v35974_v38 }
 0x6dc   :  { %28856 = vmatprep.mubr.bf16.mxu1 %v36000_v23  ;;  %28975 = vmatpush3.bf16.msra.mxu1 %v34012_v26 }
 0x6e3   :  { %28857 = vmatmul.mubr.bf16.gmra.mrb[128].mxu1 %v36002_v13 }
 0x6e4   :  { %28860 = vmatprep.mubr.bf16.mxu1 %v36018_v33 }
 0x6eb   :  { %28861 = vmatmul.mubr.bf16.gmra.mrb[244].mxu1 %v41626_v55 }
 0x6ec   :  { %28864 = vmatprep.mubr.bf16.mxu1 %v41626_v55 }
 0x6f3   :  { %28865 = vmatmul.mubr.bf16.gmra.mrb[136].mxu1 %v36037_v28 }
 0x6f4   :  { %28868 = vmatprep.mubr.bf16.mxu1 %v36063_v49 }
 0x6fb   :  { %28869 = vmatmul.mubr.bf16.gmra.mrb[140].mxu1 %v36065_v10 }
 0x6fc   :  { %28872 = vmatprep.mubr.bf16.mxu1 %v36091_v6 }
 0x6fe   :  { %v28750_v19 = vpop.f32.mrb[212].mxu1 }
 0x6ff   :  { %v5195_v14 = vpop.f32.mrb[213].mxu1 }
 0x700   :  { %v28751_v41 = vpop.f32.mrb[214].mxu1 }
 0x701   :  { %v5198_v22 = vpop.f32.mrb[215].mxu1  ;;  %v34013_v41 = vld [vmem:[%s41060_s3 + $0x140] sm:$0xff]  }
 0x702   :  { %29132 = vmatprep.subr.bf16.mxu1 %v34013_v41 }
 0x703   :  { %28873 = vmatmul.mubr.bf16.gmra.mrb[144].mxu1 %v36093_v47 }
 0x704   :  { %28876 = vmatprep.mubr.bf16.mxu1 %v36119_v36 }
 0x70b   :  { %28877 = vmatmul.mubr.bf16.gmra.mrb[148].mxu1 %v36121_v51 }
 0x70c   :  { %28880 = vmatprep.mubr.bf16.mxu1 %v36143_v57 }
 0x713   :  { %28881 = vmatmul.mubr.bf16.gmra.mrb[248].mxu1 %v41626_v55 }
 0x714   :  { %28884 = vmatprep.mubr.bf16.mxu1 %v41626_v55 }
 0x71b   :  { %28885 = vmatmul.mubr.bf16.gmra.mrb[156].mxu1 %v35286_v53 }
 0x71c   :  { %28888 = vmatprep.mubr.bf16.mxu1 %v35288_v59 }
 0x723   :  { %28889 = vmatmul.mubr.bf16.gmra.mrb[160].mxu1 %v35298_v11 }
 0x724   :  { %28892 = vmatprep.mubr.bf16.mxu1 %v35320_v2 }
 0x726   :  { %v28770_v7 = vpop.f32.mrb[232].mxu1 }
 0x727   :  { %v5275_v45 = vpop.f32.mrb[233].mxu1 }
 0x728   :  { %v28771_v19 = vpop.f32.mrb[234].mxu1 }
 0x729   :  { %v5278_v14 = vpop.f32.mrb[235].mxu1  ;;  %v41635_v19 = vld [vmem:[#allocation16_spill] sm:$0xff] }
 0x72a   :  { %v41636_v14 = vld [vmem:[#allocation17_spill] sm:$0xff] }
 0x72b   :  { %28893 = vmatmul.mubr.bf16.gmra.mrb[164].mxu1 %v35324_v37 }
 0x72c   :  { %28896 = vmatprep.mubr.bf16.mxu1 %v35344_v44 }
 0x733   :  { %28897 = vmatmul.mubr.bf16.gmra.mrb[168].mxu1 %v35348_v46 }
 0x734   :  { %28900 = vmatprep.mubr.bf16.mxu1 %v35366_v39 }
 0x73b   :  { %28901 = vmatmul.mubr.bf16.gmra.mrb[252].mxu1 %v41626_v55 }
 0x73c   :  { %28904 = vmatprep.mubr.bf16.mxu1 %v41626_v55 }
 0x743   :  { %28905 = vmatmul.mubr.bf16.gmra.mrb[176].mxu1 %v35398_v60 }
 0x744   :  { %28908 = vmatprep.mubr.bf16.mxu1 %v35421_v61 }
 0x74b   :  { %28909 = vmatmul.mubr.bf16.gmra.mrb[180].mxu1 %v35425_v18 }
 0x74c   :  { %28912 = vmatprep.mubr.bf16.mxu1 %v35447_v35 }
 0x753   :  { %28913 = vmatmul.mubr.bf16.gmra.mrb[184].mxu1 %v35451_v1 }
 0x754   :  { %28916 = vmatprep.mubr.bf16.mxu1 %v35465_v56 }
 0x75b   :  { %28917 = vmatmul.mubr.bf16.gmra.mrb[188].mxu1 %v35472_v9 }
 0x75c   :  { %28920 = vmatprep.mubr.bf16.mxu1 %v35494_v15 }
 0x763   :  { %28921 = vmatmul.mubr.bf16.gmra.mrb[92].mxu1 %v41626_v55 }
 0x764   :  { %28924 = vmatprep.mubr.bf16.mxu1 %v41626_v55 }
 0x76b   :  { %28925 = vmatmul.mubr.bf16.gmra.mrb[196].mxu1 %v35545_v12 }
 0x76c   :  { %28928 = vmatprep.mubr.bf16.mxu1 %v35591_v54 }
 0x76e   :  { %v28822_v22 = vpop.f32.mrb[236].mxu1 }
 0x76f   :  { %v6062_v26 = vpop.f32.mrb[237].mxu1 }
 0x770   :  { %v28823_v7 = vpop.f32.mrb[238].mxu1 }
 0x771   :  { %v6065_v45 = vpop.f32.mrb[239].mxu1 }
 0x773   :  { %28929 = vmatmul.mubr.bf16.gmra.mrb[200].mxu1 %v35597_v32 }
 0x774   :  { %28932 = vmatprep.mubr.bf16.mxu1 %v35639_v43  ;;  %v41637_v43 = vld [vmem:[#allocation18_spill] sm:$0xff] }
 0x77b   :  { %28933 = vmatmul.mubr.bf16.gmra.mrb[204].mxu1 %v41628_v16  ;;  %v41638_v16 = vld [vmem:[#allocation19_spill] sm:$0xff] }
 0x77c   :  { %28936 = vmatprep.mubr.bf16.mxu1 %v41629_v20  ;;  %v41639_v20 = vld [vmem:[#allocation20_spill] sm:$0xff] }
 0x783   :  { %28937 = vmatmul.mubr.bf16.gmra.mrb[208].mxu1 %v41630_v30  ;;  %v41640_v30 = vld [vmem:[#allocation21_spill] sm:$0xff] }
 0x784   :  { %28940 = vmatprep.mubr.bf16.mxu1 %v41634_v25  ;;  %v41641_v25 = vld [vmem:[#allocation22_spill] sm:$0xff] }
 0x78b   :  { %28941 = vmatmul.mubr.bf16.gmra.mrb[112].mxu1 %v41626_v55 }
 0x78c   :  { %28944 = vmatprep.mubr.bf16.mxu1 %v41626_v55 }
 0x793   :  { %28945 = vmatmul.mubr.bf16.gmra.mrb[216].mxu1 %v41635_v19 }
 0x794   :  { %28948 = vmatprep.mubr.bf16.mxu1 %v41636_v14  ;;  %v34014_v14 = vld [vmem:[%s41060_s3 + $0x148] sm:$0xff]  }
 0x796   :  { %v28842_v22 = vpop.f32.mrb[240].mxu1 }
 0x797   :  { %v6142_v26 = vpop.f32.mrb[241].mxu1  ;;  %v34015_v22 = vld [vmem:[%s41060_s3 + $0x150] sm:$0xff]  }
 0x798   :  { %v28843_v7 = vpop.f32.mrb[242].mxu1 }
 0x799   :  { %v6145_v45 = vpop.f32.mrb[243].mxu1 }
 0x79b   :  { %28949 = vmatmul.mubr.bf16.gmra.mrb[220].mxu1 %v41637_v43 }
 0x79c   :  { %28952 = vmatprep.mubr.bf16.mxu1 %v41638_v16 }
 0x7a3   :  { %28953 = vmatmul.mubr.bf16.gmra.mrb[224].mxu1 %v41639_v20 }
 0x7a4   :  { %28956 = vmatprep.mubr.bf16.mxu1 %v41640_v30 }
 0x7ab   :  { %28957 = vmatmul.mubr.bf16.gmra.mrb[228].mxu1 %v41641_v25 }
 0x7ac   :  { %28976 = vmatprep.mubr.bf16.mxu1 %v41631_v21  ;;  %v34016_v21 = vld [vmem:[%s41060_s3 + $0x158] sm:$0xff]  }
 0x7b3   :  { %28977 = vmatmul.mubr.bf16.vlgmr.msra.gmra.mrb[76].mxu1 %v41632_v48 }
 0x7b4   :  { %29133 = vmatpush3.bf16.msra.mxu1 %v34013_v41  ;;  %28980 = vmatprep.mubr.bf16.mxu1 %v41633_v4 }
 0x7b5   :  { %29134 = vmatprep.subr.bf16.mxu1 %v34014_v14 }
 0x7b8   :  { %29135 = vmatpush3.bf16.msra.mxu1 %v34014_v14  ;;  %v34017_v14 = vld [vmem:[%s41060_s3 + $0x160] sm:$0xff]  }
 0x7b9   :  { %29136 = vmatprep.subr.bf16.mxu1 %v34015_v22 }
 0x7bb   :  { %28981 = vmatmul.mubr.bf16.gmra.mrb[80].mxu1 %v35603_v34 }
 0x7bc   :  { %28984 = vmatprep.mubr.bf16.mxu1 %v35609_v0  ;;  %29137 = vmatpush3.bf16.msra.mxu1 %v34015_v22 }
 0x7bd   :  { %29138 = vmatprep.subr.bf16.mxu1 %v34016_v21 }
 0x7be   :  { %v28862_v41 = vpop.f32.mrb[244].mxu1 }
 0x7bf   :  { %v6222_v26 = vpop.f32.mrb[245].mxu1 }
 0x7c0   :  { %v28863_v7 = vpop.f32.mrb[246].mxu1  ;;  %29139 = vmatpush3.bf16.msra.mxu1 %v34016_v21 }
 0x7c1   :  { %v6225_v45 = vpop.f32.mrb[247].mxu1  ;;  %29140 = vmatprep.subr.bf16.mxu1 %v34017_v14  ;;  %v34018_v7 = vld [vmem:[%s41060_s3 + $0x168] sm:$0xff]  }
 0x7c3   :  { %28985 = vmatmul.mubr.bf16.gmra.mrb[84].mxu1 %v35652_v63 }
 0x7c4   :  { %28988 = vmatprep.mubr.bf16.mxu1 %v35654_v3  ;;  %29141 = vmatpush3.bf16.msra.mxu1 %v34017_v14 }
 0x7c5   :  { %29142 = vmatprep.subr.bf16.mxu1 %v34018_v7 }
 0x7c8   :  { %29143 = vmatpush3.bf16.msra.mxu1 %v34018_v7 }
 0x7cb   :  { %28989 = vmatmul.mubr.bf16.gmra.mrb[88].mxu1 %v35681_v31 }
 0x7cc   :  { %28992 = vmatprep.mubr.bf16.mxu1 %v41626_v55 }
 0x7d3   :  { %28993 = vmatmul.mubr.bf16.gmra.mrb[132].mxu1 %v41626_v55 }
 0x7d4   :  { %28996 = vmatprep.mubr.bf16.mxu1 %v35719_v17 }
 0x7db   :  { %28997 = vmatmul.mubr.bf16.gmra.mrb[96].mxu1 %v35763_v24 }
 0x7dc   :  { %29000 = vmatprep.mubr.bf16.mxu1 %v35769_v50 }
 0x7e3   :  { %29001 = vmatmul.mubr.bf16.gmra.mrb[100].mxu1 %v35815_v40 }
 0x7e4   :  { %29004 = vmatprep.mubr.bf16.mxu1 %v35821_v42 }
 0x7e6   :  { %v28882_v22 = vpop.f32.mrb[248].mxu1 }
 0x7e7   :  { %v6302_v21 = vpop.f32.mrb[249].mxu1 }
 0x7e8   :  { %v28883_v41 = vpop.f32.mrb[250].mxu1 }
 0x7e9   :  { %v6305_v26 = vpop.f32.mrb[251].mxu1  ;;  %v34019_v41 = vld [vmem:[%s41060_s3 + $0x170] sm:$0xff]  }
 0x7ea   :  { %29144 = vmatprep.subr.bf16.mxu1 %v34019_v41 }
 0x7eb   :  { %29005 = vmatmul.mubr.bf16.gmra.mrb[104].mxu1 %v35864_v27 }
 0x7ec   :  { %29008 = vmatprep.mubr.bf16.mxu1 %v35866_v52  ;;  %29145 = vmatpush3.bf16.msra.mxu1 %v34019_v41 }
 0x7f3   :  { %29009 = vmatmul.mubr.bf16.gmra.mrb[108].mxu1 %v35890_v8 }
 0x7f4   :  { %29012 = vmatprep.mubr.bf16.mxu1 %v41626_v55 }
 0x7fb   :  { %29013 = vmatmul.mubr.bf16.gmra.mrb[152].mxu1 %v41626_v55 }
 0x7fc   :  { %29016 = vmatprep.mubr.bf16.mxu1 %v35908_v29 }
 0x803   :  { %29017 = vmatmul.mubr.bf16.gmra.mrb[116].mxu1 %v35934_v5 }
 0x804   :  { %29020 = vmatprep.mubr.bf16.mxu1 %v35939_v62 }
 0x80b   :  { %29021 = vmatmul.mubr.bf16.gmra.mrb[120].mxu1 %v35969_v58 }
 0x80c   :  { %29024 = vmatprep.mubr.bf16.mxu1 %v35974_v38 }
 0x80e   :  { %v28902_v45 = vpop.f32.mrb[252].mxu1 }
 0x80f   :  { %v6382_v14 = vpop.f32.mrb[253].mxu1 }
 0x810   :  { %v28903_v22 = vpop.f32.mrb[254].mxu1 }
 0x811   :  { %v6385_v21 = vpop.f32.mrb[255].mxu1  ;;  %v34020_v22 = vld [vmem:[%s41060_s3 + $0x178] sm:$0xff]  }
 0x812   :  { %29146 = vmatprep.subr.bf16.mxu1 %v34020_v22 }
 0x813   :  { %29025 = vmatmul.mubr.bf16.gmra.mrb[124].mxu1 %v36000_v23 }
 0x814   :  { %29028 = vmatprep.mubr.bf16.mxu1 %v36002_v13  ;;  %29147 = vmatpush3.bf16.msra.mxu1 %v34020_v22 }
 0x81b   :  { %29029 = vmatmul.mubr.bf16.gmra.mrb[128].mxu1 %v36018_v33 }
 0x81c   :  { %29032 = vmatprep.mubr.bf16.mxu1 %v41626_v55 }
 0x823   :  { %29033 = vmatmul.mubr.bf16.gmra.mrb[172].mxu1 %v41626_v55 }
 0x824   :  { %29036 = vmatprep.mubr.bf16.mxu1 %v36037_v28 }
 0x82b   :  { %29037 = vmatmul.mubr.bf16.gmra.mrb[136].mxu1 %v36063_v49 }
 0x82c   :  { %29040 = vmatprep.mubr.bf16.mxu1 %v36065_v10 }
 0x833   :  { %29041 = vmatmul.mubr.bf16.gmra.mrb[140].mxu1 %v36091_v6 }
 0x834   :  { %29044 = vmatprep.mubr.bf16.mxu1 %v36093_v47 }
 0x836   :  { %v28922_v26 = vpop.f32.mrb[92].mxu1 }
 0x837   :  { %v6462_v7 = vpop.f32.mrb[93].mxu1 }
 0x838   :  { %v28923_v45 = vpop.f32.mrb[94].mxu1 }
 0x839   :  { %v6465_v14 = vpop.f32.mrb[95].mxu1  ;;  %v34021_v45 = vld [vmem:[%s41060_s3 + $0x180] sm:$0xff]  }
 0x83a   :  { %29304 = vmatprep.subr.bf16.mxu1 %v34021_v45 }
 0x83b   :  { %29045 = vmatmul.mubr.bf16.gmra.mrb[144].mxu1 %v36119_v36 }
 0x83c   :  { %29048 = vmatprep.mubr.bf16.mxu1 %v36121_v51 }
 0x843   :  { %29049 = vmatmul.mubr.bf16.gmra.mrb[148].mxu1 %v36143_v57 }
 0x844   :  { %29052 = vmatprep.mubr.bf16.mxu1 %v41626_v55 }
 0x84b   :  { %29053 = vmatmul.mubr.bf16.gmra.mrb[192].mxu1 %v41626_v55 }
 0x84c   :  { %29056 = vmatprep.mubr.bf16.mxu1 %v35286_v53 }
 0x853   :  { %29057 = vmatmul.mubr.bf16.gmra.mrb[156].mxu1 %v35288_v59 }
 0x854   :  { %29060 = vmatprep.mubr.bf16.mxu1 %v35298_v11 }
 0x85b   :  { %29061 = vmatmul.mubr.bf16.gmra.mrb[160].mxu1 %v35320_v2 }
 0x85c   :  { %29064 = vmatprep.mubr.bf16.mxu1 %v35324_v37 }
 0x85e   :  { %v28942_v21 = vpop.f32.mrb[112].mxu1 }
 0x85f   :  { %v6542_v41 = vpop.f32.mrb[113].mxu1 }
 0x860   :  { %v28943_v26 = vpop.f32.mrb[114].mxu1 }
 0x861   :  { %v6545_v7 = vpop.f32.mrb[115].mxu1  ;;  %v41642_v26 = vld [vmem:[#allocation11_spill] sm:$0xff] }
 0x862   :  { %v41643_v7 = vld [vmem:[#allocation12_spill] sm:$0xff] }
 0x863   :  { %29065 = vmatmul.mubr.bf16.gmra.mrb[164].mxu1 %v35344_v44 }
 0x864   :  { %29068 = vmatprep.mubr.bf16.mxu1 %v35348_v46 }
 0x86b   :  { %29069 = vmatmul.mubr.bf16.gmra.mrb[168].mxu1 %v35366_v39 }
 0x86c   :  { %29072 = vmatprep.mubr.bf16.mxu1 %v41626_v55 }
 0x873   :  { %29073 = vmatmul.mubr.bf16.gmra.mrb[212].mxu1 %v41626_v55 }
 0x874   :  { %29076 = vmatprep.mubr.bf16.mxu1 %v35398_v60 }
 0x87b   :  { %29077 = vmatmul.mubr.bf16.gmra.mrb[176].mxu1 %v35421_v61 }
 0x87c   :  { %29080 = vmatprep.mubr.bf16.mxu1 %v35425_v18 }
 0x883   :  { %29081 = vmatmul.mubr.bf16.gmra.mrb[180].mxu1 %v35447_v35 }
 0x884   :  { %29084 = vmatprep.mubr.bf16.mxu1 %v35451_v1 }
 0x88b   :  { %29085 = vmatmul.mubr.bf16.gmra.mrb[184].mxu1 %v35465_v56  ;;  %v41646_v56 = vld [vmem:[#allocation15_spill] sm:$0xff] }
 0x88c   :  { %29088 = vmatprep.mubr.bf16.mxu1 %v35472_v9  ;;  %v41644_v9 = vld [vmem:[#allocation13_spill] sm:$0xff] }
 0x893   :  { %29089 = vmatmul.mubr.bf16.gmra.mrb[188].mxu1 %v35494_v15  ;;  %v41645_v15 = vld [vmem:[#allocation14_spill] sm:$0xff] }
 0x894   :  { %29092 = vmatprep.mubr.bf16.mxu1 %v41626_v55 }
 0x89b   :  { %29093 = vmatmul.mubr.bf16.gmra.mrb[232].mxu1 %v41626_v55 }
 0x89c   :  { %29096 = vmatprep.mubr.bf16.mxu1 %v35545_v12 }
 0x8a3   :  { %29097 = vmatmul.mubr.bf16.gmra.mrb[196].mxu1 %v35591_v54 }
 0x8a4   :  { %29100 = vmatprep.mubr.bf16.mxu1 %v35597_v32 }
 0x8a6   :  { %v28994_v14 = vpop.f32.mrb[132].mxu1 }
 0x8a7   :  { %v7329_v22 = vpop.f32.mrb[133].mxu1  ;;  %v41647_v14 = vld [vmem:[#allocation17_spill] sm:$0xff] }
 0x8a8   :  { %v28995_v21 = vpop.f32.mrb[134].mxu1 }
 0x8a9   :  { %v7332_v41 = vpop.f32.mrb[135].mxu1 }
 0x8ab   :  { %29101 = vmatmul.mubr.bf16.gmra.mrb[200].mxu1 %v41642_v26 }
 0x8ac   :  { %29104 = vmatprep.mubr.bf16.mxu1 %v41643_v7 }
 0x8b3   :  { %29105 = vmatmul.mubr.bf16.gmra.mrb[204].mxu1 %v41644_v9 }
 0x8b4   :  { %29108 = vmatprep.mubr.bf16.mxu1 %v41645_v15 }
 0x8bb   :  { %29109 = vmatmul.mubr.bf16.gmra.mrb[208].mxu1 %v41646_v56  ;;  %v41648_v56 = vld [vmem:[#allocation23_spill] sm:$0xff] }
 0x8bc   :  { %29112 = vmatprep.mubr.bf16.mxu1 %v41626_v55 }
 0x8c3   :  { %29113 = vmatmul.mubr.bf16.gmra.mrb[236].mxu1 %v41626_v55 }
 0x8c4   :  { %29116 = vmatprep.mubr.bf16.mxu1 %v41635_v19 }
 0x8cb   :  { %29117 = vmatmul.mubr.bf16.gmra.mrb[216].mxu1 %v41647_v14 }
 0x8cc   :  { %29120 = vmatprep.mubr.bf16.mxu1 %v41637_v43  ;;  %v34022_v43 = vld [vmem:[%s41060_s3 + $0x188] sm:$0xff]  }
 0x8ce   :  { %v29014_v22 = vpop.f32.mrb[152].mxu1 }
 0x8cf   :  { %v7409_v21 = vpop.f32.mrb[153].mxu1 }
 0x8d0   :  { %v29015_v41 = vpop.f32.mrb[154].mxu1  ;;  %v34026_v21 = vld [vmem:[%s41060_s3 + $0x1a8] sm:$0xff]  }
 0x8d1   :  { %v7412_v7 = vpop.f32.mrb[155].mxu1 }
 0x8d2   :  { %v34023_v7 = vld [vmem:[%s41060_s3 + $0x190] sm:$0xff]  }
 0x8d3   :  { %29121 = vmatmul.mubr.bf16.gmra.mrb[220].mxu1 %v41638_v16 }
 0x8d4   :  { %29124 = vmatprep.mubr.bf16.mxu1 %v41639_v20 }
 0x8db   :  { %29125 = vmatmul.mubr.bf16.gmra.mrb[224].mxu1 %v41640_v30 }
 0x8dc   :  { %29128 = vmatprep.mubr.bf16.mxu1 %v41641_v25 }
 0x8e3   :  { %29129 = vmatmul.mubr.bf16.gmra.mrb[228].mxu1 %v41648_v56 }
 0x8e4   :  { %29148 = vmatprep.mubr.bf16.mxu1 %v41632_v48  ;;  %v34024_v48 = vld [vmem:[%s41060_s3 + $0x198] sm:$0xff]  }
 0x8eb   :  { %29149 = vmatmul.mubr.bf16.vlgmr.msra.gmra.mrb[76].mxu1 %v41633_v4 }
 0x8ec   :  { %29305 = vmatpush3.bf16.msra.mxu1 %v34021_v45  ;;  %29152 = vmatprep.mubr.bf16.mxu1 %v35603_v34 }
 0x8ed   :  { %29306 = vmatprep.subr.bf16.mxu1 %v34022_v43 }
 0x8f0   :  { %29307 = vmatpush3.bf16.msra.mxu1 %v34022_v43  ;;  %v34025_v43 = vld [vmem:[%s41060_s3 + $0x1a0] sm:$0xff]  }
 0x8f1   :  { %29308 = vmatprep.subr.bf16.mxu1 %v34023_v7 }
 0x8f3   :  { %29153 = vmatmul.mubr.bf16.gmra.mrb[80].mxu1 %v35609_v0 }
 0x8f4   :  { %29156 = vmatprep.mubr.bf16.mxu1 %v35652_v63  ;;  %29309 = vmatpush3.bf16.msra.mxu1 %v34023_v7 }
 0x8f5   :  { %29310 = vmatprep.subr.bf16.mxu1 %v34024_v48 }
 0x8f6   :  { %v29034_v4 = vpop.f32.mrb[172].mxu1 }
 0x8f7   :  { %v7489_v45 = vpop.f32.mrb[173].mxu1 }
 0x8f8   :  { %v29035_v34 = vpop.f32.mrb[174].mxu1  ;;  %29311 = vmatpush3.bf16.msra.mxu1 %v34024_v48  ;;  %v34027_v45 = vld [vmem:[%s41060_s3 + $0x1b0] sm:$0xff]  }
 0x8f9   :  { %v7492_v22 = vpop.f32.mrb[175].mxu1  ;;  %29312 = vmatprep.subr.bf16.mxu1 %v34025_v43 }
 0x8fb   :  { %29157 = vmatmul.mubr.bf16.gmra.mrb[84].mxu1 %v35654_v3 }
 0x8fc   :  { %29160 = vmatprep.mubr.bf16.mxu1 %v35681_v31  ;;  %29313 = vmatpush3.bf16.msra.mxu1 %v34025_v43 }
 0x8fd   :  { %29314 = vmatprep.subr.bf16.mxu1 %v34026_v21 }
 0x900   :  { %29315 = vmatpush3.bf16.msra.mxu1 %v34026_v21 }
 0x901   :  { %29316 = vmatprep.subr.bf16.mxu1 %v34027_v45 }
 0x903   :  { %29161 = vmatmul.mubr.bf16.gmra.mrb[88].mxu1 %v41626_v55 }
 0x904   :  { %29164 = vmatprep.mubr.bf16.mxu1 %v41626_v55  ;;  %29317 = vmatpush3.bf16.msra.mxu1 %v34027_v45  ;;  %v41651_v45 = vld [vmem:[#allocation7_spill] sm:$0xff] }
 0x90b   :  { %29165 = vmatmul.mubr.bf16.gmra.mrb[240].mxu1 %v35719_v17 }
 0x90c   :  { %29168 = vmatprep.mubr.bf16.mxu1 %v35763_v24 }
 0x913   :  { %29169 = vmatmul.mubr.bf16.gmra.mrb[96].mxu1 %v35769_v50 }
 0x914   :  { %29172 = vmatprep.mubr.bf16.mxu1 %v35815_v40 }
 0x91b   :  { %29173 = vmatmul.mubr.bf16.gmra.mrb[100].mxu1 %v35821_v42 }
 0x91c   :  { %29176 = vmatprep.mubr.bf16.mxu1 %v35864_v27 }
 0x91e   :  { %v29054_v0 = vpop.f32.mrb[192].mxu1 }
 0x91f   :  { %v7569_v63 = vpop.f32.mrb[193].mxu1 }
 0x920   :  { %v29055_v3 = vpop.f32.mrb[194].mxu1  ;;  %v34028_v63 = vld [vmem:[%s41060_s3 + $0x1b8] sm:$0xff]  }
 0x921   :  { %v7572_v31 = vpop.f32.mrb[195].mxu1  ;;  %29318 = vmatprep.subr.bf16.mxu1 %v34028_v63 }
 0x922   :  { %29319 = vmatpush3.bf16.msra.mxu1 %v34028_v63  ;;  %v41652_v63 = vld [vmem:[#allocation12_spill] sm:$0xff] }
 0x923   :  { %29177 = vmatmul.mubr.bf16.gmra.mrb[104].mxu1 %v35866_v52 }
 0x924   :  { %29180 = vmatprep.mubr.bf16.mxu1 %v35890_v8 }
 0x92b   :  { %29181 = vmatmul.mubr.bf16.gmra.mrb[108].mxu1 %v41626_v55 }
 0x92c   :  { %29184 = vmatprep.mubr.bf16.mxu1 %v41626_v55 }
 0x933   :  { %29185 = vmatmul.mubr.bf16.gmra.mrb[244].mxu1 %v35908_v29 }
 0x934   :  { %29188 = vmatprep.mubr.bf16.mxu1 %v35934_v5 }
 0x93b   :  { %29189 = vmatmul.mubr.bf16.gmra.mrb[116].mxu1 %v35939_v62 }
 0x93c   :  { %29192 = vmatprep.mubr.bf16.mxu1 %v35969_v58 }
 0x943   :  { %29193 = vmatmul.mubr.bf16.gmra.mrb[120].mxu1 %v35974_v38 }
 0x944   :  { %29196 = vmatprep.mubr.bf16.mxu1 %v36000_v23 }
 0x946   :  { %v29074_v41 = vpop.f32.mrb[212].mxu1 }
 0x947   :  { %v7649_v7 = vpop.f32.mrb[213].mxu1 }
 0x948   :  { %v29075_v48 = vpop.f32.mrb[214].mxu1  ;;  %v34029_v7 = vld [vmem:[%s41060_s3 + $0x1c0] sm:$0xff]  }
 0x949   :  { %v7652_v4 = vpop.f32.mrb[215].mxu1  ;;  %29476 = vmatprep.subr.bf16.mxu1 %v34029_v7  ;;  %v41649_v48 = vld [vmem:[#allocation5_spill] sm:$0xff] }
 0x94a   :  { %v41650_v4 = vld [vmem:[#allocation6_spill] sm:$0xff] }
 0x94b   :  { %29197 = vmatmul.mubr.bf16.gmra.mrb[124].mxu1 %v36002_v13 }
 0x94c   :  { %29200 = vmatprep.mubr.bf16.mxu1 %v36018_v33 }
 0x953   :  { %29201 = vmatmul.mubr.bf16.gmra.mrb[128].mxu1 %v41626_v55 }
 0x954   :  { %29204 = vmatprep.mubr.bf16.mxu1 %v41626_v55 }
 0x95b   :  { %29205 = vmatmul.mubr.bf16.gmra.mrb[248].mxu1 %v36037_v28 }
 0x95c   :  { %29208 = vmatprep.mubr.bf16.mxu1 %v36063_v49 }
 0x963   :  { %29209 = vmatmul.mubr.bf16.gmra.mrb[136].mxu1 %v36065_v10 }
 0x964   :  { %29212 = vmatprep.mubr.bf16.mxu1 %v36091_v6 }
 0x96b   :  { %29213 = vmatmul.mubr.bf16.gmra.mrb[140].mxu1 %v36093_v47 }
 0x96c   :  { %29216 = vmatprep.mubr.bf16.mxu1 %v36119_v36 }
 0x96e   :  { %v29094_v34 = vpop.f32.mrb[232].mxu1 }
 0x96f   :  { %v7729_v22 = vpop.f32.mrb[233].mxu1 }
 0x970   :  { %v29095_v43 = vpop.f32.mrb[234].mxu1 }
 0x971   :  { %v7732_v0 = vpop.f32.mrb[235].mxu1 }
 0x973   :  { %29217 = vmatmul.mubr.bf16.gmra.mrb[144].mxu1 %v36121_v51 }
 0x974   :  { %29220 = vmatprep.mubr.bf16.mxu1 %v36143_v57 }
 0x97b   :  { %29221 = vmatmul.mubr.bf16.gmra.mrb[148].mxu1 %v41626_v55 }
 0x97c   :  { %29224 = vmatprep.mubr.bf16.mxu1 %v41626_v55 }
 0x983   :  { %29225 = vmatmul.mubr.bf16.gmra.mrb[252].mxu1 %v35286_v53 }
 0x984   :  { %29228 = vmatprep.mubr.bf16.mxu1 %v35288_v59 }
 0x98b   :  { %29229 = vmatmul.mubr.bf16.gmra.mrb[156].mxu1 %v35298_v11 }
 0x98c   :  { %29232 = vmatprep.mubr.bf16.mxu1 %v35320_v2 }
 0x993   :  { %29233 = vmatmul.mubr.bf16.gmra.mrb[160].mxu1 %v35324_v37 }
 0x994   :  { %29236 = vmatprep.mubr.bf16.mxu1 %v35344_v44 }
 0x996   :  { %v29114_v3 = vpop.f32.mrb[236].mxu1 }
 0x997   :  { %v7809_v31 = vpop.f32.mrb[237].mxu1  ;;  %v41653_v3 = vld [vmem:[#allocation15_spill] sm:$0xff] }
 0x998   :  { %v29115_v21 = vpop.f32.mrb[238].mxu1  ;;  %v41654_v31 = vld [vmem:[#allocation18_spill] sm:$0xff] }
 0x999   :  { %v7812_v41 = vpop.f32.mrb[239].mxu1 }
 0x99b   :  { %29237 = vmatmul.mubr.bf16.gmra.mrb[164].mxu1 %v35348_v46 }
 0x99c   :  { %29240 = vmatprep.mubr.bf16.mxu1 %v35366_v39 }
 0x9a3   :  { %29241 = vmatmul.mubr.bf16.gmra.mrb[168].mxu1 %v41626_v55 }
 0x9a4   :  { %29244 = vmatprep.mubr.bf16.mxu1 %v41626_v55 }
 0x9ab   :  { %29245 = vmatmul.mubr.bf16.gmra.mrb[92].mxu1 %v35398_v60 }
 0x9ac   :  { %29248 = vmatprep.mubr.bf16.mxu1 %v35421_v61 }
 0x9b3   :  { %29249 = vmatmul.mubr.bf16.gmra.mrb[176].mxu1 %v35425_v18 }
 0x9b4   :  { %29252 = vmatprep.mubr.bf16.mxu1 %v35447_v35 }
 0x9bb   :  { %29253 = vmatmul.mubr.bf16.gmra.mrb[180].mxu1 %v35451_v1 }
 0x9bc   :  { %29256 = vmatprep.mubr.bf16.mxu1 %v41649_v48 }
 0x9c3   :  { %29257 = vmatmul.mubr.bf16.gmra.mrb[184].mxu1 %v41650_v4 }
 0x9c4   :  { %29260 = vmatprep.mubr.bf16.mxu1 %v41651_v45 }
 0x9cb   :  { %29261 = vmatmul.mubr.bf16.gmra.mrb[188].mxu1 %v41626_v55 }
 0x9cc   :  { %29264 = vmatprep.mubr.bf16.mxu1 %v41626_v55 }
 0x9d3   :  { %29265 = vmatmul.mubr.bf16.gmra.mrb[112].mxu1 %v35545_v12 }
 0x9d4   :  { %29268 = vmatprep.mubr.bf16.mxu1 %v35591_v54 }
 0x9db   :  { %29269 = vmatmul.mubr.bf16.gmra.mrb[196].mxu1 %v35597_v32 }
 0x9dc   :  { %29272 = vmatprep.mubr.bf16.mxu1 %v41642_v26 }
 0x9de   :  { %v29166_v34 = vpop.f32.mrb[240].mxu1 }
 0x9df   :  { %v8596_v22 = vpop.f32.mrb[241].mxu1 }
 0x9e0   :  { %v29167_v43 = vpop.f32.mrb[242].mxu1 }
 0x9e1   :  { %v8599_v0 = vpop.f32.mrb[243].mxu1  ;;  %v34030_v43 = vld [vmem:[%s41060_s3 + $0x1c8] sm:$0xff]  }
 0x9e2   :  { %v34031_v0 = vld [vmem:[%s41060_s3 + $0x1d0] sm:$0xff]  }
 0x9e3   :  { %29273 = vmatmul.mubr.bf16.gmra.mrb[200].mxu1 %v41652_v63 }
 0x9e4   :  { %29276 = vmatprep.mubr.bf16.mxu1 %v41644_v9 }
 0x9eb   :  { %29277 = vmatmul.mubr.bf16.gmra.mrb[204].mxu1 %v41645_v15 }
 0x9ec   :  { %29280 = vmatprep.mubr.bf16.mxu1 %v41653_v3 }
 0x9f3   :  { %29281 = vmatmul.mubr.bf16.gmra.mrb[208].mxu1 %v41626_v55 }
 0x9f4   :  { %29284 = vmatprep.mubr.bf16.mxu1 %v41626_v55 }
 0x9fb   :  { %29285 = vmatmul.mubr.bf16.gmra.mrb[132].mxu1 %v41635_v19 }
 0x9fc   :  { %29288 = vmatprep.mubr.bf16.mxu1 %v41647_v14 }
 0xa03   :  { %29289 = vmatmul.mubr.bf16.gmra.mrb[216].mxu1 %v41654_v31 }
 0xa04   :  { %29292 = vmatprep.mubr.bf16.mxu1 %v41638_v16 }
 0xa06   :  { %v29186_v21 = vpop.f32.mrb[244].mxu1 }
 0xa07   :  { %v8676_v41 = vpop.f32.mrb[245].mxu1  ;;  %v34032_v21 = vld [vmem:[%s41060_s3 + $0x1d8] sm:$0xff]  }
 0xa08   :  { %v29187_v34 = vpop.f32.mrb[246].mxu1 }
 0xa09   :  { %v8679_v22 = vpop.f32.mrb[247].mxu1 }
 0xa0b   :  { %29293 = vmatmul.mubr.bf16.gmra.mrb[220].mxu1 %v41639_v20 }
 0xa0c   :  { %29296 = vmatprep.mubr.bf16.mxu1 %v41640_v30 }
 0xa13   :  { %29297 = vmatmul.mubr.bf16.gmra.mrb[224].mxu1 %v41641_v25 }
 0xa14   :  { %29300 = vmatprep.mubr.bf16.mxu1 %v41648_v56 }
 0xa1b   :  { %29301 = vmatmul.mubr.bf16.gmra.mrb[228].mxu1 %v41626_v55 }
 0xa1c   :  { %29320 = vmatprep.mubr.bf16.mxu1 %v41626_v55 }
 0xa23   :  { %29321 = vmatmul.mubr.bf16.vlgmr.msra.gmra.mrb[76].mxu1 %v35719_v17 }
 0xa24   :  { %29477 = vmatpush3.bf16.msra.mxu1 %v34029_v7  ;;  %29324 = vmatprep.mubr.bf16.mxu1 %v35763_v24 }
 0xa25   :  { %29478 = vmatprep.subr.bf16.mxu1 %v34030_v43 }
 0xa28   :  { %29479 = vmatpush3.bf16.msra.mxu1 %v34030_v43  ;;  %v34033_v43 = vld [vmem:[%s41060_s3 + $0x1e0] sm:$0xff]  }
 0xa29   :  { %29480 = vmatprep.subr.bf16.mxu1 %v34031_v0 }
 0xa2b   :  { %29325 = vmatmul.mubr.bf16.gmra.mrb[80].mxu1 %v35769_v50 }
 0xa2c   :  { %29328 = vmatprep.mubr.bf16.mxu1 %v35815_v40  ;;  %29481 = vmatpush3.bf16.msra.mxu1 %v34031_v0 }
 0xa2d   :  { %29482 = vmatprep.subr.bf16.mxu1 %v34032_v21 }
 0xa2e   :  { %v29206_v7 = vpop.f32.mrb[248].mxu1 }
 0xa2f   :  { %v8756_v41 = vpop.f32.mrb[249].mxu1 }
 0xa30   :  { %v29207_v34 = vpop.f32.mrb[250].mxu1  ;;  %29483 = vmatpush3.bf16.msra.mxu1 %v34032_v21 }
 0xa31   :  { %v8759_v22 = vpop.f32.mrb[251].mxu1  ;;  %29484 = vmatprep.subr.bf16.mxu1 %v34033_v43  ;;  %v34034_v34 = vld [vmem:[%s41060_s3 + $0x1e8] sm:$0xff]  }
 0xa33   :  { %29329 = vmatmul.mubr.bf16.gmra.mrb[84].mxu1 %v35821_v42 }
 0xa34   :  { %29332 = vmatprep.mubr.bf16.mxu1 %v35864_v27  ;;  %29485 = vmatpush3.bf16.msra.mxu1 %v34033_v43 }
 0xa35   :  { %29486 = vmatprep.subr.bf16.mxu1 %v34034_v34 }
 0xa38   :  { %29487 = vmatpush3.bf16.msra.mxu1 %v34034_v34 }
 0xa3b   :  { %29333 = vmatmul.mubr.bf16.gmra.mrb[88].mxu1 %v35866_v52 }
 0xa3c   :  { %29336 = vmatprep.mubr.bf16.mxu1 %v35890_v8 }
 0xa43   :  { %29337 = vmatmul.mubr.bf16.gmra.mrb[152].mxu1 %v41626_v55 }
 0xa44   :  { %29340 = vmatprep.mubr.bf16.mxu1 %v41626_v55 }
 0xa4b   :  { %29341 = vmatmul.mubr.bf16.gmra.mrb[96].mxu1 %v35908_v29 }
 0xa4c   :  { %29344 = vmatprep.mubr.bf16.mxu1 %v35934_v5 }
 0xa53   :  { %29345 = vmatmul.mubr.bf16.gmra.mrb[100].mxu1 %v35939_v62 }
 0xa54   :  { %29348 = vmatprep.mubr.bf16.mxu1 %v35969_v58 }
 0xa56   :  { %v29226_v0 = vpop.f32.mrb[252].mxu1 }
 0xa57   :  { %v8836_v21 = vpop.f32.mrb[253].mxu1 }
 0xa58   :  { %v29227_v7 = vpop.f32.mrb[254].mxu1 }
 0xa59   :  { %v8839_v41 = vpop.f32.mrb[255].mxu1  ;;  %v34035_v7 = vld [vmem:[%s41060_s3 + $0x1f0] sm:$0xff]  }
 0xa5a   :  { %29488 = vmatprep.subr.bf16.mxu1 %v34035_v7 }
 0xa5b   :  { %29349 = vmatmul.mubr.bf16.gmra.mrb[104].mxu1 %v35974_v38 }
 0xa5c   :  { %29352 = vmatprep.mubr.bf16.mxu1 %v36000_v23  ;;  %29489 = vmatpush3.bf16.msra.mxu1 %v34035_v7 }
 0xa63   :  { %29353 = vmatmul.mubr.bf16.gmra.mrb[108].mxu1 %v36002_v13 }
 0xa64   :  { %29356 = vmatprep.mubr.bf16.mxu1 %v36018_v33 }
 0xa6b   :  { %29357 = vmatmul.mubr.bf16.gmra.mrb[172].mxu1 %v41626_v55 }
 0xa6c   :  { %29360 = vmatprep.mubr.bf16.mxu1 %v41626_v55 }
 0xa73   :  { %29361 = vmatmul.mubr.bf16.gmra.mrb[116].mxu1 %v36037_v28 }
 0xa74   :  { %29364 = vmatprep.mubr.bf16.mxu1 %v36063_v49 }
 0xa7b   :  { %29365 = vmatmul.mubr.bf16.gmra.mrb[120].mxu1 %v36065_v10 }
 0xa7c   :  { %29368 = vmatprep.mubr.bf16.mxu1 %v36091_v6 }
 0xa7e   :  { %v29246_v22 = vpop.f32.mrb[92].mxu1 }
 0xa7f   :  { %v8916_v43 = vpop.f32.mrb[93].mxu1 }
 0xa80   :  { %v29247_v0 = vpop.f32.mrb[94].mxu1 }
 0xa81   :  { %v8919_v21 = vpop.f32.mrb[95].mxu1  ;;  %v34036_v0 = vld [vmem:[%s41060_s3 + $0x1f8] sm:$0xff]  }
 0xa82   :  { %29490 = vmatprep.subr.bf16.mxu1 %v34036_v0 }
 0xa83   :  { %29369 = vmatmul.mubr.bf16.gmra.mrb[124].mxu1 %v36093_v47 }
 0xa84   :  { %29372 = vmatprep.mubr.bf16.mxu1 %v36119_v36  ;;  %29491 = vmatpush3.bf16.msra.mxu1 %v34036_v0 }
 0xa8b   :  { %29373 = vmatmul.mubr.bf16.gmra.mrb[128].mxu1 %v36121_v51 }
 0xa8c   :  { %29376 = vmatprep.mubr.bf16.mxu1 %v36143_v57 }
 0xa93   :  { %29377 = vmatmul.mubr.bf16.gmra.mrb[192].mxu1 %v41626_v55 }
 0xa94   :  { %29380 = vmatprep.mubr.bf16.mxu1 %v41626_v55 }
 0xa9b   :  { %29381 = vmatmul.mubr.bf16.gmra.mrb[136].mxu1 %v35286_v53 }
 0xa9c   :  { %29384 = vmatprep.mubr.bf16.mxu1 %v35288_v59 }
 0xaa3   :  { %29385 = vmatmul.mubr.bf16.gmra.mrb[140].mxu1 %v35298_v11 }
 0xaa4   :  { %29388 = vmatprep.mubr.bf16.mxu1 %v35320_v2 }
 0xaa6   :  { %v29266_v41 = vpop.f32.mrb[112].mxu1 }
 0xaa7   :  { %v8996_v34 = vpop.f32.mrb[113].mxu1 }
 0xaa8   :  { %v29267_v22 = vpop.f32.mrb[114].mxu1 }
 0xaa9   :  { %v8999_v43 = vpop.f32.mrb[115].mxu1  ;;  %v34037_v22 = vld [vmem:[%s41060_s3 + $0x200] sm:$0xff]  }
 0xaaa   :  { %29648 = vmatprep.subr.bf16.mxu1 %v34037_v22 }
 0xaab   :  { %29389 = vmatmul.mubr.bf16.gmra.mrb[144].mxu1 %v35324_v37 }
 0xaac   :  { %29392 = vmatprep.mubr.bf16.mxu1 %v35344_v44 }
 0xab3   :  { %29393 = vmatmul.mubr.bf16.gmra.mrb[148].mxu1 %v35348_v46 }
 0xab4   :  { %29396 = vmatprep.mubr.bf16.mxu1 %v35366_v39 }
 0xabb   :  { %29397 = vmatmul.mubr.bf16.gmra.mrb[212].mxu1 %v41626_v55 }
 0xabc   :  { %29400 = vmatprep.mubr.bf16.mxu1 %v41626_v55 }
 0xac3   :  { %29401 = vmatmul.mubr.bf16.gmra.mrb[156].mxu1 %v35398_v60 }
 0xac4   :  { %29404 = vmatprep.mubr.bf16.mxu1 %v35421_v61 }
 0xacb   :  { %29405 = vmatmul.mubr.bf16.gmra.mrb[160].mxu1 %v35425_v18 }
 0xacc   :  { %29408 = vmatprep.mubr.bf16.mxu1 %v35447_v35 }
 0xace   :  { %v29286_v21 = vpop.f32.mrb[132].mxu1 }
 0xacf   :  { %v9076_v7 = vpop.f32.mrb[133].mxu1 }
 0xad0   :  { %v29287_v41 = vpop.f32.mrb[134].mxu1 }
 0xad1   :  { %v9079_v34 = vpop.f32.mrb[135].mxu1 }
 0xad3   :  { %29409 = vmatmul.mubr.bf16.gmra.mrb[164].mxu1 %v35451_v1 }
 0xad4   :  { %29412 = vmatprep.mubr.bf16.mxu1 %v41649_v48 }
 0xadb   :  { %29413 = vmatmul.mubr.bf16.gmra.mrb[168].mxu1 %v41650_v4 }
 0xadc   :  { %29416 = vmatprep.mubr.bf16.mxu1 %v41651_v45 }
 0xae3   :  { %29417 = vmatmul.mubr.bf16.gmra.mrb[232].mxu1 %v41626_v55 }
 0xae4   :  { %29420 = vmatprep.mubr.bf16.mxu1 %v41626_v55 }
 0xaeb   :  { %29421 = vmatmul.mubr.bf16.gmra.mrb[176].mxu1 %v35545_v12 }
 0xaec   :  { %29424 = vmatprep.mubr.bf16.mxu1 %v35591_v54 }
 0xaf3   :  { %29425 = vmatmul.mubr.bf16.gmra.mrb[180].mxu1 %v35597_v32 }
 0xaf4   :  { %29428 = vmatprep.mubr.bf16.mxu1 %v41642_v26 }
 0xafb   :  { %29429 = vmatmul.mubr.bf16.gmra.mrb[184].mxu1 %v41652_v63 }
 0xafc   :  { %29432 = vmatprep.mubr.bf16.mxu1 %v41644_v9 }
 0xb03   :  { %29433 = vmatmul.mubr.bf16.gmra.mrb[188].mxu1 %v41645_v15 }
 0xb04   :  { %29436 = vmatprep.mubr.bf16.mxu1 %v41653_v3 }
 0xb0b   :  { %29437 = vmatmul.mubr.bf16.gmra.mrb[236].mxu1 %v41626_v55 }
 0xb0c   :  { %29440 = vmatprep.mubr.bf16.mxu1 %v41626_v55 }
 0xb13   :  { %29441 = vmatmul.mubr.bf16.gmra.mrb[196].mxu1 %v41635_v19 }
 0xb14   :  { %29444 = vmatprep.mubr.bf16.mxu1 %v41647_v14 }
 0xb16   :  { %v29338_v43 = vpop.f32.mrb[152].mxu1 }
 0xb17   :  { %v9863_v0 = vpop.f32.mrb[153].mxu1 }
 0xb18   :  { %v29339_v21 = vpop.f32.mrb[154].mxu1 }
 0xb19   :  { %v9866_v7 = vpop.f32.mrb[155].mxu1  ;;  %v34038_v21 = vld [vmem:[%s41060_s3 + $0x208] sm:$0xff]  }
 0xb1a   :  { %v34039_v7 = vld [vmem:[%s41060_s3 + $0x210] sm:$0xff]  }
 0xb1b   :  { %29445 = vmatmul.mubr.bf16.gmra.mrb[200].mxu1 %v41654_v31 }
 0xb1c   :  { %29448 = vmatprep.mubr.bf16.mxu1 %v41638_v16 }
 0xb23   :  { %29449 = vmatmul.mubr.bf16.gmra.mrb[204].mxu1 %v41639_v20 }
 0xb24   :  { %29452 = vmatprep.mubr.bf16.mxu1 %v41640_v30 }
 0xb2b   :  { %29453 = vmatmul.mubr.bf16.gmra.mrb[208].mxu1 %v41641_v25 }
 0xb2c   :  { %29456 = vmatprep.mubr.bf16.mxu1 %v41648_v56 }
 0xb33   :  { %29457 = vmatmul.mubr.bf16.gmra.mrb[240].mxu1 %v41626_v55 }
 0xb34   :  { %29460 = vmatprep.mubr.bf16.mxu1 %v41626_v55 }
 0xb3b   :  { %29461 = vmatmul.mubr.bf16.gmra.mrb[216].mxu1 %v41626_v55 }
 0xb3c   :  { %29464 = vmatprep.mubr.bf16.mxu1 %v41626_v55 }
 0xb3e   :  { %v29358_v41 = vpop.f32.mrb[172].mxu1 }
 0xb3f   :  { %v9943_v34 = vpop.f32.mrb[173].mxu1 }
 0xb40   :  { %v29359_v43 = vpop.f32.mrb[174].mxu1 }
 0xb41   :  { %v9946_v0 = vpop.f32.mrb[175].mxu1 }
 0xb42   :  { %v34041_v0 = vld [vmem:[%s41060_s3 + $0x220] sm:$0xff]  }
 0xb43   :  { %29465 = vmatmul.mubr.bf16.gmra.mrb[220].mxu1 %v41626_v55 }
 0xb44   :  { %29468 = vmatprep.mubr.bf16.mxu1 %v41626_v55 }
 0xb4b   :  { %29469 = vmatmul.mubr.bf16.gmra.mrb[224].mxu1 %v41626_v55 }
 0xb4c   :  { %29472 = vmatprep.mubr.bf16.mxu1 %v41626_v55 }
 0xb53   :  { %29473 = vmatmul.mubr.bf16.gmra.mrb[228].mxu1 %v41626_v55 }
 0xb54   :  { %29492 = vmatprep.mubr.bf16.mxu1 %v35719_v17  ;;  %v34040_v17 = vld [vmem:[%s41060_s3 + $0x218] sm:$0xff]  }
 0xb5b   :  { %29493 = vmatmul.mubr.bf16.vlgmr.msra.gmra.mrb[76].mxu1 %v35763_v24 }
 0xb5c   :  { %29649 = vmatpush3.bf16.msra.mxu1 %v34037_v22  ;;  %29496 = vmatprep.mubr.bf16.mxu1 %v35769_v50 }
 0xb5d   :  { %29650 = vmatprep.subr.bf16.mxu1 %v34038_v21 }
 0xb60   :  { %29651 = vmatpush3.bf16.msra.mxu1 %v34038_v21 }
 0xb61   :  { %29652 = vmatprep.subr.bf16.mxu1 %v34039_v7 }
 0xb63   :  { %29497 = vmatmul.mubr.bf16.gmra.mrb[80].mxu1 %v35815_v40 }
 0xb64   :  { %29500 = vmatprep.mubr.bf16.mxu1 %v35821_v42  ;;  %29653 = vmatpush3.bf16.msra.mxu1 %v34039_v7 }
 0xb65   :  { %29654 = vmatprep.subr.bf16.mxu1 %v34040_v17 }
 0xb66   :  { %v29378_v22 = vpop.f32.mrb[192].mxu1 }
 0xb67   :  { %v10023_v41 = vpop.f32.mrb[193].mxu1 }
 0xb68   :  { %v29379_v34 = vpop.f32.mrb[194].mxu1  ;;  %29655 = vmatpush3.bf16.msra.mxu1 %v34040_v17  ;;  %v34042_v41 = vld [vmem:[%s41060_s3 + $0x228] sm:$0xff]  }
 0xb69   :  { %v10026_v43 = vpop.f32.mrb[195].mxu1  ;;  %29656 = vmatprep.subr.bf16.mxu1 %v34041_v0 }
 0xb6b   :  { %29501 = vmatmul.mubr.bf16.gmra.mrb[84].mxu1 %v35864_v27 }
 0xb6c   :  { %29504 = vmatprep.mubr.bf16.mxu1 %v35866_v52  ;;  %29657 = vmatpush3.bf16.msra.mxu1 %v34041_v0 }
 0xb6d   :  { %29658 = vmatprep.subr.bf16.mxu1 %v34042_v41 }
 0xb70   :  { %29659 = vmatpush3.bf16.msra.mxu1 %v34042_v41 }
 0xb73   :  { %29505 = vmatmul.mubr.bf16.gmra.mrb[88].mxu1 %v35890_v8 }
 0xb74   :  { %29508 = vmatprep.mubr.bf16.mxu1 %v41626_v55 }
 0xb7b   :  { %29509 = vmatmul.mubr.bf16.gmra.mrb[244].mxu1 %v41626_v55 }
 0xb7c   :  { %29512 = vmatprep.mubr.bf16.mxu1 %v35908_v29 }
 0xb83   :  { %29513 = vmatmul.mubr.bf16.gmra.mrb[96].mxu1 %v35934_v5 }
 0xb84   :  { %29516 = vmatprep.mubr.bf16.mxu1 %v35939_v62 }
 0xb8b   :  { %29517 = vmatmul.mubr.bf16.gmra.mrb[100].mxu1 %v35969_v58 }
 0xb8c   :  { %29520 = vmatprep.mubr.bf16.mxu1 %v35974_v38 }
 0xb8e   :  { %v29398_v21 = vpop.f32.mrb[212].mxu1 }
 0xb8f   :  { %v10103_v7 = vpop.f32.mrb[213].mxu1 }
 0xb90   :  { %v29399_v17 = vpop.f32.mrb[214].mxu1  ;;  %v34043_v7 = vld [vmem:[%s41060_s3 + $0x230] sm:$0xff]  }
 0xb91   :  { %v10106_v22 = vpop.f32.mrb[215].mxu1  ;;  %29660 = vmatprep.subr.bf16.mxu1 %v34043_v7 }
 0xb92   :  { %29661 = vmatpush3.bf16.msra.mxu1 %v34043_v7 }
 0xb93   :  { %29521 = vmatmul.mubr.bf16.gmra.mrb[104].mxu1 %v36000_v23 }
 0xb94   :  { %29524 = vmatprep.mubr.bf16.mxu1 %v36002_v13 }
 0xb9b   :  { %29525 = vmatmul.mubr.bf16.gmra.mrb[108].mxu1 %v36018_v33 }
 0xb9c   :  { %29528 = vmatprep.mubr.bf16.mxu1 %v41626_v55 }
 0xba3   :  { %29529 = vmatmul.mubr.bf16.gmra.mrb[248].mxu1 %v41626_v55 }
 0xba4   :  { %29532 = vmatprep.mubr.bf16.mxu1 %v36037_v28 }
 0xbab   :  { %29533 = vmatmul.mubr.bf16.gmra.mrb[116].mxu1 %v36063_v49 }
 0xbac   :  { %29536 = vmatprep.mubr.bf16.mxu1 %v36065_v10 }
 0xbb3   :  { %29537 = vmatmul.mubr.bf16.gmra.mrb[120].mxu1 %v36091_v6 }
 0xbb4   :  { %29540 = vmatprep.mubr.bf16.mxu1 %v36093_v47 }
 0xbb6   :  { %v29418_v34 = vpop.f32.mrb[232].mxu1 }
 0xbb7   :  { %v10183_v43 = vpop.f32.mrb[233].mxu1 }
 0xbb8   :  { %v29419_v0 = vpop.f32.mrb[234].mxu1  ;;  %v34044_v43 = vld [vmem:[%s41060_s3 + $0x238] sm:$0xff]  }
 0xbb9   :  { %v10186_v21 = vpop.f32.mrb[235].mxu1  ;;  %29662 = vmatprep.subr.bf16.mxu1 %v34044_v43 }
 0xbba   :  { %29663 = vmatpush3.bf16.msra.mxu1 %v34044_v43 }
 0xbbb   :  { %29541 = vmatmul.mubr.bf16.gmra.mrb[124].mxu1 %v36119_v36 }
 0xbbc   :  { %29544 = vmatprep.mubr.bf16.mxu1 %v36121_v51 }
 0xbc3   :  { %29545 = vmatmul.mubr.bf16.gmra.mrb[128].mxu1 %v36143_v57 }
 0xbc4   :  { %29548 = vmatprep.mubr.bf16.mxu1 %v41626_v55 }
 0xbcb   :  { %29549 = vmatmul.mubr.bf16.gmra.mrb[252].mxu1 %v41626_v55 }
 0xbcc   :  { %29552 = vmatprep.mubr.bf16.mxu1 %v35286_v53 }
 0xbd3   :  { %29553 = vmatmul.mubr.bf16.gmra.mrb[136].mxu1 %v35288_v59 }
 0xbd4   :  { %29556 = vmatprep.mubr.bf16.mxu1 %v35298_v11 }
 0xbdb   :  { %29557 = vmatmul.mubr.bf16.gmra.mrb[140].mxu1 %v35320_v2 }
 0xbdc   :  { %29560 = vmatprep.mubr.bf16.mxu1 %v35324_v37 }
 0xbde   :  { %v29438_v17 = vpop.f32.mrb[236].mxu1 }
 0xbdf   :  { %v10263_v22 = vpop.f32.mrb[237].mxu1 }
 0xbe0   :  { %v29439_v41 = vpop.f32.mrb[238].mxu1 }
 0xbe1   :  { %v10266_v34 = vpop.f32.mrb[239].mxu1 }
 0xbe3   :  { %29561 = vmatmul.mubr.bf16.gmra.mrb[144].mxu1 %v35344_v44 }
 0xbe4   :  { %29564 = vmatprep.mubr.bf16.mxu1 %v35348_v46 }
 0xbeb   :  { %29565 = vmatmul.mubr.bf16.gmra.mrb[148].mxu1 %v35366_v39 }
 0xbec   :  { %29568 = vmatprep.mubr.bf16.mxu1 %v41626_v55 }
 0xbf3   :  { %29569 = vmatmul.mubr.bf16.gmra.mrb[92].mxu1 %v41626_v55 }
 0xbf4   :  { %29572 = vmatprep.mubr.bf16.mxu1 %v35398_v60 }
 0xbfb   :  { %29573 = vmatmul.mubr.bf16.gmra.mrb[156].mxu1 %v35421_v61 }
 0xbfc   :  { %29576 = vmatprep.mubr.bf16.mxu1 %v35425_v18 }
 0xc03   :  { %29577 = vmatmul.mubr.bf16.gmra.mrb[160].mxu1 %v35447_v35 }
 0xc04   :  { %29580 = vmatprep.mubr.bf16.mxu1 %v35451_v1 }
 0xc06   :  { %v29458_v0 = vpop.f32.mrb[240].mxu1 }
 0xc07   :  { %v10343_v21 = vpop.f32.mrb[241].mxu1 }
 0xc08   :  { %v29459_v7 = vpop.f32.mrb[242].mxu1 }
 0xc09   :  { %v10346_v17 = vpop.f32.mrb[243].mxu1 }
 0xc0b   :  { %29581 = vmatmul.mubr.bf16.gmra.mrb[164].mxu1 %v41649_v48 }
 0xc0c   :  { %29584 = vmatprep.mubr.bf16.mxu1 %v41650_v4 }
 0xc13   :  { %29585 = vmatmul.mubr.bf16.gmra.mrb[168].mxu1 %v41651_v45 }
 0xc14   :  { %29588 = vmatprep.mubr.bf16.mxu1 %v41626_v55 }
 0xc1b   :  { %29589 = vmatmul.mubr.bf16.gmra.mrb[112].mxu1 %v41626_v55 }
 0xc1c   :  { %29592 = vmatprep.mubr.bf16.mxu1 %v35545_v12 }
 0xc23   :  { %29593 = vmatmul.mubr.bf16.gmra.mrb[176].mxu1 %v35591_v54 }
 0xc24   :  { %29596 = vmatprep.mubr.bf16.mxu1 %v35597_v32 }
 0xc2b   :  { %29597 = vmatmul.mubr.bf16.gmra.mrb[180].mxu1 %v41642_v26 }
 0xc2c   :  { %29600 = vmatprep.mubr.bf16.mxu1 %v41652_v63 }
 0xc33   :  { %29601 = vmatmul.mubr.bf16.gmra.mrb[184].mxu1 %v41644_v9 }
 0xc34   :  { %29604 = vmatprep.mubr.bf16.mxu1 %v41645_v15 }
 0xc3b   :  { %29605 = vmatmul.mubr.bf16.gmra.mrb[188].mxu1 %v41653_v3 }
 0xc3c   :  { %29608 = vmatprep.mubr.bf16.mxu1 %v41626_v55 }
 0xc43   :  { %29609 = vmatmul.mubr.bf16.gmra.mrb[132].mxu1 %v41626_v55 }
 0xc44   :  { %29612 = vmatprep.mubr.bf16.mxu1 %v41635_v19 }
 0xc4b   :  { %29613 = vmatmul.mubr.bf16.gmra.mrb[196].mxu1 %v41647_v14 }
 0xc4c   :  { %29616 = vmatprep.mubr.bf16.mxu1 %v41654_v31 }
 0xc4e   :  { %v29510_v22 = vpop.f32.mrb[244].mxu1 }
 0xc4f   :  { %v11130_v41 = vpop.f32.mrb[245].mxu1 }
 0xc50   :  { %v29511_v34 = vpop.f32.mrb[246].mxu1 }
 0xc51   :  { %v11133_v43 = vpop.f32.mrb[247].mxu1 }
 0xc53   :  { %29617 = vmatmul.mubr.bf16.gmra.mrb[200].mxu1 %v41638_v16 }
 0xc54   :  { %29620 = vmatprep.mubr.bf16.mxu1 %v41639_v20 }
 0xc5b   :  { %29621 = vmatmul.mubr.bf16.gmra.mrb[204].mxu1 %v41640_v30 }
 0xc5c   :  { %29624 = vmatprep.mubr.bf16.mxu1 %v41641_v25 }
 0xc63   :  { %29625 = vmatmul.mubr.bf16.gmra.mrb[208].mxu1 %v41648_v56 }
 0xc64   :  { %29628 = vmatprep.mubr.bf16.mxu1 %v41626_v55 }
 0xc6b   :  { %29629 = vmatmul.mubr.bf16.gmra.mrb[152].mxu1 %v41626_v55 }
 0xc6c   :  { %29632 = vmatprep.mubr.bf16.mxu1 %v41626_v55 }
 0xc73   :  { %29633 = vmatmul.mubr.bf16.gmra.mrb[216].mxu1 %v41626_v55 }
 0xc74   :  { %29636 = vmatprep.mubr.bf16.mxu1 %v41626_v55 }
 0xc76   :  { %v29530_v0 = vpop.f32.mrb[248].mxu1 }
 0xc77   :  { %v11210_v21 = vpop.f32.mrb[249].mxu1 }
 0xc78   :  { %v29531_v7 = vpop.f32.mrb[250].mxu1 }
 0xc79   :  { %v11213_v17 = vpop.f32.mrb[251].mxu1 }
 0xc7b   :  { %29637 = vmatmul.mubr.bf16.gmra.mrb[220].mxu1 %v41626_v55 }
 0xc7c   :  { %29640 = vmatprep.mubr.bf16.mxu1 %v41626_v55 }
 0xc83   :  { %29641 = vmatmul.mubr.bf16.gmra.mrb[224].mxu1 %v41626_v55 }
 0xc84   :  { %29644 = vmatprep.mubr.bf16.mxu1 %v41626_v55 }
 0xc8b   :  { %29645 = vmatmul.mubr.bf16.gmra.mrb[228].mxu1 %v41626_v55 }
 0xc8c   :  { %29664 = vmatprep.mubr.bf16.mxu1 %v35763_v24 }
 0xc93   :  { %29665 = vmatmul.mubr.bf16.vlgmr.msra.gmra.mrb[76].mxu1 %v35769_v50 }
 0xc94   :  { %29668 = vmatprep.mubr.bf16.mxu1 %v35815_v40 }
 0xc9b   :  { %29669 = vmatmul.mubr.bf16.gmra.mrb[80].mxu1 %v35821_v42 }
 0xc9c   :  { %29672 = vmatprep.mubr.bf16.mxu1 %v35864_v27 }
 0xc9e   :  { %v29550_v22 = vpop.f32.mrb[252].mxu1 }
 0xc9f   :  { %v11290_v41 = vpop.f32.mrb[253].mxu1 }
 0xca0   :  { %v29551_v34 = vpop.f32.mrb[254].mxu1 }
 0xca1   :  { %v11293_v43 = vpop.f32.mrb[255].mxu1 }
 0xca3   :  { %29673 = vmatmul.mubr.bf16.gmra.mrb[84].mxu1 %v35866_v52 }
 0xca4   :  { %29676 = vmatprep.mubr.bf16.mxu1 %v35890_v8 }
 0xcab   :  { %29677 = vmatmul.mubr.bf16.gmra.mrb[88].mxu1 %v41626_v55 }
 0xcac   :  { %29680 = vmatprep.mubr.bf16.mxu1 %v41626_v55 }
 0xcb3   :  { %29681 = vmatmul.mubr.bf16.gmra.mrb[172].mxu1 %v35908_v29 }
 0xcb4   :  { %29684 = vmatprep.mubr.bf16.mxu1 %v35934_v5 }
 0xcbb   :  { %29685 = vmatmul.mubr.bf16.gmra.mrb[96].mxu1 %v35939_v62 }
 0xcbc   :  { %29688 = vmatprep.mubr.bf16.mxu1 %v35969_v58 }
 0xcc3   :  { %29689 = vmatmul.mubr.bf16.gmra.mrb[100].mxu1 %v35974_v38 }
 0xcc4   :  { %29692 = vmatprep.mubr.bf16.mxu1 %v36000_v23 }
 0xcc6   :  { %v29570_v24 = vpop.f32.mrb[92].mxu1 }
 0xcc7   :  { %v11370_v50 = vpop.f32.mrb[93].mxu1 }
 0xcc8   :  { %v29571_v40 = vpop.f32.mrb[94].mxu1 }
 0xcc9   :  { %v11373_v42 = vpop.f32.mrb[95].mxu1 }
 0xccb   :  { %29693 = vmatmul.mubr.bf16.gmra.mrb[104].mxu1 %v36002_v13 }
 0xccc   :  { %29696 = vmatprep.mubr.bf16.mxu1 %v36018_v33 }
 0xcd3   :  { %29697 = vmatmul.mubr.bf16.gmra.mrb[108].mxu1 %v41626_v55 }
 0xcd4   :  { %29700 = vmatprep.mubr.bf16.mxu1 %v41626_v55 }
 0xcdb   :  { %29701 = vmatmul.mubr.bf16.gmra.mrb[192].mxu1 %v36037_v28 }
 0xcdc   :  { %29704 = vmatprep.mubr.bf16.mxu1 %v36063_v49 }
 0xce3   :  { %29705 = vmatmul.mubr.bf16.gmra.mrb[116].mxu1 %v36065_v10 }
 0xce4   :  { %29708 = vmatprep.mubr.bf16.mxu1 %v36091_v6 }
 0xceb   :  { %29709 = vmatmul.mubr.bf16.gmra.mrb[120].mxu1 %v36093_v47 }
 0xcec   :  { %29712 = vmatprep.mubr.bf16.mxu1 %v36119_v36 }
 0xcee   :  { %v29590_v27 = vpop.f32.mrb[112].mxu1 }
 0xcef   :  { %v11450_v13 = vpop.f32.mrb[113].mxu1 }
 0xcf0   :  { %v29591_v52 = vpop.f32.mrb[114].mxu1 }
 0xcf1   :  { %v11453_v8 = vpop.f32.mrb[115].mxu1 }
 0xcf3   :  { %29713 = vmatmul.mubr.bf16.gmra.mrb[124].mxu1 %v36121_v51 }
 0xcf4   :  { %29716 = vmatprep.mubr.bf16.mxu1 %v36143_v57 }
 0xcfb   :  { %29717 = vmatmul.mubr.bf16.gmra.mrb[128].mxu1 %v41626_v55 }
 0xcfc   :  { %29720 = vmatprep.mubr.bf16.mxu1 %v41626_v55 }
 0xd03   :  { %29721 = vmatmul.mubr.bf16.gmra.mrb[212].mxu1 %v35286_v53 }
 0xd04   :  { %29724 = vmatprep.mubr.bf16.mxu1 %v35288_v59 }
 0xd0b   :  { %29725 = vmatmul.mubr.bf16.gmra.mrb[136].mxu1 %v35298_v11 }
 0xd0c   :  { %29728 = vmatprep.mubr.bf16.mxu1 %v35320_v2 }
 0xd13   :  { %29729 = vmatmul.mubr.bf16.gmra.mrb[140].mxu1 %v35324_v37 }
 0xd14   :  { %29732 = vmatprep.mubr.bf16.mxu1 %v35344_v44 }
 0xd16   :  { %v29610_v36 = vpop.f32.mrb[132].mxu1 }
 0xd17   :  { %v11530_v6 = vpop.f32.mrb[133].mxu1 }
 0xd18   :  { %v29611_v49 = vpop.f32.mrb[134].mxu1 }
 0xd19   :  { %v11533_v29 = vpop.f32.mrb[135].mxu1 }
 0xd1b   :  { %29733 = vmatmul.mubr.bf16.gmra.mrb[144].mxu1 %v35348_v46 }
 0xd1c   :  { %29736 = vmatprep.mubr.bf16.mxu1 %v35366_v39 }
 0xd23   :  { %29737 = vmatmul.mubr.bf16.gmra.mrb[148].mxu1 %v41626_v55 }
 0xd24   :  { %29740 = vmatprep.mubr.bf16.mxu1 %v41626_v55 }
 0xd2b   :  { %29741 = vmatmul.mubr.bf16.gmra.mrb[232].mxu1 %v35398_v60 }
 0xd2c   :  { %29744 = vmatprep.mubr.bf16.mxu1 %v35421_v61 }
 0xd33   :  { %29745 = vmatmul.mubr.bf16.gmra.mrb[156].mxu1 %v35425_v18 }
 0xd34   :  { %29748 = vmatprep.mubr.bf16.mxu1 %v35447_v35 }
 0xd3b   :  { %29749 = vmatmul.mubr.bf16.gmra.mrb[160].mxu1 %v35451_v1 }
 0xd3c   :  { %29752 = vmatprep.mubr.bf16.mxu1 %v41649_v48 }
 0xd3e   :  { %v29630_v53 = vpop.f32.mrb[152].mxu1 }
 0xd3f   :  { %v11610_v59 = vpop.f32.mrb[153].mxu1 }
 0xd40   :  { %v29631_v11 = vpop.f32.mrb[154].mxu1 }
 0xd41   :  { %v11613_v2 = vpop.f32.mrb[155].mxu1 }
 0xd43   :  { %29753 = vmatmul.mubr.bf16.gmra.mrb[164].mxu1 %v41650_v4 }
 0xd44   :  { %29756 = vmatprep.mubr.bf16.mxu1 %v41651_v45 }
 0xd4b   :  { %29757 = vmatmul.mubr.bf16.gmra.mrb[168].mxu1 %v41626_v55 }
 0xd4c   :  { %29760 = vmatprep.mubr.bf16.mxu1 %v41626_v55 }
 0xd53   :  { %29761 = vmatmul.mubr.bf16.gmra.mrb[236].mxu1 %v35545_v12 }
 0xd54   :  { %29764 = vmatprep.mubr.bf16.mxu1 %v35591_v54 }
 0xd5b   :  { %29765 = vmatmul.mubr.bf16.gmra.mrb[176].mxu1 %v35597_v32 }
 0xd5c   :  { %29768 = vmatprep.mubr.bf16.mxu1 %v41642_v26 }
 0xd63   :  { %29769 = vmatmul.mubr.bf16.gmra.mrb[180].mxu1 %v41652_v63 }
 0xd64   :  { %29772 = vmatprep.mubr.bf16.mxu1 %v41644_v9 }
 0xd66   :  { %v37214_v37 = vpop.f32.mrb[76].mxu1 }
 0xd67   :  { %41655 = vst [vmem:[#allocation24_spill] sm:$0xff] %v37214_v37  ;;  %v37216_v44 = vpop.f32.mrb[77].mxu1 }
 0xd68   :  { %v37218_v46 = vpop.f32.mrb[78].mxu1 }
 0xd69   :  { %41656 = vst [vmem:[#allocation25_spill] sm:$0xff] %v37218_v46  ;;  %v37220_v39 = vpop.f32.mrb[79].mxu1 }
 0xd6a   :  { %41657 = vst [vmem:[#allocation26_spill] sm:$0xff] %v37220_v39  ;;  %v13608_v60 = vadd.f32 %v37220_v39, %v37216_v44 }
 0xd6b   :  { %29773 = vmatmul.mubr.bf16.gmra.mrb[184].mxu1 %v41645_v15 }
 0xd6c   :  { %v13609_v61 = vadd.f32 %v37214_v37, %v13608_v60  ;;  %29776 = vmatprep.mubr.bf16.mxu1 %v41653_v3 }
 0xd6e   :  { %v13610_v18 = vadd.f32 %v37218_v46, %v13609_v61  ;;  %v37228_v35 = vpop.f32.mrb[80].mxu1 }
 0xd6f   :  { %v37230_v1 = vpop.f32.mrb[81].mxu1 }
 0xd70   :  { %41658 = vst [vmem:[#allocation27_spill] sm:$0xff] %v37230_v1  ;;  %v13611_v9 = vadd.f32 %v13610_v18, %v37230_v1  ;;  %v37233_v12 = vpop.f32.mrb[82].mxu1 }
 0xd71   :  { %v37235_v54 = vpop.f32.mrb[83].mxu1 }
 0xd72   :  { %v13612_v32 = vadd.f32 %v13611_v9, %v37235_v54 }
 0xd73   :  { %29777 = vmatmul.mubr.bf16.gmra.mrb[188].mxu1 %v41626_v55 }
 0xd74   :  { %v13613_v15 = vadd.f32 %v37228_v35, %v13612_v32  ;;  %29780 = vmatprep.mubr.bf16.mxu1 %v41626_v55 }
 0xd76   :  { %v13614_v5 = vadd.f32 %v37233_v12, %v13613_v15  ;;  %v37242_v62 = vpop.f32.mrb[84].mxu1 }
 0xd77   :  { %v37244_v58 = vpop.f32.mrb[85].mxu1 }
 0xd78   :  { %v13615_v38 = vadd.f32 %v13614_v5, %v37244_v58  ;;  %v37247_v23 = vpop.f32.mrb[86].mxu1 }
 0xd79   :  { %41659 = vst [vmem:[#allocation28_spill] sm:$0xff] %v37247_v23  ;;  %v37249_v33 = vpop.f32.mrb[87].mxu1 }
 0xd7a   :  { %v13616_v28 = vadd.f32 %v13615_v38, %v37249_v33 }
 0xd7b   :  { %29781 = vmatmul.mubr.bf16.gmra.mrb[240].mxu1 %v41635_v19 }
 0xd7c   :  { %v13617_v10 = vadd.f32 %v37242_v62, %v13616_v28  ;;  %29784 = vmatprep.mubr.bf16.mxu1 %v41647_v14 }
 0xd7e   :  { %v13618_v47 = vadd.f32 %v37247_v23, %v13617_v10  ;;  %v37256_v51 = vpop.f32.mrb[88].mxu1 }
 0xd7f   :  { %v37258_v57 = vpop.f32.mrb[89].mxu1 }
 0xd80   :  { %41660 = vst [vmem:[#allocation29_spill] sm:$0xff] %v37258_v57  ;;  %v13619_v26 = vadd.f32 %v13618_v47, %v37258_v57  ;;  %v37261_v48 = vpop.f32.mrb[90].mxu1 }
 0xd81   :  { %v37263_v4 = vpop.f32.mrb[91].mxu1 }
 0xd82   :  { %v13620_v45 = vadd.f32 %v13619_v26, %v37263_v4 }
 0xd83   :  { %29785 = vmatmul.mubr.bf16.gmra.mrb[196].mxu1 %v41654_v31 }
 0xd84   :  { %v13621_v19 = vadd.f32 %v37256_v51, %v13620_v45  ;;  %29788 = vmatprep.mubr.bf16.mxu1 %v41638_v16 }
 0xd86   :  { %v13622_v14 = vadd.f32 %v37261_v48, %v13621_v19  ;;  %v29682_v63 = vpop.f32.mrb[172].mxu1 }
 0xd87   :  { %v12397_v3 = vpop.f32.mrb[173].mxu1 }
 0xd88   :  { %v29683_v0 = vpop.f32.mrb[174].mxu1 }
 0xd89   :  { %v12400_v21 = vpop.f32.mrb[175].mxu1 }
 0xd8b   :  { %29789 = vmatmul.mubr.bf16.gmra.mrb[200].mxu1 %v41639_v20 }
 0xd8c   :  { %29792 = vmatprep.mubr.bf16.mxu1 %v41640_v30 }
 0xd8e   :  { %v37272_v7 = vpop.f32.mrb[96].mxu1 }
 0xd8f   :  { %v37274_v17 = vpop.f32.mrb[97].mxu1 }
 0xd90   :  { %v13627_v31 = vadd.f32 %v13622_v14, %v37274_v17  ;;  %v37277_v22 = vpop.f32.mrb[98].mxu1 }
 0xd91   :  { %v37279_v41 = vpop.f32.mrb[99].mxu1 }
 0xd92   :  { %v13628_v16 = vadd.f32 %v13627_v31, %v37279_v41 }
 0xd93   :  { %29793 = vmatmul.mubr.bf16.gmra.mrb[204].mxu1 %v41641_v25 }
 0xd94   :  { %v13629_v34 = vadd.f32 %v37272_v7, %v13628_v16  ;;  %29796 = vmatprep.mubr.bf16.mxu1 %v41648_v56 }
 0xd96   :  { %v13630_v20 = vadd.f32 %v37277_v22, %v13629_v34  ;;  %v37286_v30 = vpop.f32.mrb[100].mxu1 }
 0xd97   :  { %v37288_v43 = vpop.f32.mrb[101].mxu1 }
 0xd98   :  { %v13631_v24 = vadd.f32 %v13630_v20, %v37288_v43  ;;  %v37291_v50 = vpop.f32.mrb[102].mxu1 }
 0xd99   :  { %v37293_v40 = vpop.f32.mrb[103].mxu1 }
 0xd9a   :  { %v13632_v42 = vadd.f32 %v13631_v24, %v37293_v40 }
 0xd9b   :  { %29797 = vmatmul.mubr.bf16.gmra.mrb[208].mxu1 %v41626_v55 }
 0xd9c   :  { %v13633_v25 = vadd.f32 %v37286_v30, %v13632_v42  ;;  %29800 = vmatprep.mubr.bf16.mxu1 %v41626_v55 }
 0xd9e   :  { %v13634_v56 = vadd.f32 %v37291_v50, %v13633_v25  ;;  %v37300_v27 = vpop.f32.mrb[104].mxu1 }
 0xd9f   :  { %v37302_v13 = vpop.f32.mrb[105].mxu1 }
 0xda0   :  { %v13635_v52 = vadd.f32 %v13634_v56, %v37302_v13  ;;  %v37305_v8 = vpop.f32.mrb[106].mxu1 }
 0xda1   :  { %v37307_v36 = vpop.f32.mrb[107].mxu1 }
 0xda2   :  { %v13636_v6 = vadd.f32 %v13635_v52, %v37307_v36 }
 0xda3   :  { %29801 = vmatmul.mubr.bf16.gmra.mrb[244].mxu1 %v41626_v55 }
 0xda4   :  { %v13637_v49 = vadd.f32 %v37300_v27, %v13636_v6  ;;  %29804 = vmatprep.mubr.bf16.mxu1 %v41626_v55 }
 0xda6   :  { %v13638_v29 = vadd.f32 %v37305_v8, %v13637_v49  ;;  %v37314_v53 = vpop.f32.mrb[108].mxu1 }
 0xda7   :  { %v37316_v59 = vpop.f32.mrb[109].mxu1 }
 0xda8   :  { %41661 = vst [vmem:[#allocation30_spill] sm:$0xff] %v37316_v59  ;;  %v13639_v11 = vadd.f32 %v13638_v29, %v37316_v59  ;;  %v37319_v2 = vpop.f32.mrb[110].mxu1 }
 0xda9   :  { %v37321_v60 = vpop.f32.mrb[111].mxu1 }
 0xdaa   :  { %v13640_v61 = vadd.f32 %v13639_v11, %v37321_v60 }
 0xdab   :  { %29805 = vmatmul.mubr.bf16.gmra.mrb[216].mxu1 %v41626_v55 }
 0xdac   :  { %v13641_v18 = vadd.f32 %v37314_v53, %v13640_v61  ;;  %29808 = vmatprep.mubr.bf16.mxu1 %v41626_v55 }
 0xdae   :  { %v13642_v9 = vadd.f32 %v37319_v2, %v13641_v18  ;;  %v29702_v32 = vpop.f32.mrb[192].mxu1 }
 0xdaf   :  { %v12477_v15 = vpop.f32.mrb[193].mxu1 }
 0xdb0   :  { %v29703_v5 = vpop.f32.mrb[194].mxu1 }
 0xdb1   :  { %v12480_v38 = vpop.f32.mrb[195].mxu1 }
 0xdb3   :  { %29809 = vmatmul.mubr.bf16.gmra.mrb[220].mxu1 %v41626_v55 }
 0xdb4   :  { %29812 = vmatprep.mubr.bf16.mxu1 %v41626_v55 }
 0xdb6   :  { %v37330_v28 = vpop.f32.mrb[116].mxu1 }
 0xdb7   :  { %v37332_v10 = vpop.f32.mrb[117].mxu1 }
 0xdb8   :  { %v13647_v47 = vadd.f32 %v13642_v9, %v37332_v10  ;;  %v37335_v26 = vpop.f32.mrb[118].mxu1 }
 0xdb9   :  { %v37337_v45 = vpop.f32.mrb[119].mxu1 }
 0xdba   :  { %v13648_v19 = vadd.f32 %v13647_v47, %v37337_v45 }
 0xdbb   :  { %29813 = vmatmul.mubr.bf16.gmra.mrb[224].mxu1 %v41626_v55 }
 0xdbc   :  { %v13649_v14 = vadd.f32 %v37330_v28, %v13648_v19  ;;  %29816 = vmatprep.mubr.bf16.mxu1 %v41626_v55 }
 0xdbe   :  { %v13650_v63 = vadd.f32 %v37335_v26, %v13649_v14  ;;  %v37344_v3 = vpop.f32.mrb[120].mxu1 }
 0xdbf   :  { %v37346_v0 = vpop.f32.mrb[121].mxu1 }
 0xdc0   :  { %v13651_v21 = vadd.f32 %v13650_v63, %v37346_v0  ;;  %v37349_v31 = vpop.f32.mrb[122].mxu1 }
 0xdc1   :  { %v37351_v16 = vpop.f32.mrb[123].mxu1 }
 0xdc2   :  { %v13652_v34 = vadd.f32 %v13651_v21, %v37351_v16 }
 0xdc3   :  { %29817 = vmatmul.mubr.bf16.gmra.mrb[228].mxu1 %v41626_v55 }
 0xdc4   :  { %v13653_v20 = vadd.f32 %v37344_v3, %v13652_v34 }
 0xdc6   :  { %v13654_v24 = vadd.f32 %v37349_v31, %v13653_v20  ;;  %v37357_v42 = vpop.f32.mrb[124].mxu1 }
 0xdc7   :  { %v37359_v25 = vpop.f32.mrb[125].mxu1 }
 0xdc8   :  { %v13655_v56 = vadd.f32 %v13654_v24, %v37359_v25  ;;  %v37362_v52 = vpop.f32.mrb[126].mxu1 }
 0xdc9   :  { %v37364_v6 = vpop.f32.mrb[127].mxu1 }
 0xdca   :  { %v13656_v49 = vadd.f32 %v13655_v56, %v37364_v6 }
 0xdcc   :  { %v13657_v29 = vadd.f32 %v37357_v42, %v13656_v49 }
 0xdce   :  { %v13658_v11 = vadd.f32 %v37362_v52, %v13657_v29  ;;  %v37369_v61 = vpop.f32.mrb[128].mxu1 }
 0xdcf   :  { %41662 = vst [vmem:[#allocation31_spill] sm:$0xff] %v37369_v61  ;;  %v37371_v18 = vpop.f32.mrb[129].mxu1 }
 0xdd0   :  { %v13659_v9 = vadd.f32 %v13658_v11, %v37371_v18  ;;  %v37374_v32 = vpop.f32.mrb[130].mxu1 }
 0xdd1   :  { %41663 = vst [vmem:[#allocation32_spill] sm:$0xff] %v37374_v32  ;;  %v37376_v15 = vpop.f32.mrb[131].mxu1 }
 0xdd2   :  { %41664 = vst [vmem:[#allocation33_spill] sm:$0xff] %v37376_v15  ;;  %v13660_v5 = vadd.f32 %v13659_v9, %v37376_v15 }
 0xdd4   :  { %v13661_v38 = vadd.f32 %v37369_v61, %v13660_v5 }
 0xdd6   :  { %v13662_v47 = vadd.f32 %v37374_v32, %v13661_v38  ;;  %v29722_v19 = vpop.f32.mrb[212].mxu1 }
 0xdd7   :  { %v12557_v14 = vpop.f32.mrb[213].mxu1 }
 0xdd8   :  { %v29723_v63 = vpop.f32.mrb[214].mxu1 }
 0xdd9   :  { %v12560_v21 = vpop.f32.mrb[215].mxu1 }
 0xdde   :  { %v37381_v34 = vpop.f32.mrb[136].mxu1 }
 0xddf   :  { %41665 = vst [vmem:[#allocation34_spill] sm:$0xff] %v37381_v34  ;;  %v37383_v20 = vpop.f32.mrb[137].mxu1 }
 0xde0   :  { %41666 = vst [vmem:[#allocation35_spill] sm:$0xff] %v37383_v20  ;;  %v13667_v24 = vadd.f32 %v13662_v47, %v37383_v20  ;;  %v37386_v56 = vpop.f32.mrb[138].mxu1 }
 0xde1   :  { %41667 = vst [vmem:[#allocation36_spill] sm:$0xff] %v37386_v56  ;;  %v37388_v49 = vpop.f32.mrb[139].mxu1 }
 0xde2   :  { %41668 = vst [vmem:[#allocation37_spill] sm:$0xff] %v37388_v49  ;;  %v13668_v29 = vadd.f32 %v13667_v24, %v37388_v49 }
 0xde4   :  { %v13669_v11 = vadd.f32 %v37381_v34, %v13668_v29 }
 0xde6   :  { %v13670_v9 = vadd.f32 %v37386_v56, %v13669_v11  ;;  %v37393_v5 = vpop.f32.mrb[140].mxu1 }
 0xde7   :  { %41669 = vst [vmem:[#allocation38_spill] sm:$0xff] %v37393_v5  ;;  %v37395_v38 = vpop.f32.mrb[141].mxu1 }
 0xde8   :  { %41670 = vst [vmem:[#allocation39_spill] sm:$0xff] %v37395_v38  ;;  %v13671_v19 = vadd.f32 %v13670_v9, %v37395_v38  ;;  %v37398_v14 = vpop.f32.mrb[142].mxu1 }
 0xde9   :  { %41671 = vst [vmem:[#allocation40_spill] sm:$0xff] %v37398_v14  ;;  %v37400_v63 = vpop.f32.mrb[143].mxu1 }
 0xdea   :  { %41672 = vst [vmem:[#allocation41_spill] sm:$0xff] %v37400_v63  ;;  %v13672_v47 = vadd.f32 %v13671_v19, %v37400_v63 }
 0xdec   :  { %v13673_v21 = vadd.f32 %v37393_v5, %v13672_v47 }
 0xdee   :  { %v13674_v24 = vadd.f32 %v37398_v14, %v13673_v21  ;;  %v37405_v55 = vpop.f32.mrb[144].mxu1 }
 0xdef   :  { %41673 = vst [vmem:[#allocation42_spill] sm:$0xff] %v37405_v55  ;;  %v37407_v29 = vpop.f32.mrb[145].mxu1 }
 0xdf0   :  { %41674 = vst [vmem:[#allocation43_spill] sm:$0xff] %v37407_v29  ;;  %v13675_v11 = vadd.f32 %v13674_v24, %v37407_v29  ;;  %v37410_v56 = vpop.f32.mrb[146].mxu1 }
 0xdf1   :  { %41675 = vst [vmem:[#allocation44_spill] sm:$0xff] %v37410_v56  ;;  %v37412_v34 = vpop.f32.mrb[147].mxu1 }
 0xdf2   :  { %41676 = vst [vmem:[#allocation45_spill] sm:$0xff] %v37412_v34  ;;  %v13676_v9 = vadd.f32 %v13675_v11, %v37412_v34 }
 0xdf4   :  { %v13677_v38 = vadd.f32 %v37405_v55, %v13676_v9 }
 0xdf6   :  { %v13678_v19 = vadd.f32 %v37410_v56, %v13677_v38  ;;  %v37417_v63 = vpop.f32.mrb[148].mxu1 }
 0xdf7   :  { %41677 = vst [vmem:[#allocation46_spill] sm:$0xff] %v37417_v63  ;;  %v37419_v47 = vpop.f32.mrb[149].mxu1 }
 0xdf8   :  { %41678 = vst [vmem:[#allocation47_spill] sm:$0xff] %v37419_v47  ;;  %v13679_v21 = vadd.f32 %v13678_v19, %v37419_v47  ;;  %v37422_v14 = vpop.f32.mrb[150].mxu1 }
 0xdf9   :  { %41679 = vst [vmem:[#allocation48_spill] sm:$0xff] %v37422_v14  ;;  %v37424_v5 = vpop.f32.mrb[151].mxu1 }
 0xdfa   :  { %41680 = vst [vmem:[#allocation49_spill] sm:$0xff] %v37424_v5  ;;  %v13680_v24 = vadd.f32 %v13679_v21, %v37424_v5 }
 0xdfc   :  { %v13681_v29 = vadd.f32 %v37417_v63, %v13680_v24 }
 0xdfe   :  { %v13682_v11 = vadd.f32 %v37422_v14, %v13681_v29  ;;  %v29742_v34 = vpop.f32.mrb[232].mxu1 }
 0xdff   :  { %v12637_v9 = vpop.f32.mrb[233].mxu1 }
 0xe00   :  { %v29743_v55 = vpop.f32.mrb[234].mxu1 }
 0xe01   :  { %v12640_v38 = vpop.f32.mrb[235].mxu1 }
 0xe06   :  { %v37429_v56 = vpop.f32.mrb[156].mxu1 }
 0xe07   :  { %41681 = vst [vmem:[#allocation50_spill] sm:$0xff] %v37429_v56  ;;  %v37431_v49 = vpop.f32.mrb[157].mxu1 }
 0xe08   :  { %41682 = vst [vmem:[#allocation51_spill] sm:$0xff] %v37431_v49  ;;  %v13687_v19 = vadd.f32 %v13682_v11, %v37431_v49  ;;  %v37434_v47 = vpop.f32.mrb[158].mxu1 }
 0xe09   :  { %41683 = vst [vmem:[#allocation52_spill] sm:$0xff] %v37434_v47  ;;  %v37436_v20 = vpop.f32.mrb[159].mxu1 }
 0xe0a   :  { %41684 = vst [vmem:[#allocation53_spill] sm:$0xff] %v37436_v20  ;;  %v13688_v21 = vadd.f32 %v13687_v19, %v37436_v20 }
 0xe0c   :  { %v13689_v24 = vadd.f32 %v37429_v56, %v13688_v21 }
 0xe0e   :  { %v37440_v63 = vpop.f32.mrb[160].mxu1  ;;  %v13690_v34 = vadd.f32 %v37434_v47, %v13689_v24 }
 0xe0f   :  { %41685 = vst [vmem:[#allocation54_spill] sm:$0xff] %v37440_v63  ;;  %v37443_v55 = vpop.f32.mrb[161].mxu1 }
 0xe10   :  { %41686 = vst [vmem:[#allocation55_spill] sm:$0xff] %v37443_v55  ;;  %v13691_v29 = vadd.f32 %v13690_v34, %v37443_v55  ;;  %v37446_v9 = vpop.f32.mrb[162].mxu1 }
 0xe11   :  { %41687 = vst [vmem:[#allocation56_spill] sm:$0xff] %v37446_v9  ;;  %v37448_v38 = vpop.f32.mrb[163].mxu1 }
 0xe12   :  { %41688 = vst [vmem:[#allocation57_spill] sm:$0xff] %v37448_v38  ;;  %v13692_v11 = vadd.f32 %v13691_v29, %v37448_v38 }
 0xe14   :  { %v13693_v49 = vadd.f32 %v37440_v63, %v13692_v11 }
 0xe16   :  { %v37452_v14 = vpop.f32.mrb[164].mxu1  ;;  %v13694_v19 = vadd.f32 %v37446_v9, %v13693_v49 }
 0xe17   :  { %41689 = vst [vmem:[#allocation58_spill] sm:$0xff] %v37452_v14  ;;  %v37455_v21 = vpop.f32.mrb[165].mxu1 }
 0xe18   :  { %41690 = vst [vmem:[#allocation59_spill] sm:$0xff] %v37455_v21  ;;  %v13695_v24 = vadd.f32 %v13694_v19, %v37455_v21  ;;  %v37458_v47 = vpop.f32.mrb[166].mxu1 }
 0xe19   :  { %41691 = vst [vmem:[#allocation60_spill] sm:$0xff] %v37458_v47  ;;  %v37460_v56 = vpop.f32.mrb[167].mxu1 }
 0xe1a   :  { %41692 = vst [vmem:[#allocation61_spill] sm:$0xff] %v37460_v56  ;;  %v13696_v34 = vadd.f32 %v13695_v24, %v37460_v56 }
 0xe1c   :  { %v13697_v55 = vadd.f32 %v37452_v14, %v13696_v34 }
 0xe1e   :  { %v37464_v20 = vpop.f32.mrb[168].mxu1  ;;  %v13698_v29 = vadd.f32 %v37458_v47, %v13697_v55 }
 0xe1f   :  { %41693 = vst [vmem:[#allocation62_spill] sm:$0xff] %v37464_v20  ;;  %v37467_v11 = vpop.f32.mrb[169].mxu1 }
 0xe20   :  { %41694 = vst [vmem:[#allocation63_spill] sm:$0xff] %v37467_v11  ;;  %v13699_v49 = vadd.f32 %v13698_v29, %v37467_v11  ;;  %v37470_v9 = vpop.f32.mrb[170].mxu1 }
 0xe21   :  { %41695 = vst [vmem:[#allocation64_spill] sm:$0xff] %v37470_v9  ;;  %v37472_v63 = vpop.f32.mrb[171].mxu1 }
 0xe22   :  { %41696 = vst [vmem:[#allocation65_spill] sm:$0xff] %v37472_v63  ;;  %v13700_v19 = vadd.f32 %v13699_v49, %v37472_v63 }
 0xe24   :  { %v13701_v21 = vadd.f32 %v37464_v20, %v13700_v19 }
 0xe26   :  { %v29762_v38 = vpop.f32.mrb[236].mxu1  ;;  %v13702_v24 = vadd.f32 %v37470_v9, %v13701_v21 }
 0xe27   :  { %v12717_v34 = vpop.f32.mrb[237].mxu1 }
 0xe28   :  { %v29763_v14 = vpop.f32.mrb[238].mxu1 }
 0xe29   :  { %v12720_v56 = vpop.f32.mrb[239].mxu1 }
 0xe2e   :  { %v37477_v5 = vpop.f32.mrb[176].mxu1 }
 0xe2f   :  { %41697 = vst [vmem:[#allocation66_spill] sm:$0xff] %v37477_v5  ;;  %v37479_v55 = vpop.f32.mrb[177].mxu1 }
 0xe30   :  { %41698 = vst [vmem:[#allocation67_spill] sm:$0xff] %v37479_v55  ;;  %v13707_v29 = vadd.f32 %v13702_v24, %v37479_v55  ;;  %v37482_v11 = vpop.f32.mrb[178].mxu1 }
 0xe31   :  { %41699 = vst [vmem:[#allocation68_spill] sm:$0xff] %v37482_v11  ;;  %v37484_v47 = vpop.f32.mrb[179].mxu1 }
 0xe32   :  { %41700 = vst [vmem:[#allocation69_spill] sm:$0xff] %v37484_v47  ;;  %v13708_v49 = vadd.f32 %v13707_v29, %v37484_v47 }
 0xe34   :  { %v13709_v19 = vadd.f32 %v37477_v5, %v13708_v49 }
 0xe36   :  { %v37488_v38 = vpop.f32.mrb[180].mxu1  ;;  %v13710_v21 = vadd.f32 %v37482_v11, %v13709_v19 }
 0xe37   :  { %41701 = vst [vmem:[#allocation8_spill] sm:$0xff] %v37488_v38  ;;  %v37491_v14 = vpop.f32.mrb[181].mxu1 }
 0xe38   :  { %41702 = vst [vmem:[#allocation9_spill] sm:$0xff] %v37491_v14  ;;  %v13711_v56 = vadd.f32 %v13710_v21, %v37491_v14  ;;  %v37494_v34 = vpop.f32.mrb[182].mxu1 }
 0xe39   :  { %41703 = vst [vmem:[#allocation10_spill] sm:$0xff] %v37494_v34  ;;  %v37496_v9 = vpop.f32.mrb[183].mxu1 }
 0xe3a   :  { %41704 = vst [vmem:[#allocation16_spill] sm:$0xff] %v37496_v9  ;;  %v13712_v24 = vadd.f32 %v13711_v56, %v37496_v9 }
 0xe3c   :  { %v13713_v55 = vadd.f32 %v37488_v38, %v13712_v24 }
 0xe3e   :  { %v37500_v20 = vpop.f32.mrb[184].mxu1  ;;  %v13714_v29 = vadd.f32 %v37494_v34, %v13713_v55 }
 0xe3f   :  { %41705 = vst [vmem:[#allocation19_spill] sm:$0xff] %v37500_v20  ;;  %v37503_v49 = vpop.f32.mrb[185].mxu1 }
 0xe40   :  { %41706 = vst [vmem:[#allocation20_spill] sm:$0xff] %v37503_v49  ;;  %v13715_v19 = vadd.f32 %v13714_v29, %v37503_v49  ;;  %v37506_v11 = vpop.f32.mrb[186].mxu1 }
 0xe41   :  { %41707 = vst [vmem:[#allocation21_spill] sm:$0xff] %v37506_v11  ;;  %v37508_v5 = vpop.f32.mrb[187].mxu1 }
 0xe42   :  { %41708 = vst [vmem:[#allocation22_spill] sm:$0xff] %v37508_v5  ;;  %v13716_v21 = vadd.f32 %v13715_v19, %v37508_v5 }
 0xe44   :  { %v13717_v14 = vadd.f32 %v37500_v20, %v13716_v21 }
 0xe46   :  { %v37512_v47 = vpop.f32.mrb[188].mxu1  ;;  %v13718_v56 = vadd.f32 %v37506_v11, %v13717_v14 }
 0xe47   :  { %41709 = vst [vmem:[#allocation11_spill] sm:$0xff] %v37512_v47  ;;  %v37515_v24 = vpop.f32.mrb[189].mxu1 }
 0xe48   :  { %41710 = vst [vmem:[#allocation13_spill] sm:$0xff] %v37515_v24  ;;  %v13719_v55 = vadd.f32 %v13718_v56, %v37515_v24  ;;  %v37518_v34 = vpop.f32.mrb[190].mxu1 }
 0xe49   :  { %41711 = vst [vmem:[#allocation14_spill] sm:$0xff] %v37518_v34  ;;  %v37520_v38 = vpop.f32.mrb[191].mxu1 }
 0xe4a   :  { %41712 = vst [vmem:[#allocation17_spill] sm:$0xff] %v37520_v38  ;;  %v13720_v29 = vadd.f32 %v13719_v55, %v37520_v38 }
 0xe4c   :  { %v13721_v49 = vadd.f32 %v37512_v47, %v13720_v29 }
 0xe4e   :  { %v29782_v9 = vpop.f32.mrb[240].mxu1  ;;  %v13722_v19 = vadd.f32 %v37518_v34, %v13721_v49 }
 0xe4f   :  { %v12797_v21 = vpop.f32.mrb[241].mxu1 }
 0xe50   :  { %v29783_v20 = vpop.f32.mrb[242].mxu1 }
 0xe51   :  { %v12800_v5 = vpop.f32.mrb[243].mxu1 }
 0xe56   :  { %v37525_v63 = vpop.f32.mrb[196].mxu1 }
 0xe57   :  { %41713 = vst [vmem:[#allocation23_spill] sm:$0xff] %v37525_v63  ;;  %v37527_v14 = vpop.f32.mrb[197].mxu1 }
 0xe58   :  { %41714 = vst [vmem:[#allocation5_spill] sm:$0xff] %v37527_v14  ;;  %v13727_v56 = vadd.f32 %v13722_v19, %v37527_v14  ;;  %v37530_v24 = vpop.f32.mrb[198].mxu1 }
 0xe59   :  { %41715 = vst [vmem:[#allocation6_spill] sm:$0xff] %v37530_v24  ;;  %v37532_v11 = vpop.f32.mrb[199].mxu1 }
 0xe5a   :  { %41716 = vst [vmem:[#allocation7_spill] sm:$0xff] %v37532_v11  ;;  %v13728_v55 = vadd.f32 %v13727_v56, %v37532_v11 }
 0xe5c   :  { %v13729_v29 = vadd.f32 %v37525_v63, %v13728_v55 }
 0xe5e   :  { %v37536_v9 = vpop.f32.mrb[200].mxu1  ;;  %v13730_v49 = vadd.f32 %v37530_v24, %v13729_v29 }
 0xe5f   :  { %41717 = vst [vmem:[#allocation12_spill] sm:$0xff] %v37536_v9  ;;  %v37539_v20 = vpop.f32.mrb[201].mxu1 }
 0xe60   :  { %41718 = vst [vmem:[#allocation15_spill] sm:$0xff] %v37539_v20  ;;  %v13731_v5 = vadd.f32 %v13730_v49, %v37539_v20  ;;  %v37542_v21 = vpop.f32.mrb[202].mxu1 }
 0xe61   :  { %41719 = vst [vmem:[#allocation18_spill] sm:$0xff] %v37542_v21  ;;  %v37544_v34 = vpop.f32.mrb[203].mxu1 }
 0xe62   :  { %41720 = vst [vmem:[#allocation70_spill] sm:$0xff] %v37544_v34  ;;  %v13732_v19 = vadd.f32 %v13731_v5, %v37544_v34 }
 0xe64   :  { %v13733_v14 = vadd.f32 %v37536_v9, %v13732_v19 }
 0xe66   :  { %v37548_v47 = vpop.f32.mrb[204].mxu1  ;;  %v13734_v56 = vadd.f32 %v37542_v21, %v13733_v14 }
 0xe67   :  { %41721 = vst [vmem:[#allocation71_spill] sm:$0xff] %v37548_v47  ;;  %v37551_v55 = vpop.f32.mrb[205].mxu1 }
 0xe68   :  { %41722 = vst [vmem:[#allocation72_spill] sm:$0xff] %v37551_v55  ;;  %v13735_v29 = vadd.f32 %v13734_v56, %v37551_v55  ;;  %v37554_v24 = vpop.f32.mrb[206].mxu1 }
 0xe69   :  { %41723 = vst [vmem:[#allocation73_spill] sm:$0xff] %v37554_v24  ;;  %v37556_v63 = vpop.f32.mrb[207].mxu1 }
 0xe6a   :  { %41724 = vst [vmem:[#allocation74_spill] sm:$0xff] %v37556_v63  ;;  %v13736_v49 = vadd.f32 %v13735_v29, %v37556_v63 }
 0xe6c   :  { %v13737_v20 = vadd.f32 %v37548_v47, %v13736_v49 }
 0xe6e   :  { %v37560_v11 = vpop.f32.mrb[208].mxu1  ;;  %v13738_v5 = vadd.f32 %v37554_v24, %v13737_v20 }
 0xe6f   :  { %41725 = vst [vmem:[#allocation75_spill] sm:$0xff] %v37560_v11  ;;  %v37563_v19 = vpop.f32.mrb[209].mxu1 }
 0xe70   :  { %41726 = vst [vmem:[#allocation76_spill] sm:$0xff] %v37563_v19  ;;  %v13739_v14 = vadd.f32 %v13738_v5, %v37563_v19  ;;  %v37566_v21 = vpop.f32.mrb[210].mxu1 }
 0xe71   :  { %41727 = vst [vmem:[#allocation77_spill] sm:$0xff] %v37566_v21  ;;  %v37568_v9 = vpop.f32.mrb[211].mxu1 }
 0xe72   :  { %41728 = vst [vmem:[#allocation78_spill] sm:$0xff] %v37568_v9  ;;  %v13740_v56 = vadd.f32 %v13739_v14, %v37568_v9 }
 0xe74   :  { %v13741_v55 = vadd.f32 %v37560_v11, %v13740_v56 }
 0xe76   :  { %v29802_v34 = vpop.f32.mrb[244].mxu1  ;;  %v13742_v29 = vadd.f32 %v37566_v21, %v13741_v55 }
 0xe77   :  { %v12877_v49 = vpop.f32.mrb[245].mxu1 }
 0xe78   :  { %v29803_v47 = vpop.f32.mrb[246].mxu1 }
 0xe79   :  { %v12880_v63 = vpop.f32.mrb[247].mxu1 }
 0xe7e   :  { %v37573_v38 = vpop.f32.mrb[216].mxu1 }
 0xe7f   :  { %41729 = vst [vmem:[#allocation79_spill] sm:$0xff] %v37573_v38  ;;  %v37575_v20 = vpop.f32.mrb[217].mxu1 }
 0xe80   :  { %41730 = vst [vmem:[#allocation80_spill] sm:$0xff] %v37575_v20  ;;  %v13747_v5 = vadd.f32 %v13742_v29, %v37575_v20  ;;  %v37578_v19 = vpop.f32.mrb[218].mxu1 }
 0xe81   :  { %41731 = vst [vmem:[#allocation81_spill] sm:$0xff] %v37578_v19  ;;  %v37580_v24 = vpop.f32.mrb[219].mxu1 }
 0xe82   :  { %41732 = vst [vmem:[#allocation82_spill] sm:$0xff] %v37580_v24  ;;  %v13748_v14 = vadd.f32 %v13747_v5, %v37580_v24 }
 0xe84   :  { %v13749_v56 = vadd.f32 %v37573_v38, %v13748_v14 }
 0xe86   :  { %v37584_v34 = vpop.f32.mrb[220].mxu1  ;;  %v13750_v55 = vadd.f32 %v37578_v19, %v13749_v56 }
 0xe87   :  { %41733 = vst [vmem:[#allocation83_spill] sm:$0xff] %v37584_v34  ;;  %v37587_v47 = vpop.f32.mrb[221].mxu1 }
 0xe88   :  { %41734 = vst [vmem:[#allocation84_spill] sm:$0xff] %v37587_v47  ;;  %v13751_v63 = vadd.f32 %v13750_v55, %v37587_v47  ;;  %v37590_v49 = vpop.f32.mrb[222].mxu1 }
 0xe89   :  { %41735 = vst [vmem:[#allocation85_spill] sm:$0xff] %v37590_v49  ;;  %v37592_v21 = vpop.f32.mrb[223].mxu1 }
 0xe8a   :  { %41736 = vst [vmem:[#allocation86_spill] sm:$0xff] %v37592_v21  ;;  %v13752_v29 = vadd.f32 %v13751_v63, %v37592_v21 }
 0xe8c   :  { %v13753_v20 = vadd.f32 %v37584_v34, %v13752_v29 }
 0xe8e   :  { %v37596_v11 = vpop.f32.mrb[224].mxu1  ;;  %v13754_v5 = vadd.f32 %v37590_v49, %v13753_v20 }
 0xe8f   :  { %41737 = vst [vmem:[#allocation87_spill] sm:$0xff] %v37596_v11  ;;  %v37599_v14 = vpop.f32.mrb[225].mxu1 }
 0xe90   :  { %41738 = vst [vmem:[#allocation88_spill] sm:$0xff] %v37599_v14  ;;  %v13755_v56 = vadd.f32 %v13754_v5, %v37599_v14  ;;  %v37602_v19 = vpop.f32.mrb[226].mxu1 }
 0xe91   :  { %41739 = vst [vmem:[#allocation89_spill] sm:$0xff] %v37602_v19  ;;  %v37604_v38 = vpop.f32.mrb[227].mxu1 }
 0xe92   :  { %41740 = vst [vmem:[#allocation90_spill] sm:$0xff] %v37604_v38  ;;  %v13756_v55 = vadd.f32 %v13755_v56, %v37604_v38 }
 0xe94   :  { %v13757_v47 = vadd.f32 %v37596_v11, %v13756_v55 }
 0xe96   :  { %v37608_v24 = vpop.f32.mrb[228].mxu1  ;;  %v13758_v63 = vadd.f32 %v37602_v19, %v13757_v47 }
 0xe97   :  { %41741 = vst [vmem:[#allocation91_spill] sm:$0xff] %v37608_v24  ;;  %v37611_v29 = vpop.f32.mrb[229].mxu1 }
 0xe98   :  { %41742 = vst [vmem:[#allocation92_spill] sm:$0xff] %v37611_v29  ;;  %v13759_v20 = vadd.f32 %v13758_v63, %v37611_v29  ;;  %v37614_v49 = vpop.f32.mrb[230].mxu1 }
 0xe99   :  { %v37616_v34 = vpop.f32.mrb[231].mxu1 }
 0xe9a   :  { %v13760_v5 = vadd.f32 %v13759_v20, %v37616_v34 }
 0xe9c   :  { %v13761_v14 = vadd.f32 %v37608_v24, %v13760_v5 }
 0xe9e   :  { %v13762_v56 = vadd.f32 %v37614_v49, %v13761_v14 }
 0xea0   :  { %v13763_v38 = vrot.slane %v13762_v56, 4 }
 0xea2   :  { %v13764_v55 = vadd.f32 %v13763_v38, %v13762_v56 }
 0xea4   :  { %v13765_v11 = vrot.slane %v13764_v55, 2 }
 0xea6   :  { %v13766_v21 = vadd.f32 %v13765_v11, %v13764_v55 }
 0xea8   :  { %v13767_v9 = vrot.slane %v13766_v21, 1 }
 0xeaa   :  { %v13768_v47 = vadd.f32 %v13767_v9, %v13766_v21 }
 0xeac   :  { %v37621_v19 = vmul.f32 0.0009765625, %v13768_v47 }
 0xeae   :  { %v13770_v63 = vsub.f32 %v37216_v44, %v37621_v19  ;;  %v13771_v29 = vsub.f32 %v37220_v39, %v37621_v19  ;;  %v13772_v20 = vsub.f32 %v37214_v37, %v37621_v19  ;;  %v13773_v38 = vsub.f32 %v37218_v46, %v37621_v19 }
 0xeaf   :  { %v13774_v11 = vsub.f32 %v37230_v1, %v37621_v19  ;;  %v13775_v14 = vsub.f32 %v37235_v54, %v37621_v19  ;;  %v13776_v47 = vsub.f32 %v37228_v35, %v37621_v19  ;;  %v13778_v1 = vsub.f32 %v37244_v58, %v37621_v19 }
 0xeb0   :  { %v13926_v5 = vmul.f32 %v13770_v63, %v13770_v63  ;;  %v13927_v24 = vmul.f32 %v13771_v29, %v13771_v29  ;;  %v13928_v9 = vmul.f32 %v13772_v20, %v13772_v20  ;;  %v13929_v56 = vmul.f32 %v13773_v38, %v13773_v38 }
 0xeb1   :  { %v13930_v39 = vmul.f32 %v13774_v11, %v13774_v11  ;;  %v13777_v29 = vsub.f32 %v37233_v12, %v37621_v19  ;;  %v13931_v63 = vmul.f32 %v13775_v14, %v13775_v14  ;;  %v13932_v20 = vmul.f32 %v13776_v47, %v13776_v47 }
 0xeb2   :  { %v14082_v21 = vadd.f32 %v13927_v24, %v13926_v5  ;;  %v13779_v5 = vsub.f32 %v37249_v33, %v37621_v19  ;;  %v13934_v11 = vmul.f32 %v13778_v1, %v13778_v1 }
 0xeb3   :  { %v13933_v38 = vmul.f32 %v13777_v29, %v13777_v29 }
 0xeb4   :  { %v14083_v55 = vadd.f32 %v14082_v21, %v13928_v9  ;;  %v13780_v21 = vsub.f32 %v37242_v62, %v37621_v19  ;;  %v13935_v14 = vmul.f32 %v13779_v5, %v13779_v5 }
 0xeb6   :  { %v14084_v37 = vadd.f32 %v14083_v55, %v13929_v56  ;;  %v13781_v55 = vsub.f32 %v37247_v23, %v37621_v19  ;;  %v13936_v47 = vmul.f32 %v13780_v21, %v13780_v21 }
 0xeb8   :  { %v14085_v46 = vadd.f32 %v14084_v37, %v13930_v39  ;;  %v13782_v39 = vsub.f32 %v37258_v57, %v37621_v19  ;;  %v13937_v29 = vmul.f32 %v13781_v55, %v13781_v55 }
 0xeba   :  { %v14086_v24 = vadd.f32 %v14085_v46, %v13931_v63  ;;  %v13783_v63 = vsub.f32 %v37263_v4, %v37621_v19  ;;  %v13938_v1 = vmul.f32 %v13782_v39, %v13782_v39  ;;  %v13790_v39 = vsub.f32 %v37274_v17, %v37621_v19 }
 0xebc   :  { %v14087_v9 = vadd.f32 %v14086_v24, %v13932_v20  ;;  %v13784_v24 = vsub.f32 %v37256_v51, %v37621_v19  ;;  %v13939_v5 = vmul.f32 %v13783_v63, %v13783_v63  ;;  %v13791_v63 = vsub.f32 %v37279_v41, %v37621_v19 }
 0xebe   :  { %v14088_v56 = vadd.f32 %v14087_v9, %v13933_v38  ;;  %v13785_v9 = vsub.f32 %v37261_v48, %v37621_v19  ;;  %v13940_v57 = vmul.f32 %v13784_v24, %v13784_v24  ;;  %v13946_v24 = vmul.f32 %v13790_v39, %v13790_v39 }
 0xec0   :  { %v14089_v37 = vadd.f32 %v14088_v56, %v13934_v11  ;;  %v13786_v56 = vsub.f32 0.0, %v37621_v19 }
 0xec2   :  { %v14090_v46 = vadd.f32 %v14089_v37, %v13935_v14  ;;  %v13941_v14 = vmul.f32 %v13785_v9, %v13785_v9  ;;  %v37656_v23 = vmul.f32 %v13786_v56, %v13786_v56 }
 0xec4   :  { %v14091_v20 = vadd.f32 %v14090_v46, %v13936_v47 }
 0xec6   :  { %v14092_v38 = vadd.f32 %v14091_v20, %v13937_v29  ;;  %v13792_v20 = vsub.f32 %v37272_v7, %v37621_v19 }
 0xec8   :  { %v14093_v11 = vadd.f32 %v14092_v38, %v13938_v1  ;;  %v13793_v1 = vsub.f32 %v37277_v22, %v37621_v19  ;;  %v13947_v38 = vmul.f32 %v13791_v63, %v13791_v63 }
 0xeca   :  { %v14094_v21 = vadd.f32 %v14093_v11, %v13939_v5  ;;  %v13794_v5 = vsub.f32 %v37288_v43, %v37621_v19  ;;  %v13948_v11 = vmul.f32 %v13792_v20, %v13792_v20 }
 0xecc   :  { %v14095_v37 = vadd.f32 %v14094_v21, %v13940_v57  ;;  %v13795_v21 = vsub.f32 %v37293_v40, %v37621_v19 }
 0xece   :  { %v14096_v55 = vadd.f32 %v14095_v37, %v13941_v14  ;;  %v13949_v14 = vmul.f32 %v13793_v1, %v13793_v1  ;;  %v13951_v63 = vmul.f32 %v13795_v21, %v13795_v21 }
 0xed0   :  { %v14097_v47 = vadd.f32 %v14096_v55, %v37656_v23  ;;  %v13796_v55 = vsub.f32 %v37286_v30, %v37621_v19 }
 0xed2   :  { %v14098_v46 = vadd.f32 %v14097_v47, %v37656_v23  ;;  %v13950_v47 = vmul.f32 %v13794_v5, %v13794_v5  ;;  %v13952_v20 = vmul.f32 %v13796_v55, %v13796_v55 }
 0xed4   :  { %v14099_v29 = vadd.f32 %v14098_v46, %v37656_v23  ;;  %v13797_v46 = vsub.f32 %v37291_v50, %v37621_v19 }
 0xed6   :  { %v14100_v57 = vadd.f32 %v14099_v29, %v37656_v23  ;;  %v13953_v1 = vmul.f32 %v13797_v46, %v13797_v46 }
 0xed8   :  { %v14101_v9 = vadd.f32 %v14100_v57, %v13946_v24  ;;  %v13798_v24 = vsub.f32 %v37302_v13, %v37621_v19 }
 0xeda   :  { %v14102_v56 = vadd.f32 %v14101_v9, %v13947_v38  ;;  %v13799_v38 = vsub.f32 %v37307_v36, %v37621_v19  ;;  %v13954_v5 = vmul.f32 %v13798_v24, %v13798_v24 }
 0xedc   :  { %v14103_v37 = vadd.f32 %v14102_v56, %v13948_v11  ;;  %v13800_v11 = vsub.f32 %v37300_v27, %v37621_v19  ;;  %v13955_v21 = vmul.f32 %v13799_v38, %v13799_v38 }
 0xede   :  { %v14104_v39 = vadd.f32 %v14103_v37, %v13949_v14  ;;  %v13801_v14 = vsub.f32 %v37305_v8, %v37621_v19  ;;  %v13956_v55 = vmul.f32 %v13800_v11, %v13800_v11 }
 0xee0   :  { %v14105_v29 = vadd.f32 %v14104_v39, %v13950_v47  ;;  %v13802_v47 = vsub.f32 %v37316_v59, %v37621_v19  ;;  %v13957_v46 = vmul.f32 %v13801_v14, %v13801_v14  ;;  %v13810_v14 = vsub.f32 %v37332_v10, %v37621_v19 }
 0xee2   :  { %v14106_v57 = vadd.f32 %v14105_v29, %v13951_v63  ;;  %v13803_v63 = vsub.f32 %v37321_v60, %v37621_v19  ;;  %v13958_v24 = vmul.f32 %v13802_v47, %v13802_v47  ;;  %v13811_v47 = vsub.f32 %v37337_v45, %v37621_v19 }
 0xee4   :  { %v14107_v9 = vadd.f32 %v14106_v57, %v13952_v20  ;;  %v13804_v20 = vsub.f32 %v37314_v53, %v37621_v19  ;;  %v13959_v38 = vmul.f32 %v13803_v63, %v13803_v63  ;;  %v13812_v63 = vsub.f32 %v37330_v28, %v37621_v19 }
 0xee6   :  { %v14108_v56 = vadd.f32 %v14107_v9, %v13953_v1  ;;  %v13805_v1 = vsub.f32 %v37319_v2, %v37621_v19 }
 0xee8   :  { %v14109_v37 = vadd.f32 %v14108_v56, %v13954_v5  ;;  %v13960_v5 = vmul.f32 %v13804_v20, %v13804_v20  ;;  %v13961_v59 = vmul.f32 %v13805_v1, %v13805_v1  ;;  %v13967_v20 = vmul.f32 %v13811_v47, %v13811_v47 }
 0xee9   :  { %v13968_v1 = vmul.f32 %v13812_v63, %v13812_v63 }
 0xeea   :  { %v14110_v39 = vadd.f32 %v14109_v37, %v13955_v21 }
 0xeec   :  { %v14111_v29 = vadd.f32 %v14110_v39, %v13956_v55 }
 0xeee   :  { %v14112_v57 = vadd.f32 %v14111_v29, %v13957_v46  ;;  %v13966_v46 = vmul.f32 %v13810_v14, %v13810_v14  ;;  %v13817_v14 = vsub.f32 %v37349_v31, %v37621_v19 }
 0xef0   :  { %v14113_v9 = vadd.f32 %v14112_v57, %v13958_v24  ;;  %v13814_v57 = vsub.f32 %v37346_v0, %v37621_v19 }
 0xef2   :  { %v14114_v56 = vadd.f32 %v14113_v9, %v13959_v38  ;;  %v13815_v9 = vsub.f32 %v37351_v16, %v37621_v19 }
 0xef4   :  { %v14115_v11 = vadd.f32 %v14114_v56, %v13960_v5 }
 0xef6   :  { %v14116_v21 = vadd.f32 %v14115_v11, %v13961_v59  ;;  %v13813_v59 = vsub.f32 %v37335_v26, %v37621_v19  ;;  %v13816_v11 = vsub.f32 %v37344_v3, %v37621_v19 }
 0xef8   :  { %v14117_v37 = vadd.f32 %v14116_v21, %v37656_v23  ;;  %v13969_v5 = vmul.f32 %v13813_v59, %v13813_v59  ;;  %v13970_v21 = vmul.f32 %v13814_v57, %v13814_v57  ;;  %v13972_v63 = vmul.f32 %v13816_v11, %v13816_v11 }
 0xef9   :  { %v13973_v59 = vmul.f32 %v13817_v14, %v13817_v14 }
 0xefa   :  { %v14118_v55 = vadd.f32 %v14117_v37, %v37656_v23 }
 0xefc   :  { %v14119_v39 = vadd.f32 %v14118_v55, %v37656_v23  ;;  %v13971_v55 = vmul.f32 %v13815_v9, %v13815_v9 }
 0xefe   :  { %v14120_v29 = vadd.f32 %v14119_v39, %v37656_v23  ;;  %v13818_v39 = vsub.f32 %v37359_v25, %v37621_v19 }
 0xf00   :  { %v14121_v24 = vadd.f32 %v14120_v29, %v13966_v46  ;;  %v13819_v29 = vsub.f32 %v37364_v6, %v37621_v19  ;;  %v13974_v57 = vmul.f32 %v13818_v39, %v13818_v39 }
 0xf02   :  { %v14122_v38 = vadd.f32 %v14121_v24, %v13967_v20  ;;  %v13820_v24 = vsub.f32 %v37357_v42, %v37621_v19  ;;  %v13975_v9 = vmul.f32 %v13819_v29, %v13819_v29 }
 0xf04   :  { %v14123_v56 = vadd.f32 %v14122_v38, %v13968_v1  ;;  %v13821_v38 = vsub.f32 %v37362_v52, %v37621_v19  ;;  %v13976_v11 = vmul.f32 %v13820_v24, %v13820_v24 }
 0xf06   :  { %v14124_v37 = vadd.f32 %v14123_v56, %v13969_v5  ;;  %v13822_v56 = vsub.f32 %v37371_v18, %v37621_v19  ;;  %v13977_v14 = vmul.f32 %v13821_v38, %v13821_v38  ;;  %v41743_v38 = vld [vmem:[#allocation35_spill] sm:$0xff] }
 0xf08   :  { %v14125_v47 = vadd.f32 %v14124_v37, %v13970_v21  ;;  %v13823_v37 = vsub.f32 %v37376_v15, %v37621_v19  ;;  %v13978_v39 = vmul.f32 %v13822_v56, %v13822_v56  ;;  %v41744_v56 = vld [vmem:[#allocation37_spill] sm:$0xff] }
 0xf0a   :  { %v14126_v46 = vadd.f32 %v14125_v47, %v13971_v55  ;;  %v13824_v47 = vsub.f32 %v37369_v61, %v37621_v19  ;;  %v13979_v29 = vmul.f32 %v13823_v37, %v13823_v37  ;;  %v41745_v37 = vld [vmem:[#allocation34_spill] sm:$0xff]  ;;  %v41750_v61 = vld [vmem:[#allocation40_spill] sm:$0xff] }
 0xf0c   :  { %v14127_v20 = vadd.f32 %v14126_v46, %v13972_v63  ;;  %v13825_v46 = vsub.f32 %v37374_v32, %v37621_v19 }
 0xf0e   :  { %v14128_v1 = vadd.f32 %v14127_v20, %v13973_v59  ;;  %v13980_v20 = vmul.f32 %v13824_v47, %v13824_v47 }
 0xf10   :  { %v14129_v5 = vadd.f32 %v14128_v1, %v13974_v57  ;;  %v13981_v1 = vmul.f32 %v13825_v46, %v13825_v46  ;;  %v41746_v46 = vld [vmem:[#allocation36_spill] sm:$0xff] }
 0xf12   :  { %v14130_v21 = vadd.f32 %v14129_v5, %v13975_v9 }
 0xf14   :  { %v14131_v55 = vadd.f32 %v14130_v21, %v13976_v11  ;;  %v13830_v11 = vsub.f32 %v41743_v38, %v37621_v19 }
 0xf16   :  { %v14132_v63 = vadd.f32 %v14131_v55, %v13977_v14  ;;  %v13831_v14 = vsub.f32 %v41744_v56, %v37621_v19  ;;  %v13986_v47 = vmul.f32 %v13830_v11, %v13830_v11 }
 0xf18   :  { %v14133_v59 = vadd.f32 %v14132_v63, %v13978_v39  ;;  %v13832_v39 = vsub.f32 %v41745_v37, %v37621_v19  ;;  %v41749_v37 = vld [vmem:[#allocation38_spill] sm:$0xff] }
 0xf19   :  { %v13836_v11 = vsub.f32 %v41749_v37, %v37621_v19 }
 0xf1a   :  { %v14134_v57 = vadd.f32 %v14133_v59, %v13979_v29  ;;  %v13833_v29 = vsub.f32 %v41746_v46, %v37621_v19  ;;  %v13987_v59 = vmul.f32 %v13831_v14, %v13831_v14  ;;  %v13837_v46 = vsub.f32 %v41750_v61, %v37621_v19 }
 0xf1c   :  { %v14135_v24 = vadd.f32 %v14134_v57, %v13980_v20  ;;  %v41747_v57 = vld [vmem:[#allocation39_spill] sm:$0xff] }
 0xf1e   :  { %v14136_v9 = vadd.f32 %v14135_v24, %v13981_v1  ;;  %v13834_v1 = vsub.f32 %v41747_v57, %v37621_v19  ;;  %v13988_v24 = vmul.f32 %v13832_v39, %v13832_v39  ;;  %v13992_v39 = vmul.f32 %v13836_v11, %v13836_v11 }
 0xf20   :  { %v14137_v5 = vadd.f32 %v14136_v9, %v37656_v23  ;;  %v13990_v32 = vmul.f32 %v13834_v1, %v13834_v1 }
 0xf22   :  { %v14138_v21 = vadd.f32 %v14137_v5, %v37656_v23  ;;  %v41748_v5 = vld [vmem:[#allocation41_spill] sm:$0xff] }
 0xf23   :  { %v13835_v56 = vsub.f32 %v41748_v5, %v37621_v19 }
 0xf24   :  { %v14139_v55 = vadd.f32 %v14138_v21, %v37656_v23  ;;  %v13989_v21 = vmul.f32 %v13833_v29, %v13833_v29  ;;  %v13993_v29 = vmul.f32 %v13837_v46, %v13837_v46 }
 0xf25   :  { %v13991_v14 = vmul.f32 %v13835_v56, %v13835_v56 }
 0xf26   :  { %v14140_v63 = vadd.f32 %v14139_v55, %v37656_v23 }
 0xf28   :  { %v14141_v20 = vadd.f32 %v14140_v63, %v13986_v47  ;;  %v41751_v63 = vld [vmem:[#allocation43_spill] sm:$0xff] }
 0xf29   :  { %v13838_v57 = vsub.f32 %v41751_v63, %v37621_v19 }
 0xf2a   :  { %v14142_v9 = vadd.f32 %v14141_v20, %v13987_v59  ;;  %v41752_v20 = vld [vmem:[#allocation45_spill] sm:$0xff] }
 0xf2b   :  { %v13839_v5 = vsub.f32 %v41752_v20, %v37621_v19  ;;  %v13994_v1 = vmul.f32 %v13838_v57, %v13838_v57 }
 0xf2c   :  { %v14143_v38 = vadd.f32 %v14142_v9, %v13988_v24  ;;  %v41753_v9 = vld [vmem:[#allocation42_spill] sm:$0xff] }
 0xf2d   :  { %v13840_v37 = vsub.f32 %v41753_v9, %v37621_v19  ;;  %v13995_v56 = vmul.f32 %v13839_v5, %v13839_v5 }
 0xf2e   :  { %v14144_v55 = vadd.f32 %v14143_v38, %v13989_v21  ;;  %v41754_v21 = vld [vmem:[#allocation44_spill] sm:$0xff] }
 0xf2f   :  { %v13841_v61 = vsub.f32 %v41754_v21, %v37621_v19  ;;  %v13996_v11 = vmul.f32 %v13840_v37, %v13840_v37 }
 0xf30   :  { %v14145_v47 = vadd.f32 %v14144_v55, %v13990_v32  ;;  %v41755_v55 = vld [vmem:[#allocation47_spill] sm:$0xff] }
 0xf31   :  { %v13842_v63 = vsub.f32 %v41755_v55, %v37621_v19  ;;  %v13997_v46 = vmul.f32 %v13841_v61, %v13841_v61  ;;  %v41759_v61 = vld [vmem:[#allocation51_spill] sm:$0xff] }
 0xf32   :  { %v14146_v59 = vadd.f32 %v14145_v47, %v13991_v14  ;;  %v41756_v47 = vld [vmem:[#allocation49_spill] sm:$0xff] }
 0xf33   :  { %v13843_v20 = vsub.f32 %v41756_v47, %v37621_v19  ;;  %v13998_v57 = vmul.f32 %v13842_v63, %v13842_v63  ;;  %v41760_v63 = vld [vmem:[#allocation53_spill] sm:$0xff] }
 0xf34   :  { %v14147_v24 = vadd.f32 %v14146_v59, %v13992_v39  ;;  %v41757_v59 = vld [vmem:[#allocation46_spill] sm:$0xff] }
 0xf35   :  { %v13844_v9 = vsub.f32 %v41757_v59, %v37621_v19  ;;  %v13999_v5 = vmul.f32 %v13843_v20, %v13843_v20  ;;  %v41761_v20 = vld [vmem:[#allocation50_spill] sm:$0xff]  ;;  %v41766_v59 = vld [vmem:[#allocation56_spill] sm:$0xff] }
 0xf36   :  { %v14148_v38 = vadd.f32 %v14147_v24, %v13993_v29  ;;  %v41758_v24 = vld [vmem:[#allocation48_spill] sm:$0xff] }
 0xf37   :  { %v13845_v21 = vsub.f32 %v41758_v24, %v37621_v19 }
 0xf38   :  { %v14149_v32 = vadd.f32 %v14148_v38, %v13994_v1  ;;  %v14000_v38 = vmul.f32 %v13844_v9, %v13844_v9 }
 0xf39   :  { %v14001_v55 = vmul.f32 %v13845_v21, %v13845_v21 }
 0xf3a   :  { %v14150_v14 = vadd.f32 %v14149_v32, %v13995_v56 }
 0xf3c   :  { %v14151_v39 = vadd.f32 %v14150_v14, %v13996_v11  ;;  %v13850_v11 = vsub.f32 %v41759_v61, %v37621_v19 }
 0xf3e   :  { %v14152_v29 = vadd.f32 %v14151_v39, %v13997_v46  ;;  %v13851_v46 = vsub.f32 %v41760_v63, %v37621_v19  ;;  %v14006_v9 = vmul.f32 %v13850_v11, %v13850_v11 }
 0xf40   :  { %v14153_v1 = vadd.f32 %v14152_v29, %v13998_v57  ;;  %v13852_v57 = vsub.f32 %v41761_v20, %v37621_v19  ;;  %v14007_v29 = vmul.f32 %v13851_v46, %v13851_v46  ;;  %v41765_v20 = vld [vmem:[#allocation54_spill] sm:$0xff] }
 0xf41   :  { %v13856_v11 = vsub.f32 %v41765_v20, %v37621_v19 }
 0xf42   :  { %v14154_v15 = vadd.f32 %v14153_v1, %v13999_v5  ;;  %v41763_v1 = vld [vmem:[#allocation55_spill] sm:$0xff] }
 0xf44   :  { %v14155_v37 = vadd.f32 %v14154_v15, %v14000_v38  ;;  %v41762_v15 = vld [vmem:[#allocation52_spill] sm:$0xff]  ;;  %v13854_v38 = vsub.f32 %v41763_v1, %v37621_v19 }
 0xf46   :  { %v14156_v56 = vadd.f32 %v14155_v37, %v14001_v55  ;;  %v13853_v55 = vsub.f32 %v41762_v15, %v37621_v19  ;;  %v14008_v37 = vmul.f32 %v13852_v57, %v13852_v57  ;;  %v14010_v24 = vmul.f32 %v13854_v38, %v13854_v38 }
 0xf47   :  { %v13857_v15 = vsub.f32 %v41766_v59, %v37621_v19  ;;  %v14012_v57 = vmul.f32 %v13856_v11, %v13856_v11 }
 0xf48   :  { %v14157_v32 = vadd.f32 %v14156_v56, %v37656_v23 }
 0xf4a   :  { %v14158_v14 = vadd.f32 %v14157_v32, %v37656_v23  ;;  %v41764_v32 = vld [vmem:[#allocation57_spill] sm:$0xff] }
 0xf4b   :  { %v13855_v63 = vsub.f32 %v41764_v32, %v37621_v19 }
 0xf4c   :  { %v14159_v39 = vadd.f32 %v14158_v14, %v37656_v23  ;;  %v14009_v14 = vmul.f32 %v13853_v55, %v13853_v55  ;;  %v14013_v55 = vmul.f32 %v13857_v15, %v13857_v15 }
 0xf4d   :  { %v14011_v46 = vmul.f32 %v13855_v63, %v13855_v63 }
 0xf4e   :  { %v14160_v21 = vadd.f32 %v14159_v39, %v37656_v23 }
 0xf50   :  { %v14161_v5 = vadd.f32 %v14160_v21, %v14006_v9  ;;  %v41767_v21 = vld [vmem:[#allocation59_spill] sm:$0xff] }
 0xf51   :  { %v13858_v1 = vsub.f32 %v41767_v21, %v37621_v19 }
 0xf52   :  { %v14162_v56 = vadd.f32 %v14161_v5, %v14007_v29  ;;  %v41768_v5 = vld [vmem:[#allocation61_spill] sm:$0xff] }
 0xf53   :  { %v13859_v32 = vsub.f32 %v41768_v5, %v37621_v19  ;;  %v14014_v38 = vmul.f32 %v13858_v1, %v13858_v1 }
 0xf54   :  { %v14163_v61 = vadd.f32 %v14162_v56, %v14008_v37  ;;  %v41769_v56 = vld [vmem:[#allocation58_spill] sm:$0xff] }
 0xf55   :  { %v13860_v20 = vsub.f32 %v41769_v56, %v37621_v19  ;;  %v14015_v63 = vmul.f32 %v13859_v32, %v13859_v32 }
 0xf56   :  { %v14164_v39 = vadd.f32 %v14163_v61, %v14009_v14  ;;  %v41770_v14 = vld [vmem:[#allocation60_spill] sm:$0xff] }
 0xf57   :  { %v13861_v59 = vsub.f32 %v41770_v14, %v37621_v19  ;;  %v14016_v11 = vmul.f32 %v13860_v20, %v13860_v20 }
 0xf58   :  { %v14165_v9 = vadd.f32 %v14164_v39, %v14010_v24  ;;  %v41771_v39 = vld [vmem:[#allocation63_spill] sm:$0xff] }
 0xf59   :  { %v13862_v21 = vsub.f32 %v41771_v39, %v37621_v19  ;;  %v14017_v15 = vmul.f32 %v13861_v59, %v13861_v59  ;;  %v41775_v59 = vld [vmem:[#allocation67_spill] sm:$0xff] }
 0xf5a   :  { %v14166_v29 = vadd.f32 %v14165_v9, %v14011_v46  ;;  %v41772_v9 = vld [vmem:[#allocation65_spill] sm:$0xff] }
 0xf5b   :  { %v13863_v5 = vsub.f32 %v41772_v9, %v37621_v19  ;;  %v14018_v1 = vmul.f32 %v13862_v21, %v13862_v21  ;;  %v41776_v21 = vld [vmem:[#allocation69_spill] sm:$0xff] }
 0xf5c   :  { %v14167_v37 = vadd.f32 %v14166_v29, %v14012_v57  ;;  %v41773_v29 = vld [vmem:[#allocation62_spill] sm:$0xff] }
 0xf5d   :  { %v13864_v56 = vsub.f32 %v41773_v29, %v37621_v19  ;;  %v14019_v32 = vmul.f32 %v13863_v5, %v13863_v5  ;;  %v41777_v5 = vld [vmem:[#allocation66_spill] sm:$0xff] }
 0xf5e   :  { %v14168_v61 = vadd.f32 %v14167_v37, %v14013_v55  ;;  %v41774_v37 = vld [vmem:[#allocation64_spill] sm:$0xff]  ;;  %v41782_v29 = vld [vmem:[#allocation10_spill] sm:$0xff] }
 0xf5f   :  { %v13865_v14 = vsub.f32 %v41774_v37, %v37621_v19 }
 0xf60   :  { %v14169_v24 = vadd.f32 %v14168_v61, %v14014_v38  ;;  %v14020_v61 = vmul.f32 %v13864_v56, %v13864_v56 }
 0xf61   :  { %v14021_v39 = vmul.f32 %v13865_v14, %v13865_v14 }
 0xf62   :  { %v14170_v46 = vadd.f32 %v14169_v24, %v14015_v63 }
 0xf64   :  { %v14171_v57 = vadd.f32 %v14170_v46, %v14016_v11  ;;  %v13870_v11 = vsub.f32 %v41775_v59, %v37621_v19 }
 0xf66   :  { %v14172_v55 = vadd.f32 %v14171_v57, %v14017_v15  ;;  %v13871_v15 = vsub.f32 %v41776_v21, %v37621_v19  ;;  %v14026_v56 = vmul.f32 %v13870_v11, %v13870_v11 }
 0xf68   :  { %v14173_v38 = vadd.f32 %v14172_v55, %v14018_v1  ;;  %v13872_v1 = vsub.f32 %v41777_v5, %v37621_v19  ;;  %v14027_v55 = vmul.f32 %v13871_v15, %v13871_v15  ;;  %v41781_v5 = vld [vmem:[#allocation8_spill] sm:$0xff] }
 0xf69   :  { %v13876_v11 = vsub.f32 %v41781_v5, %v37621_v19 }
 0xf6a   :  { %v14174_v47 = vadd.f32 %v14173_v38, %v14019_v32  ;;  %v41779_v38 = vld [vmem:[#allocation9_spill] sm:$0xff] }
 0xf6c   :  { %v14175_v20 = vadd.f32 %v14174_v47, %v14020_v61  ;;  %v41778_v47 = vld [vmem:[#allocation68_spill] sm:$0xff]  ;;  %v13874_v61 = vsub.f32 %v41779_v38, %v37621_v19 }
 0xf6e   :  { %v14176_v63 = vadd.f32 %v14175_v20, %v14021_v39  ;;  %v13873_v39 = vsub.f32 %v41778_v47, %v37621_v19  ;;  %v14028_v20 = vmul.f32 %v13872_v1, %v13872_v1  ;;  %v14030_v37 = vmul.f32 %v13874_v61, %v13874_v61 }
 0xf6f   :  { %v13877_v47 = vsub.f32 %v41782_v29, %v37621_v19  ;;  %v14032_v1 = vmul.f32 %v13876_v11, %v13876_v11 }
 0xf70   :  { %v14177_v24 = vadd.f32 %v14176_v63, %v37656_v23 }
 0xf72   :  { %v14178_v46 = vadd.f32 %v14177_v24, %v37656_v23  ;;  %v41780_v24 = vld [vmem:[#allocation16_spill] sm:$0xff] }
 0xf73   :  { %v13875_v21 = vsub.f32 %v41780_v24, %v37621_v19 }
 0xf74   :  { %v14179_v57 = vadd.f32 %v14178_v46, %v37656_v23  ;;  %v14029_v46 = vmul.f32 %v13873_v39, %v13873_v39  ;;  %v14033_v39 = vmul.f32 %v13877_v47, %v13877_v47 }
 0xf75   :  { %v14031_v15 = vmul.f32 %v13875_v21, %v13875_v21 }
 0xf76   :  { %v14180_v14 = vadd.f32 %v14179_v57, %v37656_v23 }
 0xf78   :  { %v14181_v32 = vadd.f32 %v14180_v14, %v14026_v56  ;;  %v41783_v14 = vld [vmem:[#allocation20_spill] sm:$0xff] }
 0xf79   :  { %v13878_v38 = vsub.f32 %v41783_v14, %v37621_v19 }
 0xf7a   :  { %v14182_v63 = vadd.f32 %v14181_v32, %v14027_v55  ;;  %v41784_v32 = vld [vmem:[#allocation22_spill] sm:$0xff] }
 0xf7b   :  { %v13879_v24 = vsub.f32 %v41784_v32, %v37621_v19  ;;  %v14034_v61 = vmul.f32 %v13878_v38, %v13878_v38 }
 0xf7c   :  { %v14183_v59 = vadd.f32 %v14182_v63, %v14028_v20  ;;  %v41785_v63 = vld [vmem:[#allocation19_spill] sm:$0xff] }
 0xf7d   :  { %v13880_v5 = vsub.f32 %v41785_v63, %v37621_v19  ;;  %v14035_v21 = vmul.f32 %v13879_v24, %v13879_v24 }
 0xf7e   :  { %v14184_v57 = vadd.f32 %v14183_v59, %v14029_v46  ;;  %v41786_v46 = vld [vmem:[#allocation21_spill] sm:$0xff] }
 0xf7f   :  { %v13881_v29 = vsub.f32 %v41786_v46, %v37621_v19  ;;  %v14036_v11 = vmul.f32 %v13880_v5, %v13880_v5 }
 0xf80   :  { %v14185_v56 = vadd.f32 %v14184_v57, %v14030_v37  ;;  %v41787_v57 = vld [vmem:[#allocation13_spill] sm:$0xff] }
 0xf81   :  { %v13882_v14 = vsub.f32 %v41787_v57, %v37621_v19  ;;  %v14037_v47 = vmul.f32 %v13881_v29, %v13881_v29  ;;  %v41791_v29 = vld [vmem:[#allocation5_spill] sm:$0xff] }
 0xf82   :  { %v14186_v55 = vadd.f32 %v14185_v56, %v14031_v15  ;;  %v41788_v56 = vld [vmem:[#allocation17_spill] sm:$0xff] }
 0xf83   :  { %v13883_v32 = vsub.f32 %v41788_v56, %v37621_v19  ;;  %v14038_v38 = vmul.f32 %v13882_v14, %v13882_v14  ;;  %v41792_v14 = vld [vmem:[#allocation7_spill] sm:$0xff] }
 0xf84   :  { %v14187_v20 = vadd.f32 %v14186_v55, %v14032_v1  ;;  %v41789_v55 = vld [vmem:[#allocation11_spill] sm:$0xff] }
 0xf85   :  { %v13884_v63 = vsub.f32 %v41789_v55, %v37621_v19  ;;  %v14039_v24 = vmul.f32 %v13883_v32, %v13883_v32  ;;  %v41793_v32 = vld [vmem:[#allocation23_spill] sm:$0xff]  ;;  %v41798_v55 = vld [vmem:[#allocation18_spill] sm:$0xff] }
 0xf86   :  { %v14188_v59 = vadd.f32 %v14187_v20, %v14033_v39  ;;  %v41790_v20 = vld [vmem:[#allocation14_spill] sm:$0xff] }
 0xf87   :  { %v13885_v46 = vsub.f32 %v41790_v20, %v37621_v19 }
 0xf88   :  { %v14189_v37 = vadd.f32 %v14188_v59, %v14034_v61  ;;  %v14040_v59 = vmul.f32 %v13884_v63, %v13884_v63 }
 0xf89   :  { %v14041_v57 = vmul.f32 %v13885_v46, %v13885_v46 }
 0xf8a   :  { %v14190_v15 = vadd.f32 %v14189_v37, %v14035_v21 }
 0xf8c   :  { %v14191_v1 = vadd.f32 %v14190_v15, %v14036_v11  ;;  %v13890_v11 = vsub.f32 %v41791_v29, %v37621_v19 }
 0xf8e   :  { %v14192_v39 = vadd.f32 %v14191_v1, %v14037_v47  ;;  %v13891_v47 = vsub.f32 %v41792_v14, %v37621_v19  ;;  %v14046_v63 = vmul.f32 %v13890_v11, %v13890_v11 }
 0xf90   :  { %v14193_v61 = vadd.f32 %v14192_v39, %v14038_v38  ;;  %v13892_v38 = vsub.f32 %v41793_v32, %v37621_v19  ;;  %v14047_v39 = vmul.f32 %v13891_v47, %v13891_v47  ;;  %v41797_v32 = vld [vmem:[#allocation12_spill] sm:$0xff] }
 0xf91   :  { %v13896_v11 = vsub.f32 %v41797_v32, %v37621_v19 }
 0xf92   :  { %v14194_v9 = vadd.f32 %v14193_v61, %v14039_v24  ;;  %v41795_v61 = vld [vmem:[#allocation15_spill] sm:$0xff] }
 0xf94   :  { %v14195_v5 = vadd.f32 %v14194_v9, %v14040_v59  ;;  %v41794_v9 = vld [vmem:[#allocation6_spill] sm:$0xff]  ;;  %v13894_v59 = vsub.f32 %v41795_v61, %v37621_v19 }
 0xf96   :  { %v14196_v21 = vadd.f32 %v14195_v5, %v14041_v57  ;;  %v13893_v57 = vsub.f32 %v41794_v9, %v37621_v19  ;;  %v14048_v5 = vmul.f32 %v13892_v38, %v13892_v38  ;;  %v14050_v20 = vmul.f32 %v13894_v59, %v13894_v59 }
 0xf97   :  { %v13897_v9 = vsub.f32 %v41798_v55, %v37621_v19  ;;  %v14052_v38 = vmul.f32 %v13896_v11, %v13896_v11 }
 0xf98   :  { %v14197_v37 = vadd.f32 %v14196_v21, %v37656_v23 }
 0xf9a   :  { %v14198_v15 = vadd.f32 %v14197_v37, %v37656_v23  ;;  %v41796_v37 = vld [vmem:[#allocation70_spill] sm:$0xff] }
 0xf9b   :  { %v13895_v14 = vsub.f32 %v41796_v37, %v37621_v19 }
 0xf9c   :  { %v14199_v1 = vadd.f32 %v14198_v15, %v37656_v23  ;;  %v14049_v15 = vmul.f32 %v13893_v57, %v13893_v57  ;;  %v14053_v57 = vmul.f32 %v13897_v9, %v13897_v9  ;;  %v34045_v9 = vld [vmem:[%s41064_s6] sm:$0xff]  }
 0xf9d   :  { %v14051_v47 = vmul.f32 %v13895_v14, %v13895_v14  ;;  %29820 = vmatprep.subr.bf16.mxu0 %v34045_v9 }
 0xf9e   :  { %v14200_v46 = vadd.f32 %v14199_v1, %v37656_v23  ;;  %29821 = vmatpush3.bf16.msra.mxu0 %v34045_v9 }
 0xfa0   :  { %v14201_v24 = vadd.f32 %v14200_v46, %v14046_v63  ;;  %v41799_v46 = vld [vmem:[#allocation72_spill] sm:$0xff] }
 0xfa1   :  { %v13898_v61 = vsub.f32 %v41799_v46, %v37621_v19 }
 0xfa2   :  { %v14202_v21 = vadd.f32 %v14201_v24, %v14047_v39  ;;  %v41800_v24 = vld [vmem:[#allocation74_spill] sm:$0xff] }
 0xfa3   :  { %v13899_v37 = vsub.f32 %v41800_v24, %v37621_v19  ;;  %v14054_v59 = vmul.f32 %v13898_v61, %v13898_v61 }
 0xfa4   :  { %v14203_v29 = vadd.f32 %v14202_v21, %v14048_v5  ;;  %v41801_v21 = vld [vmem:[#allocation71_spill] sm:$0xff] }
 0xfa5   :  { %v13900_v32 = vsub.f32 %v41801_v21, %v37621_v19  ;;  %v14055_v14 = vmul.f32 %v13899_v37, %v13899_v37 }
 0xfa6   :  { %v14204_v1 = vadd.f32 %v14203_v29, %v14049_v15  ;;  %v41802_v15 = vld [vmem:[#allocation73_spill] sm:$0xff] }
 0xfa7   :  { %v13901_v55 = vsub.f32 %v41802_v15, %v37621_v19  ;;  %v14056_v11 = vmul.f32 %v13900_v32, %v13900_v32  ;;  %v34046_v32 = vld [vmem:[%s41064_s6 + $0x8] sm:$0xff]  }
 0xfa8   :  { %v14205_v63 = vadd.f32 %v14204_v1, %v14050_v20  ;;  %v41803_v1 = vld [vmem:[#allocation76_spill] sm:$0xff]  ;;  %29822 = vmatprep.subr.bf16.mxu0 %v34046_v32 }
 0xfa9   :  { %v13902_v46 = vsub.f32 %v41803_v1, %v37621_v19  ;;  %29823 = vmatpush3.bf16.msra.mxu0 %v34046_v32 }
 0xfaa   :  { %v14206_v39 = vadd.f32 %v14205_v63, %v14051_v47  ;;  %v41804_v63 = vld [vmem:[#allocation78_spill] sm:$0xff] }
 0xfab   :  { %v14058_v37 = vmul.f32 %v13902_v46, %v13902_v46 }
 0xfac   :  { %v14207_v5 = vadd.f32 %v14206_v39, %v14052_v38  ;;  %v13903_v38 = vsub.f32 %v41804_v63, %v37621_v19  ;;  %v14057_v39 = vmul.f32 %v13901_v55, %v13901_v55 }
 0xfae   :  { %v14208_v29 = vadd.f32 %v14207_v5, %v14053_v57  ;;  %v41805_v57 = vld [vmem:[#allocation75_spill] sm:$0xff] }
 0xfaf   :  { %v13904_v5 = vsub.f32 %v41805_v57, %v37621_v19  ;;  %v41818_v57 = vld [vmem:[#allocation87_spill] sm:$0xff] }
 0xfb0   :  { %v14209_v20 = vadd.f32 %v14208_v29, %v14054_v59  ;;  %v41806_v29 = vld [vmem:[#allocation77_spill] sm:$0xff]  ;;  %v13920_v15 = vsub.f32 %v41818_v57, %v37621_v19 }
 0xfb1   :  { %v14060_v63 = vmul.f32 %v13904_v5, %v13904_v5 }
 0xfb2   :  { %v14210_v47 = vadd.f32 %v14209_v20, %v14055_v14  ;;  %v13905_v14 = vsub.f32 %v41806_v29, %v37621_v19  ;;  %v14059_v20 = vmul.f32 %v13903_v38, %v13903_v38 }
 0xfb4   :  { %v14211_v61 = vadd.f32 %v14210_v47, %v14056_v11  ;;  %v34047_v11 = vld [vmem:[%s41064_s6 + $0x10] sm:$0xff]   ;;  %v14061_v46 = vmul.f32 %v13905_v14, %v13905_v14  ;;  %v41809_v14 = vld [vmem:[#allocation79_spill] sm:$0xff] }
 0xfb5   :  { %29824 = vmatprep.subr.bf16.mxu0 %v34047_v11 }
 0xfb6   :  { %v14212_v59 = vadd.f32 %v14211_v61, %v14057_v39  ;;  %29825 = vmatpush3.bf16.msra.mxu0 %v34047_v11  ;;  %v34048_v39 = vld [vmem:[%s41064_s6 + $0x18] sm:$0xff]   ;;  %v41807_v61 = vld [vmem:[#allocation80_spill] sm:$0xff] }
 0xfb7   :  { %29826 = vmatprep.subr.bf16.mxu0 %v34048_v39 }
 0xfb8   :  { %v14213_v1 = vadd.f32 %v14212_v59, %v14058_v37  ;;  %v41808_v37 = vld [vmem:[#allocation82_spill] sm:$0xff] }
 0xfb9   :  { %v13911_v59 = vsub.f32 %v41808_v37, %v37621_v19 }
 0xfba   :  { %v14214_v55 = vadd.f32 %v14213_v1, %v14059_v20  ;;  %v13910_v1 = vsub.f32 %v41807_v61, %v37621_v19  ;;  %29827 = vmatpush3.bf16.msra.mxu0 %v34048_v39  ;;  %v13912_v20 = vsub.f32 %v41809_v14, %v37621_v19 }
 0xfbb   :  { %v14067_v39 = vmul.f32 %v13911_v59, %v13911_v59  ;;  %v41813_v59 = vld [vmem:[#allocation83_spill] sm:$0xff] }
 0xfbc   :  { %v14215_v47 = vadd.f32 %v14214_v55, %v14060_v63  ;;  %v34049_v63 = vld [vmem:[%s41064_s6 + $0x20] sm:$0xff]   ;;  %v14066_v55 = vmul.f32 %v13910_v1, %v13910_v1  ;;  %v14068_v61 = vmul.f32 %v13912_v20, %v13912_v20  ;;  %v41812_v1 = vld [vmem:[#allocation86_spill] sm:$0xff]  ;;  %v34052_v20 = vld [vmem:[%s41064_s6 + $0x38] sm:$0xff]  }
 0xfbd   :  { %29828 = vmatprep.subr.bf16.mxu0 %v34049_v63 }
 0xfbe   :  { %v14216_v9 = vadd.f32 %v14215_v47, %v14061_v46  ;;  %29829 = vmatpush3.bf16.msra.mxu0 %v34049_v63  ;;  %v34050_v46 = vld [vmem:[%s41064_s6 + $0x28] sm:$0xff]   ;;  %v13915_v63 = vsub.f32 %v41812_v1, %v37621_v19 }
 0xfbf   :  { %v41810_v47 = vld [vmem:[#allocation81_spill] sm:$0xff]  ;;  %29830 = vmatprep.subr.bf16.mxu0 %v34050_v46 }
 0xfc0   :  { %v14217_v38 = vadd.f32 %v14216_v9, %v37656_v23  ;;  %v13913_v9 = vsub.f32 %v41810_v47, %v37621_v19 }
 0xfc2   :  { %v14218_v5 = vadd.f32 %v14217_v38, %v37656_v23  ;;  %29831 = vmatpush3.bf16.msra.mxu0 %v34050_v46  ;;  %v41814_v46 = vld [vmem:[#allocation85_spill] sm:$0xff] }
 0xfc4   :  { %v14219_v32 = vadd.f32 %v14218_v5, %v37656_v23  ;;  %v41811_v5 = vld [vmem:[#allocation84_spill] sm:$0xff] }
 0xfc5   :  { %v13914_v37 = vsub.f32 %v41811_v5, %v37621_v19 }
 0xfc6   :  { %v14220_v11 = vadd.f32 %v14219_v32, %v37656_v23  ;;  %v34051_v23 = vld [vmem:[%s41064_s6 + $0x30] sm:$0xff]   ;;  %v14069_v32 = vmul.f32 %v13913_v9, %v13913_v9  ;;  %v41815_v9 = vld [vmem:[#allocation88_spill] sm:$0xff] }
 0xfc7   :  { %29832 = vmatprep.subr.bf16.mxu0 %v34051_v23 }
 0xfc8   :  { %v14221_v38 = vadd.f32 %v14220_v11, %v14066_v55  ;;  %v13916_v55 = vsub.f32 %v41813_v59, %v37621_v19  ;;  %v14070_v11 = vmul.f32 %v13914_v37, %v13914_v37  ;;  %29833 = vmatpush3.bf16.msra.mxu0 %v34051_v23  ;;  %v41816_v37 = vld [vmem:[#allocation90_spill] sm:$0xff]  ;;  %v41817_v59 = vmov 0  }
 0xfc9   :  { %29834 = vmatprep.subr.bf16.mxu0 %v34052_v20 }
 0xfca   :  { %v14222_v29 = vadd.f32 %v14221_v38, %v14067_v39  ;;  %v13917_v39 = vsub.f32 %v41814_v46, %v37621_v19  ;;  %v14071_v38 = vmul.f32 %v13915_v63, %v13915_v63 }
 0xfcc   :  { %v14223_v14 = vadd.f32 %v14222_v29, %v14068_v61  ;;  %v13918_v29 = vsub.f32 %v41815_v9, %v37621_v19  ;;  %v14072_v61 = vmul.f32 %v13916_v55, %v13916_v55  ;;  %29835 = vmatpush3.bf16.msra.mxu0 %v34052_v20  ;;  %v14073_v23 = vmul.f32 %v13917_v39, %v13917_v39  ;;  %v41820_v20 = vld [vmem:[#allocation92_spill] sm:$0xff] }
 0xfce   :  { %v14224_v47 = vadd.f32 %v14223_v14, %v14069_v32  ;;  %v13919_v14 = vsub.f32 %v41816_v37, %v37621_v19  ;;  %v14074_v46 = vmul.f32 %v13918_v29, %v13918_v29  ;;  %v14076_v37 = vmul.f32 %v13920_v15, %v13920_v15  ;;  %v41821_v29 = vld [vmem:[#allocation91_spill] sm:$0xff] }
 0xfcf   :  { %29837 = vmatmul.mubr.bf16.vlgmr.msra.gmra.mrb[0].mxu0 %v41817_v59 }
 0xfd0   :  { %v14225_v5 = vadd.f32 %v14224_v47, %v14070_v11  ;;  %29840 = vmatprep.mubr.bf16.mxu0 %v41817_v59  ;;  %v41819_v47 = vld [vmem:[#allocation89_spill] sm:$0xff]  ;;  %v14075_v55 = vmul.f32 %v13919_v14, %v13919_v14 }
 0xfd1   :  { %v13921_v11 = vsub.f32 %v41819_v47, %v37621_v19 }
 0xfd2   :  { %v14226_v1 = vadd.f32 %v14225_v5, %v14071_v38  ;;  %v13922_v38 = vsub.f32 %v41820_v20, %v37621_v19 }
 0xfd4   :  { %v14227_v32 = vadd.f32 %v14226_v1, %v14072_v61  ;;  %v13923_v1 = vsub.f32 %v37616_v34, %v37621_v19  ;;  %v14077_v61 = vmul.f32 %v13921_v11, %v13921_v11 }
 0xfd6   :  { %v14228_v63 = vadd.f32 %v14227_v32, %v14073_v23  ;;  %v13924_v23 = vsub.f32 %v41821_v29, %v37621_v19  ;;  %v14078_v32 = vmul.f32 %v13922_v38, %v13922_v38  ;;  %v14079_v14 = vmul.f32 %v13923_v1, %v13923_v1 }
 0xfd7   :  { %29841 = vmatmul.mubr.bf16.gmra.mrb[4].mxu0 %v41817_v59 }
 0xfd8   :  { %v14229_v5 = vadd.f32 %v14228_v63, %v14074_v46  ;;  %29844 = vmatprep.mubr.bf16.mxu0 %v41817_v59  ;;  %v13925_v46 = vsub.f32 %v37614_v49, %v37621_v19  ;;  %v14080_v63 = vmul.f32 %v13924_v23, %v13924_v23 }
 0xfda   :  { %v14230_v39 = vadd.f32 %v14229_v5, %v14075_v55  ;;  %v14081_v5 = vmul.f32 %v13925_v46, %v13925_v46 }
 0xfdc   :  { %v14231_v9 = vadd.f32 %v14230_v39, %v14076_v37 }
 0xfde   :  { %v14232_v57 = vadd.f32 %v14231_v9, %v14077_v61  ;;  %v14243_v61 = vmul.f32 %v37621_v19, %v37621_v19 }
 0xfdf   :  { %29845 = vmatmul.mubr.bf16.gmra.mrb[8].mxu0 %v41817_v59 }
 0xfe0   :  { %v14233_v15 = vadd.f32 %v14232_v57, %v14078_v32  ;;  %29848 = vmatprep.mubr.bf16.mxu0 %v41817_v59  ;;  %v14244_v23 = vmul.f32 224.0, %v14243_v61 }
 0xfe2   :  { %v14234_v55 = vadd.f32 %v14233_v15, %v14079_v14  ;;  %v34053_v15 = vld [vmem:[%s41064_s6 + $0x40] sm:$0xff]  }
 0xfe3   :  { %29992 = vmatprep.subr.bf16.mxu0 %v34053_v15 }
 0xfe4   :  { %v14235_v47 = vadd.f32 %v14234_v55, %v14080_v63  ;;  %v34054_v63 = vld [vmem:[%s41064_s6 + $0x48] sm:$0xff]   ;;  %29993 = vmatpush3.bf16.msra.mxu0 %v34053_v15  ;;  %v14248_v55 = vld [vmem:[%s41065_s4] sm:$0x1] }
 0xfe5   :  { %29994 = vmatprep.subr.bf16.mxu0 %v34054_v63 }
 0xfe6   :  { %v14236_v37 = vadd.f32 %v14235_v47, %v14081_v5 }
 0xfe7   :  { %29849 = vmatmul.mubr.bf16.gmra.mrb[12].mxu0 %v41817_v59 }
 0xfe8   :  { %v14237_v11 = vrot.slane %v14236_v37, 4  ;;  %29852 = vmatprep.mubr.bf16.mxu0 %v41817_v59  ;;  %29995 = vmatpush3.bf16.msra.mxu0 %v34054_v63 }
 0xfea   :  { %v14238_v39 = vadd.f32 %v14237_v11, %v14236_v37  ;;  %v14252_v11 = vld [vmem:[%s41066_s5] sm:$0x1] }
 0xfec   :  { %v14239_v38 = vrot.slane %v14238_v39, 2 }
 0xfee   :  { %v14240_v9 = vadd.f32 %v14239_v38, %v14238_v39  ;;  %v41822_v38 = vld [vmem:[#allocation4_spill] sm:$0xff] }
 0xfef   :  { %29853 = vmatmul.mubr.bf16.gmra.mrb[16].mxu0 %v41817_v59 }
 0xff0   :  { %v14241_v57 = vrot.slane %v14240_v9, 1  ;;  %29856 = vmatprep.mubr.bf16.mxu0 %v41817_v59  ;;  %v41842_v59 = vld [vmem:[#allocation36_spill] sm:$0xff] }
 0xff2   :  { %v14242_v1 = vadd.f32 %v14241_v57, %v14240_v9 }
 0xff4   :  { %v14245_v32 = vsub.f32 %v14242_v1, %v14244_v23 }
 0xff6   :  { %v14246_v47 = vmul.f32 0.0009765625, %v14245_v32  ;;  %v41823_v32 = vld [vmem:[#allocation26_spill] sm:$0xff] }
 0xff8   :  { %v14247_v46 = vmax.f32 %v14246_v47, 0.0 }
 0xffa   :  { %v14249_v14 = vadd.f32 1e-05, %v14247_v46 }
 0xffc   :  { %34119 = vrsqrt.f32 %v14249_v14  ;;  %v41825_v14 = vld [vmem:[#allocation25_spill] sm:$0xff] }
0x1006   :  { %v34120_v5 = vpop.eup %34119 }
0x1007   :  { %v14251_v37 = vmul.f32 %v34120_v5, %v14248_v55 }
0x1009   :  { %v14253_v39 = vmul.f32 %v14251_v37, %v37621_v19  ;;  %v37960_v9 = vrot.slane %v14251_v37, %v41822_v38  ;;  %v41824_v19 = vld [vmem:[#allocation24_spill] sm:$0xff]  ;;  %v34055_v37 = vld [vmem:[%s41064_s6 + $0x50] sm:$0xff]  }
0x100a   :  { %29996 = vmatprep.subr.bf16.mxu0 %v34055_v37 }
0x100b   :  { %v14254_v61 = vsub.f32 %v14252_v11, %v14253_v39  ;;  %v14855_v57 = vmul.f32 %v37960_v9, %v41820_v20  ;;  %v14856_v1 = vmul.f32 %v37960_v9, %v37616_v34  ;;  %v37968_v23 = vmul.f32 %v37960_v9, %v37216_v44  ;;  %v41826_v20 = vld [vmem:[#allocation27_spill] sm:$0xff]  ;;  %v41827_v39 = vld [vmem:[#allocation28_spill] sm:$0xff]  ;;  %29997 = vmatpush3.bf16.msra.mxu0 %v34055_v37 }
0x100c   :  { %v37972_v47 = vmul.f32 %v37960_v9, %v41823_v32  ;;  %v37976_v46 = vmul.f32 %v41824_v19, %v37960_v9  ;;  %v37980_v15 = vmul.f32 %v41825_v14, %v37960_v9  ;;  %v37984_v63 = vmul.f32 %v37960_v9, %v41826_v20  ;;  %v41828_v32 = vld [vmem:[#allocation29_spill] sm:$0xff] }
0x100d   :  { %v37987_v34 = vrot.slane %v14254_v61, %v41822_v38  ;;  %v37991_v44 = vmul.f32 %v37960_v9, %v37235_v54  ;;  %v37995_v55 = vmul.f32 %v37228_v35, %v37960_v9  ;;  %v37999_v5 = vmul.f32 %v37233_v12, %v37960_v9 }
0x100e   :  { %v38006_v11 = vmul.f32 %v37960_v9, %v37244_v58  ;;  %v38010_v54 = vmul.f32 %v37960_v9, %v37249_v33  ;;  %v38014_v35 = vmul.f32 %v37242_v62, %v37960_v9  ;;  %v38018_v12 = vmul.f32 %v41827_v39, %v37960_v9 }
0x100f   :  { %v14871_v38 = vadd.f32 %v14855_v57, %v37987_v34  ;;  %v14872_v61 = vadd.f32 %v14856_v1, %v37987_v34  ;;  %v38024_v58 = vmul.f32 %v37960_v9, %v41828_v32  ;;  %v38028_v33 = vmul.f32 %v37960_v9, %v37263_v4  ;;  %v41832_v32 = vld [vmem:[#allocation31_spill] sm:$0xff] }
0x1010   :  { %v38032_v62 = vmul.f32 %v37256_v51, %v37960_v9  ;;  %v38036_v19 = vmul.f32 %v37261_v48, %v37960_v9  ;;  %v38040_v57 = vmul.f32 %v37960_v9, %v37274_v17  ;;  %v38044_v1 = vmul.f32 %v37960_v9, %v37279_v41 }
0x1011   :  { %v14887_v4 = vmax.f32 %v14871_v38, 0.0  ;;  %v14888_v14 = vmax.f32 %v14872_v61, 0.0  ;;  %v38048_v20 = vmul.f32 %v37272_v7, %v37960_v9  ;;  %v38052_v51 = vmul.f32 %v37277_v22, %v37960_v9  ;;  %v41831_v61 = vld [vmem:[#allocation33_spill] sm:$0xff] }
0x1012   :  { %v38056_v48 = vmul.f32 %v37960_v9, %v37288_v43  ;;  %v38060_v17 = vmul.f32 %v37960_v9, %v37293_v40  ;;  %v38064_v41 = vmul.f32 %v37286_v30, %v37960_v9  ;;  %v38068_v7 = vmul.f32 %v37291_v50, %v37960_v9  ;;  %v41830_v50 = vld [vmem:[#allocation30_spill] sm:$0xff] }
0x1013   :  { %v38070_v37 = vpack.c.bf16 %v14888_v14, %v14887_v4  ;;  %v38074_v22 = vmul.f32 %v37960_v9, %v37302_v13  ;;  %v38078_v43 = vmul.f32 %v37960_v9, %v37307_v36  ;;  %v38082_v40 = vmul.f32 %v37300_v27, %v37960_v9  ;;  %v41834_v4 = vld [vmem:[#allocation32_spill] sm:$0xff]  ;;  %v41836_v14 = vld [vmem:[#allocation35_spill] sm:$0xff] }
0x1014   :  { %v38086_v30 = vmul.f32 %v37305_v8, %v37960_v9  ;;  %v38090_v39 = vmul.f32 %v37960_v9, %v41830_v50  ;;  %v38094_v13 = vmul.f32 %v37960_v9, %v37321_v60  ;;  %v38098_v36 = vmul.f32 %v37314_v53, %v37960_v9  ;;  %v41838_v50 = vld [vmem:[#allocation37_spill] sm:$0xff] }
0x1015   :  { %41829 = vst [vmem:[#allocation17_spill] sm:$0xff] %v38070_v37  ;;  %v38102_v27 = vmul.f32 %v37319_v2, %v37960_v9  ;;  %v38106_v8 = vmul.f32 %v37960_v9, %v37332_v10  ;;  %v38110_v38 = vmul.f32 %v37960_v9, %v37337_v45  ;;  %v38114_v60 = vmul.f32 %v37330_v28, %v37960_v9  ;;  %v41840_v37 = vld [vmem:[#allocation34_spill] sm:$0xff] }
0x1016   :  { %v38118_v53 = vmul.f32 %v37335_v26, %v37960_v9  ;;  %v38122_v2 = vmul.f32 %v37960_v9, %v37346_v0  ;;  %v38126_v10 = vmul.f32 %v37960_v9, %v37351_v16  ;;  %v38130_v45 = vmul.f32 %v37344_v3, %v37960_v9 }
0x1017   :  { %v38134_v28 = vmul.f32 %v37349_v31, %v37960_v9  ;;  %v38138_v26 = vmul.f32 %v37960_v9, %v37359_v25  ;;  %v38142_v0 = vmul.f32 %v37960_v9, %v37364_v6  ;;  %v38146_v16 = vmul.f32 %v37357_v42, %v37960_v9 }
0x1018   :  { %v38150_v3 = vmul.f32 %v37362_v52, %v37960_v9  ;;  %v38154_v31 = vmul.f32 %v37960_v9, %v37371_v18  ;;  %v38158_v25 = vmul.f32 %v37960_v9, %v41831_v61  ;;  %v38162_v6 = vmul.f32 %v41832_v32, %v37960_v9 }
0x1019   :  { %v38166_v42 = vmul.f32 %v41834_v4, %v37960_v9  ;;  %v38170_v52 = vmul.f32 %v37960_v9, %v41836_v14  ;;  %v38174_v18 = vmul.f32 %v37960_v9, %v41838_v50  ;;  %v38178_v61 = vmul.f32 %v41840_v37, %v37960_v9 }
0x101a   :  { %41833 = vst [vmem:[#allocation74_spill] sm:$0xff] %v38162_v6  ;;  %v38182_v32 = vmul.f32 %v41842_v59, %v37960_v9  ;;  %v41844_v6 = vld [vmem:[#allocation39_spill] sm:$0xff] }
0x101b   :  { %41835 = vst [vmem:[#allocation71_spill] sm:$0xff] %v38166_v42  ;;  %41837 = vst [vmem:[#allocation92_spill] sm:$0xff] %v38170_v52  ;;  %v38186_v4 = vmul.f32 %v37960_v9, %v41844_v6  ;;  %v41846_v42 = vld [vmem:[#allocation41_spill] sm:$0xff]  ;;  %v41848_v52 = vld [vmem:[#allocation38_spill] sm:$0xff] }
0x101c   :  { %41839 = vst [vmem:[#allocation91_spill] sm:$0xff] %v38174_v18  ;;  %41841 = vst [vmem:[#allocation4_spill] sm:$0xff] %v38178_v61  ;;  %v38190_v14 = vmul.f32 %v37960_v9, %v41846_v42  ;;  %v38194_v50 = vmul.f32 %v41848_v52, %v37960_v9  ;;  %v41850_v18 = vld [vmem:[#allocation40_spill] sm:$0xff]  ;;  %v41852_v61 = vld [vmem:[#allocation43_spill] sm:$0xff] }
0x101d   :  { %41843 = vst [vmem:[#allocation26_spill] sm:$0xff] %v38182_v32  ;;  %41845 = vst [vmem:[#allocation24_spill] sm:$0xff] %v38186_v4  ;;  %v38198_v37 = vmul.f32 %v41850_v18, %v37960_v9  ;;  %v38202_v59 = vmul.f32 %v37960_v9, %v41852_v61  ;;  %v41854_v32 = vld [vmem:[#allocation45_spill] sm:$0xff]  ;;  %v41856_v4 = vld [vmem:[#allocation42_spill] sm:$0xff] }
0x101e   :  { %41847 = vst [vmem:[#allocation25_spill] sm:$0xff] %v38190_v14  ;;  %41849 = vst [vmem:[#allocation27_spill] sm:$0xff] %v38194_v50  ;;  %v38206_v6 = vmul.f32 %v37960_v9, %v41854_v32  ;;  %v38210_v42 = vmul.f32 %v41856_v4, %v37960_v9  ;;  %v41858_v14 = vld [vmem:[#allocation44_spill] sm:$0xff]  ;;  %v41860_v50 = vld [vmem:[#allocation47_spill] sm:$0xff] }
0x101f   :  { %41851 = vst [vmem:[#allocation28_spill] sm:$0xff] %v38198_v37  ;;  %41853 = vst [vmem:[#allocation29_spill] sm:$0xff] %v38202_v59  ;;  %v38214_v52 = vmul.f32 %v41858_v14, %v37960_v9  ;;  %v38218_v18 = vmul.f32 %v37960_v9, %v41860_v50  ;;  %v41862_v37 = vld [vmem:[#allocation49_spill] sm:$0xff]  ;;  %v41864_v59 = vld [vmem:[#allocation46_spill] sm:$0xff] }
0x1020   :  { %41855 = vst [vmem:[#allocation30_spill] sm:$0xff] %v38206_v6  ;;  %41857 = vst [vmem:[#allocation33_spill] sm:$0xff] %v38210_v42  ;;  %v38222_v61 = vmul.f32 %v37960_v9, %v41862_v37  ;;  %v38226_v32 = vmul.f32 %v41864_v59, %v37960_v9  ;;  %v41866_v6 = vld [vmem:[#allocation48_spill] sm:$0xff]  ;;  %v41868_v42 = vld [vmem:[#allocation51_spill] sm:$0xff] }
0x1021   :  { %41859 = vst [vmem:[#allocation31_spill] sm:$0xff] %v38214_v52  ;;  %41861 = vst [vmem:[#allocation32_spill] sm:$0xff] %v38218_v18  ;;  %v38230_v4 = vmul.f32 %v41866_v6, %v37960_v9  ;;  %v38234_v14 = vmul.f32 %v37960_v9, %v41868_v42  ;;  %v41870_v52 = vld [vmem:[#allocation53_spill] sm:$0xff]  ;;  %v41872_v18 = vld [vmem:[#allocation50_spill] sm:$0xff] }
0x1022   :  { %41863 = vst [vmem:[#allocation35_spill] sm:$0xff] %v38222_v61  ;;  %41865 = vst [vmem:[#allocation37_spill] sm:$0xff] %v38226_v32  ;;  %v38238_v50 = vmul.f32 %v37960_v9, %v41870_v52  ;;  %v38242_v37 = vmul.f32 %v41872_v18, %v37960_v9  ;;  %v41874_v61 = vld [vmem:[#allocation52_spill] sm:$0xff]  ;;  %v41876_v32 = vld [vmem:[#allocation55_spill] sm:$0xff] }
0x1023   :  { %41867 = vst [vmem:[#allocation34_spill] sm:$0xff] %v38230_v4  ;;  %41869 = vst [vmem:[#allocation36_spill] sm:$0xff] %v38234_v14  ;;  %v38246_v59 = vmul.f32 %v41874_v61, %v37960_v9  ;;  %v38250_v6 = vmul.f32 %v37960_v9, %v41876_v32  ;;  %v41878_v4 = vld [vmem:[#allocation57_spill] sm:$0xff]  ;;  %v41880_v14 = vld [vmem:[#allocation54_spill] sm:$0xff] }
0x1024   :  { %41871 = vst [vmem:[#allocation39_spill] sm:$0xff] %v38238_v50  ;;  %41873 = vst [vmem:[#allocation41_spill] sm:$0xff] %v38242_v37  ;;  %v38254_v42 = vmul.f32 %v37960_v9, %v41878_v4  ;;  %v38258_v52 = vmul.f32 %v41880_v14, %v37960_v9  ;;  %v41882_v50 = vld [vmem:[#allocation56_spill] sm:$0xff]  ;;  %v41884_v37 = vld [vmem:[#allocation59_spill] sm:$0xff] }
0x1025   :  { %41875 = vst [vmem:[#allocation38_spill] sm:$0xff] %v38246_v59  ;;  %41877 = vst [vmem:[#allocation40_spill] sm:$0xff] %v38250_v6  ;;  %v38262_v18 = vmul.f32 %v41882_v50, %v37960_v9  ;;  %v38266_v61 = vmul.f32 %v37960_v9, %v41884_v37  ;;  %v41886_v59 = vld [vmem:[#allocation61_spill] sm:$0xff]  ;;  %v41888_v6 = vld [vmem:[#allocation58_spill] sm:$0xff] }
0x1026   :  { %41879 = vst [vmem:[#allocation43_spill] sm:$0xff] %v38254_v42  ;;  %41881 = vst [vmem:[#allocation45_spill] sm:$0xff] %v38258_v52  ;;  %v38270_v32 = vmul.f32 %v37960_v9, %v41886_v59  ;;  %v38274_v4 = vmul.f32 %v41888_v6, %v37960_v9  ;;  %v41890_v42 = vld [vmem:[#allocation60_spill] sm:$0xff]  ;;  %v41892_v52 = vld [vmem:[#allocation63_spill] sm:$0xff] }
0x1027   :  { %41883 = vst [vmem:[#allocation42_spill] sm:$0xff] %v38262_v18  ;;  %41885 = vst [vmem:[#allocation44_spill] sm:$0xff] %v38266_v61  ;;  %v38278_v14 = vmul.f32 %v41890_v42, %v37960_v9  ;;  %v38282_v50 = vmul.f32 %v37960_v9, %v41892_v52  ;;  %v41894_v18 = vld [vmem:[#allocation65_spill] sm:$0xff]  ;;  %v41896_v61 = vld [vmem:[#allocation62_spill] sm:$0xff] }
0x1028   :  { %41887 = vst [vmem:[#allocation47_spill] sm:$0xff] %v38270_v32  ;;  %41889 = vst [vmem:[#allocation49_spill] sm:$0xff] %v38274_v4  ;;  %v38286_v37 = vmul.f32 %v37960_v9, %v41894_v18  ;;  %v38290_v59 = vmul.f32 %v41896_v61, %v37960_v9  ;;  %v41898_v32 = vld [vmem:[#allocation64_spill] sm:$0xff]  ;;  %v41900_v4 = vld [vmem:[#allocation67_spill] sm:$0xff] }
0x1029   :  { %41891 = vst [vmem:[#allocation46_spill] sm:$0xff] %v38278_v14  ;;  %41893 = vst [vmem:[#allocation48_spill] sm:$0xff] %v38282_v50  ;;  %v38294_v6 = vmul.f32 %v41898_v32, %v37960_v9  ;;  %v38298_v42 = vmul.f32 %v37960_v9, %v41900_v4  ;;  %v41902_v14 = vld [vmem:[#allocation69_spill] sm:$0xff]  ;;  %v41904_v50 = vld [vmem:[#allocation66_spill] sm:$0xff] }
0x102a   :  { %41895 = vst [vmem:[#allocation51_spill] sm:$0xff] %v38286_v37  ;;  %41897 = vst [vmem:[#allocation53_spill] sm:$0xff] %v38290_v59  ;;  %v38302_v52 = vmul.f32 %v37960_v9, %v41902_v14  ;;  %v38306_v18 = vmul.f32 %v41904_v50, %v37960_v9  ;;  %v41906_v37 = vld [vmem:[#allocation68_spill] sm:$0xff]  ;;  %v41908_v59 = vld [vmem:[#allocation9_spill] sm:$0xff] }
0x102b   :  { %41899 = vst [vmem:[#allocation50_spill] sm:$0xff] %v38294_v6  ;;  %41901 = vst [vmem:[#allocation52_spill] sm:$0xff] %v38298_v42  ;;  %v38310_v61 = vmul.f32 %v41906_v37, %v37960_v9  ;;  %v38314_v32 = vmul.f32 %v37960_v9, %v41908_v59  ;;  %v41910_v6 = vld [vmem:[#allocation16_spill] sm:$0xff] }
0x102c   :  { %41903 = vst [vmem:[#allocation55_spill] sm:$0xff] %v38302_v52  ;;  %41905 = vst [vmem:[#allocation57_spill] sm:$0xff] %v38306_v18  ;;  %v38318_v4 = vmul.f32 %v37960_v9, %v41910_v6  ;;  %v41912_v42 = vld [vmem:[#allocation8_spill] sm:$0xff]  ;;  %v41914_v52 = vld [vmem:[#allocation10_spill] sm:$0xff] }
0x102d   :  { %41907 = vst [vmem:[#allocation54_spill] sm:$0xff] %v38310_v61  ;;  %41909 = vst [vmem:[#allocation56_spill] sm:$0xff] %v38314_v32  ;;  %v38322_v14 = vmul.f32 %v41912_v42, %v37960_v9  ;;  %v38326_v50 = vmul.f32 %v41914_v52, %v37960_v9  ;;  %v41915_v18 = vld [vmem:[#allocation20_spill] sm:$0xff]  ;;  %v41917_v61 = vld [vmem:[#allocation22_spill] sm:$0xff] }
0x102e   :  { %41911 = vst [vmem:[#allocation59_spill] sm:$0xff] %v38318_v4  ;;  %v38330_v37 = vmul.f32 %v37960_v9, %v41915_v18  ;;  %v38334_v59 = vmul.f32 %v37960_v9, %v41917_v61  ;;  %v41919_v32 = vld [vmem:[#allocation19_spill] sm:$0xff]  ;;  %v41921_v4 = vld [vmem:[#allocation21_spill] sm:$0xff]  ;;  %v38350_v18 = vmul.f32 %v37960_v9, %v41788_v56 }
0x102f   :  { %41913 = vst [vmem:[#allocation61_spill] sm:$0xff] %v38322_v14  ;;  %v38338_v6 = vmul.f32 %v41919_v32, %v37960_v9  ;;  %v38342_v42 = vmul.f32 %v41921_v4, %v37960_v9  ;;  %v41923_v14 = vld [vmem:[#allocation13_spill] sm:$0xff] }
0x1030   :  { %41916 = vst [vmem:[#allocation58_spill] sm:$0xff] %v38330_v37  ;;  %41918 = vst [vmem:[#allocation60_spill] sm:$0xff] %v38334_v59  ;;  %v38346_v52 = vmul.f32 %v37960_v9, %v41923_v14  ;;  %v41926_v37 = vld [vmem:[#allocation11_spill] sm:$0xff]  ;;  %v41928_v59 = vld [vmem:[#allocation14_spill] sm:$0xff] }
0x1031   :  { %41920 = vst [vmem:[#allocation63_spill] sm:$0xff] %v38338_v6  ;;  %41922 = vst [vmem:[#allocation65_spill] sm:$0xff] %v38342_v42  ;;  %v38354_v61 = vmul.f32 %v41926_v37, %v37960_v9  ;;  %v38358_v32 = vmul.f32 %v41928_v59, %v37960_v9  ;;  %v41930_v6 = vld [vmem:[#allocation5_spill] sm:$0xff]  ;;  %v41932_v42 = vld [vmem:[#allocation7_spill] sm:$0xff] }
0x1032   :  { %41924 = vst [vmem:[#allocation62_spill] sm:$0xff] %v38346_v52  ;;  %41925 = vst [vmem:[#allocation64_spill] sm:$0xff] %v38350_v18  ;;  %v38362_v4 = vmul.f32 %v37960_v9, %v41930_v6  ;;  %v38366_v14 = vmul.f32 %v37960_v9, %v41932_v42  ;;  %v41934_v52 = vld [vmem:[#allocation23_spill] sm:$0xff]  ;;  %v41936_v18 = vld [vmem:[#allocation6_spill] sm:$0xff] }
0x1033   :  { %41927 = vst [vmem:[#allocation67_spill] sm:$0xff] %v38354_v61  ;;  %41929 = vst [vmem:[#allocation69_spill] sm:$0xff] %v38358_v32  ;;  %v38370_v56 = vmul.f32 %v41934_v52, %v37960_v9  ;;  %v38374_v37 = vmul.f32 %v41936_v18, %v37960_v9  ;;  %v41937_v61 = vld [vmem:[#allocation15_spill] sm:$0xff]  ;;  %v41938_v32 = vld [vmem:[#allocation70_spill] sm:$0xff] }
0x1034   :  { %41931 = vst [vmem:[#allocation66_spill] sm:$0xff] %v38362_v4  ;;  %41933 = vst [vmem:[#allocation68_spill] sm:$0xff] %v38366_v14  ;;  %v38378_v59 = vmul.f32 %v37960_v9, %v41937_v61  ;;  %v38382_v6 = vmul.f32 %v37960_v9, %v41938_v32  ;;  %v41940_v4 = vld [vmem:[#allocation12_spill] sm:$0xff]  ;;  %v41942_v14 = vld [vmem:[#allocation18_spill] sm:$0xff]  ;;  %v38398_v61 = vmul.f32 %v37960_v9, %v41800_v24 }
0x1035   :  { %41935 = vst [vmem:[#allocation9_spill] sm:$0xff] %v38370_v56  ;;  %v38386_v42 = vmul.f32 %v41940_v4, %v37960_v9  ;;  %v38390_v52 = vmul.f32 %v41942_v14, %v37960_v9  ;;  %v41944_v56 = vld [vmem:[#allocation72_spill] sm:$0xff]  ;;  %v38402_v32 = vmul.f32 %v41801_v21, %v37960_v9 }
0x1036   :  { %41939 = vst [vmem:[#allocation16_spill] sm:$0xff] %v38382_v6  ;;  %v38394_v18 = vmul.f32 %v37960_v9, %v41944_v56  ;;  %41946 = vst [vmem:[#allocation22_spill] sm:$0xff] %v38398_v61  ;;  %v41948_v6 = vld [vmem:[#allocation73_spill] sm:$0xff] }
0x1037   :  { %41941 = vst [vmem:[#allocation8_spill] sm:$0xff] %v38386_v42  ;;  %41943 = vst [vmem:[#allocation10_spill] sm:$0xff] %v38390_v52  ;;  %v38406_v4 = vmul.f32 %v41948_v6, %v37960_v9  ;;  %v41950_v42 = vld [vmem:[#allocation76_spill] sm:$0xff]  ;;  %v41952_v52 = vld [vmem:[#allocation78_spill] sm:$0xff] }
0x1038   :  { %41945 = vst [vmem:[#allocation20_spill] sm:$0xff] %v38394_v18  ;;  %41947 = vst [vmem:[#allocation19_spill] sm:$0xff] %v38402_v32  ;;  %v38410_v14 = vmul.f32 %v37960_v9, %v41950_v42  ;;  %v38414_v56 = vmul.f32 %v37960_v9, %v41952_v52  ;;  %v41954_v18 = vld [vmem:[#allocation75_spill] sm:$0xff]  ;;  %v41956_v61 = vld [vmem:[#allocation77_spill] sm:$0xff] }
0x1039   :  { %41949 = vst [vmem:[#allocation21_spill] sm:$0xff] %v38406_v4  ;;  %v38418_v24 = vmul.f32 %v41954_v18, %v37960_v9  ;;  %v38422_v21 = vmul.f32 %v41956_v61, %v37960_v9  ;;  %v41958_v32 = vld [vmem:[#allocation80_spill] sm:$0xff]  ;;  %v41960_v4 = vld [vmem:[#allocation82_spill] sm:$0xff] }
0x103a   :  { %41951 = vst [vmem:[#allocation13_spill] sm:$0xff] %v38410_v14  ;;  %41953 = vst [vmem:[#allocation11_spill] sm:$0xff] %v38414_v56  ;;  %v38426_v6 = vmul.f32 %v37960_v9, %v41958_v32  ;;  %v38430_v42 = vmul.f32 %v37960_v9, %v41960_v4  ;;  %v41962_v14 = vld [vmem:[#allocation79_spill] sm:$0xff]  ;;  %v41964_v56 = vld [vmem:[#allocation81_spill] sm:$0xff] }
0x103b   :  { %41955 = vst [vmem:[#allocation14_spill] sm:$0xff] %v38418_v24  ;;  %41957 = vst [vmem:[#allocation5_spill] sm:$0xff] %v38422_v21  ;;  %v38434_v52 = vmul.f32 %v41962_v14, %v37960_v9  ;;  %v38438_v18 = vmul.f32 %v41964_v56, %v37960_v9  ;;  %v41966_v24 = vld [vmem:[#allocation84_spill] sm:$0xff]  ;;  %v41968_v21 = vld [vmem:[#allocation86_spill] sm:$0xff] }
0x103c   :  { %41959 = vst [vmem:[#allocation7_spill] sm:$0xff] %v38426_v6  ;;  %41961 = vst [vmem:[#allocation23_spill] sm:$0xff] %v38430_v42  ;;  %v38442_v61 = vmul.f32 %v37960_v9, %v41966_v24  ;;  %v38446_v32 = vmul.f32 %v37960_v9, %v41968_v21  ;;  %v41970_v6 = vld [vmem:[#allocation83_spill] sm:$0xff]  ;;  %v41971_v42 = vld [vmem:[#allocation85_spill] sm:$0xff] }
0x103d   :  { %41963 = vst [vmem:[#allocation6_spill] sm:$0xff] %v38434_v52  ;;  %41965 = vst [vmem:[#allocation15_spill] sm:$0xff] %v38438_v18  ;;  %v38450_v4 = vmul.f32 %v41970_v6, %v37960_v9  ;;  %v38454_v14 = vmul.f32 %v41971_v42, %v37960_v9  ;;  %v41972_v52 = vld [vmem:[#allocation88_spill] sm:$0xff]  ;;  %v41973_v18 = vld [vmem:[#allocation90_spill] sm:$0xff]  ;;  %v38474_v42 = vmul.f32 %v41821_v29, %v37960_v9 }
0x103e   :  { %41967 = vst [vmem:[#allocation70_spill] sm:$0xff] %v38442_v61  ;;  %41969 = vst [vmem:[#allocation12_spill] sm:$0xff] %v38446_v32  ;;  %v38458_v56 = vmul.f32 %v37960_v9, %v41972_v52  ;;  %v38462_v24 = vmul.f32 %v37960_v9, %v41973_v18  ;;  %v41974_v61 = vld [vmem:[#allocation87_spill] sm:$0xff]  ;;  %v41975_v32 = vld [vmem:[#allocation89_spill] sm:$0xff]  ;;  %v38478_v52 = vmul.f32 %v37614_v49, %v37960_v9 }
0x103f   :  { %v38466_v21 = vmul.f32 %v41974_v61, %v37960_v9  ;;  %v38470_v6 = vmul.f32 %v41975_v32, %v37960_v9  ;;  %v38482_v18 = vadd.f32 %v37968_v23, %v37987_v34  ;;  %v38486_v61 = vadd.f32 %v37972_v47, %v37987_v34 }
0x1040   :  { %v38490_v32 = vadd.f32 %v37976_v46, %v37987_v34  ;;  %v38494_v29 = vadd.f32 %v37980_v15, %v37987_v34  ;;  %v38498_v49 = vadd.f32 %v37984_v63, %v37987_v34  ;;  %v38502_v9 = vadd.f32 %v37991_v44, %v37987_v34 }
0x1041   :  { %v38506_v23 = vadd.f32 %v37995_v55, %v37987_v34  ;;  %v38510_v47 = vadd.f32 %v37999_v5, %v37987_v34  ;;  %v38514_v46 = vadd.f32 %v38006_v11, %v37987_v34  ;;  %v38518_v15 = vadd.f32 %v38010_v54, %v37987_v34 }
0x1042   :  { %v38522_v63 = vadd.f32 %v38014_v35, %v37987_v34  ;;  %v38526_v44 = vadd.f32 %v38018_v12, %v37987_v34  ;;  %v38530_v55 = vadd.f32 %v38024_v58, %v37987_v34  ;;  %v38534_v5 = vadd.f32 %v38028_v33, %v37987_v34 }
0x1043   :  { %v38538_v11 = vadd.f32 %v38032_v62, %v37987_v34  ;;  %v38542_v54 = vadd.f32 %v38036_v19, %v37987_v34  ;;  %v38546_v35 = vadd.f32 %v38040_v57, %v37987_v34  ;;  %v38550_v12 = vadd.f32 %v38044_v1, %v37987_v34 }
0x1044   :  { %v38554_v58 = vadd.f32 %v38048_v20, %v37987_v34  ;;  %v38558_v33 = vadd.f32 %v38052_v51, %v37987_v34  ;;  %v38562_v62 = vadd.f32 %v38056_v48, %v37987_v34  ;;  %v38566_v19 = vadd.f32 %v38060_v17, %v37987_v34 }
0x1045   :  { %v38570_v57 = vadd.f32 %v38064_v41, %v37987_v34  ;;  %v38574_v1 = vadd.f32 %v38068_v7, %v37987_v34  ;;  %v38578_v20 = vadd.f32 %v38074_v22, %v37987_v34  ;;  %v38582_v51 = vadd.f32 %v38078_v43, %v37987_v34 }
0x1046   :  { %v38586_v48 = vadd.f32 %v38082_v40, %v37987_v34  ;;  %v38590_v17 = vadd.f32 %v38086_v30, %v37987_v34  ;;  %v38594_v41 = vadd.f32 %v38090_v39, %v37987_v34  ;;  %v38598_v7 = vadd.f32 %v38094_v13, %v37987_v34 }
0x1047   :  { %v38602_v22 = vadd.f32 %v38098_v36, %v37987_v34  ;;  %v38606_v43 = vadd.f32 %v38102_v27, %v37987_v34  ;;  %v38610_v40 = vadd.f32 %v38106_v8, %v37987_v34  ;;  %v38614_v30 = vadd.f32 %v38110_v38, %v37987_v34  ;;  %v34056_v27 = vld [vmem:[%s41064_s6 + $0x58] sm:$0xff]  }
0x1048   :  { %v38618_v39 = vadd.f32 %v38114_v60, %v37987_v34  ;;  %v38622_v13 = vadd.f32 %v38118_v53, %v37987_v34  ;;  %v38626_v36 = vadd.f32 %v38122_v2, %v37987_v34  ;;  %v38633_v8 = vadd.f32 %v38126_v10, %v37987_v34  ;;  %29998 = vmatprep.subr.bf16.mxu0 %v34056_v27 }
0x1049   :  { %41976 = vst [vmem:[#allocation18_spill] sm:$0xff] %v38606_v43  ;;  %41977 = vst [vmem:[#allocation72_spill] sm:$0xff] %v38610_v40  ;;  %v38637_v38 = vadd.f32 %v38130_v45, %v37987_v34  ;;  %v38641_v60 = vadd.f32 %v38134_v28, %v37987_v34  ;;  %v38645_v53 = vadd.f32 %v38138_v26, %v37987_v34  ;;  %29999 = vmatpush3.bf16.msra.mxu0 %v34056_v27  ;;  %v42007_v27 = vld [vmem:[#allocation27_spill] sm:$0xff] }
0x104a   :  { %41978 = vst [vmem:[#allocation73_spill] sm:$0xff] %v38614_v30  ;;  %41979 = vst [vmem:[#allocation76_spill] sm:$0xff] %v38618_v39  ;;  %v38649_v2 = vadd.f32 %v38142_v0, %v37987_v34  ;;  %v38653_v10 = vadd.f32 %v38146_v16, %v37987_v34  ;;  %v38657_v45 = vadd.f32 %v38150_v3, %v37987_v34  ;;  %v41991_v0 = vld [vmem:[#allocation74_spill] sm:$0xff]  ;;  %v41993_v16 = vld [vmem:[#allocation71_spill] sm:$0xff] }
0x104b   :  { %41980 = vst [vmem:[#allocation78_spill] sm:$0xff] %v38622_v13  ;;  %41981 = vst [vmem:[#allocation75_spill] sm:$0xff] %v38626_v36  ;;  %v38661_v28 = vadd.f32 %v38154_v31, %v37987_v34  ;;  %v38665_v26 = vadd.f32 %v38158_v25, %v37987_v34  ;;  %v41995_v3 = vld [vmem:[#allocation92_spill] sm:$0xff]  ;;  %v41997_v31 = vld [vmem:[#allocation91_spill] sm:$0xff] }
0x104c   :  { %41982 = vst [vmem:[#allocation77_spill] sm:$0xff] %v38633_v8  ;;  %41983 = vst [vmem:[#allocation80_spill] sm:$0xff] %v38637_v38  ;;  %v41999_v25 = vld [vmem:[#allocation4_spill] sm:$0xff]  ;;  %v42210_v8 = vmax.f32 %v38490_v32, 0.0  ;;  %v42220_v32 = vmax.f32 %v38518_v15, 0.0  ;;  %v42227_v15 = vmax.f32 %v38546_v35, 0.0 }
0x104d   :  { %41984 = vst [vmem:[#allocation82_spill] sm:$0xff] %v38641_v60  ;;  %41985 = vst [vmem:[#allocation79_spill] sm:$0xff] %v38645_v53  ;;  %v42211_v60 = vmax.f32 %v38494_v29, 0.0  ;;  %v42221_v29 = vmax.f32 %v38522_v63, 0.0  ;;  %v42228_v63 = vmax.f32 %v38550_v12, 0.0  ;;  %v42233_v35 = vmax.f32 %v38570_v57, 0.0 }
0x104e   :  { %41986 = vst [vmem:[#allocation81_spill] sm:$0xff] %v38649_v2  ;;  %41987 = vst [vmem:[#allocation84_spill] sm:$0xff] %v38653_v10  ;;  %v38669_v2 = vadd.f32 %v41991_v0, %v37987_v34  ;;  %v38673_v10 = vadd.f32 %v41993_v16, %v37987_v34  ;;  %v42001_v0 = vld [vmem:[#allocation26_spill] sm:$0xff]  ;;  %v42003_v16 = vld [vmem:[#allocation24_spill] sm:$0xff]  ;;  %v42234_v12 = vmax.f32 %v38574_v1, 0.0  ;;  %v42239_v57 = vmax.f32 %v38594_v41, 0.0 }
0x104f   :  { %41988 = vst [vmem:[#allocation86_spill] sm:$0xff] %v38657_v45  ;;  %41989 = vst [vmem:[#allocation83_spill] sm:$0xff] %v38661_v28  ;;  %v38677_v45 = vadd.f32 %v41995_v3, %v37987_v34  ;;  %v38681_v28 = vadd.f32 %v41997_v31, %v37987_v34  ;;  %v42005_v3 = vld [vmem:[#allocation25_spill] sm:$0xff]  ;;  %v38701_v31 = vadd.f32 %v42007_v27, %v37987_v34  ;;  %v42240_v1 = vmax.f32 %v38598_v7, 0.0 }
0x1050   :  { %41990 = vst [vmem:[#allocation85_spill] sm:$0xff] %v38665_v26  ;;  %41992 = vst [vmem:[#allocation88_spill] sm:$0xff] %v38669_v2  ;;  %v38685_v26 = vadd.f32 %v41999_v25, %v37987_v34  ;;  %v38689_v2 = vadd.f32 %v42001_v0, %v37987_v34  ;;  %v39126_v43 = vpack.c.bf16 %v42211_v60, %v42210_v8 }
0x1051   :  { %41994 = vst [vmem:[#allocation90_spill] sm:$0xff] %v38673_v10  ;;  %41996 = vst [vmem:[#allocation87_spill] sm:$0xff] %v38677_v45  ;;  %v38693_v10 = vadd.f32 %v42003_v16, %v37987_v34  ;;  %v38697_v45 = vadd.f32 %v42005_v3, %v37987_v34 }
0x1052   :  { %41998 = vst [vmem:[#allocation89_spill] sm:$0xff] %v38681_v28  ;;  %42000 = vst [vmem:[#allocation74_spill] sm:$0xff] %v38685_v26  ;;  %v42009_v28 = vld [vmem:[#allocation28_spill] sm:$0xff]  ;;  %v42011_v26 = vld [vmem:[#allocation29_spill] sm:$0xff] }
0x1053   :  { %42002 = vst [vmem:[#allocation71_spill] sm:$0xff] %v38689_v2  ;;  %42004 = vst [vmem:[#allocation92_spill] sm:$0xff] %v38693_v10  ;;  %v38705_v25 = vadd.f32 %v42009_v28, %v37987_v34  ;;  %v38709_v0 = vadd.f32 %v42011_v26, %v37987_v34  ;;  %v42013_v2 = vld [vmem:[#allocation30_spill] sm:$0xff]  ;;  %v42015_v10 = vld [vmem:[#allocation33_spill] sm:$0xff] }
0x1054   :  { %42006 = vst [vmem:[#allocation91_spill] sm:$0xff] %v38697_v45  ;;  %42008 = vst [vmem:[#allocation4_spill] sm:$0xff] %v38701_v31  ;;  %v38713_v16 = vadd.f32 %v42013_v2, %v37987_v34  ;;  %v38717_v3 = vadd.f32 %v42015_v10, %v37987_v34  ;;  %v42017_v45 = vld [vmem:[#allocation31_spill] sm:$0xff]  ;;  %v42019_v31 = vld [vmem:[#allocation32_spill] sm:$0xff] }
0x1055   :  { %42010 = vst [vmem:[#allocation26_spill] sm:$0xff] %v38705_v25  ;;  %42012 = vst [vmem:[#allocation24_spill] sm:$0xff] %v38709_v0  ;;  %v38721_v27 = vadd.f32 %v42017_v45, %v37987_v34  ;;  %v38725_v28 = vadd.f32 %v42019_v31, %v37987_v34  ;;  %v42021_v25 = vld [vmem:[#allocation35_spill] sm:$0xff]  ;;  %v42023_v0 = vld [vmem:[#allocation37_spill] sm:$0xff] }
0x1056   :  { %42014 = vst [vmem:[#allocation25_spill] sm:$0xff] %v38713_v16  ;;  %42016 = vst [vmem:[#allocation27_spill] sm:$0xff] %v38717_v3  ;;  %v38729_v26 = vadd.f32 %v42021_v25, %v37987_v34  ;;  %v38733_v2 = vadd.f32 %v42023_v0, %v37987_v34  ;;  %v42025_v16 = vld [vmem:[#allocation34_spill] sm:$0xff]  ;;  %v42027_v3 = vld [vmem:[#allocation36_spill] sm:$0xff] }
0x1057   :  { %42018 = vst [vmem:[#allocation28_spill] sm:$0xff] %v38721_v27  ;;  %42020 = vst [vmem:[#allocation29_spill] sm:$0xff] %v38725_v28  ;;  %v38737_v10 = vadd.f32 %v42025_v16, %v37987_v34  ;;  %v38741_v45 = vadd.f32 %v42027_v3, %v37987_v34  ;;  %v42029_v27 = vld [vmem:[#allocation39_spill] sm:$0xff]  ;;  %v42031_v28 = vld [vmem:[#allocation41_spill] sm:$0xff] }
0x1058   :  { %42022 = vst [vmem:[#allocation30_spill] sm:$0xff] %v38729_v26  ;;  %42024 = vst [vmem:[#allocation33_spill] sm:$0xff] %v38733_v2  ;;  %v38745_v31 = vadd.f32 %v42029_v27, %v37987_v34  ;;  %v38749_v25 = vadd.f32 %v42031_v28, %v37987_v34  ;;  %v42033_v26 = vld [vmem:[#allocation38_spill] sm:$0xff]  ;;  %v42035_v2 = vld [vmem:[#allocation40_spill] sm:$0xff] }
0x1059   :  { %42026 = vst [vmem:[#allocation31_spill] sm:$0xff] %v38737_v10  ;;  %42028 = vst [vmem:[#allocation32_spill] sm:$0xff] %v38741_v45  ;;  %v38753_v0 = vadd.f32 %v42033_v26, %v37987_v34  ;;  %v38757_v16 = vadd.f32 %v42035_v2, %v37987_v34  ;;  %v42037_v10 = vld [vmem:[#allocation43_spill] sm:$0xff]  ;;  %v42039_v45 = vld [vmem:[#allocation45_spill] sm:$0xff] }
0x105a   :  { %42030 = vst [vmem:[#allocation35_spill] sm:$0xff] %v38745_v31  ;;  %42032 = vst [vmem:[#allocation37_spill] sm:$0xff] %v38749_v25  ;;  %v38761_v3 = vadd.f32 %v42037_v10, %v37987_v34  ;;  %v38765_v27 = vadd.f32 %v42039_v45, %v37987_v34  ;;  %v42041_v31 = vld [vmem:[#allocation42_spill] sm:$0xff]  ;;  %v42043_v25 = vld [vmem:[#allocation44_spill] sm:$0xff] }
0x105b   :  { %42034 = vst [vmem:[#allocation34_spill] sm:$0xff] %v38753_v0  ;;  %42036 = vst [vmem:[#allocation36_spill] sm:$0xff] %v38757_v16  ;;  %v38769_v28 = vadd.f32 %v42041_v31, %v37987_v34  ;;  %v38773_v26 = vadd.f32 %v42043_v25, %v37987_v34  ;;  %v42045_v0 = vld [vmem:[#allocation47_spill] sm:$0xff]  ;;  %v42047_v16 = vld [vmem:[#allocation49_spill] sm:$0xff] }
0x105c   :  { %42038 = vst [vmem:[#allocation39_spill] sm:$0xff] %v38761_v3  ;;  %42040 = vst [vmem:[#allocation41_spill] sm:$0xff] %v38765_v27  ;;  %v38777_v2 = vadd.f32 %v42045_v0, %v37987_v34  ;;  %v38781_v10 = vadd.f32 %v42047_v16, %v37987_v34  ;;  %v42049_v3 = vld [vmem:[#allocation46_spill] sm:$0xff]  ;;  %v42051_v27 = vld [vmem:[#allocation48_spill] sm:$0xff] }
0x105d   :  { %42042 = vst [vmem:[#allocation38_spill] sm:$0xff] %v38769_v28  ;;  %42044 = vst [vmem:[#allocation40_spill] sm:$0xff] %v38773_v26  ;;  %v38785_v45 = vadd.f32 %v42049_v3, %v37987_v34  ;;  %v38789_v31 = vadd.f32 %v42051_v27, %v37987_v34  ;;  %v42053_v28 = vld [vmem:[#allocation51_spill] sm:$0xff]  ;;  %v42055_v26 = vld [vmem:[#allocation53_spill] sm:$0xff] }
0x105e   :  { %42046 = vst [vmem:[#allocation43_spill] sm:$0xff] %v38777_v2  ;;  %42048 = vst [vmem:[#allocation45_spill] sm:$0xff] %v38781_v10  ;;  %v38793_v25 = vadd.f32 %v42053_v28, %v37987_v34  ;;  %v38797_v0 = vadd.f32 %v42055_v26, %v37987_v34  ;;  %v42057_v2 = vld [vmem:[#allocation50_spill] sm:$0xff]  ;;  %v42059_v10 = vld [vmem:[#allocation52_spill] sm:$0xff] }
0x105f   :  { %42050 = vst [vmem:[#allocation42_spill] sm:$0xff] %v38785_v45  ;;  %42052 = vst [vmem:[#allocation44_spill] sm:$0xff] %v38789_v31  ;;  %v38801_v16 = vadd.f32 %v42057_v2, %v37987_v34  ;;  %v38805_v3 = vadd.f32 %v42059_v10, %v37987_v34  ;;  %v42061_v45 = vld [vmem:[#allocation55_spill] sm:$0xff]  ;;  %v42063_v31 = vld [vmem:[#allocation57_spill] sm:$0xff] }
0x1060   :  { %42054 = vst [vmem:[#allocation47_spill] sm:$0xff] %v38793_v25  ;;  %42056 = vst [vmem:[#allocation49_spill] sm:$0xff] %v38797_v0  ;;  %v38809_v27 = vadd.f32 %v42061_v45, %v37987_v34  ;;  %v38813_v28 = vadd.f32 %v42063_v31, %v37987_v34  ;;  %v42065_v25 = vld [vmem:[#allocation54_spill] sm:$0xff]  ;;  %v42067_v0 = vld [vmem:[#allocation56_spill] sm:$0xff]  ;;  %v38833_v31 = vadd.f32 %v38326_v50, %v37987_v34 }
0x1061   :  { %42058 = vst [vmem:[#allocation46_spill] sm:$0xff] %v38801_v16  ;;  %42060 = vst [vmem:[#allocation48_spill] sm:$0xff] %v38805_v3  ;;  %v38817_v26 = vadd.f32 %v42065_v25, %v37987_v34  ;;  %v38821_v2 = vadd.f32 %v42067_v0, %v37987_v34  ;;  %v42069_v16 = vld [vmem:[#allocation59_spill] sm:$0xff]  ;;  %v42071_v3 = vld [vmem:[#allocation61_spill] sm:$0xff] }
0x1062   :  { %42062 = vst [vmem:[#allocation51_spill] sm:$0xff] %v38809_v27  ;;  %42064 = vst [vmem:[#allocation53_spill] sm:$0xff] %v38813_v28  ;;  %v38825_v10 = vadd.f32 %v42069_v16, %v37987_v34  ;;  %v38829_v45 = vadd.f32 %v42071_v3, %v37987_v34  ;;  %v42074_v28 = vld [vmem:[#allocation58_spill] sm:$0xff]  ;;  %v42252_v7 = vld [vmem:[#allocation75_spill] sm:$0xff] }
0x1063   :  { %42066 = vst [vmem:[#allocation50_spill] sm:$0xff] %v38817_v26  ;;  %42068 = vst [vmem:[#allocation52_spill] sm:$0xff] %v38821_v2  ;;  %v38837_v25 = vadd.f32 %v42074_v28, %v37987_v34  ;;  %v42076_v26 = vld [vmem:[#allocation60_spill] sm:$0xff]  ;;  %v42078_v2 = vld [vmem:[#allocation63_spill] sm:$0xff] }
0x1064   :  { %42070 = vst [vmem:[#allocation55_spill] sm:$0xff] %v38825_v10  ;;  %42072 = vst [vmem:[#allocation57_spill] sm:$0xff] %v38829_v45  ;;  %v38841_v0 = vadd.f32 %v42076_v26, %v37987_v34  ;;  %v38845_v16 = vadd.f32 %v42078_v2, %v37987_v34  ;;  %v42080_v10 = vld [vmem:[#allocation65_spill] sm:$0xff]  ;;  %v42082_v45 = vld [vmem:[#allocation62_spill] sm:$0xff] }
0x1065   :  { %42073 = vst [vmem:[#allocation54_spill] sm:$0xff] %v38833_v31  ;;  %42075 = vst [vmem:[#allocation56_spill] sm:$0xff] %v38837_v25  ;;  %v38849_v3 = vadd.f32 %v42080_v10, %v37987_v34  ;;  %v38853_v50 = vadd.f32 %v42082_v45, %v37987_v34  ;;  %v42084_v31 = vld [vmem:[#allocation64_spill] sm:$0xff]  ;;  %v42086_v25 = vld [vmem:[#allocation67_spill] sm:$0xff] }
0x1066   :  { %42077 = vst [vmem:[#allocation59_spill] sm:$0xff] %v38841_v0  ;;  %42079 = vst [vmem:[#allocation61_spill] sm:$0xff] %v38845_v16  ;;  %v38857_v28 = vadd.f32 %v42084_v31, %v37987_v34  ;;  %v38861_v26 = vadd.f32 %v42086_v25, %v37987_v34  ;;  %v42088_v0 = vld [vmem:[#allocation69_spill] sm:$0xff]  ;;  %v42090_v16 = vld [vmem:[#allocation66_spill] sm:$0xff]  ;;  %v38881_v25 = vadd.f32 %v38374_v37, %v37987_v34 }
0x1067   :  { %42081 = vst [vmem:[#allocation58_spill] sm:$0xff] %v38849_v3  ;;  %42083 = vst [vmem:[#allocation60_spill] sm:$0xff] %v38853_v50  ;;  %v38865_v2 = vadd.f32 %v42088_v0, %v37987_v34  ;;  %v38869_v10 = vadd.f32 %v42090_v16, %v37987_v34  ;;  %v42092_v3 = vld [vmem:[#allocation68_spill] sm:$0xff]  ;;  %v42094_v50 = vld [vmem:[#allocation9_spill] sm:$0xff]  ;;  %v38885_v0 = vadd.f32 %v38378_v59, %v37987_v34 }
0x1068   :  { %42085 = vst [vmem:[#allocation63_spill] sm:$0xff] %v38857_v28  ;;  %42087 = vst [vmem:[#allocation65_spill] sm:$0xff] %v38861_v26  ;;  %v38873_v45 = vadd.f32 %v42092_v3, %v37987_v34  ;;  %v38877_v31 = vadd.f32 %v42094_v50, %v37987_v34 }
0x1069   :  { %42089 = vst [vmem:[#allocation62_spill] sm:$0xff] %v38865_v2  ;;  %42091 = vst [vmem:[#allocation64_spill] sm:$0xff] %v38869_v10  ;;  %v42098_v2 = vld [vmem:[#allocation16_spill] sm:$0xff] }
0x106a   :  { %42093 = vst [vmem:[#allocation67_spill] sm:$0xff] %v38873_v45  ;;  %42095 = vst [vmem:[#allocation69_spill] sm:$0xff] %v38877_v31  ;;  %v38889_v16 = vadd.f32 %v42098_v2, %v37987_v34  ;;  %v42100_v10 = vld [vmem:[#allocation8_spill] sm:$0xff]  ;;  %v42102_v45 = vld [vmem:[#allocation10_spill] sm:$0xff] }
0x106b   :  { %42096 = vst [vmem:[#allocation66_spill] sm:$0xff] %v38881_v25  ;;  %42097 = vst [vmem:[#allocation68_spill] sm:$0xff] %v38885_v0  ;;  %v38893_v3 = vadd.f32 %v42100_v10, %v37987_v34  ;;  %v38897_v50 = vadd.f32 %v42102_v45, %v37987_v34  ;;  %v42104_v31 = vld [vmem:[#allocation20_spill] sm:$0xff]  ;;  %v42106_v25 = vld [vmem:[#allocation22_spill] sm:$0xff] }
0x106c   :  { %42099 = vst [vmem:[#allocation9_spill] sm:$0xff] %v38889_v16  ;;  %v38901_v37 = vadd.f32 %v42104_v31, %v37987_v34  ;;  %v38905_v59 = vadd.f32 %v42106_v25, %v37987_v34  ;;  %v42108_v0 = vld [vmem:[#allocation19_spill] sm:$0xff]  ;;  %v42110_v16 = vld [vmem:[#allocation21_spill] sm:$0xff] }
0x106d   :  { %42101 = vst [vmem:[#allocation16_spill] sm:$0xff] %v38893_v3  ;;  %42103 = vst [vmem:[#allocation8_spill] sm:$0xff] %v38897_v50  ;;  %v38909_v2 = vadd.f32 %v42108_v0, %v37987_v34  ;;  %v38913_v10 = vadd.f32 %v42110_v16, %v37987_v34  ;;  %v42112_v3 = vld [vmem:[#allocation13_spill] sm:$0xff]  ;;  %v42114_v50 = vld [vmem:[#allocation11_spill] sm:$0xff] }
0x106e   :  { %42105 = vst [vmem:[#allocation10_spill] sm:$0xff] %v38901_v37  ;;  %42107 = vst [vmem:[#allocation20_spill] sm:$0xff] %v38905_v59  ;;  %v38917_v45 = vadd.f32 %v42112_v3, %v37987_v34  ;;  %v38921_v31 = vadd.f32 %v42114_v50, %v37987_v34  ;;  %v42116_v37 = vld [vmem:[#allocation14_spill] sm:$0xff]  ;;  %v42118_v59 = vld [vmem:[#allocation5_spill] sm:$0xff] }
0x106f   :  { %42109 = vst [vmem:[#allocation22_spill] sm:$0xff] %v38909_v2  ;;  %42111 = vst [vmem:[#allocation19_spill] sm:$0xff] %v38913_v10  ;;  %v38925_v25 = vadd.f32 %v42116_v37, %v37987_v34  ;;  %v38929_v0 = vadd.f32 %v42118_v59, %v37987_v34  ;;  %v42120_v2 = vld [vmem:[#allocation7_spill] sm:$0xff] }
0x1070   :  { %42113 = vst [vmem:[#allocation21_spill] sm:$0xff] %v38917_v45  ;;  %42115 = vst [vmem:[#allocation13_spill] sm:$0xff] %v38921_v31  ;;  %v38933_v16 = vadd.f32 %v42120_v2, %v37987_v34  ;;  %v42122_v10 = vld [vmem:[#allocation23_spill] sm:$0xff]  ;;  %v42124_v45 = vld [vmem:[#allocation6_spill] sm:$0xff] }
0x1071   :  { %42117 = vst [vmem:[#allocation11_spill] sm:$0xff] %v38925_v25  ;;  %42119 = vst [vmem:[#allocation14_spill] sm:$0xff] %v38929_v0  ;;  %v38937_v3 = vadd.f32 %v42122_v10, %v37987_v34  ;;  %v38941_v50 = vadd.f32 %v42124_v45, %v37987_v34  ;;  %v42125_v31 = vld [vmem:[#allocation15_spill] sm:$0xff]  ;;  %v42126_v25 = vld [vmem:[#allocation70_spill] sm:$0xff]  ;;  %v38957_v10 = vadd.f32 %v38450_v4, %v37987_v34 }
0x1072   :  { %42121 = vst [vmem:[#allocation5_spill] sm:$0xff] %v38933_v16  ;;  %v38945_v37 = vadd.f32 %v42125_v31, %v37987_v34  ;;  %v38949_v59 = vadd.f32 %v42126_v25, %v37987_v34  ;;  %v42127_v0 = vld [vmem:[#allocation12_spill] sm:$0xff]  ;;  %v38961_v45 = vadd.f32 %v38454_v14, %v37987_v34  ;;  %v38965_v31 = vadd.f32 %v38458_v56, %v37987_v34 }
0x1073   :  { %42123 = vst [vmem:[#allocation7_spill] sm:$0xff] %v38937_v3  ;;  %v38953_v2 = vadd.f32 %v42127_v0, %v37987_v34  ;;  %v38969_v25 = vadd.f32 %v38462_v24, %v37987_v34  ;;  %v38973_v0 = vadd.f32 %v38466_v21, %v37987_v34  ;;  %v38977_v4 = vadd.f32 %v38470_v6, %v37987_v34  ;;  %v42164_v24 = vld [vmem:[#allocation38_spill] sm:$0xff]  ;;  %v42191_v38 = vld [vmem:[#allocation9_spill] sm:$0xff] }
0x1074   :  { %42129 = vst [vmem:[#allocation6_spill] sm:$0xff] %v38965_v31  ;;  %v38981_v14 = vadd.f32 %v38474_v42, %v37987_v34  ;;  %v38985_v56 = vadd.f32 %v38478_v52, %v37987_v34  ;;  %v42175_v6 = vld [vmem:[#allocation50_spill] sm:$0xff]  ;;  %v42192_v21 = vld [vmem:[#allocation16_spill] sm:$0xff]  ;;  %v42207_v34 = vmax.f32 %v38482_v18, 0.0  ;;  %v42208_v52 = vmax.f32 %v38486_v61, 0.0 }
0x1075   :  { %42128 = vst [vmem:[#allocation23_spill] sm:$0xff] %v38953_v2  ;;  %42130 = vst [vmem:[#allocation15_spill] sm:$0xff] %v38969_v25  ;;  %v34057_v25 = vld [vmem:[%s41064_s6 + $0x60] sm:$0xff]   ;;  %v42194_v28 = vld [vmem:[#allocation10_spill] sm:$0xff]  ;;  %v42205_v16 = vmov %v38977_v4  ;;  %v42217_v18 = vmax.f32 %v38510_v47, 0.0  ;;  %v42219_v61 = vmax.f32 %v38514_v46, 0.0 }
0x1076   :  { %42131 = vst [vmem:[#allocation70_spill] sm:$0xff] %v38973_v0  ;;  %42132 = vst [vmem:[#allocation12_spill] sm:$0xff] %v38977_v4  ;;  %30000 = vmatprep.subr.bf16.mxu0 %v34057_v25  ;;  %v42174_v0 = vld [vmem:[#allocation53_spill] sm:$0xff]  ;;  %v42193_v31 = vld [vmem:[#allocation8_spill] sm:$0xff]  ;;  %v42206_v3 = vmov %v38981_v14  ;;  %v39120_v2 = vpack.c.bf16 %v42208_v52, %v42207_v34  ;;  %v42214_v4 = vmax.f32 %v38502_v9, 0.0  ;;  %v42223_v9 = vmax.f32 %v38530_v55, 0.0 }
0x1077   :  { %42133 = vst [vmem:[#allocation93_spill] sm:$0xff] %v38981_v14  ;;  %30001 = vmatpush3.bf16.msra.mxu0 %v34057_v25  ;;  %v42195_v26 = vld [vmem:[#allocation20_spill] sm:$0xff]  ;;  %v42196_v40 = vld [vmem:[#allocation22_spill] sm:$0xff]  ;;  %v42197_v30 = vld [vmem:[#allocation19_spill] sm:$0xff]  ;;  %v42213_v25 = vmax.f32 %v38498_v49, 0.0  ;;  %v42216_v14 = vmax.f32 %v38506_v23, 0.0  ;;  %v39144_v34 = vpack.c.bf16 %v42220_v32, %v42219_v61  ;;  %v39206_v32 = vpack.c.bf16 %v42240_v1, %v42239_v57 }
0x1078   :  { %v42198_v39 = vld [vmem:[#allocation21_spill] sm:$0xff]  ;;  %42209 = vst [vmem:[#allocation38_spill] sm:$0xff] %v39120_v2  ;;  %42212 = vst [vmem:[#allocation53_spill] sm:$0xff] %v39126_v43  ;;  %v42222_v49 = vmax.f32 %v38526_v44, 0.0  ;;  %v42224_v23 = vmax.f32 %v38534_v5, 0.0  ;;  %v42225_v47 = vmax.f32 %v38538_v11, 0.0  ;;  %29857 = vmatmul.mubr.bf16.gmra.mrb[20].mxu0 %v39120_v2 }
0x1079   :  { %v39132_v27 = vpack.c.bf16 %v42214_v4, %v42213_v25  ;;  %v39138_v42 = vpack.c.bf16 %v42217_v18, %v42216_v14  ;;  %v42226_v46 = vmax.f32 %v38542_v54, 0.0  ;;  %v39168_v14 = vpack.c.bf16 %v42228_v63, %v42227_v15  ;;  %29860 = vmatprep.mubr.bf16.mxu0 %v39126_v43  ;;  %v42250_v63 = vld [vmem:[#allocation78_spill] sm:$0xff]  ;;  %v42262_v1 = vld [vmem:[#allocation81_spill] sm:$0xff] }
0x107a   :  { %v39150_v8 = vpack.c.bf16 %v42222_v49, %v42221_v29  ;;  %v39156_v60 = vpack.c.bf16 %v42224_v23, %v42223_v9  ;;  %v42229_v44 = vmax.f32 %v38554_v58, 0.0  ;;  %v42230_v55 = vmax.f32 %v38558_v33, 0.0  ;;  %v42242_v29 = vld [vmem:[#allocation18_spill] sm:$0xff]  ;;  %v42244_v9 = vld [vmem:[#allocation72_spill] sm:$0xff] }
0x107b   :  { %v42202_v13 = vld [vmem:[#allocation6_spill] sm:$0xff]  ;;  %42215 = vst [vmem:[#allocation50_spill] sm:$0xff] %v39132_v27  ;;  %42218 = vst [vmem:[#allocation9_spill] sm:$0xff] %v39138_v42  ;;  %v39162_v4 = vpack.c.bf16 %v42226_v46, %v42225_v47  ;;  %v42231_v11 = vmax.f32 %v38562_v62, 0.0  ;;  %v42232_v54 = vmax.f32 %v38566_v19, 0.0  ;;  %v39187_v25 = vpack.c.bf16 %v42234_v12, %v42233_v35  ;;  %v42246_v47 = vld [vmem:[#allocation73_spill] sm:$0xff] }
0x107c   :  { %v42203_v36 = vld [vmem:[#allocation15_spill] sm:$0xff]  ;;  %v39175_v5 = vpack.c.bf16 %v42230_v55, %v42229_v44  ;;  %v42235_v18 = vmax.f32 %v38578_v20, 0.0  ;;  %v42236_v58 = vmax.f32 %v38582_v51, 0.0  ;;  %v42237_v33 = vmax.f32 %v38586_v48, 0.0  ;;  %v42256_v35 = vld [vmem:[#allocation80_spill] sm:$0xff] }
0x107d   :  { %v42204_v53 = vld [vmem:[#allocation70_spill] sm:$0xff]  ;;  %v39181_v52 = vpack.c.bf16 %v42232_v54, %v42231_v11  ;;  %v42238_v62 = vmax.f32 %v38590_v17, 0.0  ;;  %v42241_v20 = vmax.f32 %v38602_v22, 0.0  ;;  %v42243_v51 = vmax.f32 %v42242_v29, 0.0  ;;  %v42248_v17 = vld [vmem:[#allocation76_spill] sm:$0xff]  ;;  %v42254_v11 = vld [vmem:[#allocation77_spill] sm:$0xff] }
0x107e   :  { %v39193_v61 = vpack.c.bf16 %v42236_v58, %v42235_v18  ;;  %v42245_v23 = vmax.f32 %v42244_v9, 0.0  ;;  %v42247_v48 = vmax.f32 %v42246_v47, 0.0  ;;  %v42249_v15 = vmax.f32 %v42248_v17, 0.0  ;;  %v42258_v18 = vld [vmem:[#allocation82_spill] sm:$0xff]  ;;  %v42268_v17 = vld [vmem:[#allocation83_spill] sm:$0xff] }
0x107f   :  { %v39200_v19 = vpack.c.bf16 %v42238_v62, %v42237_v33  ;;  %v39212_v49 = vpack.c.bf16 %v42243_v51, %v42241_v20  ;;  %v42251_v41 = vmax.f32 %v42250_v63, 0.0  ;;  %v42253_v55 = vmax.f32 %v42252_v7, 0.0  ;;  %v42260_v62 = vld [vmem:[#allocation79_spill] sm:$0xff]  ;;  %v42264_v51 = vld [vmem:[#allocation84_spill] sm:$0xff]  ;;  %v42270_v63 = vld [vmem:[#allocation85_spill] sm:$0xff] }
0x1080   :  { %v39218_v46 = vpack.c.bf16 %v42247_v48, %v42245_v23  ;;  %v42255_v22 = vmax.f32 %v42254_v11, 0.0  ;;  %v42257_v12 = vmax.f32 %v42256_v35, 0.0  ;;  %v42259_v58 = vmax.f32 %v42258_v18, 0.0  ;;  %v42266_v23 = vld [vmem:[#allocation86_spill] sm:$0xff]  ;;  %v42276_v18 = vld [vmem:[#allocation87_spill] sm:$0xff]  ;;  %29861 = vmatmul.mubr.bf16.gmra.mrb[24].mxu0 %v39132_v27 }
0x1081   :  { %v39224_v44 = vpack.c.bf16 %v42251_v41, %v42249_v15  ;;  %v42261_v57 = vmax.f32 %v42260_v62, 0.0  ;;  %v42263_v20 = vmax.f32 %v42262_v1, 0.0  ;;  %v42265_v9 = vmax.f32 %v42264_v51, 0.0  ;;  %v42278_v62 = vld [vmem:[#allocation89_spill] sm:$0xff]  ;;  %v42369_v27 = vld [vmem:[#allocation59_spill] sm:$0xff]  ;;  %29864 = vmatprep.mubr.bf16.mxu0 %v39138_v42 }
0x1082   :  { %v39230_v54 = vpack.c.bf16 %v42255_v22, %v42253_v55  ;;  %v39236_v33 = vpack.c.bf16 %v42259_v58, %v42257_v12  ;;  %v42267_v47 = vmax.f32 %v42266_v23, 0.0  ;;  %v42269_v15 = vmax.f32 %v42268_v17, 0.0  ;;  %v42272_v55 = vld [vmem:[#allocation88_spill] sm:$0xff]  ;;  %v42274_v22 = vld [vmem:[#allocation90_spill] sm:$0xff] }
0x1083   :  { %v39242_v29 = vpack.c.bf16 %v42263_v20, %v42261_v57  ;;  %v42271_v41 = vmax.f32 %v42270_v63, 0.0  ;;  %v42273_v11 = vmax.f32 %v42272_v55, 0.0  ;;  %v42275_v35 = vmax.f32 %v42274_v22, 0.0  ;;  %v42280_v20 = vld [vmem:[#allocation74_spill] sm:$0xff]  ;;  %v42285_v17 = vld [vmem:[#allocation92_spill] sm:$0xff]  ;;  %v42287_v63 = vld [vmem:[#allocation91_spill] sm:$0xff] }
0x1084   :  { %v39248_v48 = vpack.c.bf16 %v42267_v47, %v42265_v9  ;;  %v42277_v58 = vmax.f32 %v42276_v18, 0.0  ;;  %v42279_v57 = vmax.f32 %v42278_v62, 0.0  ;;  %v42281_v51 = vmax.f32 %v42280_v20, 0.0  ;;  %v42282_v9 = vld [vmem:[#allocation71_spill] sm:$0xff] }
0x1085   :  { %v39254_v7 = vpack.c.bf16 %v42271_v41, %v42269_v15  ;;  %v39260_v12 = vpack.c.bf16 %v42275_v35, %v42273_v11  ;;  %v42283_v23 = vmax.f32 %v42282_v9, 0.0  ;;  %v42286_v15 = vmax.f32 %v42285_v17, 0.0  ;;  %v42290_v11 = vld [vmem:[#allocation4_spill] sm:$0xff]  ;;  %v42292_v35 = vld [vmem:[#allocation26_spill] sm:$0xff] }
0x1086   :  { %v39266_v1 = vpack.c.bf16 %v42279_v57, %v42277_v58  ;;  %v42288_v41 = vmax.f32 %v42287_v63, 0.0  ;;  %v42291_v22 = vmax.f32 %v42290_v11, 0.0  ;;  %v42293_v18 = vmax.f32 %v42292_v35, 0.0  ;;  %v42295_v58 = vld [vmem:[#allocation24_spill] sm:$0xff]  ;;  %v42297_v57 = vld [vmem:[#allocation25_spill] sm:$0xff] }
0x1087   :  { %v39272_v47 = vpack.c.bf16 %v42283_v23, %v42281_v51  ;;  %v42296_v62 = vmax.f32 %v42295_v58, 0.0  ;;  %v42298_v20 = vmax.f32 %v42297_v57, 0.0  ;;  %v42300_v51 = vld [vmem:[#allocation27_spill] sm:$0xff]  ;;  %v42302_v23 = vld [vmem:[#allocation28_spill] sm:$0xff] }
0x1088   :  { %v39278_v55 = vpack.c.bf16 %v42288_v41, %v42286_v15  ;;  %v39284_v43 = vpack.c.bf16 %v42293_v18, %v42291_v22  ;;  %v42301_v9 = vmax.f32 %v42300_v51, 0.0  ;;  %v42303_v17 = vmax.f32 %v42302_v23, 0.0  ;;  %v42305_v15 = vld [vmem:[#allocation29_spill] sm:$0xff]  ;;  %v42307_v41 = vld [vmem:[#allocation30_spill] sm:$0xff]  ;;  %v42312_v18 = vld [vmem:[#allocation31_spill] sm:$0xff]  ;;  %29865 = vmatmul.mubr.bf16.gmra.mrb[28].mxu0 %v39144_v34 }
0x1089   :  { %42284 = vst [vmem:[#allocation16_spill] sm:$0xff] %v39272_v47  ;;  %v39290_v2 = vpack.c.bf16 %v42298_v20, %v42296_v62  ;;  %v42306_v63 = vmax.f32 %v42305_v15, 0.0  ;;  %v42308_v11 = vmax.f32 %v42307_v41, 0.0  ;;  %v42310_v22 = vld [vmem:[#allocation33_spill] sm:$0xff]  ;;  %v42313_v58 = vmax.f32 %v42312_v18, 0.0  ;;  %v42314_v62 = vld [vmem:[#allocation32_spill] sm:$0xff]  ;;  %29868 = vmatprep.mubr.bf16.mxu0 %v39150_v8 }
0x108a   :  { %42289 = vst [vmem:[#allocation8_spill] sm:$0xff] %v39278_v55  ;;  %42294 = vst [vmem:[#allocation10_spill] sm:$0xff] %v39284_v43  ;;  %v39296_v47 = vpack.c.bf16 %v42303_v17, %v42301_v9  ;;  %v42311_v35 = vmax.f32 %v42310_v22, 0.0  ;;  %v42315_v57 = vmax.f32 %v42314_v62, 0.0  ;;  %v42316_v20 = vld [vmem:[#allocation35_spill] sm:$0xff]  ;;  %v42319_v9 = vld [vmem:[#allocation37_spill] sm:$0xff] }
0x108b   :  { %42299 = vst [vmem:[#allocation20_spill] sm:$0xff] %v39290_v2  ;;  %v39302_v55 = vpack.c.bf16 %v42308_v11, %v42306_v63  ;;  %v42317_v51 = vmax.f32 %v42316_v20, 0.0  ;;  %v42320_v23 = vmax.f32 %v42319_v9, 0.0  ;;  %v42321_v17 = vld [vmem:[#allocation34_spill] sm:$0xff]  ;;  %v42324_v63 = vld [vmem:[#allocation36_spill] sm:$0xff]  ;;  %v42326_v11 = vld [vmem:[#allocation39_spill] sm:$0xff] }
0x108c   :  { %42304 = vst [vmem:[#allocation22_spill] sm:$0xff] %v39296_v47  ;;  %v39308_v43 = vpack.c.bf16 %v42313_v58, %v42311_v35  ;;  %v42322_v15 = vmax.f32 %v42321_v17, 0.0  ;;  %v42325_v41 = vmax.f32 %v42324_v63, 0.0  ;;  %v42327_v22 = vmax.f32 %v42326_v11, 0.0  ;;  %v42329_v35 = vld [vmem:[#allocation41_spill] sm:$0xff] }
0x108d   :  { %42309 = vst [vmem:[#allocation19_spill] sm:$0xff] %v39302_v55  ;;  %v39314_v2 = vpack.c.bf16 %v42317_v51, %v42315_v57  ;;  %v42330_v18 = vmax.f32 %v42329_v35, 0.0  ;;  %v42331_v58 = vmax.f32 %v42164_v24, 0.0  ;;  %v42333_v57 = vld [vmem:[#allocation40_spill] sm:$0xff]  ;;  %v42335_v51 = vld [vmem:[#allocation43_spill] sm:$0xff]  ;;  %v42346_v24 = vld [vmem:[#allocation49_spill] sm:$0xff] }
0x108e   :  { %v39320_v47 = vpack.c.bf16 %v42322_v15, %v42320_v23  ;;  %v39326_v55 = vpack.c.bf16 %v42327_v22, %v42325_v41  ;;  %v42334_v20 = vmax.f32 %v42333_v57, 0.0  ;;  %v42336_v9 = vmax.f32 %v42335_v51, 0.0  ;;  %v42338_v23 = vld [vmem:[#allocation45_spill] sm:$0xff]  ;;  %v42340_v15 = vld [vmem:[#allocation42_spill] sm:$0xff]  ;;  %v42342_v41 = vld [vmem:[#allocation44_spill] sm:$0xff] }
0x108f   :  { %42318 = vst [vmem:[#allocation21_spill] sm:$0xff] %v39314_v2  ;;  %v39332_v62 = vpack.c.bf16 %v42331_v58, %v42330_v18  ;;  %v42339_v17 = vmax.f32 %v42338_v23, 0.0  ;;  %v42341_v63 = vmax.f32 %v42340_v15, 0.0  ;;  %v42343_v11 = vmax.f32 %v42342_v41, 0.0  ;;  %v42344_v22 = vld [vmem:[#allocation47_spill] sm:$0xff]  ;;  %v42348_v58 = vld [vmem:[#allocation46_spill] sm:$0xff] }
0x1090   :  { %42323 = vst [vmem:[#allocation6_spill] sm:$0xff] %v39320_v47  ;;  %42328 = vst [vmem:[#allocation15_spill] sm:$0xff] %v39326_v55  ;;  %v39338_v2 = vpack.c.bf16 %v42336_v9, %v42334_v20  ;;  %v42345_v35 = vmax.f32 %v42344_v22, 0.0  ;;  %v42347_v18 = vmax.f32 %v42346_v24, 0.0  ;;  %v42349_v57 = vmax.f32 %v42348_v58, 0.0  ;;  %v42350_v20 = vld [vmem:[#allocation48_spill] sm:$0xff]  ;;  %29869 = vmatmul.mubr.bf16.gmra.mrb[32].mxu0 %v39156_v60 }
0x1091   :  { %42332 = vst [vmem:[#allocation70_spill] sm:$0xff] %v39332_v62  ;;  %v39344_v47 = vpack.c.bf16 %v42341_v63, %v42339_v17  ;;  %v42351_v51 = vmax.f32 %v42350_v20, 0.0  ;;  %v42352_v9 = vld [vmem:[#allocation51_spill] sm:$0xff]  ;;  %v42355_v17 = vmax.f32 %v42174_v0, 0.0  ;;  %v42356_v15 = vmax.f32 %v42175_v6, 0.0  ;;  %v42357_v41 = vld [vmem:[#allocation52_spill] sm:$0xff]  ;;  %29872 = vmatprep.mubr.bf16.mxu0 %v39162_v4 }
0x1092   :  { %42337 = vst [vmem:[#allocation12_spill] sm:$0xff] %v39338_v2  ;;  %v39350_v55 = vpack.c.bf16 %v42345_v35, %v42343_v11  ;;  %v39356_v62 = vpack.c.bf16 %v42349_v57, %v42347_v18  ;;  %v42353_v23 = vmax.f32 %v42352_v9, 0.0  ;;  %v42358_v11 = vmax.f32 %v42357_v41, 0.0  ;;  %v42359_v22 = vld [vmem:[#allocation55_spill] sm:$0xff]  ;;  %v42362_v18 = vld [vmem:[#allocation57_spill] sm:$0xff]  ;;  %v42364_v57 = vld [vmem:[#allocation54_spill] sm:$0xff] }
0x1093   :  { %v39369_v63 = vpack.c.bf16 %v42356_v15, %v42355_v17  ;;  %v42360_v35 = vmax.f32 %v42359_v22, 0.0  ;;  %v42363_v58 = vmax.f32 %v42362_v18, 0.0  ;;  %v42365_v20 = vmax.f32 %v42364_v57, 0.0  ;;  %v42367_v9 = vld [vmem:[#allocation56_spill] sm:$0xff]  ;;  %v42372_v6 = vld [vmem:[#allocation61_spill] sm:$0xff]  ;;  %v42374_v15 = vld [vmem:[#allocation58_spill] sm:$0xff] }
0x1094   :  { %v39362_v2 = vpack.c.bf16 %v42353_v23, %v42351_v51  ;;  %v42368_v23 = vmax.f32 %v42367_v9, 0.0  ;;  %v42370_v0 = vmax.f32 %v42369_v27, 0.0  ;;  %v42373_v17 = vmax.f32 %v42372_v6, 0.0  ;;  %v42377_v22 = vld [vmem:[#allocation60_spill] sm:$0xff]  ;;  %v42379_v18 = vld [vmem:[#allocation63_spill] sm:$0xff] }
0x1095   :  { %v39375_v24 = vpack.c.bf16 %v42360_v35, %v42358_v11  ;;  %v39381_v51 = vpack.c.bf16 %v42365_v20, %v42363_v58  ;;  %v42375_v41 = vmax.f32 %v42374_v15, 0.0  ;;  %v42378_v35 = vmax.f32 %v42377_v22, 0.0  ;;  %v42381_v20 = vld [vmem:[#allocation65_spill] sm:$0xff] }
0x1096   :  { %42354 = vst [vmem:[#allocation93_spill] sm:$0xff] %v39362_v2  ;;  %v39387_v2 = vpack.c.bf16 %v42370_v0, %v42368_v23  ;;  %v42380_v57 = vmax.f32 %v42379_v18, 0.0  ;;  %v42382_v9 = vmax.f32 %v42381_v20, 0.0  ;;  %v42385_v0 = vld [vmem:[#allocation64_spill] sm:$0xff] }
0x1097   :  { %42361 = vst [vmem:[#allocation18_spill] sm:$0xff] %v39375_v24  ;;  %42366 = vst [vmem:[#allocation72_spill] sm:$0xff] %v39381_v51  ;;  %v39394_v11 = vpack.c.bf16 %v42375_v41, %v42373_v17  ;;  %v42383_v51 = vld [vmem:[#allocation62_spill] sm:$0xff]  ;;  %v42386_v42 = vmax.f32 %v42385_v0, 0.0  ;;  %v42389_v17 = vld [vmem:[#allocation69_spill] sm:$0xff] }
0x1098   :  { %42371 = vst [vmem:[#allocation73_spill] sm:$0xff] %v39387_v2  ;;  %v39400_v58 = vpack.c.bf16 %v42380_v57, %v42378_v35  ;;  %v42384_v27 = vmax.f32 %v42383_v51, 0.0  ;;  %v42387_v2 = vld [vmem:[#allocation67_spill] sm:$0xff]  ;;  %v42390_v15 = vmax.f32 %v42389_v17, 0.0  ;;  %v42391_v41 = vld [vmem:[#allocation66_spill] sm:$0xff]  ;;  %v42393_v35 = vld [vmem:[#allocation68_spill] sm:$0xff] }
0x1099   :  { %42376 = vst [vmem:[#allocation76_spill] sm:$0xff] %v39394_v11  ;;  %v42388_v6 = vmax.f32 %v42387_v2, 0.0  ;;  %v42392_v22 = vmax.f32 %v42391_v41, 0.0  ;;  %v42394_v18 = vmax.f32 %v42393_v35, 0.0  ;;  %v42395_v57 = vmax.f32 %v42191_v38, 0.0  ;;  %v42404_v41 = vld [vmem:[#allocation13_spill] sm:$0xff] }
0x109a   :  { %v39406_v23 = vpack.c.bf16 %v42384_v27, %v42382_v9  ;;  %v42396_v51 = vmax.f32 %v42192_v21, 0.0  ;;  %v42397_v9 = vmax.f32 %v42193_v31, 0.0  ;;  %v42398_v2 = vmax.f32 %v42194_v28, 0.0  ;;  %v42407_v31 = vld [vmem:[#allocation11_spill] sm:$0xff] }
0x109b   :  { %v39412_v24 = vpack.c.bf16 %v42388_v6, %v42386_v42  ;;  %v39418_v11 = vpack.c.bf16 %v42392_v22, %v42390_v15  ;;  %v39424_v20 = vpack.c.bf16 %v42395_v57, %v42394_v18  ;;  %v42399_v42 = vmax.f32 %v42195_v26, 0.0  ;;  %v42409_v18 = vld [vmem:[#allocation14_spill] sm:$0xff]  ;;  %v42412_v26 = vld [vmem:[#allocation5_spill] sm:$0xff] }
0x109c   :  { %v39430_v27 = vpack.c.bf16 %v42397_v9, %v42396_v51  ;;  %v42400_v6 = vmax.f32 %v42196_v40, 0.0  ;;  %v42401_v17 = vmax.f32 %v42197_v30, 0.0  ;;  %v42403_v38 = vmax.f32 %v42198_v39, 0.0  ;;  %v42414_v9 = vld [vmem:[#allocation7_spill] sm:$0xff] }
0x109d   :  { %v39436_v0 = vpack.c.bf16 %v42399_v42, %v42398_v2  ;;  %v42405_v21 = vmax.f32 %v42404_v41, 0.0  ;;  %v42408_v35 = vmax.f32 %v42407_v31, 0.0  ;;  %v42410_v28 = vmax.f32 %v42409_v18, 0.0 }
0x109e   :  { %v39442_v15 = vpack.c.bf16 %v42401_v17, %v42400_v6  ;;  %v42413_v51 = vmax.f32 %v42412_v26, 0.0  ;;  %v42415_v40 = vmax.f32 %v42414_v9, 0.0  ;;  %v42417_v30 = vmax.f32 %v38941_v50, 0.0  ;;  %v42420_v17 = vld [vmem:[#allocation23_spill] sm:$0xff] }
0x109f   :  { %v39448_v22 = vpack.c.bf16 %v42405_v21, %v42403_v38  ;;  %v39454_v57 = vpack.c.bf16 %v42410_v28, %v42408_v35  ;;  %v42418_v39 = vmax.f32 %v38945_v37, 0.0  ;;  %v42419_v6 = vmax.f32 %v38949_v59, 0.0 }
0x10a0   :  { %42402 = vst [vmem:[#allocation78_spill] sm:$0xff] %v39442_v15  ;;  %v39460_v2 = vpack.c.bf16 %v42415_v40, %v42413_v51  ;;  %v42421_v38 = vmax.f32 %v42420_v17, 0.0  ;;  %v42422_v21 = vmax.f32 %v38957_v10, 0.0  ;;  %v42423_v31 = vmax.f32 %v38961_v45, 0.0  ;;  %v42436_v45 = vld [vmem:[#allocation8_spill] sm:$0xff]  ;;  %v42441_v17 = vld [vmem:[#allocation21_spill] sm:$0xff] }
0x10a1   :  { %42406 = vst [vmem:[#allocation75_spill] sm:$0xff] %v39448_v22  ;;  %42411 = vst [vmem:[#allocation77_spill] sm:$0xff] %v39454_v57  ;;  %v39466_v42 = vpack.c.bf16 %v42418_v39, %v42417_v30  ;;  %v42425_v18 = vmax.f32 %v42202_v13, 0.0  ;;  %v42426_v50 = vmax.f32 %v42203_v36, 0.0  ;;  %v42428_v37 = vmax.f32 %v42204_v53, 0.0  ;;  %v34058_v13 = vld [vmem:[%s41064_s6 + $0x68] sm:$0xff]  }
0x10a2   :  { %42416 = vst [vmem:[#allocation80_spill] sm:$0xff] %v39460_v2  ;;  %v39472_v41 = vpack.c.bf16 %v42421_v38, %v42419_v6  ;;  %v39478_v35 = vpack.c.bf16 %v42423_v31, %v42422_v21  ;;  %v42429_v59 = vmax.f32 %v42205_v16, 0.0  ;;  %v42431_v51 = vmax.f32 %v42206_v3, 0.0  ;;  %30002 = vmatprep.subr.bf16.mxu0 %v34058_v13  ;;  %v34059_v53 = vld [vmem:[%s41064_s6 + $0x70] sm:$0xff]   ;;  %v34060_v16 = vld [vmem:[%s41064_s6 + $0x78] sm:$0xff]   ;;  %v42435_v3 = vld [vmem:[#allocation16_spill] sm:$0xff] }
0x10a3   :  { %v39484_v28 = vpack.c.bf16 %v42426_v50, %v42425_v18  ;;  %v42432_v10 = vmax.f32 %v38985_v56, 0.0  ;;  %30003 = vmatpush3.bf16.msra.mxu0 %v34058_v13  ;;  %v42434_v36 = vmov 0   ;;  %v42437_v56 = vld [vmem:[#allocation10_spill] sm:$0xff]  ;;  %v42438_v40 = vld [vmem:[#allocation20_spill] sm:$0xff]  ;;  %v42440_v6 = vld [vmem:[#allocation19_spill] sm:$0xff] }
0x10a4   :  { %42424 = vst [vmem:[#allocation82_spill] sm:$0xff] %v39478_v35  ;;  %v39490_v26 = vpack.c.bf16 %v42429_v59, %v42428_v37  ;;  %29873 = vmatmul.mubr.bf16.gmra.mrb[36].mxu0 %v42434_v36  ;;  %30004 = vmatprep.subr.bf16.mxu0 %v34059_v53  ;;  %v42439_v30 = vld [vmem:[#allocation22_spill] sm:$0xff]  ;;  %v34061_v39 = vld [vmem:[%s41064_s6 + $0x80] sm:$0xff]   ;;  %v42443_v21 = vld [vmem:[#allocation15_spill] sm:$0xff] }
0x10a5   :  { %42427 = vst [vmem:[#allocation79_spill] sm:$0xff] %v39484_v28  ;;  %v39496_v9 = vpack.c.bf16 %v42432_v10, %v42431_v51  ;;  %29876 = vmatprep.mubr.bf16.mxu0 %v42434_v36  ;;  %v42442_v38 = vld [vmem:[#allocation6_spill] sm:$0xff]  ;;  %v42445_v18 = vld [vmem:[#allocation12_spill] sm:$0xff]  ;;  %v42446_v50 = vld [vmem:[#allocation93_spill] sm:$0xff] }
0x10a6   :  { %42430 = vst [vmem:[#allocation81_spill] sm:$0xff] %v39490_v26  ;;  %v42444_v31 = vld [vmem:[#allocation70_spill] sm:$0xff]  ;;  %v42448_v59 = vld [vmem:[#allocation72_spill] sm:$0xff]  ;;  %v42449_v51 = vld [vmem:[#allocation73_spill] sm:$0xff] }
0x10a7   :  { %42433 = vst [vmem:[#allocation84_spill] sm:$0xff] %v39496_v9  ;;  %30005 = vmatpush3.bf16.msra.mxu0 %v34059_v53  ;;  %v42447_v37 = vld [vmem:[#allocation18_spill] sm:$0xff]  ;;  %v42450_v10 = vld [vmem:[#allocation76_spill] sm:$0xff]  ;;  %v34062_v13 = vld [vmem:[%s41064_s6 + $0x88] sm:$0xff]  }
0x10a8   :  { %30006 = vmatprep.subr.bf16.mxu0 %v34060_v16  ;;  %v34063_v53 = vld [vmem:[%s41064_s6 + $0x90] sm:$0xff]   ;;  %v42454_v9 = vld [vmem:[#allocation9_spill] sm:$0xff]  ;;  %v34072_v35 = vld [vmem:[%s41064_s6 + $0xd8] sm:$0xff]  }
0x10a9   :  { %v34070_v26 = vld [vmem:[%s41064_s6 + $0xc8] sm:$0xff]   ;;  %v34071_v28 = vld [vmem:[%s41064_s6 + $0xd0] sm:$0xff]  }
0x10ab   :  { %30007 = vmatpush3.bf16.msra.mxu0 %v34060_v16  ;;  %v34064_v16 = vld [vmem:[%s41064_s6 + $0x98] sm:$0xff]  }
0x10ac   :  { %29877 = vmatmul.mubr.bf16.gmra.mrb[40].mxu0 %v39168_v14  ;;  %30164 = vmatprep.subr.bf16.mxu0 %v34061_v39 }
0x10ad   :  { %29880 = vmatprep.mubr.bf16.mxu0 %v39175_v5 }
0x10b4   :  { %29881 = vmatmul.mubr.bf16.gmra.mrb[44].mxu0 %v39181_v52 }
0x10b5   :  { %29884 = vmatprep.mubr.bf16.mxu0 %v39187_v25 }
0x10bc   :  { %29885 = vmatmul.mubr.bf16.gmra.mrb[48].mxu0 %v39193_v61 }
0x10bd   :  { %29888 = vmatprep.mubr.bf16.mxu0 %v39200_v19 }
0x10c4   :  { %29889 = vmatmul.mubr.bf16.gmra.mrb[52].mxu0 %v39206_v32 }
0x10c5   :  { %29892 = vmatprep.mubr.bf16.mxu0 %v39212_v49 }
0x10cc   :  { %29893 = vmatmul.mubr.bf16.gmra.mrb[56].mxu0 %v42434_v36 }
0x10cd   :  { %29896 = vmatprep.mubr.bf16.mxu0 %v42434_v36 }
0x10d4   :  { %29897 = vmatmul.mubr.bf16.gmra.mrb[60].mxu0 %v39218_v46 }
0x10d5   :  { %29900 = vmatprep.mubr.bf16.mxu0 %v39224_v44 }
0x10dc   :  { %29901 = vmatmul.mubr.bf16.gmra.mrb[64].mxu0 %v39230_v54 }
0x10dd   :  { %29904 = vmatprep.mubr.bf16.mxu0 %v39236_v33 }
0x10e4   :  { %29905 = vmatmul.mubr.bf16.gmra.mrb[68].mxu0 %v39242_v29 }
0x10e5   :  { %29908 = vmatprep.mubr.bf16.mxu0 %v39248_v48 }
0x10ec   :  { %29909 = vmatmul.mubr.bf16.gmra.mrb[72].mxu0 %v39254_v7 }
0x10ed   :  { %29912 = vmatprep.mubr.bf16.mxu0 %v39260_v12 }
0x10f4   :  { %29913 = vmatmul.mubr.bf16.gmra.mrb[76].mxu0 %v42434_v36 }
0x10f5   :  { %29916 = vmatprep.mubr.bf16.mxu0 %v42434_v36 }
0x10fc   :  { %29917 = vmatmul.mubr.bf16.gmra.mrb[80].mxu0 %v39266_v1 }
0x10fd   :  { %29920 = vmatprep.mubr.bf16.mxu0 %v42435_v3 }
0x1104   :  { %29921 = vmatmul.mubr.bf16.gmra.mrb[84].mxu0 %v42436_v45 }
0x1105   :  { %29924 = vmatprep.mubr.bf16.mxu0 %v42437_v56 }
0x110c   :  { %29925 = vmatmul.mubr.bf16.gmra.mrb[88].mxu0 %v42438_v40 }
0x110d   :  { %29928 = vmatprep.mubr.bf16.mxu0 %v42439_v30 }
0x1114   :  { %29929 = vmatmul.mubr.bf16.gmra.mrb[92].mxu0 %v42440_v6 }
0x1115   :  { %29932 = vmatprep.mubr.bf16.mxu0 %v39308_v43 }
0x111c   :  { %29933 = vmatmul.mubr.bf16.gmra.mrb[96].mxu0 %v42434_v36 }
0x111d   :  { %29936 = vmatprep.mubr.bf16.mxu0 %v42434_v36 }
0x1124   :  { %29937 = vmatmul.mubr.bf16.gmra.mrb[100].mxu0 %v42441_v17 }
0x1125   :  { %29940 = vmatprep.mubr.bf16.mxu0 %v42442_v38 }
0x112c   :  { %29941 = vmatmul.mubr.bf16.gmra.mrb[104].mxu0 %v42443_v21 }
0x112d   :  { %29944 = vmatprep.mubr.bf16.mxu0 %v42444_v31 }
0x1134   :  { %29945 = vmatmul.mubr.bf16.gmra.mrb[108].mxu0 %v42445_v18 }
0x1135   :  { %29948 = vmatprep.mubr.bf16.mxu0 %v39344_v47 }
0x113c   :  { %29949 = vmatmul.mubr.bf16.gmra.mrb[112].mxu0 %v39350_v55 }
0x113d   :  { %29952 = vmatprep.mubr.bf16.mxu0 %v39356_v62 }
0x1144   :  { %29953 = vmatmul.mubr.bf16.gmra.mrb[116].mxu0 %v42434_v36 }
0x1145   :  { %29956 = vmatprep.mubr.bf16.mxu0 %v42434_v36 }
0x114c   :  { %29957 = vmatmul.mubr.bf16.gmra.mrb[120].mxu0 %v42446_v50 }
0x114d   :  { %29960 = vmatprep.mubr.bf16.mxu0 %v39369_v63 }
0x1154   :  { %29961 = vmatmul.mubr.bf16.gmra.mrb[124].mxu0 %v42447_v37 }
0x1155   :  { %29964 = vmatprep.mubr.bf16.mxu0 %v42448_v59 }
0x115c   :  { %29965 = vmatmul.mubr.bf16.gmra.mrb[128].mxu0 %v42449_v51 }
0x115d   :  { %29968 = vmatprep.mubr.bf16.mxu0 %v42450_v10 }
0x1164   :  { %29969 = vmatmul.mubr.bf16.gmra.mrb[132].mxu0 %v39400_v58 }
0x1165   :  { %29972 = vmatprep.mubr.bf16.mxu0 %v39406_v23 }
0x116c   :  { %29973 = vmatmul.mubr.bf16.gmra.mrb[136].mxu0 %v42434_v36 }
0x116d   :  { %29976 = vmatprep.mubr.bf16.mxu0 %v42434_v36 }
0x1174   :  { %29977 = vmatmul.mubr.bf16.gmra.mrb[140].mxu0 %v39412_v24 }
0x1175   :  { %29980 = vmatprep.mubr.bf16.mxu0 %v39418_v11 }
0x117c   :  { %29981 = vmatmul.mubr.bf16.gmra.mrb[144].mxu0 %v39424_v20 }
0x117d   :  { %29984 = vmatprep.mubr.bf16.mxu0 %v39430_v27 }
0x1184   :  { %29985 = vmatmul.mubr.bf16.gmra.mrb[148].mxu0 %v39436_v0 }
0x1185   :  { %29988 = vmatprep.mubr.bf16.mxu0 %v39442_v15 }
0x118c   :  { %29989 = vmatmul.mubr.bf16.gmra.mrb[152].mxu0 %v39448_v22 }
0x118d   :  { %30008 = vmatprep.mubr.bf16.mxu0 %v42434_v36 }
0x1194   :  { %30009 = vmatmul.mubr.bf16.vlgmr.msra.gmra.mrb[0].mxu0 %v42434_v36 }
0x1195   :  { %30165 = vmatpush3.bf16.msra.mxu0 %v34061_v39  ;;  %30012 = vmatprep.mubr.bf16.mxu0 %v42434_v36  ;;  %v34065_v39 = vld [vmem:[%s41064_s6 + $0xa0] sm:$0xff]  }
0x1196   :  { %30166 = vmatprep.subr.bf16.mxu0 %v34062_v13 }
0x1199   :  { %30167 = vmatpush3.bf16.msra.mxu0 %v34062_v13  ;;  %v42451_v13 = vld [vmem:[#allocation38_spill] sm:$0xff] }
0x119a   :  { %30168 = vmatprep.subr.bf16.mxu0 %v34063_v53 }
0x119c   :  { %30013 = vmatmul.mubr.bf16.gmra.mrb[4].mxu0 %v42434_v36 }
0x119d   :  { %30016 = vmatprep.mubr.bf16.mxu0 %v42434_v36  ;;  %30169 = vmatpush3.bf16.msra.mxu0 %v34063_v53  ;;  %v42452_v53 = vld [vmem:[#allocation53_spill] sm:$0xff] }
0x119e   :  { %30170 = vmatprep.subr.bf16.mxu0 %v34064_v16 }
0x11a1   :  { %30171 = vmatpush3.bf16.msra.mxu0 %v34064_v16  ;;  %v42453_v16 = vld [vmem:[#allocation50_spill] sm:$0xff] }
0x11a2   :  { %30172 = vmatprep.subr.bf16.mxu0 %v34065_v39 }
0x11a4   :  { %30017 = vmatmul.mubr.bf16.gmra.mrb[8].mxu0 %v42434_v36 }
0x11a5   :  { %30020 = vmatprep.mubr.bf16.mxu0 %v42434_v36  ;;  %30173 = vmatpush3.bf16.msra.mxu0 %v34065_v39  ;;  %v34066_v39 = vld [vmem:[%s41064_s6 + $0xa8] sm:$0xff]  }
0x11a6   :  { %30174 = vmatprep.subr.bf16.mxu0 %v34066_v39 }
0x11a9   :  { %30175 = vmatpush3.bf16.msra.mxu0 %v34066_v39  ;;  %v34067_v39 = vld [vmem:[%s41064_s6 + $0xb0] sm:$0xff]  }
0x11aa   :  { %30176 = vmatprep.subr.bf16.mxu0 %v34067_v39 }
0x11ac   :  { %30021 = vmatmul.mubr.bf16.gmra.mrb[12].mxu0 %v42434_v36 }
0x11ad   :  { %30024 = vmatprep.mubr.bf16.mxu0 %v42434_v36  ;;  %30177 = vmatpush3.bf16.msra.mxu0 %v34067_v39  ;;  %v34068_v39 = vld [vmem:[%s41064_s6 + $0xb8] sm:$0xff]  }
0x11ae   :  { %30178 = vmatprep.subr.bf16.mxu0 %v34068_v39 }
0x11b1   :  { %30179 = vmatpush3.bf16.msra.mxu0 %v34068_v39  ;;  %v34069_v39 = vld [vmem:[%s41064_s6 + $0xc0] sm:$0xff]  }
0x11b2   :  { %30336 = vmatprep.subr.bf16.mxu0 %v34069_v39 }
0x11b4   :  { %30025 = vmatmul.mubr.bf16.gmra.mrb[16].mxu0 %v42434_v36 }
0x11b5   :  { %30028 = vmatprep.mubr.bf16.mxu0 %v42451_v13 }
0x11bc   :  { %30029 = vmatmul.mubr.bf16.gmra.mrb[20].mxu0 %v42452_v53 }
0x11bd   :  { %30032 = vmatprep.mubr.bf16.mxu0 %v42453_v16 }
0x11c4   :  { %30033 = vmatmul.mubr.bf16.gmra.mrb[24].mxu0 %v42454_v9 }
0x11c5   :  { %30036 = vmatprep.mubr.bf16.mxu0 %v39144_v34 }
0x11cc   :  { %30037 = vmatmul.mubr.bf16.gmra.mrb[28].mxu0 %v39150_v8 }
0x11cd   :  { %30040 = vmatprep.mubr.bf16.mxu0 %v39156_v60 }
0x11d4   :  { %30041 = vmatmul.mubr.bf16.gmra.mrb[32].mxu0 %v39162_v4 }
0x11d5   :  { %30044 = vmatprep.mubr.bf16.mxu0 %v42434_v36 }
0x11dc   :  { %30045 = vmatmul.mubr.bf16.gmra.mrb[36].mxu0 %v42434_v36 }
0x11dd   :  { %30048 = vmatprep.mubr.bf16.mxu0 %v39168_v14 }
0x11e4   :  { %30049 = vmatmul.mubr.bf16.gmra.mrb[40].mxu0 %v39175_v5 }
0x11e5   :  { %30052 = vmatprep.mubr.bf16.mxu0 %v39181_v52 }
0x11ec   :  { %30053 = vmatmul.mubr.bf16.gmra.mrb[44].mxu0 %v39187_v25 }
0x11ed   :  { %30056 = vmatprep.mubr.bf16.mxu0 %v39193_v61 }
0x11f4   :  { %30057 = vmatmul.mubr.bf16.gmra.mrb[48].mxu0 %v39200_v19 }
0x11f5   :  { %30060 = vmatprep.mubr.bf16.mxu0 %v39206_v32 }
0x11fc   :  { %30061 = vmatmul.mubr.bf16.gmra.mrb[52].mxu0 %v39212_v49 }
0x11fd   :  { %30064 = vmatprep.mubr.bf16.mxu0 %v42434_v36 }
0x1204   :  { %30065 = vmatmul.mubr.bf16.gmra.mrb[56].mxu0 %v42434_v36 }
0x1205   :  { %30068 = vmatprep.mubr.bf16.mxu0 %v39218_v46 }
0x120c   :  { %30069 = vmatmul.mubr.bf16.gmra.mrb[60].mxu0 %v39224_v44 }
0x120d   :  { %30072 = vmatprep.mubr.bf16.mxu0 %v39230_v54 }
0x1214   :  { %30073 = vmatmul.mubr.bf16.gmra.mrb[64].mxu0 %v39236_v33 }
0x1215   :  { %30076 = vmatprep.mubr.bf16.mxu0 %v39242_v29 }
0x121c   :  { %30077 = vmatmul.mubr.bf16.gmra.mrb[68].mxu0 %v39248_v48 }
0x121d   :  { %30080 = vmatprep.mubr.bf16.mxu0 %v39254_v7 }
0x1224   :  { %30081 = vmatmul.mubr.bf16.gmra.mrb[72].mxu0 %v39260_v12 }
0x1225   :  { %30084 = vmatprep.mubr.bf16.mxu0 %v42434_v36 }
0x122c   :  { %30085 = vmatmul.mubr.bf16.gmra.mrb[76].mxu0 %v42434_v36 }
0x122d   :  { %30088 = vmatprep.mubr.bf16.mxu0 %v39266_v1 }
0x1234   :  { %30089 = vmatmul.mubr.bf16.gmra.mrb[80].mxu0 %v42435_v3 }
0x1235   :  { %30092 = vmatprep.mubr.bf16.mxu0 %v42436_v45 }
0x123c   :  { %30093 = vmatmul.mubr.bf16.gmra.mrb[84].mxu0 %v42437_v56 }
0x123d   :  { %30096 = vmatprep.mubr.bf16.mxu0 %v42438_v40 }
0x1244   :  { %30097 = vmatmul.mubr.bf16.gmra.mrb[88].mxu0 %v42439_v30 }
0x1245   :  { %30100 = vmatprep.mubr.bf16.mxu0 %v42440_v6 }
0x124c   :  { %30101 = vmatmul.mubr.bf16.gmra.mrb[92].mxu0 %v39308_v43 }
0x124d   :  { %30104 = vmatprep.mubr.bf16.mxu0 %v42434_v36 }
0x1254   :  { %30105 = vmatmul.mubr.bf16.gmra.mrb[96].mxu0 %v42434_v36 }
0x1255   :  { %30108 = vmatprep.mubr.bf16.mxu0 %v42441_v17 }
0x125c   :  { %30109 = vmatmul.mubr.bf16.gmra.mrb[100].mxu0 %v42442_v38 }
0x125d   :  { %30112 = vmatprep.mubr.bf16.mxu0 %v42443_v21 }
0x1264   :  { %30113 = vmatmul.mubr.bf16.gmra.mrb[104].mxu0 %v42444_v31 }
0x1265   :  { %30116 = vmatprep.mubr.bf16.mxu0 %v42445_v18 }
0x126c   :  { %30117 = vmatmul.mubr.bf16.gmra.mrb[108].mxu0 %v39344_v47 }
0x126d   :  { %30120 = vmatprep.mubr.bf16.mxu0 %v39350_v55 }
0x1274   :  { %30121 = vmatmul.mubr.bf16.gmra.mrb[112].mxu0 %v39356_v62 }
0x1275   :  { %30124 = vmatprep.mubr.bf16.mxu0 %v42434_v36 }
0x127c   :  { %30125 = vmatmul.mubr.bf16.gmra.mrb[116].mxu0 %v42434_v36 }
0x127d   :  { %30128 = vmatprep.mubr.bf16.mxu0 %v42446_v50 }
0x1284   :  { %30129 = vmatmul.mubr.bf16.gmra.mrb[120].mxu0 %v39369_v63 }
0x1285   :  { %30132 = vmatprep.mubr.bf16.mxu0 %v42447_v37 }
0x128c   :  { %30133 = vmatmul.mubr.bf16.gmra.mrb[124].mxu0 %v42448_v59 }
0x128d   :  { %30136 = vmatprep.mubr.bf16.mxu0 %v42449_v51 }
0x1294   :  { %30137 = vmatmul.mubr.bf16.gmra.mrb[128].mxu0 %v42450_v10 }
0x1295   :  { %30140 = vmatprep.mubr.bf16.mxu0 %v39400_v58 }
0x129c   :  { %30141 = vmatmul.mubr.bf16.gmra.mrb[132].mxu0 %v39406_v23 }
0x129d   :  { %30144 = vmatprep.mubr.bf16.mxu0 %v42434_v36 }
0x12a4   :  { %30145 = vmatmul.mubr.bf16.gmra.mrb[136].mxu0 %v42434_v36 }
0x12a5   :  { %30148 = vmatprep.mubr.bf16.mxu0 %v39412_v24 }
0x12ac   :  { %30149 = vmatmul.mubr.bf16.gmra.mrb[140].mxu0 %v39418_v11 }
0x12ad   :  { %30152 = vmatprep.mubr.bf16.mxu0 %v39424_v20 }
0x12b4   :  { %30153 = vmatmul.mubr.bf16.gmra.mrb[144].mxu0 %v39430_v27 }
0x12b5   :  { %30156 = vmatprep.mubr.bf16.mxu0 %v39436_v0 }
0x12bc   :  { %30157 = vmatmul.mubr.bf16.gmra.mrb[148].mxu0 %v39442_v15 }
0x12bd   :  { %30160 = vmatprep.mubr.bf16.mxu0 %v39448_v22 }
0x12c4   :  { %30161 = vmatmul.mubr.bf16.gmra.mrb[152].mxu0 %v39454_v57 }
0x12c5   :  { %30180 = vmatprep.mubr.bf16.mxu0 %v42434_v36 }
0x12cc   :  { %30181 = vmatmul.mubr.bf16.vlgmr.msra.gmra.mrb[0].mxu0 %v42434_v36 }
0x12cd   :  { %30337 = vmatpush3.bf16.msra.mxu0 %v34069_v39  ;;  %30184 = vmatprep.mubr.bf16.mxu0 %v42434_v36  ;;  %v34076_v39 = vld [vmem:[%s41064_s6 + $0xf8] sm:$0xff]  }
0x12ce   :  { %30338 = vmatprep.subr.bf16.mxu0 %v34070_v26 }
0x12d1   :  { %30339 = vmatpush3.bf16.msra.mxu0 %v34070_v26  ;;  %v34073_v26 = vld [vmem:[%s41064_s6 + $0xe0] sm:$0xff]  }
0x12d2   :  { %30340 = vmatprep.subr.bf16.mxu0 %v34071_v28 }
0x12d4   :  { %30185 = vmatmul.mubr.bf16.gmra.mrb[4].mxu0 %v42434_v36 }
0x12d5   :  { %30188 = vmatprep.mubr.bf16.mxu0 %v42434_v36  ;;  %30341 = vmatpush3.bf16.msra.mxu0 %v34071_v28  ;;  %v34075_v28 = vld [vmem:[%s41064_s6 + $0xf0] sm:$0xff]  }
0x12d6   :  { %30342 = vmatprep.subr.bf16.mxu0 %v34072_v35 }
0x12d9   :  { %30343 = vmatpush3.bf16.msra.mxu0 %v34072_v35  ;;  %v34074_v35 = vld [vmem:[%s41064_s6 + $0xe8] sm:$0xff]  }
0x12da   :  { %30344 = vmatprep.subr.bf16.mxu0 %v34073_v26 }
0x12dc   :  { %30189 = vmatmul.mubr.bf16.gmra.mrb[8].mxu0 %v42434_v36 }
0x12dd   :  { %30192 = vmatprep.mubr.bf16.mxu0 %v42434_v36  ;;  %30345 = vmatpush3.bf16.msra.mxu0 %v34073_v26  ;;  %v34077_v26 = vld [vmem:[%s41064_s6 + $0x100] sm:$0xff]  }
0x12de   :  { %30346 = vmatprep.subr.bf16.mxu0 %v34074_v35 }
0x12e1   :  { %30347 = vmatpush3.bf16.msra.mxu0 %v34074_v35  ;;  %v34078_v35 = vld [vmem:[%s41064_s6 + $0x108] sm:$0xff]  }
0x12e2   :  { %30348 = vmatprep.subr.bf16.mxu0 %v34075_v28 }
0x12e4   :  { %30193 = vmatmul.mubr.bf16.gmra.mrb[12].mxu0 %v42434_v36 }
0x12e5   :  { %30196 = vmatprep.mubr.bf16.mxu0 %v42434_v36  ;;  %30349 = vmatpush3.bf16.msra.mxu0 %v34075_v28  ;;  %v34079_v28 = vld [vmem:[%s41064_s6 + $0x110] sm:$0xff]  }
0x12e6   :  { %30350 = vmatprep.subr.bf16.mxu0 %v34076_v39 }
0x12e9   :  { %30351 = vmatpush3.bf16.msra.mxu0 %v34076_v39  ;;  %v34080_v39 = vld [vmem:[%s41064_s6 + $0x118] sm:$0xff]  }
0x12ea   :  { %30508 = vmatprep.subr.bf16.mxu0 %v34077_v26 }
0x12ec   :  { %30197 = vmatmul.mubr.bf16.gmra.mrb[16].mxu0 %v42451_v13 }
0x12ed   :  { %30200 = vmatprep.mubr.bf16.mxu0 %v42452_v53 }
0x12f4   :  { %30201 = vmatmul.mubr.bf16.gmra.mrb[20].mxu0 %v42453_v16 }
0x12f5   :  { %30204 = vmatprep.mubr.bf16.mxu0 %v42454_v9 }
0x12fc   :  { %30205 = vmatmul.mubr.bf16.gmra.mrb[24].mxu0 %v39144_v34 }
0x12fd   :  { %30208 = vmatprep.mubr.bf16.mxu0 %v39150_v8 }
0x1304   :  { %30209 = vmatmul.mubr.bf16.gmra.mrb[28].mxu0 %v39156_v60 }
0x1305   :  { %30212 = vmatprep.mubr.bf16.mxu0 %v39162_v4 }
0x130c   :  { %30213 = vmatmul.mubr.bf16.gmra.mrb[32].mxu0 %v42434_v36 }
0x130d   :  { %30216 = vmatprep.mubr.bf16.mxu0 %v42434_v36 }
0x1314   :  { %30217 = vmatmul.mubr.bf16.gmra.mrb[36].mxu0 %v39168_v14 }
0x1315   :  { %30220 = vmatprep.mubr.bf16.mxu0 %v39175_v5 }
0x131c   :  { %30221 = vmatmul.mubr.bf16.gmra.mrb[40].mxu0 %v39181_v52 }
0x131d   :  { %30224 = vmatprep.mubr.bf16.mxu0 %v39187_v25 }
0x1324   :  { %30225 = vmatmul.mubr.bf16.gmra.mrb[44].mxu0 %v39193_v61 }
0x1325   :  { %30228 = vmatprep.mubr.bf16.mxu0 %v39200_v19 }
0x132c   :  { %30229 = vmatmul.mubr.bf16.gmra.mrb[48].mxu0 %v39206_v32 }
0x132d   :  { %30232 = vmatprep.mubr.bf16.mxu0 %v39212_v49 }
0x1334   :  { %30233 = vmatmul.mubr.bf16.gmra.mrb[52].mxu0 %v42434_v36 }
0x1335   :  { %30236 = vmatprep.mubr.bf16.mxu0 %v42434_v36 }
0x133c   :  { %30237 = vmatmul.mubr.bf16.gmra.mrb[56].mxu0 %v39218_v46 }
0x133d   :  { %30240 = vmatprep.mubr.bf16.mxu0 %v39224_v44 }
0x1344   :  { %30241 = vmatmul.mubr.bf16.gmra.mrb[60].mxu0 %v39230_v54 }
0x1345   :  { %30244 = vmatprep.mubr.bf16.mxu0 %v39236_v33 }
0x134c   :  { %30245 = vmatmul.mubr.bf16.gmra.mrb[64].mxu0 %v39242_v29 }
0x134d   :  { %30248 = vmatprep.mubr.bf16.mxu0 %v39248_v48 }
0x1354   :  { %30249 = vmatmul.mubr.bf16.gmra.mrb[68].mxu0 %v39254_v7 }
0x1355   :  { %30252 = vmatprep.mubr.bf16.mxu0 %v39260_v12 }
0x135c   :  { %30253 = vmatmul.mubr.bf16.gmra.mrb[72].mxu0 %v42434_v36 }
0x135d   :  { %30256 = vmatprep.mubr.bf16.mxu0 %v42434_v36 }
0x1364   :  { %30257 = vmatmul.mubr.bf16.gmra.mrb[76].mxu0 %v39266_v1 }
0x1365   :  { %30260 = vmatprep.mubr.bf16.mxu0 %v42435_v3 }
0x136c   :  { %30261 = vmatmul.mubr.bf16.gmra.mrb[80].mxu0 %v42436_v45 }
0x136d   :  { %30264 = vmatprep.mubr.bf16.mxu0 %v42437_v56 }
0x1374   :  { %30265 = vmatmul.mubr.bf16.gmra.mrb[84].mxu0 %v42438_v40 }
0x1375   :  { %30268 = vmatprep.mubr.bf16.mxu0 %v42439_v30 }
0x137c   :  { %30269 = vmatmul.mubr.bf16.gmra.mrb[88].mxu0 %v42440_v6 }
0x137d   :  { %30272 = vmatprep.mubr.bf16.mxu0 %v39308_v43 }
0x1384   :  { %30273 = vmatmul.mubr.bf16.gmra.mrb[92].mxu0 %v42434_v36 }
0x1385   :  { %30276 = vmatprep.mubr.bf16.mxu0 %v42434_v36 }
0x138c   :  { %30277 = vmatmul.mubr.bf16.gmra.mrb[96].mxu0 %v42441_v17 }
0x138d   :  { %30280 = vmatprep.mubr.bf16.mxu0 %v42442_v38 }
0x1394   :  { %30281 = vmatmul.mubr.bf16.gmra.mrb[100].mxu0 %v42443_v21 }
0x1395   :  { %30284 = vmatprep.mubr.bf16.mxu0 %v42444_v31 }
0x139c   :  { %30285 = vmatmul.mubr.bf16.gmra.mrb[104].mxu0 %v42445_v18 }
0x139d   :  { %30288 = vmatprep.mubr.bf16.mxu0 %v39344_v47 }
0x13a4   :  { %30289 = vmatmul.mubr.bf16.gmra.mrb[108].mxu0 %v39350_v55 }
0x13a5   :  { %30292 = vmatprep.mubr.bf16.mxu0 %v39356_v62 }
0x13ac   :  { %30293 = vmatmul.mubr.bf16.gmra.mrb[112].mxu0 %v42434_v36 }
0x13ad   :  { %30296 = vmatprep.mubr.bf16.mxu0 %v42434_v36 }
0x13b4   :  { %30297 = vmatmul.mubr.bf16.gmra.mrb[116].mxu0 %v42446_v50 }
0x13b5   :  { %30300 = vmatprep.mubr.bf16.mxu0 %v39369_v63 }
0x13bc   :  { %30301 = vmatmul.mubr.bf16.gmra.mrb[120].mxu0 %v42447_v37 }
0x13bd   :  { %30304 = vmatprep.mubr.bf16.mxu0 %v42448_v59 }
0x13c4   :  { %30305 = vmatmul.mubr.bf16.gmra.mrb[124].mxu0 %v42449_v51 }
0x13c5   :  { %30308 = vmatprep.mubr.bf16.mxu0 %v42450_v10 }
0x13cc   :  { %30309 = vmatmul.mubr.bf16.gmra.mrb[128].mxu0 %v39400_v58 }
0x13cd   :  { %30312 = vmatprep.mubr.bf16.mxu0 %v39406_v23 }
0x13d4   :  { %30313 = vmatmul.mubr.bf16.gmra.mrb[132].mxu0 %v42434_v36 }
0x13d5   :  { %30316 = vmatprep.mubr.bf16.mxu0 %v42434_v36 }
0x13dc   :  { %30317 = vmatmul.mubr.bf16.gmra.mrb[136].mxu0 %v39412_v24 }
0x13dd   :  { %30320 = vmatprep.mubr.bf16.mxu0 %v39418_v11 }
0x13e4   :  { %30321 = vmatmul.mubr.bf16.gmra.mrb[140].mxu0 %v39424_v20 }
0x13e5   :  { %30324 = vmatprep.mubr.bf16.mxu0 %v39430_v27 }
0x13ec   :  { %30325 = vmatmul.mubr.bf16.gmra.mrb[144].mxu0 %v39436_v0 }
0x13ed   :  { %30328 = vmatprep.mubr.bf16.mxu0 %v39442_v15 }
0x13f4   :  { %30329 = vmatmul.mubr.bf16.gmra.mrb[148].mxu0 %v39448_v22 }
0x13f5   :  { %30332 = vmatprep.mubr.bf16.mxu0 %v39454_v57 }
0x13fc   :  { %30333 = vmatmul.mubr.bf16.gmra.mrb[152].mxu0 %v42434_v36 }
0x13fd   :  { %30352 = vmatprep.mubr.bf16.mxu0 %v42434_v36 }
0x1404   :  { %30353 = vmatmul.mubr.bf16.vlgmr.msra.gmra.mrb[0].mxu0 %v42451_v13 }
0x1405   :  { %30509 = vmatpush3.bf16.msra.mxu0 %v34077_v26  ;;  %30356 = vmatprep.mubr.bf16.mxu0 %v42452_v53  ;;  %v34081_v26 = vld [vmem:[%s41064_s6 + $0x120] sm:$0xff]  }
0x1406   :  { %30510 = vmatprep.subr.bf16.mxu0 %v34078_v35 }
0x1409   :  { %30511 = vmatpush3.bf16.msra.mxu0 %v34078_v35  ;;  %v34082_v35 = vld [vmem:[%s41064_s6 + $0x128] sm:$0xff]  }
0x140a   :  { %30512 = vmatprep.subr.bf16.mxu0 %v34079_v28 }
0x140c   :  { %30357 = vmatmul.mubr.bf16.gmra.mrb[4].mxu0 %v42453_v16 }
0x140d   :  { %30360 = vmatprep.mubr.bf16.mxu0 %v42454_v9  ;;  %30513 = vmatpush3.bf16.msra.mxu0 %v34079_v28  ;;  %v34083_v28 = vld [vmem:[%s41064_s6 + $0x130] sm:$0xff]  }
0x140e   :  { %30514 = vmatprep.subr.bf16.mxu0 %v34080_v39 }
0x1411   :  { %30515 = vmatpush3.bf16.msra.mxu0 %v34080_v39  ;;  %v34084_v39 = vld [vmem:[%s41064_s6 + $0x138] sm:$0xff]  }
0x1412   :  { %30516 = vmatprep.subr.bf16.mxu0 %v34081_v26 }
0x1414   :  { %30361 = vmatmul.mubr.bf16.gmra.mrb[8].mxu0 %v39144_v34 }
0x1415   :  { %30364 = vmatprep.mubr.bf16.mxu0 %v39150_v8  ;;  %30517 = vmatpush3.bf16.msra.mxu0 %v34081_v26  ;;  %v34085_v26 = vld [vmem:[%s41064_s6 + $0x140] sm:$0xff]  }
0x1416   :  { %30518 = vmatprep.subr.bf16.mxu0 %v34082_v35 }
0x1419   :  { %30519 = vmatpush3.bf16.msra.mxu0 %v34082_v35  ;;  %v42455_v35 = vld [vmem:[#allocation82_spill] sm:$0xff] }
0x141a   :  { %30520 = vmatprep.subr.bf16.mxu0 %v34083_v28 }
0x141c   :  { %30365 = vmatmul.mubr.bf16.gmra.mrb[12].mxu0 %v39156_v60 }
0x141d   :  { %30368 = vmatprep.mubr.bf16.mxu0 %v39162_v4  ;;  %30521 = vmatpush3.bf16.msra.mxu0 %v34083_v28  ;;  %v42456_v28 = vld [vmem:[#allocation79_spill] sm:$0xff] }
0x141e   :  { %30522 = vmatprep.subr.bf16.mxu0 %v34084_v39 }
0x1421   :  { %30523 = vmatpush3.bf16.msra.mxu0 %v34084_v39  ;;  %v42457_v39 = vld [vmem:[#allocation81_spill] sm:$0xff] }
0x1422   :  { %30680 = vmatprep.subr.bf16.mxu0 %v34085_v26 }
0x1424   :  { %30369 = vmatmul.mubr.bf16.gmra.mrb[16].mxu0 %v42434_v36 }
0x1425   :  { %30372 = vmatprep.mubr.bf16.mxu0 %v42434_v36 }
0x142c   :  { %30373 = vmatmul.mubr.bf16.gmra.mrb[20].mxu0 %v39168_v14 }
0x142d   :  { %30376 = vmatprep.mubr.bf16.mxu0 %v39175_v5 }
0x1434   :  { %30377 = vmatmul.mubr.bf16.gmra.mrb[24].mxu0 %v39181_v52 }
0x1435   :  { %30380 = vmatprep.mubr.bf16.mxu0 %v39187_v25 }
0x143c   :  { %30381 = vmatmul.mubr.bf16.gmra.mrb[28].mxu0 %v39193_v61 }
0x143d   :  { %30384 = vmatprep.mubr.bf16.mxu0 %v39200_v19 }
0x1444   :  { %30385 = vmatmul.mubr.bf16.gmra.mrb[32].mxu0 %v39206_v32 }
0x1445   :  { %30388 = vmatprep.mubr.bf16.mxu0 %v39212_v49 }
0x144c   :  { %30389 = vmatmul.mubr.bf16.gmra.mrb[36].mxu0 %v42434_v36 }
0x144d   :  { %30392 = vmatprep.mubr.bf16.mxu0 %v42434_v36 }
0x1454   :  { %30393 = vmatmul.mubr.bf16.gmra.mrb[40].mxu0 %v39218_v46 }
0x1455   :  { %30396 = vmatprep.mubr.bf16.mxu0 %v39224_v44 }
0x145c   :  { %30397 = vmatmul.mubr.bf16.gmra.mrb[44].mxu0 %v39230_v54 }
0x145d   :  { %30400 = vmatprep.mubr.bf16.mxu0 %v39236_v33 }
0x1464   :  { %30401 = vmatmul.mubr.bf16.gmra.mrb[48].mxu0 %v39242_v29 }
0x1465   :  { %30404 = vmatprep.mubr.bf16.mxu0 %v39248_v48 }
0x146c   :  { %30405 = vmatmul.mubr.bf16.gmra.mrb[52].mxu0 %v39254_v7 }
0x146d   :  { %30408 = vmatprep.mubr.bf16.mxu0 %v39260_v12 }
0x1474   :  { %30409 = vmatmul.mubr.bf16.gmra.mrb[56].mxu0 %v42434_v36 }
0x1475   :  { %30412 = vmatprep.mubr.bf16.mxu0 %v42434_v36 }
0x147c   :  { %30413 = vmatmul.mubr.bf16.gmra.mrb[60].mxu0 %v39266_v1 }
0x147d   :  { %30416 = vmatprep.mubr.bf16.mxu0 %v42435_v3 }
0x1484   :  { %30417 = vmatmul.mubr.bf16.gmra.mrb[64].mxu0 %v42436_v45 }
0x1485   :  { %30420 = vmatprep.mubr.bf16.mxu0 %v42437_v56 }
0x148c   :  { %30421 = vmatmul.mubr.bf16.gmra.mrb[68].mxu0 %v42438_v40 }
0x148d   :  { %30424 = vmatprep.mubr.bf16.mxu0 %v42439_v30 }
0x1494   :  { %30425 = vmatmul.mubr.bf16.gmra.mrb[72].mxu0 %v42440_v6 }
0x1495   :  { %30428 = vmatprep.mubr.bf16.mxu0 %v39308_v43 }
0x149c   :  { %30429 = vmatmul.mubr.bf16.gmra.mrb[76].mxu0 %v42434_v36 }
0x149d   :  { %30432 = vmatprep.mubr.bf16.mxu0 %v42434_v36 }
0x14a4   :  { %30433 = vmatmul.mubr.bf16.gmra.mrb[80].mxu0 %v42441_v17 }
0x14a5   :  { %30436 = vmatprep.mubr.bf16.mxu0 %v42442_v38 }
0x14ac   :  { %30437 = vmatmul.mubr.bf16.gmra.mrb[84].mxu0 %v42443_v21 }
0x14ad   :  { %30440 = vmatprep.mubr.bf16.mxu0 %v42444_v31 }
0x14b4   :  { %30441 = vmatmul.mubr.bf16.gmra.mrb[88].mxu0 %v42445_v18 }
0x14b5   :  { %30444 = vmatprep.mubr.bf16.mxu0 %v39344_v47 }
0x14bc   :  { %30445 = vmatmul.mubr.bf16.gmra.mrb[92].mxu0 %v39350_v55 }
0x14bd   :  { %30448 = vmatprep.mubr.bf16.mxu0 %v39356_v62 }
0x14c4   :  { %30449 = vmatmul.mubr.bf16.gmra.mrb[96].mxu0 %v42434_v36 }
0x14c5   :  { %30452 = vmatprep.mubr.bf16.mxu0 %v42434_v36 }
0x14cc   :  { %30453 = vmatmul.mubr.bf16.gmra.mrb[100].mxu0 %v42446_v50 }
0x14cd   :  { %30456 = vmatprep.mubr.bf16.mxu0 %v39369_v63 }
0x14d4   :  { %30457 = vmatmul.mubr.bf16.gmra.mrb[104].mxu0 %v42447_v37 }
0x14d5   :  { %30460 = vmatprep.mubr.bf16.mxu0 %v42448_v59 }
0x14dc   :  { %30461 = vmatmul.mubr.bf16.gmra.mrb[108].mxu0 %v42449_v51 }
0x14dd   :  { %30464 = vmatprep.mubr.bf16.mxu0 %v42450_v10 }
0x14e4   :  { %30465 = vmatmul.mubr.bf16.gmra.mrb[112].mxu0 %v39400_v58 }
0x14e5   :  { %30468 = vmatprep.mubr.bf16.mxu0 %v39406_v23 }
0x14ec   :  { %30469 = vmatmul.mubr.bf16.gmra.mrb[116].mxu0 %v42434_v36 }
0x14ed   :  { %30472 = vmatprep.mubr.bf16.mxu0 %v42434_v36 }
0x14f4   :  { %30473 = vmatmul.mubr.bf16.gmra.mrb[120].mxu0 %v39412_v24 }
0x14f5   :  { %30476 = vmatprep.mubr.bf16.mxu0 %v39418_v11 }
0x14fc   :  { %30477 = vmatmul.mubr.bf16.gmra.mrb[124].mxu0 %v39424_v20 }
0x14fd   :  { %30480 = vmatprep.mubr.bf16.mxu0 %v39430_v27 }
0x1504   :  { %30481 = vmatmul.mubr.bf16.gmra.mrb[128].mxu0 %v39436_v0 }
0x1505   :  { %30484 = vmatprep.mubr.bf16.mxu0 %v39442_v15  ;;  %v42458_v15 = vld [vmem:[#allocation17_spill] sm:$0xff] }
0x150c   :  { %30485 = vmatmul.mubr.bf16.gmra.mrb[132].mxu0 %v39448_v22 }
0x150d   :  { %30488 = vmatprep.mubr.bf16.mxu0 %v39454_v57  ;;  %v34086_v57 = vld [vmem:[%s41064_s6 + $0x148] sm:$0xff]  }
0x1514   :  { %30489 = vmatmul.mubr.bf16.gmra.mrb[136].mxu0 %v42434_v36 }
0x1515   :  { %30492 = vmatprep.mubr.bf16.mxu0 %v42434_v36 }
0x151c   :  { %30493 = vmatmul.mubr.bf16.gmra.mrb[140].mxu0 %v39460_v2 }
0x151d   :  { %30496 = vmatprep.mubr.bf16.mxu0 %v39466_v42 }
0x1524   :  { %30497 = vmatmul.mubr.bf16.gmra.mrb[144].mxu0 %v39472_v41 }
0x1525   :  { %30500 = vmatprep.mubr.bf16.mxu0 %v42455_v35 }
0x152c   :  { %30501 = vmatmul.mubr.bf16.gmra.mrb[148].mxu0 %v42456_v28  ;;  %v34087_v28 = vld [vmem:[%s41064_s6 + $0x150] sm:$0xff]  }
0x152d   :  { %30504 = vmatprep.mubr.bf16.mxu0 %v42457_v39 }
0x1534   :  { %30505 = vmatmul.mubr.bf16.gmra.mrb[152].mxu0 %v42458_v15 }
0x1535   :  { %30524 = vmatprep.mubr.bf16.mxu0 %v42451_v13  ;;  %v34088_v13 = vld [vmem:[%s41064_s6 + $0x158] sm:$0xff]  }
0x153c   :  { %30525 = vmatmul.mubr.bf16.vlgmr.msra.gmra.mrb[0].mxu0 %v42452_v53 }
0x153d   :  { %30681 = vmatpush3.bf16.msra.mxu0 %v34085_v26  ;;  %30528 = vmatprep.mubr.bf16.mxu0 %v42453_v16  ;;  %v34090_v26 = vld [vmem:[%s41064_s6 + $0x168] sm:$0xff]  }
0x153e   :  { %30682 = vmatprep.subr.bf16.mxu0 %v34086_v57 }
0x1541   :  { %30683 = vmatpush3.bf16.msra.mxu0 %v34086_v57  ;;  %v34089_v57 = vld [vmem:[%s41064_s6 + $0x160] sm:$0xff]  }
0x1542   :  { %30684 = vmatprep.subr.bf16.mxu0 %v34087_v28 }
0x1544   :  { %30529 = vmatmul.mubr.bf16.gmra.mrb[4].mxu0 %v42454_v9 }
0x1545   :  { %30532 = vmatprep.mubr.bf16.mxu0 %v39144_v34  ;;  %30685 = vmatpush3.bf16.msra.mxu0 %v34087_v28  ;;  %v34091_v28 = vld [vmem:[%s41064_s6 + $0x170] sm:$0xff]  }
0x1546   :  { %30686 = vmatprep.subr.bf16.mxu0 %v34088_v13 }
0x1549   :  { %30687 = vmatpush3.bf16.msra.mxu0 %v34088_v13  ;;  %v34092_v13 = vld [vmem:[%s41064_s6 + $0x178] sm:$0xff]  }
0x154a   :  { %30688 = vmatprep.subr.bf16.mxu0 %v34089_v57 }
0x154c   :  { %30533 = vmatmul.mubr.bf16.gmra.mrb[8].mxu0 %v39150_v8 }
0x154d   :  { %30536 = vmatprep.mubr.bf16.mxu0 %v39156_v60  ;;  %30689 = vmatpush3.bf16.msra.mxu0 %v34089_v57  ;;  %v34093_v57 = vld [vmem:[%s41064_s6 + $0x180] sm:$0xff]  }
0x154e   :  { %30690 = vmatprep.subr.bf16.mxu0 %v34090_v26 }
0x1551   :  { %30691 = vmatpush3.bf16.msra.mxu0 %v34090_v26  ;;  %v42459_v26 = vld [vmem:[#allocation78_spill] sm:$0xff] }
0x1552   :  { %30692 = vmatprep.subr.bf16.mxu0 %v34091_v28 }
0x1554   :  { %30537 = vmatmul.mubr.bf16.gmra.mrb[12].mxu0 %v39162_v4 }
0x1555   :  { %30540 = vmatprep.mubr.bf16.mxu0 %v42434_v36  ;;  %30693 = vmatpush3.bf16.msra.mxu0 %v34091_v28  ;;  %v42460_v28 = vld [vmem:[#allocation77_spill] sm:$0xff] }
0x1556   :  { %30694 = vmatprep.subr.bf16.mxu0 %v34092_v13 }
0x1559   :  { %30695 = vmatpush3.bf16.msra.mxu0 %v34092_v13  ;;  %v42461_v13 = vld [vmem:[#allocation79_spill] sm:$0xff] }
0x155a   :  { %30852 = vmatprep.subr.bf16.mxu0 %v34093_v57 }
0x155c   :  { %30541 = vmatmul.mubr.bf16.gmra.mrb[16].mxu0 %v42434_v36 }
0x155d   :  { %30544 = vmatprep.mubr.bf16.mxu0 %v39168_v14 }
0x1564   :  { %30545 = vmatmul.mubr.bf16.gmra.mrb[20].mxu0 %v39175_v5 }
0x1565   :  { %30548 = vmatprep.mubr.bf16.mxu0 %v39181_v52 }
0x156c   :  { %30549 = vmatmul.mubr.bf16.gmra.mrb[24].mxu0 %v39187_v25 }
0x156d   :  { %30552 = vmatprep.mubr.bf16.mxu0 %v39193_v61 }
0x1574   :  { %30553 = vmatmul.mubr.bf16.gmra.mrb[28].mxu0 %v39200_v19 }
0x1575   :  { %30556 = vmatprep.mubr.bf16.mxu0 %v39206_v32 }
0x157c   :  { %30557 = vmatmul.mubr.bf16.gmra.mrb[32].mxu0 %v39212_v49 }
0x157d   :  { %30560 = vmatprep.mubr.bf16.mxu0 %v42434_v36 }
0x1584   :  { %30561 = vmatmul.mubr.bf16.gmra.mrb[36].mxu0 %v42434_v36 }
0x1585   :  { %30564 = vmatprep.mubr.bf16.mxu0 %v39218_v46 }
0x158c   :  { %30565 = vmatmul.mubr.bf16.gmra.mrb[40].mxu0 %v39224_v44 }
0x158d   :  { %30568 = vmatprep.mubr.bf16.mxu0 %v39230_v54 }
0x1594   :  { %30569 = vmatmul.mubr.bf16.gmra.mrb[44].mxu0 %v39236_v33 }
0x1595   :  { %30572 = vmatprep.mubr.bf16.mxu0 %v39242_v29 }
0x159c   :  { %30573 = vmatmul.mubr.bf16.gmra.mrb[48].mxu0 %v39248_v48 }
0x159d   :  { %30576 = vmatprep.mubr.bf16.mxu0 %v39254_v7 }
0x15a4   :  { %30577 = vmatmul.mubr.bf16.gmra.mrb[52].mxu0 %v39260_v12 }
0x15a5   :  { %30580 = vmatprep.mubr.bf16.mxu0 %v42434_v36 }
0x15ac   :  { %30581 = vmatmul.mubr.bf16.gmra.mrb[56].mxu0 %v42434_v36 }
0x15ad   :  { %30584 = vmatprep.mubr.bf16.mxu0 %v39266_v1 }
0x15b4   :  { %30585 = vmatmul.mubr.bf16.gmra.mrb[60].mxu0 %v42435_v3 }
0x15b5   :  { %30588 = vmatprep.mubr.bf16.mxu0 %v42436_v45 }
0x15bc   :  { %30589 = vmatmul.mubr.bf16.gmra.mrb[64].mxu0 %v42437_v56 }
0x15bd   :  { %30592 = vmatprep.mubr.bf16.mxu0 %v42438_v40 }
0x15c4   :  { %30593 = vmatmul.mubr.bf16.gmra.mrb[68].mxu0 %v42439_v30 }
0x15c5   :  { %30596 = vmatprep.mubr.bf16.mxu0 %v42440_v6 }
0x15cc   :  { %30597 = vmatmul.mubr.bf16.gmra.mrb[72].mxu0 %v39308_v43 }
0x15cd   :  { %30600 = vmatprep.mubr.bf16.mxu0 %v42434_v36 }
0x15d4   :  { %30601 = vmatmul.mubr.bf16.gmra.mrb[76].mxu0 %v42434_v36 }
0x15d5   :  { %30604 = vmatprep.mubr.bf16.mxu0 %v42441_v17 }
0x15dc   :  { %30605 = vmatmul.mubr.bf16.gmra.mrb[80].mxu0 %v42442_v38 }
0x15dd   :  { %30608 = vmatprep.mubr.bf16.mxu0 %v42443_v21 }
0x15e4   :  { %30609 = vmatmul.mubr.bf16.gmra.mrb[84].mxu0 %v42444_v31 }
0x15e5   :  { %30612 = vmatprep.mubr.bf16.mxu0 %v42445_v18 }
0x15ec   :  { %30613 = vmatmul.mubr.bf16.gmra.mrb[88].mxu0 %v39344_v47 }
0x15ed   :  { %30616 = vmatprep.mubr.bf16.mxu0 %v39350_v55 }
0x15f4   :  { %30617 = vmatmul.mubr.bf16.gmra.mrb[92].mxu0 %v39356_v62 }
0x15f5   :  { %30620 = vmatprep.mubr.bf16.mxu0 %v42434_v36 }
0x15fc   :  { %30621 = vmatmul.mubr.bf16.gmra.mrb[96].mxu0 %v42434_v36 }
0x15fd   :  { %30624 = vmatprep.mubr.bf16.mxu0 %v42446_v50 }
0x1604   :  { %30625 = vmatmul.mubr.bf16.gmra.mrb[100].mxu0 %v39369_v63 }
0x1605   :  { %30628 = vmatprep.mubr.bf16.mxu0 %v42447_v37 }
0x160c   :  { %30629 = vmatmul.mubr.bf16.gmra.mrb[104].mxu0 %v42448_v59 }
0x160d   :  { %30632 = vmatprep.mubr.bf16.mxu0 %v42449_v51 }
0x1614   :  { %30633 = vmatmul.mubr.bf16.gmra.mrb[108].mxu0 %v42450_v10 }
0x1615   :  { %30636 = vmatprep.mubr.bf16.mxu0 %v39400_v58 }
0x161c   :  { %30637 = vmatmul.mubr.bf16.gmra.mrb[112].mxu0 %v39406_v23 }
0x161d   :  { %30640 = vmatprep.mubr.bf16.mxu0 %v42434_v36 }
0x1624   :  { %30641 = vmatmul.mubr.bf16.gmra.mrb[116].mxu0 %v42434_v36 }
0x1625   :  { %30644 = vmatprep.mubr.bf16.mxu0 %v39412_v24 }
0x162c   :  { %30645 = vmatmul.mubr.bf16.gmra.mrb[120].mxu0 %v39418_v11 }
0x162d   :  { %30648 = vmatprep.mubr.bf16.mxu0 %v39424_v20 }
0x1634   :  { %30649 = vmatmul.mubr.bf16.gmra.mrb[124].mxu0 %v39430_v27 }
0x1635   :  { %30652 = vmatprep.mubr.bf16.mxu0 %v39436_v0 }
0x163c   :  { %30653 = vmatmul.mubr.bf16.gmra.mrb[128].mxu0 %v42459_v26 }
0x163d   :  { %30656 = vmatprep.mubr.bf16.mxu0 %v39448_v22  ;;  %v42462_v22 = vld [vmem:[#allocation84_spill] sm:$0xff] }
0x1644   :  { %30657 = vmatmul.mubr.bf16.gmra.mrb[132].mxu0 %v42460_v28 }
0x1645   :  { %30660 = vmatprep.mubr.bf16.mxu0 %v42434_v36 }
0x164c   :  { %30661 = vmatmul.mubr.bf16.gmra.mrb[136].mxu0 %v42434_v36 }
0x164d   :  { %30664 = vmatprep.mubr.bf16.mxu0 %v39460_v2  ;;  %v34094_v2 = vld [vmem:[%s41064_s6 + $0x188] sm:$0xff]  }
0x1654   :  { %30665 = vmatmul.mubr.bf16.gmra.mrb[140].mxu0 %v39466_v42 }
0x1655   :  { %30668 = vmatprep.mubr.bf16.mxu0 %v39472_v41 }
0x165c   :  { %30669 = vmatmul.mubr.bf16.gmra.mrb[144].mxu0 %v42455_v35 }
0x165d   :  { %30672 = vmatprep.mubr.bf16.mxu0 %v42461_v13 }
0x1664   :  { %30673 = vmatmul.mubr.bf16.gmra.mrb[148].mxu0 %v42457_v39  ;;  %v34095_v39 = vld [vmem:[%s41064_s6 + $0x190] sm:$0xff]  }
0x1665   :  { %30676 = vmatprep.mubr.bf16.mxu0 %v42458_v15 }
0x166c   :  { %30677 = vmatmul.mubr.bf16.gmra.mrb[152].mxu0 %v42462_v22 }
0x166d   :  { %30696 = vmatprep.mubr.bf16.mxu0 %v42452_v53  ;;  %v34096_v53 = vld [vmem:[%s41064_s6 + $0x198] sm:$0xff]  }
0x1674   :  { %30697 = vmatmul.mubr.bf16.vlgmr.msra.gmra.mrb[0].mxu0 %v42453_v16  ;;  %v42464_v16 = vld [vmem:[#allocation80_spill] sm:$0xff] }
0x1675   :  { %30853 = vmatpush3.bf16.msra.mxu0 %v34093_v57  ;;  %30700 = vmatprep.mubr.bf16.mxu0 %v42454_v9  ;;  %v42463_v9 = vld [vmem:[#allocation75_spill] sm:$0xff]  ;;  %v34102_v57 = vld [vmem:[%s41064_s6 + $0x1c8] sm:$0xff]  }
0x1676   :  { %30854 = vmatprep.subr.bf16.mxu0 %v34094_v2 }
0x1679   :  { %30855 = vmatpush3.bf16.msra.mxu0 %v34094_v2  ;;  %v34097_v2 = vld [vmem:[%s41064_s6 + $0x1a0] sm:$0xff]  }
0x167a   :  { %30856 = vmatprep.subr.bf16.mxu0 %v34095_v39 }
0x167c   :  { %30701 = vmatmul.mubr.bf16.gmra.mrb[4].mxu0 %v39144_v34  ;;  %v34098_v34 = vld [vmem:[%s41064_s6 + $0x1a8] sm:$0xff]  }
0x167d   :  { %30704 = vmatprep.mubr.bf16.mxu0 %v39150_v8  ;;  %30857 = vmatpush3.bf16.msra.mxu0 %v34095_v39  ;;  %v34099_v8 = vld [vmem:[%s41064_s6 + $0x1b0] sm:$0xff]   ;;  %v42465_v39 = vld [vmem:[#allocation81_spill] sm:$0xff] }
0x167e   :  { %30858 = vmatprep.subr.bf16.mxu0 %v34096_v53 }
0x1681   :  { %30859 = vmatpush3.bf16.msra.mxu0 %v34096_v53  ;;  %v34103_v53 = vld [vmem:[%s41064_s6 + $0x1d0] sm:$0xff]  }
0x1682   :  { %30860 = vmatprep.subr.bf16.mxu0 %v34097_v2 }
0x1684   :  { %30705 = vmatmul.mubr.bf16.gmra.mrb[8].mxu0 %v39156_v60  ;;  %v34100_v60 = vld [vmem:[%s41064_s6 + $0x1b8] sm:$0xff]  }
0x1685   :  { %30708 = vmatprep.mubr.bf16.mxu0 %v39162_v4  ;;  %30861 = vmatpush3.bf16.msra.mxu0 %v34097_v2  ;;  %v34101_v4 = vld [vmem:[%s41064_s6 + $0x1c0] sm:$0xff]   ;;  %v34104_v2 = vld [vmem:[%s41064_s6 + $0x1d8] sm:$0xff]  }
0x1686   :  { %30862 = vmatprep.subr.bf16.mxu0 %v34098_v34 }
0x1689   :  { %30863 = vmatpush3.bf16.msra.mxu0 %v34098_v34  ;;  %v34105_v34 = vld [vmem:[%s41064_s6 + $0x1e0] sm:$0xff]  }
0x168a   :  { %30864 = vmatprep.subr.bf16.mxu0 %v34099_v8 }
0x168c   :  { %30709 = vmatmul.mubr.bf16.gmra.mrb[12].mxu0 %v42434_v36 }
0x168d   :  { %30712 = vmatprep.mubr.bf16.mxu0 %v42434_v36  ;;  %30865 = vmatpush3.bf16.msra.mxu0 %v34099_v8  ;;  %v34106_v8 = vld [vmem:[%s41064_s6 + $0x1e8] sm:$0xff]  }
0x168e   :  { %30866 = vmatprep.subr.bf16.mxu0 %v34100_v60 }
0x1691   :  { %30867 = vmatpush3.bf16.msra.mxu0 %v34100_v60  ;;  %v34107_v60 = vld [vmem:[%s41064_s6 + $0x1f0] sm:$0xff]  }
0x1692   :  { %31024 = vmatprep.subr.bf16.mxu0 %v34101_v4 }
0x1694   :  { %30713 = vmatmul.mubr.bf16.gmra.mrb[16].mxu0 %v39168_v14 }
0x1695   :  { %30716 = vmatprep.mubr.bf16.mxu0 %v39175_v5 }
0x169c   :  { %30717 = vmatmul.mubr.bf16.gmra.mrb[20].mxu0 %v39181_v52 }
0x169d   :  { %30720 = vmatprep.mubr.bf16.mxu0 %v39187_v25 }
0x16a4   :  { %30721 = vmatmul.mubr.bf16.gmra.mrb[24].mxu0 %v39193_v61 }
0x16a5   :  { %30724 = vmatprep.mubr.bf16.mxu0 %v39200_v19 }
0x16ac   :  { %30725 = vmatmul.mubr.bf16.gmra.mrb[28].mxu0 %v39206_v32 }
0x16ad   :  { %30728 = vmatprep.mubr.bf16.mxu0 %v39212_v49 }
0x16b4   :  { %30729 = vmatmul.mubr.bf16.gmra.mrb[32].mxu0 %v42434_v36 }
0x16b5   :  { %30732 = vmatprep.mubr.bf16.mxu0 %v42434_v36 }
0x16bc   :  { %30733 = vmatmul.mubr.bf16.gmra.mrb[36].mxu0 %v39218_v46 }
0x16bd   :  { %30736 = vmatprep.mubr.bf16.mxu0 %v39224_v44 }
0x16c4   :  { %30737 = vmatmul.mubr.bf16.gmra.mrb[40].mxu0 %v39230_v54 }
0x16c5   :  { %30740 = vmatprep.mubr.bf16.mxu0 %v39236_v33 }
0x16cc   :  { %30741 = vmatmul.mubr.bf16.gmra.mrb[44].mxu0 %v39242_v29 }
0x16cd   :  { %30744 = vmatprep.mubr.bf16.mxu0 %v39248_v48 }
0x16d4   :  { %30745 = vmatmul.mubr.bf16.gmra.mrb[48].mxu0 %v39254_v7 }
0x16d5   :  { %30748 = vmatprep.mubr.bf16.mxu0 %v39260_v12 }
0x16dc   :  { %30749 = vmatmul.mubr.bf16.gmra.mrb[52].mxu0 %v42434_v36 }
0x16dd   :  { %30752 = vmatprep.mubr.bf16.mxu0 %v42434_v36 }
0x16e4   :  { %30753 = vmatmul.mubr.bf16.gmra.mrb[56].mxu0 %v39266_v1 }
0x16e5   :  { %30756 = vmatprep.mubr.bf16.mxu0 %v42435_v3 }
0x16ec   :  { %30757 = vmatmul.mubr.bf16.gmra.mrb[60].mxu0 %v42436_v45 }
0x16ed   :  { %30760 = vmatprep.mubr.bf16.mxu0 %v42437_v56 }
0x16f4   :  { %30761 = vmatmul.mubr.bf16.gmra.mrb[64].mxu0 %v42438_v40 }
0x16f5   :  { %30764 = vmatprep.mubr.bf16.mxu0 %v42439_v30 }
0x16fc   :  { %30765 = vmatmul.mubr.bf16.gmra.mrb[68].mxu0 %v42440_v6 }
0x16fd   :  { %30768 = vmatprep.mubr.bf16.mxu0 %v39308_v43 }
0x1704   :  { %30769 = vmatmul.mubr.bf16.gmra.mrb[72].mxu0 %v42434_v36 }
0x1705   :  { %30772 = vmatprep.mubr.bf16.mxu0 %v42434_v36 }
0x170c   :  { %30773 = vmatmul.mubr.bf16.gmra.mrb[76].mxu0 %v42441_v17 }
0x170d   :  { %30776 = vmatprep.mubr.bf16.mxu0 %v42442_v38 }
0x1714   :  { %30777 = vmatmul.mubr.bf16.gmra.mrb[80].mxu0 %v42443_v21 }
0x1715   :  { %30780 = vmatprep.mubr.bf16.mxu0 %v42444_v31 }
0x171c   :  { %30781 = vmatmul.mubr.bf16.gmra.mrb[84].mxu0 %v42445_v18 }
0x171d   :  { %30784 = vmatprep.mubr.bf16.mxu0 %v39344_v47 }
0x1724   :  { %30785 = vmatmul.mubr.bf16.gmra.mrb[88].mxu0 %v39350_v55 }
0x1725   :  { %30788 = vmatprep.mubr.bf16.mxu0 %v39356_v62 }
0x172c   :  { %30789 = vmatmul.mubr.bf16.gmra.mrb[92].mxu0 %v42434_v36 }
0x172d   :  { %30792 = vmatprep.mubr.bf16.mxu0 %v42434_v36 }
0x1734   :  { %30793 = vmatmul.mubr.bf16.gmra.mrb[96].mxu0 %v42446_v50 }
0x1735   :  { %30796 = vmatprep.mubr.bf16.mxu0 %v39369_v63 }
0x173c   :  { %30797 = vmatmul.mubr.bf16.gmra.mrb[100].mxu0 %v42447_v37 }
0x173d   :  { %30800 = vmatprep.mubr.bf16.mxu0 %v42448_v59 }
0x1744   :  { %30801 = vmatmul.mubr.bf16.gmra.mrb[104].mxu0 %v42449_v51 }
0x1745   :  { %30804 = vmatprep.mubr.bf16.mxu0 %v42450_v10 }
0x174c   :  { %30805 = vmatmul.mubr.bf16.gmra.mrb[108].mxu0 %v39400_v58 }
0x174d   :  { %30808 = vmatprep.mubr.bf16.mxu0 %v39406_v23 }
0x1754   :  { %30809 = vmatmul.mubr.bf16.gmra.mrb[112].mxu0 %v42434_v36 }
0x1755   :  { %30812 = vmatprep.mubr.bf16.mxu0 %v42434_v36 }
0x175c   :  { %30813 = vmatmul.mubr.bf16.gmra.mrb[116].mxu0 %v39412_v24 }
0x175d   :  { %30816 = vmatprep.mubr.bf16.mxu0 %v39418_v11 }
0x1764   :  { %30817 = vmatmul.mubr.bf16.gmra.mrb[120].mxu0 %v39424_v20 }
0x1765   :  { %30820 = vmatprep.mubr.bf16.mxu0 %v39430_v27 }
0x176c   :  { %30821 = vmatmul.mubr.bf16.gmra.mrb[124].mxu0 %v39436_v0 }
0x176d   :  { %30824 = vmatprep.mubr.bf16.mxu0 %v42459_v26 }
0x1774   :  { %30825 = vmatmul.mubr.bf16.gmra.mrb[128].mxu0 %v42463_v9 }
0x1775   :  { %30828 = vmatprep.mubr.bf16.mxu0 %v42460_v28 }
0x177c   :  { %30829 = vmatmul.mubr.bf16.gmra.mrb[132].mxu0 %v42434_v36 }
0x177d   :  { %30832 = vmatprep.mubr.bf16.mxu0 %v42434_v36 }
0x1784   :  { %30833 = vmatmul.mubr.bf16.gmra.mrb[136].mxu0 %v42464_v16 }
0x1785   :  { %30836 = vmatprep.mubr.bf16.mxu0 %v39466_v42 }
0x178c   :  { %30837 = vmatmul.mubr.bf16.gmra.mrb[140].mxu0 %v39472_v41 }
0x178d   :  { %30840 = vmatprep.mubr.bf16.mxu0 %v42455_v35 }
0x1794   :  { %30841 = vmatmul.mubr.bf16.gmra.mrb[144].mxu0 %v42461_v13 }
0x1795   :  { %30844 = vmatprep.mubr.bf16.mxu0 %v42465_v39 }
0x179c   :  { %30845 = vmatmul.mubr.bf16.gmra.mrb[148].mxu0 %v42458_v15 }
0x179d   :  { %30848 = vmatprep.mubr.bf16.mxu0 %v42462_v22 }
0x17a4   :  { %30849 = vmatmul.mubr.bf16.gmra.mrb[152].mxu0 %v42434_v36 }
0x17a5   :  { %30868 = vmatprep.mubr.bf16.mxu0 %v42434_v36 }
0x17ac   :  { %30869 = vmatmul.mubr.bf16.vlgmr.msra.gmra.mrb[0].mxu0 %v39168_v14 }
0x17ad   :  { %31025 = vmatpush3.bf16.msra.mxu0 %v34101_v4  ;;  %30872 = vmatprep.mubr.bf16.mxu0 %v39175_v5  ;;  %v34108_v4 = vld [vmem:[%s41064_s6 + $0x1f8] sm:$0xff]  }
0x17ae   :  { %31026 = vmatprep.subr.bf16.mxu0 %v34102_v57 }
0x17b1   :  { %31027 = vmatpush3.bf16.msra.mxu0 %v34102_v57  ;;  %v34109_v57 = vld [vmem:[%s41064_s6 + $0x200] sm:$0xff]  }
0x17b2   :  { %31028 = vmatprep.subr.bf16.mxu0 %v34103_v53 }
0x17b4   :  { %30873 = vmatmul.mubr.bf16.gmra.mrb[4].mxu0 %v39181_v52 }
0x17b5   :  { %30876 = vmatprep.mubr.bf16.mxu0 %v39187_v25  ;;  %31029 = vmatpush3.bf16.msra.mxu0 %v34103_v53  ;;  %v34110_v53 = vld [vmem:[%s41064_s6 + $0x208] sm:$0xff]  }
0x17b6   :  { %31030 = vmatprep.subr.bf16.mxu0 %v34104_v2 }
0x17b9   :  { %31031 = vmatpush3.bf16.msra.mxu0 %v34104_v2  ;;  %v34111_v2 = vld [vmem:[%s41064_s6 + $0x210] sm:$0xff]  }
0x17ba   :  { %31032 = vmatprep.subr.bf16.mxu0 %v34105_v34 }
0x17bc   :  { %30877 = vmatmul.mubr.bf16.gmra.mrb[8].mxu0 %v39193_v61 }
0x17bd   :  { %30880 = vmatprep.mubr.bf16.mxu0 %v39200_v19  ;;  %31033 = vmatpush3.bf16.msra.mxu0 %v34105_v34  ;;  %v34113_v34 = vld [vmem:[%s41064_s6 + $0x220] sm:$0xff]  }
0x17be   :  { %31034 = vmatprep.subr.bf16.mxu0 %v34106_v8 }
0x17c1   :  { %31035 = vmatpush3.bf16.msra.mxu0 %v34106_v8  ;;  %v34114_v8 = vld [vmem:[%s41064_s6 + $0x228] sm:$0xff]  }
0x17c2   :  { %31036 = vmatprep.subr.bf16.mxu0 %v34107_v60 }
0x17c4   :  { %30881 = vmatmul.mubr.bf16.gmra.mrb[12].mxu0 %v39206_v32 }
0x17c5   :  { %30884 = vmatprep.mubr.bf16.mxu0 %v39212_v49  ;;  %31037 = vmatpush3.bf16.msra.mxu0 %v34107_v60  ;;  %v34115_v60 = vld [vmem:[%s41064_s6 + $0x230] sm:$0xff]  }
0x17c6   :  { %31038 = vmatprep.subr.bf16.mxu0 %v34108_v4 }
0x17c9   :  { %31039 = vmatpush3.bf16.msra.mxu0 %v34108_v4  ;;  %v34116_v4 = vld [vmem:[%s41064_s6 + $0x238] sm:$0xff]  }
0x17ca   :  { %31196 = vmatprep.subr.bf16.mxu0 %v34109_v57 }
0x17cc   :  { %30885 = vmatmul.mubr.bf16.gmra.mrb[16].mxu0 %v42434_v36 }
0x17cd   :  { %30888 = vmatprep.mubr.bf16.mxu0 %v42434_v36 }
0x17d4   :  { %30889 = vmatmul.mubr.bf16.gmra.mrb[20].mxu0 %v39218_v46 }
0x17d5   :  { %30892 = vmatprep.mubr.bf16.mxu0 %v39224_v44 }
0x17dc   :  { %30893 = vmatmul.mubr.bf16.gmra.mrb[24].mxu0 %v39230_v54 }
0x17dd   :  { %30896 = vmatprep.mubr.bf16.mxu0 %v39236_v33 }
0x17e4   :  { %30897 = vmatmul.mubr.bf16.gmra.mrb[28].mxu0 %v39242_v29 }
0x17e5   :  { %30900 = vmatprep.mubr.bf16.mxu0 %v39248_v48 }
0x17ec   :  { %30901 = vmatmul.mubr.bf16.gmra.mrb[32].mxu0 %v39254_v7 }
0x17ed   :  { %30904 = vmatprep.mubr.bf16.mxu0 %v39260_v12 }
0x17f4   :  { %30905 = vmatmul.mubr.bf16.gmra.mrb[36].mxu0 %v42434_v36 }
0x17f5   :  { %30908 = vmatprep.mubr.bf16.mxu0 %v42434_v36 }
0x17fc   :  { %30909 = vmatmul.mubr.bf16.gmra.mrb[40].mxu0 %v39266_v1 }
0x17fd   :  { %30912 = vmatprep.mubr.bf16.mxu0 %v42435_v3 }
0x1804   :  { %30913 = vmatmul.mubr.bf16.gmra.mrb[44].mxu0 %v42436_v45 }
0x1805   :  { %30916 = vmatprep.mubr.bf16.mxu0 %v42437_v56 }
0x180c   :  { %30917 = vmatmul.mubr.bf16.gmra.mrb[48].mxu0 %v42438_v40 }
0x180d   :  { %30920 = vmatprep.mubr.bf16.mxu0 %v42439_v30 }
0x1814   :  { %30921 = vmatmul.mubr.bf16.gmra.mrb[52].mxu0 %v42440_v6 }
0x1815   :  { %30924 = vmatprep.mubr.bf16.mxu0 %v39308_v43 }
0x181c   :  { %30925 = vmatmul.mubr.bf16.gmra.mrb[56].mxu0 %v42434_v36 }
0x181d   :  { %30928 = vmatprep.mubr.bf16.mxu0 %v42434_v36 }
0x1824   :  { %30929 = vmatmul.mubr.bf16.gmra.mrb[60].mxu0 %v42441_v17 }
0x1825   :  { %30932 = vmatprep.mubr.bf16.mxu0 %v42442_v38 }
0x182c   :  { %30933 = vmatmul.mubr.bf16.gmra.mrb[64].mxu0 %v42443_v21 }
0x182d   :  { %30936 = vmatprep.mubr.bf16.mxu0 %v42444_v31 }
0x1834   :  { %30937 = vmatmul.mubr.bf16.gmra.mrb[68].mxu0 %v42445_v18 }
0x1835   :  { %30940 = vmatprep.mubr.bf16.mxu0 %v39344_v47 }
0x183c   :  { %30941 = vmatmul.mubr.bf16.gmra.mrb[72].mxu0 %v39350_v55 }
0x183d   :  { %30944 = vmatprep.mubr.bf16.mxu0 %v39356_v62 }
0x1844   :  { %30945 = vmatmul.mubr.bf16.gmra.mrb[76].mxu0 %v42434_v36 }
0x1845   :  { %30948 = vmatprep.mubr.bf16.mxu0 %v42434_v36 }
0x184c   :  { %30949 = vmatmul.mubr.bf16.gmra.mrb[80].mxu0 %v42446_v50 }
0x184d   :  { %30952 = vmatprep.mubr.bf16.mxu0 %v39369_v63 }
0x1854   :  { %30953 = vmatmul.mubr.bf16.gmra.mrb[84].mxu0 %v42447_v37 }
0x1855   :  { %30956 = vmatprep.mubr.bf16.mxu0 %v42448_v59 }
0x185c   :  { %30957 = vmatmul.mubr.bf16.gmra.mrb[88].mxu0 %v42449_v51 }
0x185d   :  { %30960 = vmatprep.mubr.bf16.mxu0 %v42450_v10 }
0x1864   :  { %30961 = vmatmul.mubr.bf16.gmra.mrb[92].mxu0 %v39400_v58 }
0x1865   :  { %30964 = vmatprep.mubr.bf16.mxu0 %v39406_v23 }
0x186c   :  { %30965 = vmatmul.mubr.bf16.gmra.mrb[96].mxu0 %v42434_v36 }
0x186d   :  { %30968 = vmatprep.mubr.bf16.mxu0 %v42434_v36 }
0x1874   :  { %30969 = vmatmul.mubr.bf16.gmra.mrb[100].mxu0 %v39412_v24 }
0x1875   :  { %30972 = vmatprep.mubr.bf16.mxu0 %v39418_v11 }
0x187c   :  { %30973 = vmatmul.mubr.bf16.gmra.mrb[104].mxu0 %v39424_v20 }
0x187d   :  { %30976 = vmatprep.mubr.bf16.mxu0 %v39430_v27 }
0x1884   :  { %30977 = vmatmul.mubr.bf16.gmra.mrb[108].mxu0 %v39436_v0 }
0x1885   :  { %30980 = vmatprep.mubr.bf16.mxu0 %v42459_v26 }
0x188c   :  { %30981 = vmatmul.mubr.bf16.gmra.mrb[112].mxu0 %v42463_v9 }
0x188d   :  { %30984 = vmatprep.mubr.bf16.mxu0 %v42460_v28 }
0x1894   :  { %30985 = vmatmul.mubr.bf16.gmra.mrb[116].mxu0 %v42434_v36 }
0x1895   :  { %30988 = vmatprep.mubr.bf16.mxu0 %v42434_v36 }
0x189c   :  { %30989 = vmatmul.mubr.bf16.gmra.mrb[120].mxu0 %v42464_v16 }
0x189d   :  { %30992 = vmatprep.mubr.bf16.mxu0 %v39466_v42 }
0x18a4   :  { %30993 = vmatmul.mubr.bf16.gmra.mrb[124].mxu0 %v39472_v41 }
0x18a5   :  { %30996 = vmatprep.mubr.bf16.mxu0 %v42455_v35 }
0x18ac   :  { %30997 = vmatmul.mubr.bf16.gmra.mrb[128].mxu0 %v42461_v13 }
0x18ad   :  { %31000 = vmatprep.mubr.bf16.mxu0 %v42465_v39 }
0x18b4   :  { %31001 = vmatmul.mubr.bf16.gmra.mrb[132].mxu0 %v42458_v15 }
0x18b5   :  { %31004 = vmatprep.mubr.bf16.mxu0 %v42462_v22 }
0x18bc   :  { %31005 = vmatmul.mubr.bf16.gmra.mrb[136].mxu0 %v42434_v36 }
0x18bd   :  { %31008 = vmatprep.mubr.bf16.mxu0 %v42434_v36 }
0x18c4   :  { %31009 = vmatmul.mubr.bf16.gmra.mrb[140].mxu0 %v42434_v36 }
0x18c5   :  { %31012 = vmatprep.mubr.bf16.mxu0 %v42434_v36 }
0x18cc   :  { %31013 = vmatmul.mubr.bf16.gmra.mrb[144].mxu0 %v42434_v36 }
0x18cd   :  { %31016 = vmatprep.mubr.bf16.mxu0 %v42434_v36 }
0x18d4   :  { %31017 = vmatmul.mubr.bf16.gmra.mrb[148].mxu0 %v42434_v36 }
0x18d5   :  { %31020 = vmatprep.mubr.bf16.mxu0 %v42434_v36 }
0x18dc   :  { %31021 = vmatmul.mubr.bf16.gmra.mrb[152].mxu0 %v42434_v36 }
0x18dd   :  { %31040 = vmatprep.mubr.bf16.mxu0 %v39168_v14  ;;  %v34112_v14 = vld [vmem:[%s41064_s6 + $0x218] sm:$0xff]  }
0x18e4   :  { %31041 = vmatmul.mubr.bf16.vlgmr.msra.gmra.mrb[0].mxu0 %v39175_v5 }
0x18e5   :  { %31197 = vmatpush3.bf16.msra.mxu0 %v34109_v57  ;;  %31044 = vmatprep.mubr.bf16.mxu0 %v39181_v52 }
0x18e6   :  { %31198 = vmatprep.subr.bf16.mxu0 %v34110_v53 }
0x18e9   :  { %31199 = vmatpush3.bf16.msra.mxu0 %v34110_v53 }
0x18ea   :  { %31200 = vmatprep.subr.bf16.mxu0 %v34111_v2 }
0x18ec   :  { %31045 = vmatmul.mubr.bf16.gmra.mrb[4].mxu0 %v39187_v25 }
0x18ed   :  { %31048 = vmatprep.mubr.bf16.mxu0 %v39193_v61  ;;  %31201 = vmatpush3.bf16.msra.mxu0 %v34111_v2 }
0x18ee   :  { %31202 = vmatprep.subr.bf16.mxu0 %v34112_v14 }
0x18f1   :  { %31203 = vmatpush3.bf16.msra.mxu0 %v34112_v14 }
0x18f2   :  { %31204 = vmatprep.subr.bf16.mxu0 %v34113_v34 }
0x18f4   :  { %31049 = vmatmul.mubr.bf16.gmra.mrb[8].mxu0 %v39200_v19 }
0x18f5   :  { %31052 = vmatprep.mubr.bf16.mxu0 %v39206_v32  ;;  %31205 = vmatpush3.bf16.msra.mxu0 %v34113_v34 }
0x18f6   :  { %31206 = vmatprep.subr.bf16.mxu0 %v34114_v8 }
0x18f9   :  { %31207 = vmatpush3.bf16.msra.mxu0 %v34114_v8 }
0x18fa   :  { %31208 = vmatprep.subr.bf16.mxu0 %v34115_v60 }
0x18fc   :  { %31053 = vmatmul.mubr.bf16.gmra.mrb[12].mxu0 %v39212_v49 }
0x18fd   :  { %31056 = vmatprep.mubr.bf16.mxu0 %v42434_v36  ;;  %31209 = vmatpush3.bf16.msra.mxu0 %v34115_v60 }
0x18fe   :  { %31210 = vmatprep.subr.bf16.mxu0 %v34116_v4 }
0x1901   :  { %31211 = vmatpush3.bf16.msra.mxu0 %v34116_v4 }
0x1904   :  { %31057 = vmatmul.mubr.bf16.gmra.mrb[16].mxu0 %v42434_v36 }
0x1905   :  { %31060 = vmatprep.mubr.bf16.mxu0 %v39218_v46 }
0x190c   :  { %31061 = vmatmul.mubr.bf16.gmra.mrb[20].mxu0 %v39224_v44 }
0x190d   :  { %31064 = vmatprep.mubr.bf16.mxu0 %v39230_v54 }
0x1914   :  { %31065 = vmatmul.mubr.bf16.gmra.mrb[24].mxu0 %v39236_v33 }
0x1915   :  { %31068 = vmatprep.mubr.bf16.mxu0 %v39242_v29 }
0x191c   :  { %31069 = vmatmul.mubr.bf16.gmra.mrb[28].mxu0 %v39248_v48 }
0x191d   :  { %31072 = vmatprep.mubr.bf16.mxu0 %v39254_v7 }
0x1924   :  { %31073 = vmatmul.mubr.bf16.gmra.mrb[32].mxu0 %v39260_v12 }
0x1925   :  { %31076 = vmatprep.mubr.bf16.mxu0 %v42434_v36 }
0x192c   :  { %31077 = vmatmul.mubr.bf16.gmra.mrb[36].mxu0 %v42434_v36 }
0x192d   :  { %31080 = vmatprep.mubr.bf16.mxu0 %v39266_v1 }
0x1934   :  { %31081 = vmatmul.mubr.bf16.gmra.mrb[40].mxu0 %v42435_v3 }
0x1935   :  { %31084 = vmatprep.mubr.bf16.mxu0 %v42436_v45 }
0x193c   :  { %31085 = vmatmul.mubr.bf16.gmra.mrb[44].mxu0 %v42437_v56 }
0x193d   :  { %31088 = vmatprep.mubr.bf16.mxu0 %v42438_v40 }
0x1944   :  { %31089 = vmatmul.mubr.bf16.gmra.mrb[48].mxu0 %v42439_v30 }
0x1945   :  { %31092 = vmatprep.mubr.bf16.mxu0 %v42440_v6 }
0x194c   :  { %31093 = vmatmul.mubr.bf16.gmra.mrb[52].mxu0 %v39308_v43 }
0x194d   :  { %31096 = vmatprep.mubr.bf16.mxu0 %v42434_v36 }
0x1954   :  { %31097 = vmatmul.mubr.bf16.gmra.mrb[56].mxu0 %v42434_v36 }
0x1955   :  { %31100 = vmatprep.mubr.bf16.mxu0 %v42441_v17 }
0x195c   :  { %31101 = vmatmul.mubr.bf16.gmra.mrb[60].mxu0 %v42442_v38 }
0x195d   :  { %31104 = vmatprep.mubr.bf16.mxu0 %v42443_v21 }
0x1964   :  { %31105 = vmatmul.mubr.bf16.gmra.mrb[64].mxu0 %v42444_v31 }
0x1965   :  { %31108 = vmatprep.mubr.bf16.mxu0 %v42445_v18 }
0x196c   :  { %31109 = vmatmul.mubr.bf16.gmra.mrb[68].mxu0 %v39344_v47 }
0x196d   :  { %31112 = vmatprep.mubr.bf16.mxu0 %v39350_v55 }
0x1974   :  { %31113 = vmatmul.mubr.bf16.gmra.mrb[72].mxu0 %v39356_v62 }
0x1975   :  { %31116 = vmatprep.mubr.bf16.mxu0 %v42434_v36 }
0x197c   :  { %31117 = vmatmul.mubr.bf16.gmra.mrb[76].mxu0 %v42434_v36 }
0x197d   :  { %31120 = vmatprep.mubr.bf16.mxu0 %v42446_v50 }
0x1984   :  { %31121 = vmatmul.mubr.bf16.gmra.mrb[80].mxu0 %v39369_v63 }
0x1985   :  { %31124 = vmatprep.mubr.bf16.mxu0 %v42447_v37 }
0x198c   :  { %31125 = vmatmul.mubr.bf16.gmra.mrb[84].mxu0 %v42448_v59 }
0x198d   :  { %31128 = vmatprep.mubr.bf16.mxu0 %v42449_v51 }
0x1994   :  { %31129 = vmatmul.mubr.bf16.gmra.mrb[88].mxu0 %v42450_v10 }
0x1995   :  { %31132 = vmatprep.mubr.bf16.mxu0 %v39400_v58 }
0x199c   :  { %31133 = vmatmul.mubr.bf16.gmra.mrb[92].mxu0 %v39406_v23 }
0x199d   :  { %31136 = vmatprep.mubr.bf16.mxu0 %v42434_v36 }
0x19a4   :  { %31137 = vmatmul.mubr.bf16.gmra.mrb[96].mxu0 %v42434_v36 }
0x19a5   :  { %31140 = vmatprep.mubr.bf16.mxu0 %v39412_v24 }
0x19ac   :  { %31141 = vmatmul.mubr.bf16.gmra.mrb[100].mxu0 %v39418_v11 }
0x19ad   :  { %31144 = vmatprep.mubr.bf16.mxu0 %v39424_v20 }
0x19b4   :  { %31145 = vmatmul.mubr.bf16.gmra.mrb[104].mxu0 %v39430_v27 }
0x19b5   :  { %31148 = vmatprep.mubr.bf16.mxu0 %v39436_v0 }
0x19bc   :  { %31149 = vmatmul.mubr.bf16.gmra.mrb[108].mxu0 %v42459_v26 }
0x19bd   :  { %31152 = vmatprep.mubr.bf16.mxu0 %v42463_v9 }
0x19c4   :  { %31153 = vmatmul.mubr.bf16.gmra.mrb[112].mxu0 %v42460_v28 }
0x19c5   :  { %31156 = vmatprep.mubr.bf16.mxu0 %v42434_v36 }
0x19cc   :  { %31157 = vmatmul.mubr.bf16.gmra.mrb[116].mxu0 %v42434_v36 }
0x19cd   :  { %31160 = vmatprep.mubr.bf16.mxu0 %v42464_v16 }
0x19d4   :  { %31161 = vmatmul.mubr.bf16.gmra.mrb[120].mxu0 %v39466_v42 }
0x19d5   :  { %31164 = vmatprep.mubr.bf16.mxu0 %v39472_v41 }
0x19dc   :  { %31165 = vmatmul.mubr.bf16.gmra.mrb[124].mxu0 %v42455_v35 }
0x19dd   :  { %31168 = vmatprep.mubr.bf16.mxu0 %v42461_v13 }
0x19e4   :  { %31169 = vmatmul.mubr.bf16.gmra.mrb[128].mxu0 %v42465_v39 }
0x19e5   :  { %31172 = vmatprep.mubr.bf16.mxu0 %v42458_v15 }
0x19ec   :  { %31173 = vmatmul.mubr.bf16.gmra.mrb[132].mxu0 %v42462_v22 }
0x19ed   :  { %31176 = vmatprep.mubr.bf16.mxu0 %v42434_v36 }
0x19f4   :  { %31177 = vmatmul.mubr.bf16.gmra.mrb[136].mxu0 %v42434_v36 }
0x19f5   :  { %31180 = vmatprep.mubr.bf16.mxu0 %v42434_v36 }
0x19fc   :  { %31181 = vmatmul.mubr.bf16.gmra.mrb[140].mxu0 %v42434_v36 }
0x19fd   :  { %31184 = vmatprep.mubr.bf16.mxu0 %v42434_v36 }
0x1a04   :  { %31185 = vmatmul.mubr.bf16.gmra.mrb[144].mxu0 %v42434_v36 }
0x1a05   :  { %31188 = vmatprep.mubr.bf16.mxu0 %v42434_v36 }
0x1a0c   :  { %31189 = vmatmul.mubr.bf16.gmra.mrb[148].mxu0 %v42434_v36 }
0x1a0d   :  { %31192 = vmatprep.mubr.bf16.mxu0 %v42434_v36 }
0x1a14   :  { %31193 = vmatmul.mubr.bf16.gmra.mrb[152].mxu0 %v42434_v36 }
0x1a15   :  { %31212 = vmatprep.mubr.bf16.mxu0 %v39175_v5 }
0x1a1c   :  { %31213 = vmatmul.mubr.bf16.vlgmr.msra.gmra.mrb[0].mxu0 %v39181_v52 }
0x1a1d   :  { %31216 = vmatprep.mubr.bf16.mxu0 %v39187_v25 }
0x1a24   :  { %31217 = vmatmul.mubr.bf16.gmra.mrb[4].mxu0 %v39193_v61 }
0x1a25   :  { %31220 = vmatprep.mubr.bf16.mxu0 %v39200_v19 }
0x1a2c   :  { %31221 = vmatmul.mubr.bf16.gmra.mrb[8].mxu0 %v39206_v32 }
0x1a2d   :  { %31224 = vmatprep.mubr.bf16.mxu0 %v39212_v49 }
0x1a34   :  { %31225 = vmatmul.mubr.bf16.gmra.mrb[12].mxu0 %v42434_v36 }
0x1a35   :  { %31228 = vmatprep.mubr.bf16.mxu0 %v42434_v36 }
0x1a3c   :  { %31229 = vmatmul.mubr.bf16.gmra.mrb[16].mxu0 %v39218_v46 }
0x1a3d   :  { %31232 = vmatprep.mubr.bf16.mxu0 %v39224_v44 }
0x1a44   :  { %31233 = vmatmul.mubr.bf16.gmra.mrb[20].mxu0 %v39230_v54 }
0x1a45   :  { %31236 = vmatprep.mubr.bf16.mxu0 %v39236_v33 }
0x1a4c   :  { %31237 = vmatmul.mubr.bf16.gmra.mrb[24].mxu0 %v39242_v29 }
0x1a4d   :  { %31240 = vmatprep.mubr.bf16.mxu0 %v39248_v48 }
0x1a54   :  { %31241 = vmatmul.mubr.bf16.gmra.mrb[28].mxu0 %v39254_v7 }
0x1a55   :  { %31244 = vmatprep.mubr.bf16.mxu0 %v39260_v12 }
0x1a5c   :  { %31245 = vmatmul.mubr.bf16.gmra.mrb[32].mxu0 %v42434_v36 }
0x1a5d   :  { %31248 = vmatprep.mubr.bf16.mxu0 %v42434_v36 }
0x1a64   :  { %31249 = vmatmul.mubr.bf16.gmra.mrb[36].mxu0 %v39266_v1 }
0x1a65   :  { %31252 = vmatprep.mubr.bf16.mxu0 %v42435_v3 }
0x1a6c   :  { %31253 = vmatmul.mubr.bf16.gmra.mrb[40].mxu0 %v42436_v45 }
0x1a6d   :  { %31256 = vmatprep.mubr.bf16.mxu0 %v42437_v56 }
0x1a74   :  { %31257 = vmatmul.mubr.bf16.gmra.mrb[44].mxu0 %v42438_v40 }
0x1a75   :  { %31260 = vmatprep.mubr.bf16.mxu0 %v42439_v30 }
0x1a7c   :  { %31261 = vmatmul.mubr.bf16.gmra.mrb[48].mxu0 %v42440_v6 }
0x1a7d   :  { %31264 = vmatprep.mubr.bf16.mxu0 %v39308_v43 }
0x1a84   :  { %31265 = vmatmul.mubr.bf16.gmra.mrb[52].mxu0 %v42434_v36 }
0x1a85   :  { %31268 = vmatprep.mubr.bf16.mxu0 %v42434_v36 }
0x1a8c   :  { %31269 = vmatmul.mubr.bf16.gmra.mrb[56].mxu0 %v42441_v17 }
0x1a8d   :  { %31272 = vmatprep.mubr.bf16.mxu0 %v42442_v38 }
0x1a94   :  { %31273 = vmatmul.mubr.bf16.gmra.mrb[60].mxu0 %v42443_v21 }
0x1a95   :  { %31276 = vmatprep.mubr.bf16.mxu0 %v42444_v31 }
0x1a9c   :  { %31277 = vmatmul.mubr.bf16.gmra.mrb[64].mxu0 %v42445_v18 }
0x1a9d   :  { %31280 = vmatprep.mubr.bf16.mxu0 %v39344_v47 }
0x1aa4   :  { %31281 = vmatmul.mubr.bf16.gmra.mrb[68].mxu0 %v39350_v55 }
0x1aa5   :  { %31284 = vmatprep.mubr.bf16.mxu0 %v39356_v62 }
0x1aac   :  { %31285 = vmatmul.mubr.bf16.gmra.mrb[72].mxu0 %v42434_v36 }
0x1aad   :  { %31288 = vmatprep.mubr.bf16.mxu0 %v42434_v36 }
0x1ab4   :  { %31289 = vmatmul.mubr.bf16.gmra.mrb[76].mxu0 %v42446_v50 }
0x1ab5   :  { %31292 = vmatprep.mubr.bf16.mxu0 %v39369_v63 }
0x1abc   :  { %31293 = vmatmul.mubr.bf16.gmra.mrb[80].mxu0 %v42447_v37 }
0x1abd   :  { %31296 = vmatprep.mubr.bf16.mxu0 %v42448_v59 }
0x1ac4   :  { %31297 = vmatmul.mubr.bf16.gmra.mrb[84].mxu0 %v42449_v51 }
0x1ac5   :  { %31300 = vmatprep.mubr.bf16.mxu0 %v42450_v10 }
0x1acc   :  { %31301 = vmatmul.mubr.bf16.gmra.mrb[88].mxu0 %v39400_v58 }
0x1acd   :  { %31304 = vmatprep.mubr.bf16.mxu0 %v39406_v23 }
0x1ad4   :  { %31305 = vmatmul.mubr.bf16.gmra.mrb[92].mxu0 %v42434_v36 }
0x1ad5   :  { %31308 = vmatprep.mubr.bf16.mxu0 %v42434_v36 }
0x1adc   :  { %31309 = vmatmul.mubr.bf16.gmra.mrb[96].mxu0 %v39412_v24 }
0x1add   :  { %31312 = vmatprep.mubr.bf16.mxu0 %v39418_v11 }
0x1ae4   :  { %31313 = vmatmul.mubr.bf16.gmra.mrb[100].mxu0 %v39424_v20 }
0x1ae5   :  { %31316 = vmatprep.mubr.bf16.mxu0 %v39430_v27 }
0x1aec   :  { %31317 = vmatmul.mubr.bf16.gmra.mrb[104].mxu0 %v39436_v0 }
0x1aed   :  { %31320 = vmatprep.mubr.bf16.mxu0 %v42459_v26 }
0x1aef   :  { %v31214_v43 = vpop.f32.mrb[0].mxu0 }
0x1af0   :  { %26156 = vst [vmem:[%s41063_s8 + $0x10] sm:$0xff] %v31214_v43  ;;  %v25375_v5 = vpop.f32.mrb[1].mxu0 }
0x1af1   :  { %26154 = vst [vmem:[%s41063_s8] sm:$0xff] %v25375_v5  ;;  %v31215_v52 = vpop.f32.mrb[2].mxu0 }
0x1af2   :  { %26157 = vst [vmem:[%s41063_s8 + $0x18] sm:$0xff] %v31215_v52  ;;  %v25378_v25 = vpop.f32.mrb[3].mxu0 }
0x1af3   :  { %26155 = vst [vmem:[%s41063_s8 + $0x8] sm:$0xff] %v25378_v25 }
0x1af4   :  { %31321 = vmatmul.mubr.bf16.gmra.mrb[108].mxu0 %v42463_v9 }
0x1af5   :  { %31324 = vmatprep.mubr.bf16.mxu0 %v42460_v28 }
0x1af7   :  { %v31218_v61 = vpop.f32.mrb[4].mxu0 }
0x1af8   :  { %26160 = vst [vmem:[%s41063_s8 + $0x30] sm:$0xff] %v31218_v61  ;;  %v25391_v19 = vpop.f32.mrb[5].mxu0 }
0x1af9   :  { %26158 = vst [vmem:[%s41063_s8 + $0x20] sm:$0xff] %v25391_v19  ;;  %v31219_v32 = vpop.f32.mrb[6].mxu0 }
0x1afa   :  { %26161 = vst [vmem:[%s41063_s8 + $0x38] sm:$0xff] %v31219_v32  ;;  %v25394_v49 = vpop.f32.mrb[7].mxu0 }
0x1afb   :  { %26159 = vst [vmem:[%s41063_s8 + $0x28] sm:$0xff] %v25394_v49 }
0x1afc   :  { %31325 = vmatmul.mubr.bf16.gmra.mrb[112].mxu0 %v42434_v36 }
0x1afd   :  { %31328 = vmatprep.mubr.bf16.mxu0 %v42434_v36 }
0x1aff   :  { %v31222_v46 = vpop.f32.mrb[8].mxu0 }
0x1b00   :  { %26164 = vst [vmem:[%s41063_s8 + $0x50] sm:$0xff] %v31222_v46  ;;  %v25407_v44 = vpop.f32.mrb[9].mxu0 }
0x1b01   :  { %26162 = vst [vmem:[%s41063_s8 + $0x40] sm:$0xff] %v25407_v44  ;;  %v31223_v54 = vpop.f32.mrb[10].mxu0 }
0x1b02   :  { %26165 = vst [vmem:[%s41063_s8 + $0x58] sm:$0xff] %v31223_v54  ;;  %v25410_v33 = vpop.f32.mrb[11].mxu0 }
0x1b03   :  { %26163 = vst [vmem:[%s41063_s8 + $0x48] sm:$0xff] %v25410_v33 }
0x1b04   :  { %31329 = vmatmul.mubr.bf16.gmra.mrb[116].mxu0 %v42464_v16 }
0x1b05   :  { %31332 = vmatprep.mubr.bf16.mxu0 %v39466_v42 }
0x1b07   :  { %v31226_v29 = vpop.f32.mrb[12].mxu0 }
0x1b08   :  { %26168 = vst [vmem:[%s41063_s8 + $0x70] sm:$0xff] %v31226_v29  ;;  %v25423_v48 = vpop.f32.mrb[13].mxu0 }
0x1b09   :  { %26166 = vst [vmem:[%s41063_s8 + $0x60] sm:$0xff] %v25423_v48  ;;  %v31227_v7 = vpop.f32.mrb[14].mxu0 }
0x1b0a   :  { %26169 = vst [vmem:[%s41063_s8 + $0x78] sm:$0xff] %v31227_v7  ;;  %v25426_v12 = vpop.f32.mrb[15].mxu0 }
0x1b0b   :  { %26167 = vst [vmem:[%s41063_s8 + $0x68] sm:$0xff] %v25426_v12 }
0x1b0c   :  { %31333 = vmatmul.mubr.bf16.gmra.mrb[120].mxu0 %v39472_v41 }
0x1b0d   :  { %31336 = vmatprep.mubr.bf16.mxu0 %v42455_v35 }
0x1b0f   :  { %v31230_v1 = vpop.f32.mrb[16].mxu0 }
0x1b10   :  { %26172 = vst [vmem:[%s41063_s8 + $0x90] sm:$0xff] %v31230_v1  ;;  %v25439_v47 = vpop.f32.mrb[17].mxu0 }
0x1b11   :  { %26170 = vst [vmem:[%s41063_s8 + $0x80] sm:$0xff] %v25439_v47  ;;  %v31231_v55 = vpop.f32.mrb[18].mxu0  ;;  %v31385_v47 = vld [vmem:[%s41063_s8 + $0x290] sm:$0xff] }
0x1b12   :  { %26173 = vst [vmem:[%s41063_s8 + $0x98] sm:$0xff] %v31231_v55  ;;  %v25442_v62 = vpop.f32.mrb[19].mxu0 }
0x1b13   :  { %26171 = vst [vmem:[%s41063_s8 + $0x88] sm:$0xff] %v25442_v62 }
0x1b14   :  { %31337 = vmatmul.mubr.bf16.gmra.mrb[124].mxu0 %v42461_v13 }
0x1b15   :  { %31340 = vmatprep.mubr.bf16.mxu0 %v42465_v39 }
0x1b17   :  { %v31234_v63 = vpop.f32.mrb[20].mxu0 }
0x1b18   :  { %26176 = vst [vmem:[%s41063_s8 + $0xb0] sm:$0xff] %v31234_v63  ;;  %v25455_v24 = vpop.f32.mrb[21].mxu0  ;;  %v31388_v63 = vld [vmem:[%s41063_s8 + $0x280] sm:$0xff] }
0x1b19   :  { %26174 = vst [vmem:[%s41063_s8 + $0xa0] sm:$0xff] %v25455_v24  ;;  %v31235_v11 = vpop.f32.mrb[22].mxu0 }
0x1b1a   :  { %26177 = vst [vmem:[%s41063_s8 + $0xb8] sm:$0xff] %v31235_v11  ;;  %v25458_v58 = vpop.f32.mrb[23].mxu0 }
0x1b1b   :  { %26175 = vst [vmem:[%s41063_s8 + $0xa8] sm:$0xff] %v25458_v58  ;;  %v31391_v58 = vld [vmem:[%s41063_s8 + $0x298] sm:$0xff] }
0x1b1c   :  { %31341 = vmatmul.mubr.bf16.gmra.mrb[128].mxu0 %v42458_v15 }
0x1b1d   :  { %31344 = vmatprep.mubr.bf16.mxu0 %v42462_v22 }
0x1b1f   :  { %v31238_v23 = vpop.f32.mrb[24].mxu0 }
0x1b20   :  { %26180 = vst [vmem:[%s41063_s8 + $0xd0] sm:$0xff] %v31238_v23  ;;  %v25471_v20 = vpop.f32.mrb[25].mxu0 }
0x1b21   :  { %26178 = vst [vmem:[%s41063_s8 + $0xc0] sm:$0xff] %v25471_v20  ;;  %v31239_v27 = vpop.f32.mrb[26].mxu0 }
0x1b22   :  { %26181 = vst [vmem:[%s41063_s8 + $0xd8] sm:$0xff] %v31239_v27  ;;  %v25474_v0 = vpop.f32.mrb[27].mxu0  ;;  %v31394_v27 = vld [vmem:[%s41063_s8 + $0x288] sm:$0xff] }
0x1b23   :  { %26179 = vst [vmem:[%s41063_s8 + $0xc8] sm:$0xff] %v25474_v0 }
0x1b24   :  { %31345 = vmatmul.mubr.bf16.gmra.mrb[132].mxu0 %v42434_v36 }
0x1b25   :  { %31348 = vmatprep.mubr.bf16.mxu0 %v42434_v36 }
0x1b27   :  { %v31242_v15 = vpop.f32.mrb[28].mxu0 }
0x1b28   :  { %26184 = vst [vmem:[%s41063_s8 + $0xf0] sm:$0xff] %v31242_v15  ;;  %v25487_v22 = vpop.f32.mrb[29].mxu0 }
0x1b29   :  { %26182 = vst [vmem:[%s41063_s8 + $0xe0] sm:$0xff] %v25487_v22  ;;  %v31243_v42 = vpop.f32.mrb[30].mxu0  ;;  %v31397_v22 = vld [vmem:[%s41063_s8 + $0x2b0] sm:$0xff] }
0x1b2a   :  { %26185 = vst [vmem:[%s41063_s8 + $0xf8] sm:$0xff] %v31243_v42  ;;  %v25490_v41 = vpop.f32.mrb[31].mxu0 }
0x1b2b   :  { %26183 = vst [vmem:[%s41063_s8 + $0xe8] sm:$0xff] %v25490_v41 }
0x1b2c   :  { %31349 = vmatmul.mubr.bf16.gmra.mrb[136].mxu0 %v42434_v36 }
0x1b2d   :  { %31352 = vmatprep.mubr.bf16.mxu0 %v42434_v36 }
0x1b2f   :  { %v31246_v3 = vpop.f32.mrb[32].mxu0 }
0x1b30   :  { %26188 = vst [vmem:[%s41063_s8 + $0x110] sm:$0xff] %v31246_v3  ;;  %v25503_v45 = vpop.f32.mrb[33].mxu0  ;;  %v31400_v3 = vld [vmem:[%s41063_s8 + $0x2a0] sm:$0xff] }
0x1b31   :  { %26186 = vst [vmem:[%s41063_s8 + $0x100] sm:$0xff] %v25503_v45  ;;  %v31247_v56 = vpop.f32.mrb[34].mxu0 }
0x1b32   :  { %26189 = vst [vmem:[%s41063_s8 + $0x118] sm:$0xff] %v31247_v56  ;;  %v25506_v40 = vpop.f32.mrb[35].mxu0 }
0x1b33   :  { %26187 = vst [vmem:[%s41063_s8 + $0x108] sm:$0xff] %v25506_v40  ;;  %v31403_v40 = vld [vmem:[%s41063_s8 + $0x2b8] sm:$0xff] }
0x1b34   :  { %31353 = vmatmul.mubr.bf16.gmra.mrb[140].mxu0 %v42434_v36 }
0x1b35   :  { %31356 = vmatprep.mubr.bf16.mxu0 %v42434_v36 }
0x1b37   :  { %v31250_v30 = vpop.f32.mrb[36].mxu0 }
0x1b38   :  { %26192 = vst [vmem:[%s41063_s8 + $0x130] sm:$0xff] %v31250_v30  ;;  %v25519_v6 = vpop.f32.mrb[37].mxu0 }
0x1b39   :  { %26190 = vst [vmem:[%s41063_s8 + $0x120] sm:$0xff] %v25519_v6  ;;  %v31251_v17 = vpop.f32.mrb[38].mxu0 }
0x1b3a   :  { %26193 = vst [vmem:[%s41063_s8 + $0x138] sm:$0xff] %v31251_v17  ;;  %v25522_v38 = vpop.f32.mrb[39].mxu0  ;;  %v31406_v17 = vld [vmem:[%s41063_s8 + $0x2a8] sm:$0xff] }
0x1b3b   :  { %26191 = vst [vmem:[%s41063_s8 + $0x128] sm:$0xff] %v25522_v38 }
0x1b3c   :  { %31357 = vmatmul.mubr.bf16.gmra.mrb[144].mxu0 %v42434_v36 }
0x1b3d   :  { %31360 = vmatprep.mubr.bf16.mxu0 %v42434_v36 }
0x1b3f   :  { %v31254_v21 = vpop.f32.mrb[40].mxu0 }
0x1b40   :  { %26196 = vst [vmem:[%s41063_s8 + $0x150] sm:$0xff] %v31254_v21  ;;  %v25535_v31 = vpop.f32.mrb[41].mxu0 }
0x1b41   :  { %26194 = vst [vmem:[%s41063_s8 + $0x140] sm:$0xff] %v25535_v31  ;;  %v31255_v18 = vpop.f32.mrb[42].mxu0  ;;  %v31409_v31 = vld [vmem:[%s41063_s8 + $0x2d0] sm:$0xff] }
0x1b42   :  { %26197 = vst [vmem:[%s41063_s8 + $0x158] sm:$0xff] %v31255_v18  ;;  %v25538_v50 = vpop.f32.mrb[43].mxu0 }
0x1b43   :  { %26195 = vst [vmem:[%s41063_s8 + $0x148] sm:$0xff] %v25538_v50 }
0x1b44   :  { %31361 = vmatmul.mubr.bf16.gmra.mrb[148].mxu0 %v42434_v36 }
0x1b45   :  { %31364 = vmatprep.mubr.bf16.mxu0 %v42434_v36 }
0x1b47   :  { %v31258_v37 = vpop.f32.mrb[44].mxu0 }
0x1b48   :  { %26200 = vst [vmem:[%s41063_s8 + $0x170] sm:$0xff] %v31258_v37  ;;  %v25551_v59 = vpop.f32.mrb[45].mxu0  ;;  %v31412_v37 = vld [vmem:[%s41063_s8 + $0x2c0] sm:$0xff] }
0x1b49   :  { %26198 = vst [vmem:[%s41063_s8 + $0x160] sm:$0xff] %v25551_v59  ;;  %v31259_v51 = vpop.f32.mrb[46].mxu0 }
0x1b4a   :  { %26201 = vst [vmem:[%s41063_s8 + $0x178] sm:$0xff] %v31259_v51  ;;  %v25554_v10 = vpop.f32.mrb[47].mxu0 }
0x1b4b   :  { %26199 = vst [vmem:[%s41063_s8 + $0x168] sm:$0xff] %v25554_v10  ;;  %v31415_v10 = vld [vmem:[%s41063_s8 + $0x2d8] sm:$0xff] }
0x1b4c   :  { %31365 = vmatmul.mubr.bf16.gmra.mrb[152].mxu0 %v42434_v36 }
0x1b4f   :  { %v31262_v35 = vpop.f32.mrb[48].mxu0 }
0x1b50   :  { %26204 = vst [vmem:[%s41063_s8 + $0x190] sm:$0xff] %v31262_v35  ;;  %v25567_v26 = vpop.f32.mrb[49].mxu0 }
0x1b51   :  { %26202 = vst [vmem:[%s41063_s8 + $0x180] sm:$0xff] %v25567_v26  ;;  %v31263_v28 = vpop.f32.mrb[50].mxu0 }
0x1b52   :  { %26205 = vst [vmem:[%s41063_s8 + $0x198] sm:$0xff] %v31263_v28  ;;  %v25570_v13 = vpop.f32.mrb[51].mxu0  ;;  %v31418_v28 = vld [vmem:[%s41063_s8 + $0x2c8] sm:$0xff] }
0x1b53   :  { %26203 = vst [vmem:[%s41063_s8 + $0x188] sm:$0xff] %v25570_v13 }
0x1b57   :  { %v31266_v36 = vpop.f32.mrb[52].mxu0 }
0x1b58   :  { %26208 = vst [vmem:[%s41063_s8 + $0x1b0] sm:$0xff] %v31266_v36  ;;  %v25583_v9 = vpop.f32.mrb[53].mxu0 }
0x1b59   :  { %26206 = vst [vmem:[%s41063_s8 + $0x1a0] sm:$0xff] %v25583_v9  ;;  %v31267_v16 = vpop.f32.mrb[54].mxu0  ;;  %v31421_v9 = vld [vmem:[%s41063_s8 + $0x2f0] sm:$0xff] }
0x1b5a   :  { %26209 = vst [vmem:[%s41063_s8 + $0x1b8] sm:$0xff] %v31267_v16  ;;  %v25586_v39 = vpop.f32.mrb[55].mxu0 }
0x1b5b   :  { %26207 = vst [vmem:[%s41063_s8 + $0x1a8] sm:$0xff] %v25586_v39 }
0x1b5f   :  { %v31270_v57 = vpop.f32.mrb[56].mxu0 }
0x1b60   :  { %26212 = vst [vmem:[%s41063_s8 + $0x1d0] sm:$0xff] %v31270_v57  ;;  %v25599_v53 = vpop.f32.mrb[57].mxu0  ;;  %v31424_v57 = vld [vmem:[%s41063_s8 + $0x2e0] sm:$0xff] }
0x1b61   :  { %26210 = vst [vmem:[%s41063_s8 + $0x1c0] sm:$0xff] %v25599_v53  ;;  %v31271_v2 = vpop.f32.mrb[58].mxu0 }
0x1b62   :  { %26213 = vst [vmem:[%s41063_s8 + $0x1d8] sm:$0xff] %v31271_v2  ;;  %v25602_v14 = vpop.f32.mrb[59].mxu0 }
0x1b63   :  { %26211 = vst [vmem:[%s41063_s8 + $0x1c8] sm:$0xff] %v25602_v14  ;;  %v31427_v14 = vld [vmem:[%s41063_s8 + $0x2f8] sm:$0xff] }
0x1b67   :  { %v31274_v34 = vpop.f32.mrb[60].mxu0 }
0x1b68   :  { %26216 = vst [vmem:[%s41063_s8 + $0x1f0] sm:$0xff] %v31274_v34  ;;  %v25615_v8 = vpop.f32.mrb[61].mxu0 }
0x1b69   :  { %26214 = vst [vmem:[%s41063_s8 + $0x1e0] sm:$0xff] %v25615_v8  ;;  %v31275_v60 = vpop.f32.mrb[62].mxu0 }
0x1b6a   :  { %26217 = vst [vmem:[%s41063_s8 + $0x1f8] sm:$0xff] %v31275_v60  ;;  %v25618_v4 = vpop.f32.mrb[63].mxu0  ;;  %v31430_v60 = vld [vmem:[%s41063_s8 + $0x2e8] sm:$0xff] }
0x1b6b   :  { %26215 = vst [vmem:[%s41063_s8 + $0x1e8] sm:$0xff] %v25618_v4 }
0x1b6f   :  { %v31278_v43 = vpop.f32.mrb[64].mxu0 }
0x1b70   :  { %26220 = vst [vmem:[%s41063_s8 + $0x210] sm:$0xff] %v31278_v43  ;;  %v25631_v5 = vpop.f32.mrb[65].mxu0 }
0x1b71   :  { %26218 = vst [vmem:[%s41063_s8 + $0x200] sm:$0xff] %v25631_v5  ;;  %v31279_v52 = vpop.f32.mrb[66].mxu0  ;;  %v31433_v5 = vld [vmem:[%s41063_s8 + $0x310] sm:$0xff] }
0x1b72   :  { %26221 = vst [vmem:[%s41063_s8 + $0x218] sm:$0xff] %v31279_v52  ;;  %v25634_v25 = vpop.f32.mrb[67].mxu0 }
0x1b73   :  { %26219 = vst [vmem:[%s41063_s8 + $0x208] sm:$0xff] %v25634_v25 }
0x1b77   :  { %v31282_v61 = vpop.f32.mrb[68].mxu0 }
0x1b78   :  { %26224 = vst [vmem:[%s41063_s8 + $0x230] sm:$0xff] %v31282_v61  ;;  %v25647_v19 = vpop.f32.mrb[69].mxu0  ;;  %v31436_v61 = vld [vmem:[%s41063_s8 + $0x300] sm:$0xff] }
0x1b79   :  { %26222 = vst [vmem:[%s41063_s8 + $0x220] sm:$0xff] %v25647_v19  ;;  %v31283_v32 = vpop.f32.mrb[70].mxu0 }
0x1b7a   :  { %26225 = vst [vmem:[%s41063_s8 + $0x238] sm:$0xff] %v31283_v32  ;;  %v25650_v49 = vpop.f32.mrb[71].mxu0 }
0x1b7b   :  { %26223 = vst [vmem:[%s41063_s8 + $0x228] sm:$0xff] %v25650_v49  ;;  %v31439_v49 = vld [vmem:[%s41063_s8 + $0x318] sm:$0xff] }
0x1b7f   :  { %v31286_v46 = vpop.f32.mrb[72].mxu0 }
0x1b80   :  { %26228 = vst [vmem:[%s41063_s8 + $0x250] sm:$0xff] %v31286_v46  ;;  %v25663_v44 = vpop.f32.mrb[73].mxu0 }
0x1b81   :  { %26226 = vst [vmem:[%s41063_s8 + $0x240] sm:$0xff] %v25663_v44  ;;  %v31287_v54 = vpop.f32.mrb[74].mxu0 }
0x1b82   :  { %26229 = vst [vmem:[%s41063_s8 + $0x258] sm:$0xff] %v31287_v54  ;;  %v25666_v33 = vpop.f32.mrb[75].mxu0  ;;  %v31442_v54 = vld [vmem:[%s41063_s8 + $0x308] sm:$0xff] }
0x1b83   :  { %26227 = vst [vmem:[%s41063_s8 + $0x248] sm:$0xff] %v25666_v33 }
0x1b87   :  { %v31290_v29 = vpop.f32.mrb[76].mxu0 }
0x1b88   :  { %26232 = vst [vmem:[%s41063_s8 + $0x270] sm:$0xff] %v31290_v29  ;;  %v25679_v48 = vpop.f32.mrb[77].mxu0 }
0x1b89   :  { %26230 = vst [vmem:[%s41063_s8 + $0x260] sm:$0xff] %v25679_v48  ;;  %v31291_v7 = vpop.f32.mrb[78].mxu0  ;;  %v31445_v48 = vld [vmem:[%s41063_s8 + $0x330] sm:$0xff] }
0x1b8a   :  { %26233 = vst [vmem:[%s41063_s8 + $0x278] sm:$0xff] %v31291_v7  ;;  %v25682_v12 = vpop.f32.mrb[79].mxu0 }
0x1b8b   :  { %26231 = vst [vmem:[%s41063_s8 + $0x268] sm:$0xff] %v25682_v12 }
0x1b8f   :  { %v31294_v1 = vpop.f32.mrb[80].mxu0 }
0x1b90   :  { %v31386_v55 = vadd.f32 %v31385_v47, %v31294_v1  ;;  %v25695_v62 = vpop.f32.mrb[81].mxu0  ;;  %v31448_v1 = vld [vmem:[%s41063_s8 + $0x320] sm:$0xff] }
0x1b91   :  { %v31389_v24 = vadd.f32 %v31388_v63, %v25695_v62  ;;  %v31295_v11 = vpop.f32.mrb[82].mxu0  ;;  %v31451_v62 = vld [vmem:[%s41063_s8 + $0x338] sm:$0xff] }
0x1b92   :  { %26236 = vst [vmem:[%s41063_s8 + $0x290] sm:$0xff] %v31386_v55  ;;  %v31392_v23 = vadd.f32 %v31391_v58, %v31295_v11  ;;  %v25698_v20 = vpop.f32.mrb[83].mxu0  ;;  %v31454_v11 = vld [vmem:[%s41063_s8 + $0x328] sm:$0xff] }
0x1b93   :  { %26234 = vst [vmem:[%s41063_s8 + $0x280] sm:$0xff] %v31389_v24  ;;  %v31395_v0 = vadd.f32 %v31394_v27, %v25698_v20  ;;  %v31457_v20 = vld [vmem:[%s41063_s8 + $0x350] sm:$0xff] }
0x1b94   :  { %26237 = vst [vmem:[%s41063_s8 + $0x298] sm:$0xff] %v31392_v23 }
0x1b95   :  { %26235 = vst [vmem:[%s41063_s8 + $0x288] sm:$0xff] %v31395_v0 }
0x1b97   :  { %v31298_v15 = vpop.f32.mrb[84].mxu0 }
0x1b98   :  { %v31398_v42 = vadd.f32 %v31397_v22, %v31298_v15  ;;  %v25711_v41 = vpop.f32.mrb[85].mxu0  ;;  %v31460_v15 = vld [vmem:[%s41063_s8 + $0x340] sm:$0xff] }
0x1b99   :  { %v31401_v45 = vadd.f32 %v31400_v3, %v25711_v41  ;;  %v31299_v56 = vpop.f32.mrb[86].mxu0  ;;  %v31463_v41 = vld [vmem:[%s41063_s8 + $0x358] sm:$0xff] }
0x1b9a   :  { %26240 = vst [vmem:[%s41063_s8 + $0x2b0] sm:$0xff] %v31398_v42  ;;  %v31404_v30 = vadd.f32 %v31403_v40, %v31299_v56  ;;  %v25714_v6 = vpop.f32.mrb[87].mxu0  ;;  %v31466_v56 = vld [vmem:[%s41063_s8 + $0x348] sm:$0xff] }
0x1b9b   :  { %26238 = vst [vmem:[%s41063_s8 + $0x2a0] sm:$0xff] %v31401_v45  ;;  %v31407_v38 = vadd.f32 %v31406_v17, %v25714_v6  ;;  %v31469_v6 = vld [vmem:[%s41063_s8 + $0x370] sm:$0xff] }
0x1b9c   :  { %26241 = vst [vmem:[%s41063_s8 + $0x2b8] sm:$0xff] %v31404_v30 }
0x1b9d   :  { %26239 = vst [vmem:[%s41063_s8 + $0x2a8] sm:$0xff] %v31407_v38 }
0x1b9f   :  { %v31302_v21 = vpop.f32.mrb[88].mxu0 }
0x1ba0   :  { %v31410_v18 = vadd.f32 %v31409_v31, %v31302_v21  ;;  %v25727_v50 = vpop.f32.mrb[89].mxu0  ;;  %v31472_v21 = vld [vmem:[%s41063_s8 + $0x360] sm:$0xff] }
0x1ba1   :  { %v31413_v59 = vadd.f32 %v31412_v37, %v25727_v50  ;;  %v31303_v51 = vpop.f32.mrb[90].mxu0  ;;  %v31475_v50 = vld [vmem:[%s41063_s8 + $0x378] sm:$0xff] }
0x1ba2   :  { %26244 = vst [vmem:[%s41063_s8 + $0x2d0] sm:$0xff] %v31410_v18  ;;  %v31416_v35 = vadd.f32 %v31415_v10, %v31303_v51  ;;  %v25730_v26 = vpop.f32.mrb[91].mxu0  ;;  %v31478_v51 = vld [vmem:[%s41063_s8 + $0x368] sm:$0xff] }
0x1ba3   :  { %26242 = vst [vmem:[%s41063_s8 + $0x2c0] sm:$0xff] %v31413_v59  ;;  %v31419_v13 = vadd.f32 %v31418_v28, %v25730_v26  ;;  %v31481_v26 = vld [vmem:[%s41063_s8 + $0x390] sm:$0xff] }
0x1ba4   :  { %26245 = vst [vmem:[%s41063_s8 + $0x2d8] sm:$0xff] %v31416_v35 }
0x1ba5   :  { %26243 = vst [vmem:[%s41063_s8 + $0x2c8] sm:$0xff] %v31419_v13 }
0x1ba7   :  { %v31306_v36 = vpop.f32.mrb[92].mxu0 }
0x1ba8   :  { %v31422_v16 = vadd.f32 %v31421_v9, %v31306_v36  ;;  %v25743_v39 = vpop.f32.mrb[93].mxu0  ;;  %v31484_v36 = vld [vmem:[%s41063_s8 + $0x380] sm:$0xff] }
0x1ba9   :  { %v31425_v53 = vadd.f32 %v31424_v57, %v25743_v39  ;;  %v31307_v2 = vpop.f32.mrb[94].mxu0  ;;  %v31487_v39 = vld [vmem:[%s41063_s8 + $0x398] sm:$0xff] }
0x1baa   :  { %26248 = vst [vmem:[%s41063_s8 + $0x2f0] sm:$0xff] %v31422_v16  ;;  %v31428_v34 = vadd.f32 %v31427_v14, %v31307_v2  ;;  %v25746_v8 = vpop.f32.mrb[95].mxu0  ;;  %v31490_v2 = vld [vmem:[%s41063_s8 + $0x388] sm:$0xff] }
0x1bab   :  { %26246 = vst [vmem:[%s41063_s8 + $0x2e0] sm:$0xff] %v31425_v53  ;;  %v31431_v4 = vadd.f32 %v31430_v60, %v25746_v8  ;;  %v31493_v8 = vld [vmem:[%s41063_s8 + $0x3b0] sm:$0xff] }
0x1bac   :  { %26249 = vst [vmem:[%s41063_s8 + $0x2f8] sm:$0xff] %v31428_v34 }
0x1bad   :  { %26247 = vst [vmem:[%s41063_s8 + $0x2e8] sm:$0xff] %v31431_v4 }
0x1baf   :  { %v31310_v43 = vpop.f32.mrb[96].mxu0 }
0x1bb0   :  { %v31434_v52 = vadd.f32 %v31433_v5, %v31310_v43  ;;  %v25759_v25 = vpop.f32.mrb[97].mxu0  ;;  %v31496_v43 = vld [vmem:[%s41063_s8 + $0x3a0] sm:$0xff] }
0x1bb1   :  { %v31437_v19 = vadd.f32 %v31436_v61, %v25759_v25  ;;  %v31311_v32 = vpop.f32.mrb[98].mxu0  ;;  %v31499_v25 = vld [vmem:[%s41063_s8 + $0x3b8] sm:$0xff] }
0x1bb2   :  { %26252 = vst [vmem:[%s41063_s8 + $0x310] sm:$0xff] %v31434_v52  ;;  %v31440_v46 = vadd.f32 %v31439_v49, %v31311_v32  ;;  %v25762_v44 = vpop.f32.mrb[99].mxu0  ;;  %v31502_v32 = vld [vmem:[%s41063_s8 + $0x3a8] sm:$0xff] }
0x1bb3   :  { %26250 = vst [vmem:[%s41063_s8 + $0x300] sm:$0xff] %v31437_v19  ;;  %v31443_v33 = vadd.f32 %v31442_v54, %v25762_v44  ;;  %v31505_v44 = vld [vmem:[%s41063_s8 + $0x3d0] sm:$0xff] }
0x1bb4   :  { %26253 = vst [vmem:[%s41063_s8 + $0x318] sm:$0xff] %v31440_v46 }
0x1bb5   :  { %26251 = vst [vmem:[%s41063_s8 + $0x308] sm:$0xff] %v31443_v33 }
0x1bb7   :  { %v31314_v29 = vpop.f32.mrb[100].mxu0 }
0x1bb8   :  { %v31446_v7 = vadd.f32 %v31445_v48, %v31314_v29  ;;  %v25775_v12 = vpop.f32.mrb[101].mxu0  ;;  %v31508_v29 = vld [vmem:[%s41063_s8 + $0x3c0] sm:$0xff] }
0x1bb9   :  { %v31449_v47 = vadd.f32 %v31448_v1, %v25775_v12  ;;  %v31315_v55 = vpop.f32.mrb[102].mxu0  ;;  %v31511_v12 = vld [vmem:[%s41063_s8 + $0x3d8] sm:$0xff] }
0x1bba   :  { %26256 = vst [vmem:[%s41063_s8 + $0x330] sm:$0xff] %v31446_v7  ;;  %v31452_v63 = vadd.f32 %v31451_v62, %v31315_v55  ;;  %v25778_v24 = vpop.f32.mrb[103].mxu0  ;;  %v31514_v55 = vld [vmem:[%s41063_s8 + $0x3c8] sm:$0xff] }
0x1bbb   :  { %26254 = vst [vmem:[%s41063_s8 + $0x320] sm:$0xff] %v31449_v47  ;;  %v31455_v58 = vadd.f32 %v31454_v11, %v25778_v24  ;;  %v31517_v24 = vld [vmem:[%s41063_s8 + $0x3f0] sm:$0xff] }
0x1bbc   :  { %26257 = vst [vmem:[%s41063_s8 + $0x338] sm:$0xff] %v31452_v63 }
0x1bbd   :  { %26255 = vst [vmem:[%s41063_s8 + $0x328] sm:$0xff] %v31455_v58 }
0x1bbf   :  { %v31318_v23 = vpop.f32.mrb[104].mxu0 }
0x1bc0   :  { %v31458_v27 = vadd.f32 %v31457_v20, %v31318_v23  ;;  %v25791_v0 = vpop.f32.mrb[105].mxu0  ;;  %v31520_v23 = vld [vmem:[%s41063_s8 + $0x3e0] sm:$0xff] }
0x1bc1   :  { %v31461_v22 = vadd.f32 %v31460_v15, %v25791_v0  ;;  %v31319_v42 = vpop.f32.mrb[106].mxu0  ;;  %v31523_v0 = vld [vmem:[%s41063_s8 + $0x3f8] sm:$0xff] }
0x1bc2   :  { %26260 = vst [vmem:[%s41063_s8 + $0x350] sm:$0xff] %v31458_v27  ;;  %v31464_v3 = vadd.f32 %v31463_v41, %v31319_v42  ;;  %v25794_v45 = vpop.f32.mrb[107].mxu0  ;;  %v31526_v42 = vld [vmem:[%s41063_s8 + $0x3e8] sm:$0xff] }
0x1bc3   :  { %26258 = vst [vmem:[%s41063_s8 + $0x340] sm:$0xff] %v31461_v22  ;;  %v31467_v40 = vadd.f32 %v31466_v56, %v25794_v45  ;;  %v31529_v45 = vld [vmem:[%s41063_s8 + $0x410] sm:$0xff] }
0x1bc4   :  { %26261 = vst [vmem:[%s41063_s8 + $0x358] sm:$0xff] %v31464_v3 }
0x1bc5   :  { %26259 = vst [vmem:[%s41063_s8 + $0x348] sm:$0xff] %v31467_v40 }
0x1bc7   :  { %v31322_v30 = vpop.f32.mrb[108].mxu0 }
0x1bc8   :  { %v31470_v17 = vadd.f32 %v31469_v6, %v31322_v30  ;;  %v25807_v38 = vpop.f32.mrb[109].mxu0  ;;  %v31532_v30 = vld [vmem:[%s41063_s8 + $0x400] sm:$0xff] }
0x1bc9   :  { %v31473_v31 = vadd.f32 %v31472_v21, %v25807_v38  ;;  %v31323_v18 = vpop.f32.mrb[110].mxu0  ;;  %v31535_v38 = vld [vmem:[%s41063_s8 + $0x418] sm:$0xff] }
0x1bca   :  { %26264 = vst [vmem:[%s41063_s8 + $0x370] sm:$0xff] %v31470_v17  ;;  %v31476_v37 = vadd.f32 %v31475_v50, %v31323_v18  ;;  %v25810_v59 = vpop.f32.mrb[111].mxu0  ;;  %v31538_v18 = vld [vmem:[%s41063_s8 + $0x408] sm:$0xff] }
0x1bcb   :  { %26262 = vst [vmem:[%s41063_s8 + $0x360] sm:$0xff] %v31473_v31  ;;  %v31479_v10 = vadd.f32 %v31478_v51, %v25810_v59  ;;  %v31541_v59 = vld [vmem:[%s41063_s8 + $0x430] sm:$0xff] }
0x1bcc   :  { %26265 = vst [vmem:[%s41063_s8 + $0x378] sm:$0xff] %v31476_v37 }
0x1bcd   :  { %26263 = vst [vmem:[%s41063_s8 + $0x368] sm:$0xff] %v31479_v10 }
0x1bcf   :  { %v31326_v35 = vpop.f32.mrb[112].mxu0 }
0x1bd0   :  { %v31482_v28 = vadd.f32 %v31481_v26, %v31326_v35  ;;  %v25823_v13 = vpop.f32.mrb[113].mxu0  ;;  %v31544_v35 = vld [vmem:[%s41063_s8 + $0x420] sm:$0xff] }
0x1bd1   :  { %v31485_v9 = vadd.f32 %v31484_v36, %v25823_v13  ;;  %v31327_v16 = vpop.f32.mrb[114].mxu0  ;;  %v31547_v13 = vld [vmem:[%s41063_s8 + $0x438] sm:$0xff] }
0x1bd2   :  { %26268 = vst [vmem:[%s41063_s8 + $0x390] sm:$0xff] %v31482_v28  ;;  %v31488_v57 = vadd.f32 %v31487_v39, %v31327_v16  ;;  %v25826_v53 = vpop.f32.mrb[115].mxu0  ;;  %v31550_v16 = vld [vmem:[%s41063_s8 + $0x428] sm:$0xff] }
0x1bd3   :  { %26266 = vst [vmem:[%s41063_s8 + $0x380] sm:$0xff] %v31485_v9  ;;  %v31491_v14 = vadd.f32 %v31490_v2, %v25826_v53  ;;  %v31553_v53 = vld [vmem:[%s41063_s8 + $0x450] sm:$0xff] }
0x1bd4   :  { %26269 = vst [vmem:[%s41063_s8 + $0x398] sm:$0xff] %v31488_v57 }
0x1bd5   :  { %26267 = vst [vmem:[%s41063_s8 + $0x388] sm:$0xff] %v31491_v14 }
0x1bd7   :  { %v31330_v34 = vpop.f32.mrb[116].mxu0 }
0x1bd8   :  { %v31494_v60 = vadd.f32 %v31493_v8, %v31330_v34  ;;  %v25839_v4 = vpop.f32.mrb[117].mxu0  ;;  %v31556_v34 = vld [vmem:[%s41063_s8 + $0x440] sm:$0xff] }
0x1bd9   :  { %v31497_v5 = vadd.f32 %v31496_v43, %v25839_v4  ;;  %v31331_v52 = vpop.f32.mrb[118].mxu0  ;;  %v31559_v4 = vld [vmem:[%s41063_s8 + $0x458] sm:$0xff] }
0x1bda   :  { %26272 = vst [vmem:[%s41063_s8 + $0x3b0] sm:$0xff] %v31494_v60  ;;  %v31500_v61 = vadd.f32 %v31499_v25, %v31331_v52  ;;  %v25842_v19 = vpop.f32.mrb[119].mxu0  ;;  %v31562_v52 = vld [vmem:[%s41063_s8 + $0x448] sm:$0xff] }
0x1bdb   :  { %26270 = vst [vmem:[%s41063_s8 + $0x3a0] sm:$0xff] %v31497_v5  ;;  %v31503_v49 = vadd.f32 %v31502_v32, %v25842_v19  ;;  %v31565_v19 = vld [vmem:[%s41063_s8 + $0x470] sm:$0xff] }
0x1bdc   :  { %26273 = vst [vmem:[%s41063_s8 + $0x3b8] sm:$0xff] %v31500_v61 }
0x1bdd   :  { %26271 = vst [vmem:[%s41063_s8 + $0x3a8] sm:$0xff] %v31503_v49 }
0x1bdf   :  { %v31334_v46 = vpop.f32.mrb[120].mxu0 }
0x1be0   :  { %v31506_v54 = vadd.f32 %v31505_v44, %v31334_v46  ;;  %v25855_v33 = vpop.f32.mrb[121].mxu0  ;;  %v31568_v46 = vld [vmem:[%s41063_s8 + $0x460] sm:$0xff] }
0x1be1   :  { %v31509_v48 = vadd.f32 %v31508_v29, %v25855_v33  ;;  %v31335_v7 = vpop.f32.mrb[122].mxu0  ;;  %v31571_v33 = vld [vmem:[%s41063_s8 + $0x478] sm:$0xff] }
0x1be2   :  { %26276 = vst [vmem:[%s41063_s8 + $0x3d0] sm:$0xff] %v31506_v54  ;;  %v31512_v1 = vadd.f32 %v31511_v12, %v31335_v7  ;;  %v25858_v47 = vpop.f32.mrb[123].mxu0  ;;  %v31574_v7 = vld [vmem:[%s41063_s8 + $0x468] sm:$0xff] }
0x1be3   :  { %26274 = vst [vmem:[%s41063_s8 + $0x3c0] sm:$0xff] %v31509_v48  ;;  %v31515_v62 = vadd.f32 %v31514_v55, %v25858_v47  ;;  %v31577_v47 = vld [vmem:[%s41063_s8 + $0x490] sm:$0xff] }
0x1be4   :  { %26277 = vst [vmem:[%s41063_s8 + $0x3d8] sm:$0xff] %v31512_v1 }
0x1be5   :  { %26275 = vst [vmem:[%s41063_s8 + $0x3c8] sm:$0xff] %v31515_v62 }
0x1be7   :  { %v31338_v63 = vpop.f32.mrb[124].mxu0 }
0x1be8   :  { %v31518_v11 = vadd.f32 %v31517_v24, %v31338_v63  ;;  %v25871_v58 = vpop.f32.mrb[125].mxu0  ;;  %v31580_v63 = vld [vmem:[%s41063_s8 + $0x480] sm:$0xff] }
0x1be9   :  { %v31521_v20 = vadd.f32 %v31520_v23, %v25871_v58  ;;  %v31339_v27 = vpop.f32.mrb[126].mxu0  ;;  %v31583_v58 = vld [vmem:[%s41063_s8 + $0x498] sm:$0xff] }
0x1bea   :  { %26280 = vst [vmem:[%s41063_s8 + $0x3f0] sm:$0xff] %v31518_v11  ;;  %v31524_v15 = vadd.f32 %v31523_v0, %v31339_v27  ;;  %v25874_v22 = vpop.f32.mrb[127].mxu0  ;;  %v31586_v27 = vld [vmem:[%s41063_s8 + $0x488] sm:$0xff] }
0x1beb   :  { %26278 = vst [vmem:[%s41063_s8 + $0x3e0] sm:$0xff] %v31521_v20  ;;  %v31527_v41 = vadd.f32 %v31526_v42, %v25874_v22  ;;  %v31589_v22 = vld [vmem:[%s41063_s8 + $0x4b0] sm:$0xff] }
0x1bec   :  { %26281 = vst [vmem:[%s41063_s8 + $0x3f8] sm:$0xff] %v31524_v15 }
0x1bed   :  { %26279 = vst [vmem:[%s41063_s8 + $0x3e8] sm:$0xff] %v31527_v41 }
0x1bef   :  { %v31342_v3 = vpop.f32.mrb[128].mxu0 }
0x1bf0   :  { %v31530_v56 = vadd.f32 %v31529_v45, %v31342_v3  ;;  %v25887_v40 = vpop.f32.mrb[129].mxu0  ;;  %v31592_v3 = vld [vmem:[%s41063_s8 + $0x4a0] sm:$0xff] }
0x1bf1   :  { %v31533_v6 = vadd.f32 %v31532_v30, %v25887_v40  ;;  %v31343_v17 = vpop.f32.mrb[130].mxu0  ;;  %v31595_v40 = vld [vmem:[%s41063_s8 + $0x4b8] sm:$0xff] }
0x1bf2   :  { %26284 = vst [vmem:[%s41063_s8 + $0x410] sm:$0xff] %v31530_v56  ;;  %v31536_v21 = vadd.f32 %v31535_v38, %v31343_v17  ;;  %v25890_v31 = vpop.f32.mrb[131].mxu0  ;;  %v31598_v17 = vld [vmem:[%s41063_s8 + $0x4a8] sm:$0xff] }
0x1bf3   :  { %26282 = vst [vmem:[%s41063_s8 + $0x400] sm:$0xff] %v31533_v6  ;;  %v31539_v50 = vadd.f32 %v31538_v18, %v25890_v31  ;;  %v31601_v31 = vld [vmem:[%s41063_s8 + $0x4d0] sm:$0xff] }
0x1bf4   :  { %26285 = vst [vmem:[%s41063_s8 + $0x418] sm:$0xff] %v31536_v21 }
0x1bf5   :  { %26283 = vst [vmem:[%s41063_s8 + $0x408] sm:$0xff] %v31539_v50 }
0x1bf7   :  { %v31346_v37 = vpop.f32.mrb[132].mxu0 }
0x1bf8   :  { %v31542_v51 = vadd.f32 %v31541_v59, %v31346_v37  ;;  %v25903_v10 = vpop.f32.mrb[133].mxu0  ;;  %v31604_v37 = vld [vmem:[%s41063_s8 + $0x4c0] sm:$0xff] }
0x1bf9   :  { %v31545_v26 = vadd.f32 %v31544_v35, %v25903_v10  ;;  %v31347_v28 = vpop.f32.mrb[134].mxu0  ;;  %v31607_v10 = vld [vmem:[%s41063_s8 + $0x4d8] sm:$0xff] }
0x1bfa   :  { %26288 = vst [vmem:[%s41063_s8 + $0x430] sm:$0xff] %v31542_v51  ;;  %v31548_v36 = vadd.f32 %v31547_v13, %v31347_v28  ;;  %v25906_v9 = vpop.f32.mrb[135].mxu0  ;;  %v31610_v28 = vld [vmem:[%s41063_s8 + $0x4c8] sm:$0xff] }
0x1bfb   :  { %26286 = vst [vmem:[%s41063_s8 + $0x420] sm:$0xff] %v31545_v26  ;;  %v31551_v39 = vadd.f32 %v31550_v16, %v25906_v9 }
0x1bfc   :  { %26289 = vst [vmem:[%s41063_s8 + $0x438] sm:$0xff] %v31548_v36 }
0x1bfd   :  { %26287 = vst [vmem:[%s41063_s8 + $0x428] sm:$0xff] %v31551_v39 }
0x1bff   :  { %v31350_v57 = vpop.f32.mrb[136].mxu0 }
0x1c00   :  { %v31554_v2 = vadd.f32 %v31553_v53, %v31350_v57  ;;  %v25919_v14 = vpop.f32.mrb[137].mxu0 }
0x1c01   :  { %v31557_v8 = vadd.f32 %v31556_v34, %v25919_v14  ;;  %v31351_v60 = vpop.f32.mrb[138].mxu0 }
0x1c02   :  { %26292 = vst [vmem:[%s41063_s8 + $0x450] sm:$0xff] %v31554_v2  ;;  %v31560_v43 = vadd.f32 %v31559_v4, %v31351_v60  ;;  %v25922_v5 = vpop.f32.mrb[139].mxu0 }
0x1c03   :  { %26290 = vst [vmem:[%s41063_s8 + $0x440] sm:$0xff] %v31557_v8  ;;  %v31563_v25 = vadd.f32 %v31562_v52, %v25922_v5 }
0x1c04   :  { %26293 = vst [vmem:[%s41063_s8 + $0x458] sm:$0xff] %v31560_v43 }
0x1c05   :  { %26291 = vst [vmem:[%s41063_s8 + $0x448] sm:$0xff] %v31563_v25 }
0x1c07   :  { %v31354_v61 = vpop.f32.mrb[140].mxu0 }
0x1c08   :  { %v31566_v32 = vadd.f32 %v31565_v19, %v31354_v61  ;;  %v25935_v49 = vpop.f32.mrb[141].mxu0 }
0x1c09   :  { %v31569_v44 = vadd.f32 %v31568_v46, %v25935_v49  ;;  %v31355_v54 = vpop.f32.mrb[142].mxu0 }
0x1c0a   :  { %26296 = vst [vmem:[%s41063_s8 + $0x470] sm:$0xff] %v31566_v32  ;;  %v31572_v29 = vadd.f32 %v31571_v33, %v31355_v54  ;;  %v25938_v48 = vpop.f32.mrb[143].mxu0 }
0x1c0b   :  { %26294 = vst [vmem:[%s41063_s8 + $0x460] sm:$0xff] %v31569_v44  ;;  %v31575_v12 = vadd.f32 %v31574_v7, %v25938_v48 }
0x1c0c   :  { %26297 = vst [vmem:[%s41063_s8 + $0x478] sm:$0xff] %v31572_v29 }
0x1c0d   :  { %26295 = vst [vmem:[%s41063_s8 + $0x468] sm:$0xff] %v31575_v12 }
0x1c0f   :  { %v31358_v1 = vpop.f32.mrb[144].mxu0 }
0x1c10   :  { %v31578_v55 = vadd.f32 %v31577_v47, %v31358_v1  ;;  %v25951_v62 = vpop.f32.mrb[145].mxu0 }
0x1c11   :  { %v31581_v24 = vadd.f32 %v31580_v63, %v25951_v62  ;;  %v31359_v11 = vpop.f32.mrb[146].mxu0 }
0x1c12   :  { %26300 = vst [vmem:[%s41063_s8 + $0x490] sm:$0xff] %v31578_v55  ;;  %v31584_v23 = vadd.f32 %v31583_v58, %v31359_v11  ;;  %v25954_v20 = vpop.f32.mrb[147].mxu0 }
0x1c13   :  { %26298 = vst [vmem:[%s41063_s8 + $0x480] sm:$0xff] %v31581_v24  ;;  %v31587_v0 = vadd.f32 %v31586_v27, %v25954_v20 }
0x1c14   :  { %26301 = vst [vmem:[%s41063_s8 + $0x498] sm:$0xff] %v31584_v23 }
0x1c15   :  { %26299 = vst [vmem:[%s41063_s8 + $0x488] sm:$0xff] %v31587_v0 }
0x1c17   :  { %v31362_v15 = vpop.f32.mrb[148].mxu0 }
0x1c18   :  { %v31590_v42 = vadd.f32 %v31589_v22, %v31362_v15  ;;  %v25967_v41 = vpop.f32.mrb[149].mxu0 }
0x1c19   :  { %v31593_v45 = vadd.f32 %v31592_v3, %v25967_v41  ;;  %v31363_v56 = vpop.f32.mrb[150].mxu0 }
0x1c1a   :  { %26304 = vst [vmem:[%s41063_s8 + $0x4b0] sm:$0xff] %v31590_v42  ;;  %v31596_v30 = vadd.f32 %v31595_v40, %v31363_v56  ;;  %v25970_v6 = vpop.f32.mrb[151].mxu0 }
0x1c1b   :  { %26302 = vst [vmem:[%s41063_s8 + $0x4a0] sm:$0xff] %v31593_v45  ;;  %v31599_v38 = vadd.f32 %v31598_v17, %v25970_v6 }
0x1c1c   :  { %26305 = vst [vmem:[%s41063_s8 + $0x4b8] sm:$0xff] %v31596_v30 }
0x1c1d   :  { %26303 = vst [vmem:[%s41063_s8 + $0x4a8] sm:$0xff] %v31599_v38 }
0x1c1f   :  { %v31366_v21 = vpop.f32.mrb[152].mxu0 }
0x1c20   :  { %v31602_v18 = vadd.f32 %v31601_v31, %v31366_v21  ;;  %v25983_v50 = vpop.f32.mrb[153].mxu0 }
0x1c21   :  { %v31605_v59 = vadd.f32 %v31604_v37, %v25983_v50  ;;  %v31367_v51 = vpop.f32.mrb[154].mxu0 }
0x1c22   :  { %26308 = vst [vmem:[%s41063_s8 + $0x4d0] sm:$0xff] %v31602_v18  ;;  %v31608_v35 = vadd.f32 %v31607_v10, %v31367_v51  ;;  %v25986_v26 = vpop.f32.mrb[155].mxu0 }
0x1c23   :  { %26306 = vst [vmem:[%s41063_s8 + $0x4c0] sm:$0xff] %v31605_v59  ;;  %v31611_v13 = vadd.f32 %v31610_v28, %v25986_v26 }
0x1c24   :  { %26309 = vst [vmem:[%s41063_s8 + $0x4d8] sm:$0xff] %v31608_v35 }
0x1c25   :  { %26307 = vst [vmem:[%s41063_s8 + $0x4c8] sm:$0xff] %v31611_v13 }

</bundles_post_ra>
